<compile_context>
chip_gen: v5e
topology: v5e:2x2
jax: 0.10.0
libtpu: 0.0.40
codegen_flags: <defaults>
</compile_context>

<pallas_src>
import functools

import jax
import jax.numpy as jnp
from jax import lax
from jax.experimental import pallas as pl
from jax.experimental.pallas import tpu as pltpu

# Matmul-operand dtype: bf16 on a real TPU, f32 fallback elsewhere (CPU/interpret
# backends reject BF16 x BF16 = F32 dots).
_ON_TPU = jax.default_backend() == "tpu"
MXU_DT = jnp.bfloat16 if _ON_TPU else jnp.float32

_VMEM_LIMIT = 32 * 1024 * 1024


def _row_tile(p, cap=512):
    """Largest row tile <= cap that divides p (multiple of 8), preferring >= 2 steps."""
    cap = min(cap, max(8, p // 2))
    t = (min(cap, p) // 8) * 8
    while t >= 8:
        if p % t == 0:
            return t
        t -= 8
    return p


def _pick_tq(n):
    """Query tile: 128 for large search maps, otherwise aim for two tiles."""
    if n >= 256:
        return 128
    half = -(-n // 2)
    return max(8, ((half + 7) // 8) * 8)


# ----------------------------------------------------------------------------
# Kernel 1: fused (query|g) conv in a single MXU matmul + per-tile BN partials
#   res = x @ [wq | wg]        t = res[:, :Cq]          (no bias)
#   y   = res[:, Cq:] + bg
#   s1  = sum(mask*y), s2 = sum(mask*y*y)   per channel, per row tile
# ----------------------------------------------------------------------------
def _dual_conv_stats_kernel(x_ref, w_ref, b_ref, m_ref,
                            t_ref, y_ref, s1_ref, s2_ref, *, cq):
    res = jnp.dot(x_ref[...], w_ref[...], preferred_element_type=jnp.float32)
    t_ref[...] = res[:, :cq].astype(t_ref.dtype)
    y = res[:, cq:] + b_ref[...]
    y_ref[...] = y
    ym = y * m_ref[...]                      # exclude padded rows from the stats
    s1_ref[...] = jnp.sum(ym, axis=0, keepdims=True)[None]
    s2_ref[...] = jnp.sum(ym * y, axis=0, keepdims=True)[None]


def dual_conv_stats(x, wqg, bg, mask, cq):
    P, Cin = x.shape
    ctot = wqg.shape[1]
    cg = ctot - cq
    tp = _row_tile(P)
    nt = P // tp
    kern = functools.partial(_dual_conv_stats_kernel, cq=cq)
    return pl.pallas_call(
        kern,
        out_shape=(jax.ShapeDtypeStruct((P, cq), x.dtype),         # MXU dtype
                   jax.ShapeDtypeStruct((P, cg), jnp.float32),
                   jax.ShapeDtypeStruct((nt, 1, cg), jnp.float32),
                   jax.ShapeDtypeStruct((nt, 1, cg), jnp.float32)),
        grid=(nt,),
        in_specs=[pl.BlockSpec((tp, Cin), lambda i: (i, 0)),
                  pl.BlockSpec((Cin, ctot), lambda i: (0, 0)),
                  pl.BlockSpec((1, cg), lambda i: (0, 0)),
                  pl.BlockSpec((tp, 1), lambda i: (i, 0))],
        out_specs=(pl.BlockSpec((tp, cq), lambda i: (i, 0)),
                   pl.BlockSpec((tp, cg), lambda i: (i, 0)),
                   pl.BlockSpec((1, 1, cg), lambda i: (i, 0, 0)),
                   pl.BlockSpec((1, 1, cg), lambda i: (i, 0, 0))),
        compiler_params=pltpu.CompilerParams(
            dimension_semantics=("parallel",),
            vmem_limit_bytes=_VMEM_LIMIT),
    )(x, wqg, bg.reshape(1, cg), mask)


# ----------------------------------------------------------------------------
# Kernel 2: BN-apply + ReLU:  max(x * scale + shift, 0)   (final output only)
# ----------------------------------------------------------------------------
def _affine_relu_kernel(x_ref, s_ref, t_ref, o_ref):
    o_ref[...] = jnp.maximum(x_ref[...] * s_ref[...] + t_ref[...], 0.0)


def affine_relu(x, scale, shift):
    P, C = x.shape
    tp = _row_tile(P)
    return pl.pallas_call(
        _affine_relu_kernel,
        out_shape=jax.ShapeDtypeStruct((P, C), jnp.float32),
        grid=(P // tp,),
        in_specs=[pl.BlockSpec((tp, C), lambda i: (i, 0)),
                  pl.BlockSpec((1, C), lambda i: (0, 0)),
                  pl.BlockSpec((1, C), lambda i: (0, 0))],
        out_specs=pl.BlockSpec((tp, C), lambda i: (i, 0)),
        compiler_params=pltpu.CompilerParams(
            dimension_semantics=("parallel",),
            vmem_limit_bytes=_VMEM_LIMIT),
    )(x, scale.reshape(1, C), shift.reshape(1, C))


# ----------------------------------------------------------------------------
# Kernel 3: graph attention with top-k sparsification, fused with
#   * the zf_g BN-apply + ReLU (zg never round-trips HBM), and
#   * the emb-half of the fi 1x1 conv.
#   s    = xq @ zk^T
#   attn = softmax(s)               (padded key columns zeroed post-exp)
#   keep attn >= v_k (per-row k-th largest; == torch.topk+scatter w/o ties)
#   out  = (attn_kept @ zg) @ w_fi[:C]
# Top-k threshold: top_k iterations of max-extraction (O(k) instead of O(Nz)
# all-pairs rank counting; carry is a single (tq,1) vector).
# ----------------------------------------------------------------------------
def _gat_attn_kernel(xq_ref, zk_ref, ygz_ref, kmask_ref, sg_ref, tg_ref,
                     wfe_ref, o_ref, *, top_k):
    xq = xq_ref[0]                       # (tq, C)   MXU dtype
    zk = zk_ref[0]                       # (Nzp, C)  MXU dtype

    s = lax.dot_general(xq, zk, (((1,), (1,)), ((), ())),
                        preferred_element_type=jnp.float32)        # (tq, Nzp)

    kmask = kmask_ref[...]               # (1, Nzp) 1 = valid key, 0 = padding
    m = jnp.max(s, axis=-1, keepdims=True)
    e = jnp.exp(s - m) * kmask
    attn = e / jnp.sum(e, axis=-1, keepdims=True)

    # per-row k-th largest value via top_k max-extractions (softmax values >= 0)
    def body(_, thr):
        below = jnp.where(attn < thr, attn, -1.0)
        return jnp.max(below, axis=-1, keepdims=True)

    thr_k = lax.fori_loop(0, top_k, body,
                          jnp.full((attn.shape[0], 1), jnp.inf, jnp.float32),
                          unroll=True)
    attn = jnp.where(attn >= thr_k, attn, 0.0)

    # zf_g = relu(bn(y_gz)) fused here; padded zg rows are killed by attn == 0
    zg = jnp.maximum(ygz_ref[0] * sg_ref[...] + tg_ref[...], 0.0)

    mxu_dt = zk_ref.dtype
    emb = jnp.dot(attn.astype(mxu_dt), zg.astype(mxu_dt),
                  preferred_element_type=jnp.float32)              # (tq, C)
    o_ref[0] = jnp.dot(emb.astype(mxu_dt), wfe_ref[...],
                       preferred_element_type=jnp.float32)         # (tq, Cout)


def gat_attention(xq, zk, y_gz, kmask, scale_g, shift_g, w_fi_emb, top_k, tq):
    B, Nxp, C = xq.shape
    Nzp = zk.shape[1]
    Cout = w_fi_emb.shape[1]
    nq = Nxp // tq
    kern = functools.partial(_gat_attn_kernel, top_k=top_k)
    return pl.pallas_call(
        kern,
        out_shape=jax.ShapeDtypeStruct((B, Nxp, Cout), jnp.float32),
        grid=(B, nq),
        in_specs=[pl.BlockSpec((1, tq, C), lambda b, q: (b, q, 0)),
                  pl.BlockSpec((1, Nzp, C), lambda b, q: (b, 0, 0)),
                  pl.BlockSpec((1, Nzp, C), lambda b, q: (b, 0, 0)),
                  pl.BlockSpec((1, Nzp), lambda b, q: (0, 0)),
                  pl.BlockSpec((1, C), lambda b, q: (0, 0)),
                  pl.BlockSpec((1, C), lambda b, q: (0, 0)),
                  pl.BlockSpec((C, Cout), lambda b, q: (0, 0))],
        out_specs=pl.BlockSpec((1, tq, Cout), lambda b, q: (b, q, 0)),
        compiler_params=pltpu.CompilerParams(
            dimension_semantics=("parallel", "parallel"),
            vmem_limit_bytes=_VMEM_LIMIT),
    )(xq, zk, y_gz, kmask, scale_g.reshape(1, C), shift_g.reshape(1, C), w_fi_emb)


# ----------------------------------------------------------------------------
# Kernel 4: fused  xf_g = relu(bn(y_gx));  y = emb_fi + xf_g @ w_fi[C:] + b_fi
# plus per-tile masked BN partial sums of y (xf_g never goes back to HBM).
# ----------------------------------------------------------------------------
def _fi_fuse_stats_kernel(yg_ref, sg_ref, tg_ref, emb_ref, w_ref, b_ref, m_ref,
                          y_ref, s1_ref, s2_ref):
    g = jnp.maximum(yg_ref[...] * sg_ref[...] + tg_ref[...], 0.0)   # xf_g tile
    y = (emb_ref[...]
         + jnp.dot(g.astype(w_ref.dtype), w_ref[...],
                   preferred_element_type=jnp.float32)
         + b_ref[...])
    y_ref[...] = y
    ym = y * m_ref[...]
    s1_ref[...] = jnp.sum(ym, axis=0, keepdims=True)[None]
    s2_ref[...] = jnp.sum(ym * y, axis=0, keepdims=True)[None]


def fi_fuse_stats(y_g, scale_g, shift_g, emb, w, b, mask):
    P, C = y_g.shape
    Cout = w.shape[1]
    tp = _row_tile(P)
    nt = P // tp
    return pl.pallas_call(
        _fi_fuse_stats_kernel,
        out_shape=(jax.ShapeDtypeStruct((P, Cout), jnp.float32),
                   jax.ShapeDtypeStruct((nt, 1, Cout), jnp.float32),
                   jax.ShapeDtypeStruct((nt, 1, Cout), jnp.float32)),
        grid=(nt,),
        in_specs=[pl.BlockSpec((tp, C), lambda i: (i, 0)),
                  pl.BlockSpec((1, C), lambda i: (0, 0)),
                  pl.BlockSpec((1, C), lambda i: (0, 0)),
                  pl.BlockSpec((tp, Cout), lambda i: (i, 0)),
                  pl.BlockSpec((C, Cout), lambda i: (0, 0)),
                  pl.BlockSpec((1, Cout), lambda i: (0, 0)),
                  pl.BlockSpec((tp, 1), lambda i: (i, 0))],
        out_specs=(pl.BlockSpec((tp, Cout), lambda i: (i, 0)),
                   pl.BlockSpec((1, 1, Cout), lambda i: (i, 0, 0)),
                   pl.BlockSpec((1, 1, Cout), lambda i: (i, 0, 0))),
        compiler_params=pltpu.CompilerParams(
            dimension_semantics=("parallel",),
            vmem_limit_bytes=_VMEM_LIMIT),
    )(y_g, scale_g.reshape(1, C), shift_g.reshape(1, C), emb, w,
      b.reshape(1, Cout), mask)


# ----------------------------------------------------------------------------
# Graph_Attention_Union forward (glue around the Pallas kernels)
# ----------------------------------------------------------------------------
def gat_union_forward(params, zf, xf, top_k=32, eps=1e-5):
    """zf, xf: NCHW float32 backbone features. Returns NCHW output."""
    B, C, Hz, Wz = zf.shape
    _, _, Hx, Wx = xf.shape
    Nz, Nx = Hz * Wz, Hx * Wx
    Cout = params["w_fi"].shape[1]
    mxu = MXU_DT

    tq = _pick_tq(Nx)
    Nxp = -(-Nx // tq) * tq           # query rows padded to a tileable count
    Nzp = -(-Nz // 128) * 128         # key rows padded to a lane-aligned count

    def to_pix_padded(t, np_):        # NCHW -> (B, Npad, C) -> (B*Npad, C)
        p = jnp.transpose(t, (0, 2, 3, 1)).reshape(t.shape[0], -1, t.shape[1])
        if np_ != p.shape[1]:
            p = jnp.pad(p, ((0, 0), (0, np_ - p.shape[1]), (0, 0)))
        return p.reshape(-1, t.shape[1])

    def row_mask(n, np_):             # 1 for valid rows, 0 for padded rows
        m = (jnp.arange(np_) < n).astype(jnp.float32)
        return jnp.tile(m, (B,)).reshape(B * np_, 1)

    xf_pix = to_pix_padded(xf, Nxp).astype(mxu)
    zf_pix = to_pix_padded(zf, Nzp).astype(mxu)
    xmask = row_mask(Nx, Nxp)
    zmask = row_mask(Nz, Nzp)

    wq = params["w_query"].astype(mxu)
    ws = params["w_support"].astype(mxu)
    wg = params["w_g"].astype(mxu)
    wqg_x = jnp.concatenate([wq, wg], axis=1)     # one MXU matmul: query + g
    wqg_z = jnp.concatenate([ws, wg], axis=1)     # one MXU matmul: support + g

    # fused query/support + g convs with masked per-tile BN partial sums
    xf_trans, y_gx, s1x, s2x = dual_conv_stats(xf_pix, wqg_x, params["b_g"], xmask, C)
    zf_trans, y_gz, s1z, s2z = dual_conv_stats(zf_pix, wqg_z, params["b_g"], zmask, C)

    # TODO(synk): BN uses the training-batch statistics of the current call
    # (matches nn.BatchNorm2d in train mode); eval-mode running stats are not
    # modeled here.
    def bn_coeffs(s1, s2, n, gamma, beta):
        mean = jnp.sum(s1[:, 0, :], axis=0) / n
        var = jnp.maximum(jnp.sum(s2[:, 0, :], axis=0) / n - mean * mean, 0.0)
        scale = gamma / jnp.sqrt(var + eps)
        return scale, beta - mean * scale

    scale_gx, shift_gx = bn_coeffs(s1x, s2x, B * Nx,
                                   params["gamma_g"], params["beta_g"])
    scale_gz, shift_gz = bn_coeffs(s1z, s2z, B * Nz,
                                   params["gamma_g"], params["beta_g"])

    # key-padding mask (applied post-exp inside the attention kernel)
    kmask = (jnp.arange(Nzp) < Nz).astype(jnp.float32).reshape(1, Nzp)

    xq = xf_trans.reshape(B, Nxp, C)
    zk = zf_trans.reshape(B, Nzp, C)
    ygz = y_gz.reshape(B, Nzp, C)

    # split the fi conv weight: emb half fused into attention, xf_g half fused
    # with the g-branch affine+ReLU (no channel concat, no emb/xf_g round trip)
    w_fi_emb = params["w_fi"][:C].astype(mxu)
    w_fi_x = params["w_fi"][C:].astype(mxu)

    emb_fi = gat_attention(xq, zk, ygz, kmask, scale_gz, shift_gz,
                           w_fi_emb, top_k, tq)                  # (B, Nxp, Cout)
    emb_fi_pix = emb_fi.reshape(B * Nxp, Cout)

    y_fi, s1f, s2f = fi_fuse_stats(y_gx, scale_gx, shift_gx, emb_fi_pix,
                                   w_fi_x, params["b_fi"], xmask)
    scale_fi, shift_fi = bn_coeffs(s1f, s2f, B * Nx,
                                   params["gamma_fi"], params["beta_fi"])
    out_pix = affine_relu(y_fi, scale_fi, shift_fi)              # (B*Nxp, Cout)

    out = out_pix.reshape(B, Nxp, Cout)[:, :Nx].reshape(B, Hx, Wx, Cout)
    return jnp.transpose(out, (0, 3, 1, 2))


# ----------------------------------------------------------------------------
# Pure-JAX reference (mirrors the PyTorch module).  Matmul operands are rounded
# through MXU_DT exactly like the Pallas path so the top-k membership matches.
# ----------------------------------------------------------------------------
def reference_forward(params, zf, xf, top_k=32, eps=1e-5):
    f32 = jnp.float32

    def r(t):                      # mirror the kernel's matmul-operand rounding
        return t.astype(MXU_DT).astype(f32)

    B, C, Hz, Wz = zf.shape
    _, _, Hx, Wx = xf.shape

    def conv1x1(t, w, b=None):
        y = jnp.einsum("bchw,cd->bdhw", r(t), r(w), preferred_element_type=f32)
        if b is not None:
            y = y + b[None, :, None, None]
        return y

    def bn_relu(y, gamma, beta):
        mean = jnp.mean(y, axis=(0, 2, 3), keepdims=True)
        var = jnp.var(y, axis=(0, 2, 3), keepdims=True)
        y = (y - mean) / jnp.sqrt(var + eps)
        y = y * gamma[None, :, None, None] + beta[None, :, None, None]
        return jnp.maximum(y, 0.0)

    def g(t):
        return bn_relu(conv1x1(t, params["w_g"], params["b_g"]),
                       params["gamma_g"], params["beta_g"])

    xf_trans = conv1x1(xf, params["w_query"])
    zf_trans = conv1x1(zf, params["w_support"])
    xf_g = g(xf)
    zf_g = g(zf)

    zf_trans_plain = zf_trans.reshape(B, C, Hz * Wz)
    zf_g_plain = zf_g.reshape(B, C, Hz * Wz).transpose(0, 2, 1)
    xf_trans_plain = xf_trans.reshape(B, C, Hx * Wx).transpose(0, 2, 1)

    attn = jnp.einsum("bnc,bcm->bnm", r(xf_trans_plain), r(zf_trans_plain),
                      preferred_element_type=f32)
    attn = jax.nn.softmax(attn, axis=2)
    # keep entry iff < top_k entries in its row are strictly greater
    # (identical to torch.topk + scatter when there are no ties)
    cnt = jnp.sum(attn[:, :, :, None] > attn[:, :, None, :], axis=2)
    attn = jnp.where(cnt < top_k, attn, 0.0)

    emb = jnp.einsum("bnm,bmc->bnc", r(attn), r(zf_g_plain),
                     preferred_element_type=f32)
    emb = emb.transpose(0, 2, 1).reshape(B, C, Hx, Wx)

    cat = jnp.concatenate([emb, xf_g], axis=1)
    y = conv1x1(cat, params["w_fi"], params["b_fi"])
    return bn_relu(y, params["gamma_fi"], params["beta_fi"])


# ----------------------------------------------------------------------------
if __name__ == "__main__":
    key = jax.random.PRNGKey(0)
    ks = jax.random.split(key, 8)

    # Small shapes consistent with the module; deliberately non-power-of-two so
    # the padded / masked tiling paths (real GOT: Nz=169, Nx=625) are exercised.
    # (real GOT model: C=256, template 13x13 -> Nz=169, search 25x25 -> Nx=625)
    B, C, Cout = 2, 32, 32
    Hz = Wz = 7       # Nz = 49  (padded to 128 keys; >= top_k = 32)
    Hx = Wx = 15      # Nx = 225 (padded to a tileable query-row count)
    TOP_K = 32

    params = {
        "w_query":   0.1 * jax.random.normal(ks[0], (C, C), jnp.float32),
        "w_support": 0.1 * jax.random.normal(ks[1], (C, C), jnp.float32),
        "w_g":       0.1 * jax.random.normal(ks[2], (C, C), jnp.float32),
        "b_g":       0.1 * jax.random.normal(ks[3], (C,), jnp.float32),
        "gamma_g":   jnp.ones((C,), jnp.float32),
        "beta_g":    jnp.zeros((C,), jnp.float32),
        "w_fi":      0.1 * jax.random.normal(ks[4], (2 * C, Cout), jnp.float32),
        "b_fi":      0.1 * jax.random.normal(ks[5], (Cout,), jnp.float32),
        "gamma_fi":  jnp.ones((Cout,), jnp.float32),
        "beta_fi":   jnp.zeros((Cout,), jnp.float32),
    }

    zf = jax.random.normal(ks[6], (B, C, Hz, Wz), jnp.float32)  # template feats
    xf = jax.random.normal(ks[7], (B, C, Hx, Wx), jnp.float32)  # search feats

    fwd = jax.jit(functools.partial(gat_union_forward, top_k=TOP_K))
    out = jax.block_until_ready(fwd(params, zf, xf))

    ref = reference_forward(params, zf, xf, top_k=TOP_K)
    assert out.shape == (B, Cout, Hx, Wx)
    max_err = float(jnp.max(jnp.abs(out - ref)))
    assert max_err < 2e-2, f"max abs err {max_err}"

    print("KERNEL_OK")
</pallas_src>

<mosaic_0001>
module attributes {stable_mosaic.version = 11 : i64} {
  func.func @_dual_conv_stats_kernel(%arg0: i32, %arg1: memref<240x32xf32, #tpu.memory_space<vmem>>, %arg2: memref<32x64xf32, #tpu.memory_space<vmem>>, %arg3: memref<1x32xf32, #tpu.memory_space<vmem>>, %arg4: memref<240x1xf32, #tpu.memory_space<vmem>>, %arg5: memref<240x32xf32, #tpu.memory_space<vmem>>, %arg6: memref<240x32xf32, #tpu.memory_space<vmem>>, %arg7: memref<1x1x32xf32, #tpu.memory_space<vmem>>, %arg8: memref<1x1x32xf32, #tpu.memory_space<vmem>>) attributes {dimension_semantics = [#tpu.dimension_semantics<parallel>], iteration_bounds = array<i64: 2>, scalar_prefetch = 0 : i64, scratch_operands = 0 : i64, tpu.core_type = #tpu.core_type<tc>, window_params = [{transform_indices = @transform_0, window_bounds = array<i64: 240, 32>}, {pipeline_mode = #tpu.pipeline_mode<synchronous>, transform_indices = @transform_1, window_bounds = array<i64: 32, 64>}, {pipeline_mode = #tpu.pipeline_mode<synchronous>, transform_indices = @transform_2, window_bounds = array<i64: 1, 32>}, {transform_indices = @transform_3, window_bounds = array<i64: 240, 1>}, {transform_indices = @transform_4, window_bounds = array<i64: 240, 32>}, {transform_indices = @transform_5, window_bounds = array<i64: 240, 32>}, {transform_indices = @transform_6, window_bounds = array<i64: 1, 1, 32>}, {transform_indices = @transform_7, window_bounds = array<i64: 1, 1, 32>}]} {
    %c0 = arith.constant 0 : index
    %c0_0 = arith.constant 0 : index
    %0 = vector.load %arg1[%c0, %c0_0] : memref<240x32xf32, #tpu.memory_space<vmem>>, vector<240x32xf32>
    %c0_1 = arith.constant 0 : index
    %c0_2 = arith.constant 0 : index
    %1 = vector.load %arg2[%c0_1, %c0_2] : memref<32x64xf32, #tpu.memory_space<vmem>>, vector<32x64xf32>
    %cst = arith.constant dense<0.000000e+00> : vector<240x64xf32>
    %2 = tpu.matmul %0, %1, %cst {dimension_numbers = #tpu.dot_dimension_numbers<[1], [0], [0], [1], [0, 0, 1, 1], [], []>} : vector<240x32xf32>, vector<32x64xf32>, vector<240x64xf32> -> vector<240x64xf32>
    %3 = vector.extract_strided_slice %2 {offsets = [0, 0], sizes = [240, 32], strides = [1, 1]} : vector<240x64xf32> to vector<240x32xf32>
    %c0_3 = arith.constant 0 : index
    %c0_4 = arith.constant 0 : index
    %4 = vector.load %arg5[%c0_3, %c0_4] : memref<240x32xf32, #tpu.memory_space<vmem>>, vector<240x32xf32>
    tpu.vector_store %arg5[%c0_3, %c0_4], %3 {strides = array<i32>} : memref<240x32xf32, #tpu.memory_space<vmem>>, vector<240x32xf32>,
    %5 = vector.extract_strided_slice %2 {offsets = [0, 32], sizes = [240, 32], strides = [1, 1]} : vector<240x64xf32> to vector<240x32xf32>
    %c0_5 = arith.constant 0 : index
    %c0_6 = arith.constant 0 : index
    %6 = vector.load %arg3[%c0_5, %c0_6] : memref<1x32xf32, #tpu.memory_space<vmem>>, vector<1x32xf32>
    %7 = vector.broadcast %6 : vector<1x32xf32> to vector<240x32xf32>
    %8 = arith.addf %5, %7 : vector<240x32xf32>
    %c0_7 = arith.constant 0 : index
    %c0_8 = arith.constant 0 : index
    %9 = vector.load %arg6[%c0_7, %c0_8] : memref<240x32xf32, #tpu.memory_space<vmem>>, vector<240x32xf32>
    tpu.vector_store %arg6[%c0_7, %c0_8], %8 {strides = array<i32>} : memref<240x32xf32, #tpu.memory_space<vmem>>, vector<240x32xf32>,
    %c0_9 = arith.constant 0 : index
    %c0_10 = arith.constant 0 : index
    %10 = vector.load %arg4[%c0_9, %c0_10] : memref<240x1xf32, #tpu.memory_space<vmem>>, vector<240x1xf32>
    %11 = vector.broadcast %10 : vector<240x1xf32> to vector<240x32xf32>
    %12 = arith.mulf %8, %11 : vector<240x32xf32>
    %cst_11 = arith.constant dense<0.000000e+00> : vector<32xf32>
    %13 = vector.multi_reduction <add>, %12, %cst_11 [0] : vector<240x32xf32> to vector<32xf32>
    %14 = vector.shape_cast %13 : vector<32xf32> to vector<1x32xf32>
    %15 = vector.shape_cast %14 : vector<1x32xf32> to vector<1x1x32xf32>
    %c0_12 = arith.constant 0 : index
    %c0_13 = arith.constant 0 : index
    %c0_14 = arith.constant 0 : index
    %16 = vector.load %arg7[%c0_12, %c0_13, %c0_14] : memref<1x1x32xf32, #tpu.memory_space<vmem>>, vector<1x1x32xf32>
    tpu.vector_store %arg7[%c0_12, %c0_13, %c0_14], %15 {strides = array<i32>} : memref<1x1x32xf32, #tpu.memory_space<vmem>>, vector<1x1x32xf32>,
    %17 = arith.mulf %12, %8 : vector<240x32xf32>
    %cst_15 = arith.constant dense<0.000000e+00> : vector<32xf32>
    %18 = vector.multi_reduction <add>, %17, %cst_15 [0] : vector<240x32xf32> to vector<32xf32>
    %19 = vector.shape_cast %18 : vector<32xf32> to vector<1x32xf32>
    %20 = vector.shape_cast %19 : vector<1x32xf32> to vector<1x1x32xf32>
    %c0_16 = arith.constant 0 : index
    %c0_17 = arith.constant 0 : index
    %c0_18 = arith.constant 0 : index
    %21 = vector.load %arg8[%c0_16, %c0_17, %c0_18] : memref<1x1x32xf32, #tpu.memory_space<vmem>>, vector<1x1x32xf32>
    tpu.vector_store %arg8[%c0_16, %c0_17, %c0_18], %20 {strides = array<i32>} : memref<1x1x32xf32, #tpu.memory_space<vmem>>, vector<1x1x32xf32>,
    return
  }
  func.func @transform_0(%arg0: i32) -> (i32, i32) {
    %c0_i32 = arith.constant 0 : i32
    %c0_i32_0 = arith.constant 0 : i32
    return %arg0, %c0_i32 : i32, i32
  }
  func.func @transform_1(%arg0: i32) -> (i32, i32) {
    %c0_i32 = arith.constant 0 : i32
    %c0_i32_0 = arith.constant 0 : i32
    %c0_i32_1 = arith.constant 0 : i32
    return %c0_i32, %c0_i32_0 : i32, i32
  }
  func.func @transform_2(%arg0: i32) -> (i32, i32) {
    %c0_i32 = arith.constant 0 : i32
    %c0_i32_0 = arith.constant 0 : i32
    %c0_i32_1 = arith.constant 0 : i32
    return %c0_i32, %c0_i32_0 : i32, i32
  }
  func.func @transform_3(%arg0: i32) -> (i32, i32) {
    %c0_i32 = arith.constant 0 : i32
    %c0_i32_0 = arith.constant 0 : i32
    return %arg0, %c0_i32 : i32, i32
  }
  func.func @transform_4(%arg0: i32) -> (i32, i32) {
    %c0_i32 = arith.constant 0 : i32
    %c0_i32_0 = arith.constant 0 : i32
    return %arg0, %c0_i32 : i32, i32
  }
  func.func @transform_5(%arg0: i32) -> (i32, i32) {
    %c0_i32 = arith.constant 0 : i32
    %c0_i32_0 = arith.constant 0 : i32
    return %arg0, %c0_i32 : i32, i32
  }
  func.func @transform_6(%arg0: i32) -> (i32, i32, i32) {
    %c0_i32 = arith.constant 0 : i32
    %c0_i32_0 = arith.constant 0 : i32
    %c0_i32_1 = arith.constant 0 : i32
    return %arg0, %c0_i32, %c0_i32_0 : i32, i32, i32
  }
  func.func @transform_7(%arg0: i32) -> (i32, i32, i32) {
    %c0_i32 = arith.constant 0 : i32
    %c0_i32_0 = arith.constant 0 : i32
    %c0_i32_1 = arith.constant 0 : i32
    return %arg0, %c0_i32, %c0_i32_0 : i32, i32, i32
  }
}

module attributes {stable_mosaic.version = 11 : i64} {
  func.func @_dual_conv_stats_kernel(%arg0: i32, %arg1: memref<128x32xf32, #tpu.memory_space<vmem>>, %arg2: memref<32x64xf32, #tpu.memory_space<vmem>>, %arg3: memref<1x32xf32, #tpu.memory_space<vmem>>, %arg4: memref<128x1xf32, #tpu.memory_space<vmem>>, %arg5: memref<128x32xf32, #tpu.memory_space<vmem>>, %arg6: memref<128x32xf32, #tpu.memory_space<vmem>>, %arg7: memref<1x1x32xf32, #tpu.memory_space<vmem>>, %arg8: memref<1x1x32xf32, #tpu.memory_space<vmem>>) attributes {dimension_semantics = [#tpu.dimension_semantics<parallel>], iteration_bounds = array<i64: 2>, scalar_prefetch = 0 : i64, scratch_operands = 0 : i64, tpu.core_type = #tpu.core_type<tc>, window_params = [{transform_indices = @transform_0, window_bounds = array<i64: 128, 32>}, {pipeline_mode = #tpu.pipeline_mode<synchronous>, transform_indices = @transform_1, window_bounds = array<i64: 32, 64>}, {pipeline_mode = #tpu.pipeline_mode<synchronous>, transform_indices = @transform_2, window_bounds = array<i64: 1, 32>}, {transform_indices = @transform_3, window_bounds = array<i64: 128, 1>}, {transform_indices = @transform_4, window_bounds = array<i64: 128, 32>}, {transform_indices = @transform_5, window_bounds = array<i64: 128, 32>}, {transform_indices = @transform_6, window_bounds = array<i64: 1, 1, 32>}, {transform_indices = @transform_7, window_bounds = array<i64: 1, 1, 32>}]} {
    %c0 = arith.constant 0 : index
    %c0_0 = arith.constant 0 : index
    %0 = vector.load %arg1[%c0, %c0_0] : memref<128x32xf32, #tpu.memory_space<vmem>>, vector<128x32xf32>
    %c0_1 = arith.constant 0 : index
    %c0_2 = arith.constant 0 : index
    %1 = vector.load %arg2[%c0_1, %c0_2] : memref<32x64xf32, #tpu.memory_space<vmem>>, vector<32x64xf32>
    %cst = arith.constant dense<0.000000e+00> : vector<128x64xf32>
    %2 = tpu.matmul %0, %1, %cst {dimension_numbers = #tpu.dot_dimension_numbers<[1], [0], [0], [1], [0, 0, 1, 1], [], []>} : vector<128x32xf32>, vector<32x64xf32>, vector<128x64xf32> -> vector<128x64xf32>
    %3 = vector.extract_strided_slice %2 {offsets = [0, 0], sizes = [128, 32], strides = [1, 1]} : vector<128x64xf32> to vector<128x32xf32>
    %c0_3 = arith.constant 0 : index
    %c0_4 = arith.constant 0 : index
    %4 = vector.load %arg5[%c0_3, %c0_4] : memref<128x32xf32, #tpu.memory_space<vmem>>, vector<128x32xf32>
    tpu.vector_store %arg5[%c0_3, %c0_4], %3 {strides = array<i32>} : memref<128x32xf32, #tpu.memory_space<vmem>>, vector<128x32xf32>,
    %5 = vector.extract_strided_slice %2 {offsets = [0, 32], sizes = [128, 32], strides = [1, 1]} : vector<128x64xf32> to vector<128x32xf32>
    %c0_5 = arith.constant 0 : index
    %c0_6 = arith.constant 0 : index
    %6 = vector.load %arg3[%c0_5, %c0_6] : memref<1x32xf32, #tpu.memory_space<vmem>>, vector<1x32xf32>
    %7 = vector.broadcast %6 : vector<1x32xf32> to vector<128x32xf32>
    %8 = arith.addf %5, %7 : vector<128x32xf32>
    %c0_7 = arith.constant 0 : index
    %c0_8 = arith.constant 0 : index
    %9 = vector.load %arg6[%c0_7, %c0_8] : memref<128x32xf32, #tpu.memory_space<vmem>>, vector<128x32xf32>
    tpu.vector_store %arg6[%c0_7, %c0_8], %8 {strides = array<i32>} : memref<128x32xf32, #tpu.memory_space<vmem>>, vector<128x32xf32>,
    %c0_9 = arith.constant 0 : index
    %c0_10 = arith.constant 0 : index
    %10 = vector.load %arg4[%c0_9, %c0_10] : memref<128x1xf32, #tpu.memory_space<vmem>>, vector<128x1xf32>
    %11 = vector.broadcast %10 : vector<128x1xf32> to vector<128x32xf32>
    %12 = arith.mulf %8, %11 : vector<128x32xf32>
    %cst_11 = arith.constant dense<0.000000e+00> : vector<32xf32>
    %13 = vector.multi_reduction <add>, %12, %cst_11 [0] : vector<128x32xf32> to vector<32xf32>
    %14 = vector.shape_cast %13 : vector<32xf32> to vector<1x32xf32>
    %15 = vector.shape_cast %14 : vector<1x32xf32> to vector<1x1x32xf32>
    %c0_12 = arith.constant 0 : index
    %c0_13 = arith.constant 0 : index
    %c0_14 = arith.constant 0 : index
    %16 = vector.load %arg7[%c0_12, %c0_13, %c0_14] : memref<1x1x32xf32, #tpu.memory_space<vmem>>, vector<1x1x32xf32>
    tpu.vector_store %arg7[%c0_12, %c0_13, %c0_14], %15 {strides = array<i32>} : memref<1x1x32xf32, #tpu.memory_space<vmem>>, vector<1x1x32xf32>,
    %17 = arith.mulf %12, %8 : vector<128x32xf32>
    %cst_15 = arith.constant dense<0.000000e+00> : vector<32xf32>
    %18 = vector.multi_reduction <add>, %17, %cst_15 [0] : vector<128x32xf32> to vector<32xf32>
    %19 = vector.shape_cast %18 : vector<32xf32> to vector<1x32xf32>
    %20 = vector.shape_cast %19 : vector<1x32xf32> to vector<1x1x32xf32>
    %c0_16 = arith.constant 0 : index
    %c0_17 = arith.constant 0 : index
    %c0_18 = arith.constant 0 : index
    %21 = vector.load %arg8[%c0_16, %c0_17, %c0_18] : memref<1x1x32xf32, #tpu.memory_space<vmem>>, vector<1x1x32xf32>
    tpu.vector_store %arg8[%c0_16, %c0_17, %c0_18], %20 {strides = array<i32>} : memref<1x1x32xf32, #tpu.memory_space<vmem>>, vector<1x1x32xf32>,
    return
  }
  func.func @transform_0(%arg0: i32) -> (i32, i32) {
    %c0_i32 = arith.constant 0 : i32
    %c0_i32_0 = arith.constant 0 : i32
    return %arg0, %c0_i32 : i32, i32
  }
  func.func @transform_1(%arg0: i32) -> (i32, i32) {
    %c0_i32 = arith.constant 0 : i32
    %c0_i32_0 = arith.constant 0 : i32
    %c0_i32_1 = arith.constant 0 : i32
    return %c0_i32, %c0_i32_0 : i32, i32
  }
  func.func @transform_2(%arg0: i32) -> (i32, i32) {
    %c0_i32 = arith.constant 0 : i32
    %c0_i32_0 = arith.constant 0 : i32
    %c0_i32_1 = arith.constant 0 : i32
    return %c0_i32, %c0_i32_0 : i32, i32
  }
  func.func @transform_3(%arg0: i32) -> (i32, i32) {
    %c0_i32 = arith.constant 0 : i32
    %c0_i32_0 = arith.constant 0 : i32
    return %arg0, %c0_i32 : i32, i32
  }
  func.func @transform_4(%arg0: i32) -> (i32, i32) {
    %c0_i32 = arith.constant 0 : i32
    %c0_i32_0 = arith.constant 0 : i32
    return %arg0, %c0_i32 : i32, i32
  }
  func.func @transform_5(%arg0: i32) -> (i32, i32) {
    %c0_i32 = arith.constant 0 : i32
    %c0_i32_0 = arith.constant 0 : i32
    return %arg0, %c0_i32 : i32, i32
  }
  func.func @transform_6(%arg0: i32) -> (i32, i32, i32) {
    %c0_i32 = arith.constant 0 : i32
    %c0_i32_0 = arith.constant 0 : i32
    %c0_i32_1 = arith.constant 0 : i32
    return %arg0, %c0_i32, %c0_i32_0 : i32, i32, i32
  }
  func.func @transform_7(%arg0: i32) -> (i32, i32, i32) {
    %c0_i32 = arith.constant 0 : i32
    %c0_i32_0 = arith.constant 0 : i32
    %c0_i32_1 = arith.constant 0 : i32
    return %arg0, %c0_i32, %c0_i32_0 : i32, i32, i32
  }
}

module attributes {stable_mosaic.version = 11 : i64} {
  func.func @_gat_attn_kernel(%arg0: i32, %arg1: i32, %arg2: memref<1x120x32xf32, #tpu.memory_space<vmem>>, %arg3: memref<1x128x32xf32, #tpu.memory_space<vmem>>, %arg4: memref<1x128x32xf32, #tpu.memory_space<vmem>>, %arg5: memref<1x128xf32, #tpu.memory_space<vmem>>, %arg6: memref<1x32xf32, #tpu.memory_space<vmem>>, %arg7: memref<1x32xf32, #tpu.memory_space<vmem>>, %arg8: memref<32x32xf32, #tpu.memory_space<vmem>>, %arg9: memref<1x120x32xf32, #tpu.memory_space<vmem>>) attributes {dimension_semantics = [#tpu.dimension_semantics<parallel>, #tpu.dimension_semantics<parallel>], iteration_bounds = array<i64: 2, 2>, scalar_prefetch = 0 : i64, scratch_operands = 0 : i64, tpu.core_type = #tpu.core_type<tc>, window_params = [{transform_indices = @transform_0, window_bounds = array<i64: 1, 120, 32>}, {transform_indices = @transform_1, window_bounds = array<i64: 1, 128, 32>}, {transform_indices = @transform_2, window_bounds = array<i64: 1, 128, 32>}, {pipeline_mode = #tpu.pipeline_mode<synchronous>, transform_indices = @transform_3, window_bounds = array<i64: 1, 128>}, {pipeline_mode = #tpu.pipeline_mode<synchronous>, transform_indices = @transform_4, window_bounds = array<i64: 1, 32>}, {pipeline_mode = #tpu.pipeline_mode<synchronous>, transform_indices = @transform_5, window_bounds = array<i64: 1, 32>}, {pipeline_mode = #tpu.pipeline_mode<synchronous>, transform_indices = @transform_6, window_bounds = array<i64: 32, 32>}, {transform_indices = @transform_7, window_bounds = array<i64: 1, 120, 32>}]} {
    %c0 = arith.constant 0 : index
    %c0_0 = arith.constant 0 : index
    %c0_1 = arith.constant 0 : index
    %0 = vector.load %arg2[%c0, %c0_0, %c0_1] : memref<1x120x32xf32, #tpu.memory_space<vmem>>, vector<1x120x32xf32>
    %1 = vector.shape_cast %0 : vector<1x120x32xf32> to vector<120x32xf32>
    %c0_2 = arith.constant 0 : index
    %c0_3 = arith.constant 0 : index
    %c0_4 = arith.constant 0 : index
    %2 = vector.load %arg3[%c0_2, %c0_3, %c0_4] : memref<1x128x32xf32, #tpu.memory_space<vmem>>, vector<1x128x32xf32>
    %3 = vector.shape_cast %2 : vector<1x128x32xf32> to vector<128x32xf32>
    %cst = arith.constant dense<0.000000e+00> : vector<120x128xf32>
    %4 = tpu.matmul %1, %3, %cst {dimension_numbers = #tpu.dot_dimension_numbers<[1], [1], [0], [0], [0, 0, 1, 0], [], []>} : vector<120x32xf32>, vector<128x32xf32>, vector<120x128xf32> -> vector<120x128xf32>
    %c0_5 = arith.constant 0 : index
    %c0_6 = arith.constant 0 : index
    %5 = vector.load %arg5[%c0_5, %c0_6] : memref<1x128xf32, #tpu.memory_space<vmem>>, vector<1x128xf32>
    %cst_7 = arith.constant dense<0xFF800000> : vector<120xf32>
    %6 = vector.multi_reduction <maximumf>, %4, %cst_7 [1] : vector<120x128xf32> to vector<120xf32>
    %7 = vector.shape_cast %6 : vector<120xf32> to vector<120x1xf32>
    %8 = vector.broadcast %7 : vector<120x1xf32> to vector<120x128xf32>
    %9 = arith.subf %4, %8 : vector<120x128xf32>
    %10 = math.exp %9 : vector<120x128xf32>
    %11 = vector.broadcast %5 : vector<1x128xf32> to vector<120x128xf32>
    %12 = arith.mulf %10, %11 : vector<120x128xf32>
    %cst_8 = arith.constant dense<0.000000e+00> : vector<120xf32>
    %13 = vector.multi_reduction <add>, %12, %cst_8 [1] : vector<120x128xf32> to vector<120xf32>
    %14 = vector.shape_cast %13 : vector<120xf32> to vector<120x1xf32>
    %15 = vector.broadcast %14 : vector<120x1xf32> to vector<120x128xf32>
    %16 = arith.divf %12, %15 : vector<120x128xf32>
    %cst_9 = arith.constant 0x7F800000 : f32
    %17 = vector.broadcast %cst_9 : f32 to vector<120x1xf32>
    %c0_i32 = arith.constant 0 : i32
    %18 = vector.broadcast %17 : vector<120x1xf32> to vector<120x128xf32>
    %19 = arith.cmpf olt, %16, %18 : vector<120x128xf32>
    %cst_10 = arith.constant -1.000000e+00 : f32
    %20 = vector.broadcast %cst_10 : f32 to vector<120x128xf32>
    %21 = arith.select %19, %16, %20 : vector<120x128xi1>, vector<120x128xf32>
    %cst_11 = arith.constant dense<0xFF800000> : vector<120xf32>
    %22 = vector.multi_reduction <maximumf>, %21, %cst_11 [1] : vector<120x128xf32> to vector<120xf32>
    %23 = vector.shape_cast %22 : vector<120xf32> to vector<120x1xf32>
    %c1_i32 = arith.constant 1 : i32
    %24 = vector.broadcast %23 : vector<120x1xf32> to vector<120x128xf32>
    %25 = arith.cmpf olt, %16, %24 : vector<120x128xf32>
    %cst_12 = arith.constant -1.000000e+00 : f32
    %26 = vector.broadcast %cst_12 : f32 to vector<120x128xf32>
    %27 = arith.select %25, %16, %26 : vector<120x128xi1>, vector<120x128xf32>
    %cst_13 = arith.constant dense<0xFF800000> : vector<120xf32>
    %28 = vector.multi_reduction <maximumf>, %27, %cst_13 [1] : vector<120x128xf32> to vector<120xf32>
    %29 = vector.shape_cast %28 : vector<120xf32> to vector<120x1xf32>
    %c2_i32 = arith.constant 2 : i32
    %30 = vector.broadcast %29 : vector<120x1xf32> to vector<120x128xf32>
    %31 = arith.cmpf olt, %16, %30 : vector<120x128xf32>
    %cst_14 = arith.constant -1.000000e+00 : f32
    %32 = vector.broadcast %cst_14 : f32 to vector<120x128xf32>
    %33 = arith.select %31, %16, %32 : vector<120x128xi1>, vector<120x128xf32>
    %cst_15 = arith.constant dense<0xFF800000> : vector<120xf32>
    %34 = vector.multi_reduction <maximumf>, %33, %cst_15 [1] : vector<120x128xf32> to vector<120xf32>
    %35 = vector.shape_cast %34 : vector<120xf32> to vector<120x1xf32>
    %c3_i32 = arith.constant 3 : i32
    %36 = vector.broadcast %35 : vector<120x1xf32> to vector<120x128xf32>
    %37 = arith.cmpf olt, %16, %36 : vector<120x128xf32>
    %cst_16 = arith.constant -1.000000e+00 : f32
    %38 = vector.broadcast %cst_16 : f32 to vector<120x128xf32>
    %39 = arith.select %37, %16, %38 : vector<120x128xi1>, vector<120x128xf32>
    %cst_17 = arith.constant dense<0xFF800000> : vector<120xf32>
    %40 = vector.multi_reduction <maximumf>, %39, %cst_17 [1] : vector<120x128xf32> to vector<120xf32>
    %41 = vector.shape_cast %40 : vector<120xf32> to vector<120x1xf32>
    %c4_i32 = arith.constant 4 : i32
    %42 = vector.broadcast %41 : vector<120x1xf32> to vector<120x128xf32>
    %43 = arith.cmpf olt, %16, %42 : vector<120x128xf32>
    %cst_18 = arith.constant -1.000000e+00 : f32
    %44 = vector.broadcast %cst_18 : f32 to vector<120x128xf32>
    %45 = arith.select %43, %16, %44 : vector<120x128xi1>, vector<120x128xf32>
    %cst_19 = arith.constant dense<0xFF800000> : vector<120xf32>
    %46 = vector.multi_reduction <maximumf>, %45, %cst_19 [1] : vector<120x128xf32> to vector<120xf32>
    %47 = vector.shape_cast %46 : vector<120xf32> to vector<120x1xf32>
    %c5_i32 = arith.constant 5 : i32
    %48 = vector.broadcast %47 : vector<120x1xf32> to vector<120x128xf32>
    %49 = arith.cmpf olt, %16, %48 : vector<120x128xf32>
    %cst_20 = arith.constant -1.000000e+00 : f32
    %50 = vector.broadcast %cst_20 : f32 to vector<120x128xf32>
    %51 = arith.select %49, %16, %50 : vector<120x128xi1>, vector<120x128xf32>
    %cst_21 = arith.constant dense<0xFF800000> : vector<120xf32>
    %52 = vector.multi_reduction <maximumf>, %51, %cst_21 [1] : vector<120x128xf32> to vector<120xf32>
    %53 = vector.shape_cast %52 : vector<120xf32> to vector<120x1xf32>
    %c6_i32 = arith.constant 6 : i32
    %54 = vector.broadcast %53 : vector<120x1xf32> to vector<120x128xf32>
    %55 = arith.cmpf olt, %16, %54 : vector<120x128xf32>
    %cst_22 = arith.constant -1.000000e+00 : f32
    %56 = vector.broadcast %cst_22 : f32 to vector<120x128xf32>
    %57 = arith.select %55, %16, %56 : vector<120x128xi1>, vector<120x128xf32>
    %cst_23 = arith.constant dense<0xFF800000> : vector<120xf32>
    %58 = vector.multi_reduction <maximumf>, %57, %cst_23 [1] : vector<120x128xf32> to vector<120xf32>
    %59 = vector.shape_cast %58 : vector<120xf32> to vector<120x1xf32>
    %c7_i32 = arith.constant 7 : i32
    %60 = vector.broadcast %59 : vector<120x1xf32> to vector<120x128xf32>
    %61 = arith.cmpf olt, %16, %60 : vector<120x128xf32>
    %cst_24 = arith.constant -1.000000e+00 : f32
    %62 = vector.broadcast %cst_24 : f32 to vector<120x128xf32>
    %63 = arith.select %61, %16, %62 : vector<120x128xi1>, vector<120x128xf32>
    %cst_25 = arith.constant dense<0xFF800000> : vector<120xf32>
    %64 = vector.multi_reduction <maximumf>, %63, %cst_25 [1] : vector<120x128xf32> to vector<120xf32>
    %65 = vector.shape_cast %64 : vector<120xf32> to vector<120x1xf32>
    %c8_i32 = arith.constant 8 : i32
    %66 = vector.broadcast %65 : vector<120x1xf32> to vector<120x128xf32>
    %67 = arith.cmpf olt, %16, %66 : vector<120x128xf32>
    %cst_26 = arith.constant -1.000000e+00 : f32
    %68 = vector.broadcast %cst_26 : f32 to vector<120x128xf32>
    %69 = arith.select %67, %16, %68 : vector<120x128xi1>, vector<120x128xf32>
    %cst_27 = arith.constant dense<0xFF800000> : vector<120xf32>
    %70 = vector.multi_reduction <maximumf>, %69, %cst_27 [1] : vector<120x128xf32> to vector<120xf32>
    %71 = vector.shape_cast %70 : vector<120xf32> to vector<120x1xf32>
    %c9_i32 = arith.constant 9 : i32
    %72 = vector.broadcast %71 : vector<120x1xf32> to vector<120x128xf32>
    %73 = arith.cmpf olt, %16, %72 : vector<120x128xf32>
    %cst_28 = arith.constant -1.000000e+00 : f32
    %74 = vector.broadcast %cst_28 : f32 to vector<120x128xf32>
    %75 = arith.select %73, %16, %74 : vector<120x128xi1>, vector<120x128xf32>
    %cst_29 = arith.constant dense<0xFF800000> : vector<120xf32>
    %76 = vector.multi_reduction <maximumf>, %75, %cst_29 [1] : vector<120x128xf32> to vector<120xf32>
    %77 = vector.shape_cast %76 : vector<120xf32> to vector<120x1xf32>
    %c10_i32 = arith.constant 10 : i32
    %78 = vector.broadcast %77 : vector<120x1xf32> to vector<120x128xf32>
    %79 = arith.cmpf olt, %16, %78 : vector<120x128xf32>
    %cst_30 = arith.constant -1.000000e+00 : f32
    %80 = vector.broadcast %cst_30 : f32 to vector<120x128xf32>
    %81 = arith.select %79, %16, %80 : vector<120x128xi1>, vector<120x128xf32>
    %cst_31 = arith.constant dense<0xFF800000> : vector<120xf32>
    %82 = vector.multi_reduction <maximumf>, %81, %cst_31 [1] : vector<120x128xf32> to vector<120xf32>
    %83 = vector.shape_cast %82 : vector<120xf32> to vector<120x1xf32>
    %c11_i32 = arith.constant 11 : i32
    %84 = vector.broadcast %83 : vector<120x1xf32> to vector<120x128xf32>
    %85 = arith.cmpf olt, %16, %84 : vector<120x128xf32>
    %cst_32 = arith.constant -1.000000e+00 : f32
    %86 = vector.broadcast %cst_32 : f32 to vector<120x128xf32>
    %87 = arith.select %85, %16, %86 : vector<120x128xi1>, vector<120x128xf32>
    %cst_33 = arith.constant dense<0xFF800000> : vector<120xf32>
    %88 = vector.multi_reduction <maximumf>, %87, %cst_33 [1] : vector<120x128xf32> to vector<120xf32>
    %89 = vector.shape_cast %88 : vector<120xf32> to vector<120x1xf32>
    %c12_i32 = arith.constant 12 : i32
    %90 = vector.broadcast %89 : vector<120x1xf32> to vector<120x128xf32>
    %91 = arith.cmpf olt, %16, %90 : vector<120x128xf32>
    %cst_34 = arith.constant -1.000000e+00 : f32
    %92 = vector.broadcast %cst_34 : f32 to vector<120x128xf32>
    %93 = arith.select %91, %16, %92 : vector<120x128xi1>, vector<120x128xf32>
    %cst_35 = arith.constant dense<0xFF800000> : vector<120xf32>
    %94 = vector.multi_reduction <maximumf>, %93, %cst_35 [1] : vector<120x128xf32> to vector<120xf32>
    %95 = vector.shape_cast %94 : vector<120xf32> to vector<120x1xf32>
    %c13_i32 = arith.constant 13 : i32
    %96 = vector.broadcast %95 : vector<120x1xf32> to vector<120x128xf32>
    %97 = arith.cmpf olt, %16, %96 : vector<120x128xf32>
    %cst_36 = arith.constant -1.000000e+00 : f32
    %98 = vector.broadcast %cst_36 : f32 to vector<120x128xf32>
    %99 = arith.select %97, %16, %98 : vector<120x128xi1>, vector<120x128xf32>
    %cst_37 = arith.constant dense<0xFF800000> : vector<120xf32>
    %100 = vector.multi_reduction <maximumf>, %99, %cst_37 [1] : vector<120x128xf32> to vector<120xf32>
    %101 = vector.shape_cast %100 : vector<120xf32> to vector<120x1xf32>
    %c14_i32 = arith.constant 14 : i32
    %102 = vector.broadcast %101 : vector<120x1xf32> to vector<120x128xf32>
    %103 = arith.cmpf olt, %16, %102 : vector<120x128xf32>
    %cst_38 = arith.constant -1.000000e+00 : f32
    %104 = vector.broadcast %cst_38 : f32 to vector<120x128xf32>
    %105 = arith.select %103, %16, %104 : vector<120x128xi1>, vector<120x128xf32>
    %cst_39 = arith.constant dense<0xFF800000> : vector<120xf32>
    %106 = vector.multi_reduction <maximumf>, %105, %cst_39 [1] : vector<120x128xf32> to vector<120xf32>
    %107 = vector.shape_cast %106 : vector<120xf32> to vector<120x1xf32>
    %c15_i32 = arith.constant 15 : i32
    %108 = vector.broadcast %107 : vector<120x1xf32> to vector<120x128xf32>
    %109 = arith.cmpf olt, %16, %108 : vector<120x128xf32>
    %cst_40 = arith.constant -1.000000e+00 : f32
    %110 = vector.broadcast %cst_40 : f32 to vector<120x128xf32>
    %111 = arith.select %109, %16, %110 : vector<120x128xi1>, vector<120x128xf32>
    %cst_41 = arith.constant dense<0xFF800000> : vector<120xf32>
    %112 = vector.multi_reduction <maximumf>, %111, %cst_41 [1] : vector<120x128xf32> to vector<120xf32>
    %113 = vector.shape_cast %112 : vector<120xf32> to vector<120x1xf32>
    %c16_i32 = arith.constant 16 : i32
    %114 = vector.broadcast %113 : vector<120x1xf32> to vector<120x128xf32>
    %115 = arith.cmpf olt, %16, %114 : vector<120x128xf32>
    %cst_42 = arith.constant -1.000000e+00 : f32
    %116 = vector.broadcast %cst_42 : f32 to vector<120x128xf32>
    %117 = arith.select %115, %16, %116 : vector<120x128xi1>, vector<120x128xf32>
    %cst_43 = arith.constant dense<0xFF800000> : vector<120xf32>
    %118 = vector.multi_reduction <maximumf>, %117, %cst_43 [1] : vector<120x128xf32> to vector<120xf32>
    %119 = vector.shape_cast %118 : vector<120xf32> to vector<120x1xf32>
    %c17_i32 = arith.constant 17 : i32
    %120 = vector.broadcast %119 : vector<120x1xf32> to vector<120x128xf32>
    %121 = arith.cmpf olt, %16, %120 : vector<120x128xf32>
    %cst_44 = arith.constant -1.000000e+00 : f32
    %122 = vector.broadcast %cst_44 : f32 to vector<120x128xf32>
    %123 = arith.select %121, %16, %122 : vector<120x128xi1>, vector<120x128xf32>
    %cst_45 = arith.constant dense<0xFF800000> : vector<120xf32>
    %124 = vector.multi_reduction <maximumf>, %123, %cst_45 [1] : vector<120x128xf32> to vector<120xf32>
    %125 = vector.shape_cast %124 : vector<120xf32> to vector<120x1xf32>
    %c18_i32 = arith.constant 18 : i32
    %126 = vector.broadcast %125 : vector<120x1xf32> to vector<120x128xf32>
    %127 = arith.cmpf olt, %16, %126 : vector<120x128xf32>
    %cst_46 = arith.constant -1.000000e+00 : f32
    %128 = vector.broadcast %cst_46 : f32 to vector<120x128xf32>
    %129 = arith.select %127, %16, %128 : vector<120x128xi1>, vector<120x128xf32>
    %cst_47 = arith.constant dense<0xFF800000> : vector<120xf32>
    %130 = vector.multi_reduction <maximumf>, %129, %cst_47 [1] : vector<120x128xf32> to vector<120xf32>
    %131 = vector.shape_cast %130 : vector<120xf32> to vector<120x1xf32>
    %c19_i32 = arith.constant 19 : i32
    %132 = vector.broadcast %131 : vector<120x1xf32> to vector<120x128xf32>
    %133 = arith.cmpf olt, %16, %132 : vector<120x128xf32>
    %cst_48 = arith.constant -1.000000e+00 : f32
    %134 = vector.broadcast %cst_48 : f32 to vector<120x128xf32>
    %135 = arith.select %133, %16, %134 : vector<120x128xi1>, vector<120x128xf32>
    %cst_49 = arith.constant dense<0xFF800000> : vector<120xf32>
    %136 = vector.multi_reduction <maximumf>, %135, %cst_49 [1] : vector<120x128xf32> to vector<120xf32>
    %137 = vector.shape_cast %136 : vector<120xf32> to vector<120x1xf32>
    %c20_i32 = arith.constant 20 : i32
    %138 = vector.broadcast %137 : vector<120x1xf32> to vector<120x128xf32>
    %139 = arith.cmpf olt, %16, %138 : vector<120x128xf32>
    %cst_50 = arith.constant -1.000000e+00 : f32
    %140 = vector.broadcast %cst_50 : f32 to vector<120x128xf32>
    %141 = arith.select %139, %16, %140 : vector<120x128xi1>, vector<120x128xf32>
    %cst_51 = arith.constant dense<0xFF800000> : vector<120xf32>
    %142 = vector.multi_reduction <maximumf>, %141, %cst_51 [1] : vector<120x128xf32> to vector<120xf32>
    %143 = vector.shape_cast %142 : vector<120xf32> to vector<120x1xf32>
    %c21_i32 = arith.constant 21 : i32
    %144 = vector.broadcast %143 : vector<120x1xf32> to vector<120x128xf32>
    %145 = arith.cmpf olt, %16, %144 : vector<120x128xf32>
    %cst_52 = arith.constant -1.000000e+00 : f32
    %146 = vector.broadcast %cst_52 : f32 to vector<120x128xf32>
    %147 = arith.select %145, %16, %146 : vector<120x128xi1>, vector<120x128xf32>
    %cst_53 = arith.constant dense<0xFF800000> : vector<120xf32>
    %148 = vector.multi_reduction <maximumf>, %147, %cst_53 [1] : vector<120x128xf32> to vector<120xf32>
    %149 = vector.shape_cast %148 : vector<120xf32> to vector<120x1xf32>
    %c22_i32 = arith.constant 22 : i32
    %150 = vector.broadcast %149 : vector<120x1xf32> to vector<120x128xf32>
    %151 = arith.cmpf olt, %16, %150 : vector<120x128xf32>
    %cst_54 = arith.constant -1.000000e+00 : f32
    %152 = vector.broadcast %cst_54 : f32 to vector<120x128xf32>
    %153 = arith.select %151, %16, %152 : vector<120x128xi1>, vector<120x128xf32>
    %cst_55 = arith.constant dense<0xFF800000> : vector<120xf32>
    %154 = vector.multi_reduction <maximumf>, %153, %cst_55 [1] : vector<120x128xf32> to vector<120xf32>
    %155 = vector.shape_cast %154 : vector<120xf32> to vector<120x1xf32>
    %c23_i32 = arith.constant 23 : i32
    %156 = vector.broadcast %155 : vector<120x1xf32> to vector<120x128xf32>
    %157 = arith.cmpf olt, %16, %156 : vector<120x128xf32>
    %cst_56 = arith.constant -1.000000e+00 : f32
    %158 = vector.broadcast %cst_56 : f32 to vector<120x128xf32>
    %159 = arith.select %157, %16, %158 : vector<120x128xi1>, vector<120x128xf32>
    %cst_57 = arith.constant dense<0xFF800000> : vector<120xf32>
    %160 = vector.multi_reduction <maximumf>, %159, %cst_57 [1] : vector<120x128xf32> to vector<120xf32>
    %161 = vector.shape_cast %160 : vector<120xf32> to vector<120x1xf32>
    %c24_i32 = arith.constant 24 : i32
    %162 = vector.broadcast %161 : vector<120x1xf32> to vector<120x128xf32>
    %163 = arith.cmpf olt, %16, %162 : vector<120x128xf32>
    %cst_58 = arith.constant -1.000000e+00 : f32
    %164 = vector.broadcast %cst_58 : f32 to vector<120x128xf32>
    %165 = arith.select %163, %16, %164 : vector<120x128xi1>, vector<120x128xf32>
    %cst_59 = arith.constant dense<0xFF800000> : vector<120xf32>
    %166 = vector.multi_reduction <maximumf>, %165, %cst_59 [1] : vector<120x128xf32> to vector<120xf32>
    %167 = vector.shape_cast %166 : vector<120xf32> to vector<120x1xf32>
    %c25_i32 = arith.constant 25 : i32
    %168 = vector.broadcast %167 : vector<120x1xf32> to vector<120x128xf32>
    %169 = arith.cmpf olt, %16, %168 : vector<120x128xf32>
    %cst_60 = arith.constant -1.000000e+00 : f32
    %170 = vector.broadcast %cst_60 : f32 to vector<120x128xf32>
    %171 = arith.select %169, %16, %170 : vector<120x128xi1>, vector<120x128xf32>
    %cst_61 = arith.constant dense<0xFF800000> : vector<120xf32>
    %172 = vector.multi_reduction <maximumf>, %171, %cst_61 [1] : vector<120x128xf32> to vector<120xf32>
    %173 = vector.shape_cast %172 : vector<120xf32> to vector<120x1xf32>
    %c26_i32 = arith.constant 26 : i32
    %174 = vector.broadcast %173 : vector<120x1xf32> to vector<120x128xf32>
    %175 = arith.cmpf olt, %16, %174 : vector<120x128xf32>
    %cst_62 = arith.constant -1.000000e+00 : f32
    %176 = vector.broadcast %cst_62 : f32 to vector<120x128xf32>
    %177 = arith.select %175, %16, %176 : vector<120x128xi1>, vector<120x128xf32>
    %cst_63 = arith.constant dense<0xFF800000> : vector<120xf32>
    %178 = vector.multi_reduction <maximumf>, %177, %cst_63 [1] : vector<120x128xf32> to vector<120xf32>
    %179 = vector.shape_cast %178 : vector<120xf32> to vector<120x1xf32>
    %c27_i32 = arith.constant 27 : i32
    %180 = vector.broadcast %179 : vector<120x1xf32> to vector<120x128xf32>
    %181 = arith.cmpf olt, %16, %180 : vector<120x128xf32>
    %cst_64 = arith.constant -1.000000e+00 : f32
    %182 = vector.broadcast %cst_64 : f32 to vector<120x128xf32>
    %183 = arith.select %181, %16, %182 : vector<120x128xi1>, vector<120x128xf32>
    %cst_65 = arith.constant dense<0xFF800000> : vector<120xf32>
    %184 = vector.multi_reduction <maximumf>, %183, %cst_65 [1] : vector<120x128xf32> to vector<120xf32>
    %185 = vector.shape_cast %184 : vector<120xf32> to vector<120x1xf32>
    %c28_i32 = arith.constant 28 : i32
    %186 = vector.broadcast %185 : vector<120x1xf32> to vector<120x128xf32>
    %187 = arith.cmpf olt, %16, %186 : vector<120x128xf32>
    %cst_66 = arith.constant -1.000000e+00 : f32
    %188 = vector.broadcast %cst_66 : f32 to vector<120x128xf32>
    %189 = arith.select %187, %16, %188 : vector<120x128xi1>, vector<120x128xf32>
    %cst_67 = arith.constant dense<0xFF800000> : vector<120xf32>
    %190 = vector.multi_reduction <maximumf>, %189, %cst_67 [1] : vector<120x128xf32> to vector<120xf32>
    %191 = vector.shape_cast %190 : vector<120xf32> to vector<120x1xf32>
    %c29_i32 = arith.constant 29 : i32
    %192 = vector.broadcast %191 : vector<120x1xf32> to vector<120x128xf32>
    %193 = arith.cmpf olt, %16, %192 : vector<120x128xf32>
    %cst_68 = arith.constant -1.000000e+00 : f32
    %194 = vector.broadcast %cst_68 : f32 to vector<120x128xf32>
    %195 = arith.select %193, %16, %194 : vector<120x128xi1>, vector<120x128xf32>
    %cst_69 = arith.constant dense<0xFF800000> : vector<120xf32>
    %196 = vector.multi_reduction <maximumf>, %195, %cst_69 [1] : vector<120x128xf32> to vector<120xf32>
    %197 = vector.shape_cast %196 : vector<120xf32> to vector<120x1xf32>
    %c30_i32 = arith.constant 30 : i32
    %198 = vector.broadcast %197 : vector<120x1xf32> to vector<120x128xf32>
    %199 = arith.cmpf olt, %16, %198 : vector<120x128xf32>
    %cst_70 = arith.constant -1.000000e+00 : f32
    %200 = vector.broadcast %cst_70 : f32 to vector<120x128xf32>
    %201 = arith.select %199, %16, %200 : vector<120x128xi1>, vector<120x128xf32>
    %cst_71 = arith.constant dense<0xFF800000> : vector<120xf32>
    %202 = vector.multi_reduction <maximumf>, %201, %cst_71 [1] : vector<120x128xf32> to vector<120xf32>
    %203 = vector.shape_cast %202 : vector<120xf32> to vector<120x1xf32>
    %c31_i32 = arith.constant 31 : i32
    %204 = vector.broadcast %203 : vector<120x1xf32> to vector<120x128xf32>
    %205 = arith.cmpf olt, %16, %204 : vector<120x128xf32>
    %cst_72 = arith.constant -1.000000e+00 : f32
    %206 = vector.broadcast %cst_72 : f32 to vector<120x128xf32>
    %207 = arith.select %205, %16, %206 : vector<120x128xi1>, vector<120x128xf32>
    %cst_73 = arith.constant dense<0xFF800000> : vector<120xf32>
    %208 = vector.multi_reduction <maximumf>, %207, %cst_73 [1] : vector<120x128xf32> to vector<120xf32>
    %209 = vector.shape_cast %208 : vector<120xf32> to vector<120x1xf32>
    %210 = vector.broadcast %209 : vector<120x1xf32> to vector<120x128xf32>
    %211 = arith.cmpf oge, %16, %210 : vector<120x128xf32>
    %cst_74 = arith.constant 0.000000e+00 : f32
    %212 = vector.broadcast %cst_74 : f32 to vector<120x128xf32>
    %213 = arith.select %211, %16, %212 : vector<120x128xi1>, vector<120x128xf32>
    %c0_75 = arith.constant 0 : index
    %c0_76 = arith.constant 0 : index
    %c0_77 = arith.constant 0 : index
    %214 = vector.load %arg4[%c0_75, %c0_76, %c0_77] : memref<1x128x32xf32, #tpu.memory_space<vmem>>, vector<1x128x32xf32>
    %215 = vector.shape_cast %214 : vector<1x128x32xf32> to vector<128x32xf32>
    %c0_78 = arith.constant 0 : index
    %c0_79 = arith.constant 0 : index
    %216 = vector.load %arg6[%c0_78, %c0_79] : memref<1x32xf32, #tpu.memory_space<vmem>>, vector<1x32xf32>
    %217 = vector.broadcast %216 : vector<1x32xf32> to vector<128x32xf32>
    %218 = arith.mulf %215, %217 : vector<128x32xf32>
    %c0_80 = arith.constant 0 : index
    %c0_81 = arith.constant 0 : index
    %219 = vector.load %arg7[%c0_80, %c0_81] : memref<1x32xf32, #tpu.memory_space<vmem>>, vector<1x32xf32>
    %220 = vector.broadcast %219 : vector<1x32xf32> to vector<128x32xf32>
    %221 = arith.addf %218, %220 : vector<128x32xf32>
    %cst_82 = arith.constant 0.000000e+00 : f32
    %222 = vector.broadcast %cst_82 : f32 to vector<128x32xf32>
    %223 = arith.maximumf %221, %222 : vector<128x32xf32>
    %cst_83 = arith.constant dense<0.000000e+00> : vector<120x32xf32>
    %224 = tpu.matmul %213, %223, %cst_83 {dimension_numbers = #tpu.dot_dimension_numbers<[1], [0], [0], [1], [0, 0, 1, 1], [], []>} : vector<120x128xf32>, vector<128x32xf32>, vector<120x32xf32> -> vector<120x32xf32>
    %c0_84 = arith.constant 0 : index
    %c0_85 = arith.constant 0 : index
    %225 = vector.load %arg8[%c0_84, %c0_85] : memref<32x32xf32, #tpu.memory_space<vmem>>, vector<32x32xf32>
    %cst_86 = arith.constant dense<0.000000e+00> : vector<120x32xf32>
    %226 = tpu.matmul %224, %225, %cst_86 {dimension_numbers = #tpu.dot_dimension_numbers<[1], [0], [0], [1], [0, 0, 1, 1], [], []>} : vector<120x32xf32>, vector<32x32xf32>, vector<120x32xf32> -> vector<120x32xf32>
    %c0_87 = arith.constant 0 : index
    %c0_88 = arith.constant 0 : index
    %c0_89 = arith.constant 0 : index
    %227 = vector.load %arg9[%c0_87, %c0_88, %c0_89] : memref<1x120x32xf32, #tpu.memory_space<vmem>>, vector<1x120x32xf32>
    %228 = vector.shape_cast %227 : vector<1x120x32xf32> to vector<120x32xf32>
    %229 = vector.shape_cast %226 : vector<120x32xf32> to vector<1x120x32xf32>
    tpu.vector_store %arg9[%c0_87, %c0_88, %c0_89], %229 {strides = array<i32>} : memref<1x120x32xf32, #tpu.memory_space<vmem>>, vector<1x120x32xf32>,
    return
  }
  func.func @transform_0(%arg0: i32, %arg1: i32) -> (i32, i32, i32) {
    %c0_i32 = arith.constant 0 : i32
    %c0_i32_0 = arith.constant 0 : i32
    return %arg0, %arg1, %c0_i32 : i32, i32, i32
  }
  func.func @transform_1(%arg0: i32, %arg1: i32) -> (i32, i32, i32) {
    %c0_i32 = arith.constant 0 : i32
    %c0_i32_0 = arith.constant 0 : i32
    %c0_i32_1 = arith.constant 0 : i32
    return %arg0, %c0_i32, %c0_i32_0 : i32, i32, i32
  }
  func.func @transform_2(%arg0: i32, %arg1: i32) -> (i32, i32, i32) {
    %c0_i32 = arith.constant 0 : i32
    %c0_i32_0 = arith.constant 0 : i32
    %c0_i32_1 = arith.constant 0 : i32
    return %arg0, %c0_i32, %c0_i32_0 : i32, i32, i32
  }
  func.func @transform_3(%arg0: i32, %arg1: i32) -> (i32, i32) {
    %c0_i32 = arith.constant 0 : i32
    %c0_i32_0 = arith.constant 0 : i32
    %c0_i32_1 = arith.constant 0 : i32
    return %c0_i32, %c0_i32_0 : i32, i32
  }
  func.func @transform_4(%arg0: i32, %arg1: i32) -> (i32, i32) {
    %c0_i32 = arith.constant 0 : i32
    %c0_i32_0 = arith.constant 0 : i32
    %c0_i32_1 = arith.constant 0 : i32
    return %c0_i32, %c0_i32_0 : i32, i32
  }
  func.func @transform_5(%arg0: i32, %arg1: i32) -> (i32, i32) {
    %c0_i32 = arith.constant 0 : i32
    %c0_i32_0 = arith.constant 0 : i32
    %c0_i32_1 = arith.constant 0 : i32
    return %c0_i32, %c0_i32_0 : i32, i32
  }
  func.func @transform_6(%arg0: i32, %arg1: i32) -> (i32, i32) {
    %c0_i32 = arith.constant 0 : i32
    %c0_i32_0 = arith.constant 0 : i32
    %c0_i32_1 = arith.constant 0 : i32
    return %c0_i32, %c0_i32_0 : i32, i32
  }
  func.func @transform_7(%arg0: i32, %arg1: i32) -> (i32, i32, i32) {
    %c0_i32 = arith.constant 0 : i32
    %c0_i32_0 = arith.constant 0 : i32
    return %arg0, %arg1, %c0_i32 : i32, i32, i32
  }
}

module attributes {stable_mosaic.version = 11 : i64} {
  func.func @_fi_fuse_stats_kernel(%arg0: i32, %arg1: memref<240x32xf32, #tpu.memory_space<vmem>>, %arg2: memref<1x32xf32, #tpu.memory_space<vmem>>, %arg3: memref<1x32xf32, #tpu.memory_space<vmem>>, %arg4: memref<240x32xf32, #tpu.memory_space<vmem>>, %arg5: memref<32x32xf32, #tpu.memory_space<vmem>>, %arg6: memref<1x32xf32, #tpu.memory_space<vmem>>, %arg7: memref<240x1xf32, #tpu.memory_space<vmem>>, %arg8: memref<240x32xf32, #tpu.memory_space<vmem>>, %arg9: memref<1x1x32xf32, #tpu.memory_space<vmem>>, %arg10: memref<1x1x32xf32, #tpu.memory_space<vmem>>) attributes {dimension_semantics = [#tpu.dimension_semantics<parallel>], iteration_bounds = array<i64: 2>, scalar_prefetch = 0 : i64, scratch_operands = 0 : i64, tpu.core_type = #tpu.core_type<tc>, window_params = [{transform_indices = @transform_0, window_bounds = array<i64: 240, 32>}, {pipeline_mode = #tpu.pipeline_mode<synchronous>, transform_indices = @transform_1, window_bounds = array<i64: 1, 32>}, {pipeline_mode = #tpu.pipeline_mode<synchronous>, transform_indices = @transform_2, window_bounds = array<i64: 1, 32>}, {transform_indices = @transform_3, window_bounds = array<i64: 240, 32>}, {pipeline_mode = #tpu.pipeline_mode<synchronous>, transform_indices = @transform_4, window_bounds = array<i64: 32, 32>}, {pipeline_mode = #tpu.pipeline_mode<synchronous>, transform_indices = @transform_5, window_bounds = array<i64: 1, 32>}, {transform_indices = @transform_6, window_bounds = array<i64: 240, 1>}, {transform_indices = @transform_7, window_bounds = array<i64: 240, 32>}, {transform_indices = @transform_8, window_bounds = array<i64: 1, 1, 32>}, {transform_indices = @transform_9, window_bounds = array<i64: 1, 1, 32>}]} {
    %c0 = arith.constant 0 : index
    %c0_0 = arith.constant 0 : index
    %0 = vector.load %arg1[%c0, %c0_0] : memref<240x32xf32, #tpu.memory_space<vmem>>, vector<240x32xf32>
    %c0_1 = arith.constant 0 : index
    %c0_2 = arith.constant 0 : index
    %1 = vector.load %arg2[%c0_1, %c0_2] : memref<1x32xf32, #tpu.memory_space<vmem>>, vector<1x32xf32>
    %2 = vector.broadcast %1 : vector<1x32xf32> to vector<240x32xf32>
    %3 = arith.mulf %0, %2 : vector<240x32xf32>
    %c0_3 = arith.constant 0 : index
    %c0_4 = arith.constant 0 : index
    %4 = vector.load %arg3[%c0_3, %c0_4] : memref<1x32xf32, #tpu.memory_space<vmem>>, vector<1x32xf32>
    %5 = vector.broadcast %4 : vector<1x32xf32> to vector<240x32xf32>
    %6 = arith.addf %3, %5 : vector<240x32xf32>
    %cst = arith.constant 0.000000e+00 : f32
    %7 = vector.broadcast %cst : f32 to vector<240x32xf32>
    %8 = arith.maximumf %6, %7 : vector<240x32xf32>
    %c0_5 = arith.constant 0 : index
    %c0_6 = arith.constant 0 : index
    %9 = vector.load %arg4[%c0_5, %c0_6] : memref<240x32xf32, #tpu.memory_space<vmem>>, vector<240x32xf32>
    %c0_7 = arith.constant 0 : index
    %c0_8 = arith.constant 0 : index
    %10 = vector.load %arg5[%c0_7, %c0_8] : memref<32x32xf32, #tpu.memory_space<vmem>>, vector<32x32xf32>
    %cst_9 = arith.constant dense<0.000000e+00> : vector<240x32xf32>
    %11 = tpu.matmul %8, %10, %cst_9 {dimension_numbers = #tpu.dot_dimension_numbers<[1], [0], [0], [1], [0, 0, 1, 1], [], []>} : vector<240x32xf32>, vector<32x32xf32>, vector<240x32xf32> -> vector<240x32xf32>
    %12 = arith.addf %9, %11 : vector<240x32xf32>
    %c0_10 = arith.constant 0 : index
    %c0_11 = arith.constant 0 : index
    %13 = vector.load %arg6[%c0_10, %c0_11] : memref<1x32xf32, #tpu.memory_space<vmem>>, vector<1x32xf32>
    %14 = vector.broadcast %13 : vector<1x32xf32> to vector<240x32xf32>
    %15 = arith.addf %12, %14 : vector<240x32xf32>
    %c0_12 = arith.constant 0 : index
    %c0_13 = arith.constant 0 : index
    %16 = vector.load %arg8[%c0_12, %c0_13] : memref<240x32xf32, #tpu.memory_space<vmem>>, vector<240x32xf32>
    tpu.vector_store %arg8[%c0_12, %c0_13], %15 {strides = array<i32>} : memref<240x32xf32, #tpu.memory_space<vmem>>, vector<240x32xf32>,
    %c0_14 = arith.constant 0 : index
    %c0_15 = arith.constant 0 : index
    %17 = vector.load %arg7[%c0_14, %c0_15] : memref<240x1xf32, #tpu.memory_space<vmem>>, vector<240x1xf32>
    %18 = vector.broadcast %17 : vector<240x1xf32> to vector<240x32xf32>
    %19 = arith.mulf %15, %18 : vector<240x32xf32>
    %cst_16 = arith.constant dense<0.000000e+00> : vector<32xf32>
    %20 = vector.multi_reduction <add>, %19, %cst_16 [0] : vector<240x32xf32> to vector<32xf32>
    %21 = vector.shape_cast %20 : vector<32xf32> to vector<1x32xf32>
    %22 = vector.shape_cast %21 : vector<1x32xf32> to vector<1x1x32xf32>
    %c0_17 = arith.constant 0 : index
    %c0_18 = arith.constant 0 : index
    %c0_19 = arith.constant 0 : index
    %23 = vector.load %arg9[%c0_17, %c0_18, %c0_19] : memref<1x1x32xf32, #tpu.memory_space<vmem>>, vector<1x1x32xf32>
    tpu.vector_store %arg9[%c0_17, %c0_18, %c0_19], %22 {strides = array<i32>} : memref<1x1x32xf32, #tpu.memory_space<vmem>>, vector<1x1x32xf32>,
    %24 = arith.mulf %19, %15 : vector<240x32xf32>
    %cst_20 = arith.constant dense<0.000000e+00> : vector<32xf32>
    %25 = vector.multi_reduction <add>, %24, %cst_20 [0] : vector<240x32xf32> to vector<32xf32>
    %26 = vector.shape_cast %25 : vector<32xf32> to vector<1x32xf32>
    %27 = vector.shape_cast %26 : vector<1x32xf32> to vector<1x1x32xf32>
    %c0_21 = arith.constant 0 : index
    %c0_22 = arith.constant 0 : index
    %c0_23 = arith.constant 0 : index
    %28 = vector.load %arg10[%c0_21, %c0_22, %c0_23] : memref<1x1x32xf32, #tpu.memory_space<vmem>>, vector<1x1x32xf32>
    tpu.vector_store %arg10[%c0_21, %c0_22, %c0_23], %27 {strides = array<i32>} : memref<1x1x32xf32, #tpu.memory_space<vmem>>, vector<1x1x32xf32>,
    return
  }
  func.func @transform_0(%arg0: i32) -> (i32, i32) {
    %c0_i32 = arith.constant 0 : i32
    %c0_i32_0 = arith.constant 0 : i32
    return %arg0, %c0_i32 : i32, i32
  }
  func.func @transform_1(%arg0: i32) -> (i32, i32) {
    %c0_i32 = arith.constant 0 : i32
    %c0_i32_0 = arith.constant 0 : i32
    %c0_i32_1 = arith.constant 0 : i32
    return %c0_i32, %c0_i32_0 : i32, i32
  }
  func.func @transform_2(%arg0: i32) -> (i32, i32) {
    %c0_i32 = arith.constant 0 : i32
    %c0_i32_0 = arith.constant 0 : i32
    %c0_i32_1 = arith.constant 0 : i32
    return %c0_i32, %c0_i32_0 : i32, i32
  }
  func.func @transform_3(%arg0: i32) -> (i32, i32) {
    %c0_i32 = arith.constant 0 : i32
    %c0_i32_0 = arith.constant 0 : i32
    return %arg0, %c0_i32 : i32, i32
  }
  func.func @transform_4(%arg0: i32) -> (i32, i32) {
    %c0_i32 = arith.constant 0 : i32
    %c0_i32_0 = arith.constant 0 : i32
    %c0_i32_1 = arith.constant 0 : i32
    return %c0_i32, %c0_i32_0 : i32, i32
  }
  func.func @transform_5(%arg0: i32) -> (i32, i32) {
    %c0_i32 = arith.constant 0 : i32
    %c0_i32_0 = arith.constant 0 : i32
    %c0_i32_1 = arith.constant 0 : i32
    return %c0_i32, %c0_i32_0 : i32, i32
  }
  func.func @transform_6(%arg0: i32) -> (i32, i32) {
    %c0_i32 = arith.constant 0 : i32
    %c0_i32_0 = arith.constant 0 : i32
    return %arg0, %c0_i32 : i32, i32
  }
  func.func @transform_7(%arg0: i32) -> (i32, i32) {
    %c0_i32 = arith.constant 0 : i32
    %c0_i32_0 = arith.constant 0 : i32
    return %arg0, %c0_i32 : i32, i32
  }
  func.func @transform_8(%arg0: i32) -> (i32, i32, i32) {
    %c0_i32 = arith.constant 0 : i32
    %c0_i32_0 = arith.constant 0 : i32
    %c0_i32_1 = arith.constant 0 : i32
    return %arg0, %c0_i32, %c0_i32_0 : i32, i32, i32
  }
  func.func @transform_9(%arg0: i32) -> (i32, i32, i32) {
    %c0_i32 = arith.constant 0 : i32
    %c0_i32_0 = arith.constant 0 : i32
    %c0_i32_1 = arith.constant 0 : i32
    return %arg0, %c0_i32, %c0_i32_0 : i32, i32, i32
  }
}

module attributes {stable_mosaic.version = 11 : i64} {
  func.func @_affine_relu_kernel(%arg0: i32, %arg1: memref<240x32xf32, #tpu.memory_space<vmem>>, %arg2: memref<1x32xf32, #tpu.memory_space<vmem>>, %arg3: memref<1x32xf32, #tpu.memory_space<vmem>>, %arg4: memref<240x32xf32, #tpu.memory_space<vmem>>) attributes {dimension_semantics = [#tpu.dimension_semantics<parallel>], iteration_bounds = array<i64: 2>, scalar_prefetch = 0 : i64, scratch_operands = 0 : i64, tpu.core_type = #tpu.core_type<tc>, window_params = [{transform_indices = @transform_0, window_bounds = array<i64: 240, 32>}, {pipeline_mode = #tpu.pipeline_mode<synchronous>, transform_indices = @transform_1, window_bounds = array<i64: 1, 32>}, {pipeline_mode = #tpu.pipeline_mode<synchronous>, transform_indices = @transform_2, window_bounds = array<i64: 1, 32>}, {transform_indices = @transform_3, window_bounds = array<i64: 240, 32>}]} {
    %c0 = arith.constant 0 : index
    %c0_0 = arith.constant 0 : index
    %0 = vector.load %arg1[%c0, %c0_0] : memref<240x32xf32, #tpu.memory_space<vmem>>, vector<240x32xf32>
    %c0_1 = arith.constant 0 : index
    %c0_2 = arith.constant 0 : index
    %1 = vector.load %arg2[%c0_1, %c0_2] : memref<1x32xf32, #tpu.memory_space<vmem>>, vector<1x32xf32>
    %2 = vector.broadcast %1 : vector<1x32xf32> to vector<240x32xf32>
    %3 = arith.mulf %0, %2 : vector<240x32xf32>
    %c0_3 = arith.constant 0 : index
    %c0_4 = arith.constant 0 : index
    %4 = vector.load %arg3[%c0_3, %c0_4] : memref<1x32xf32, #tpu.memory_space<vmem>>, vector<1x32xf32>
    %5 = vector.broadcast %4 : vector<1x32xf32> to vector<240x32xf32>
    %6 = arith.addf %3, %5 : vector<240x32xf32>
    %cst = arith.constant 0.000000e+00 : f32
    %7 = vector.broadcast %cst : f32 to vector<240x32xf32>
    %8 = arith.maximumf %6, %7 : vector<240x32xf32>
    %c0_5 = arith.constant 0 : index
    %c0_6 = arith.constant 0 : index
    %9 = vector.load %arg4[%c0_5, %c0_6] : memref<240x32xf32, #tpu.memory_space<vmem>>, vector<240x32xf32>
    tpu.vector_store %arg4[%c0_5, %c0_6], %8 {strides = array<i32>} : memref<240x32xf32, #tpu.memory_space<vmem>>, vector<240x32xf32>,
    return
  }
  func.func @transform_0(%arg0: i32) -> (i32, i32) {
    %c0_i32 = arith.constant 0 : i32
    %c0_i32_0 = arith.constant 0 : i32
    return %arg0, %c0_i32 : i32, i32
  }
  func.func @transform_1(%arg0: i32) -> (i32, i32) {
    %c0_i32 = arith.constant 0 : i32
    %c0_i32_0 = arith.constant 0 : i32
    %c0_i32_1 = arith.constant 0 : i32
    return %c0_i32, %c0_i32_0 : i32, i32
  }
  func.func @transform_2(%arg0: i32) -> (i32, i32) {
    %c0_i32 = arith.constant 0 : i32
    %c0_i32_0 = arith.constant 0 : i32
    %c0_i32_1 = arith.constant 0 : i32
    return %c0_i32, %c0_i32_0 : i32, i32
  }
  func.func @transform_3(%arg0: i32) -> (i32, i32) {
    %c0_i32 = arith.constant 0 : i32
    %c0_i32_0 = arith.constant 0 : i32
    return %arg0, %c0_i32 : i32, i32
  }
}

</mosaic_0001>

<bundles_post_ra>
// kernel: tile.13
= control target key start
LH: loop header
LB: loop body
LE: loop exit
PB: predicated region body
PF: predicated region fallthrough
CT: control target
= control target key end

     0   :  { %s34_s0 = inlined_call_operand.vmem [shape: f32[240], index: 0, kind: input, shape index: {}]   ;;  %s35_s1 = inlined_call_operand.vmem [shape: f32[2,240], index: 1, kind: output, shape index: {}]  }
   0x1   :  { %v4_v0 = vld [vmem:[%s34_s0] ss:$0 sm:$0xff]  ;;  %v10_v1 = vld [vmem:[%s34_s0 + $0x1] ss:$0 sm:$0xff] }
   0x2   :  { %5 = vst [vmem:[%s35_s1] sm:$0x3] %v4_v0 }
   0x3   :  { %11 = vst [vmem:[%s35_s1 + $0x2] sm:$0x3] %v10_v1 }

// kernel: tile.0
= control target key start
LH: loop header
LB: loop body
LE: loop exit
PB: predicated region body
PF: predicated region fallthrough
CT: control target
= control target key end

     0   :  { %s1402_s10 = smov 125   ;;  %s1403_s11 = smov 123   ;;  %vm11_vm0 = vcmask 7168   ;;  %s2614_s0 = inlined_call_operand.vmem [shape: f32[2,240], index: 0, kind: input, shape index: {}]   ;;  %s2615_s1 = inlined_call_operand.vmem [shape: f32[480,1], index: 1, kind: output, shape index: {}]  }
   0x1   :  { %v1034_v0 = vld [vmem:[%s2614_s0 + $0x2] sm:$0x3]  ;;  %v8_v1 = vld [vmem:[%s2614_s0] sm:$0x3]  ;;  %s1401_s0 = smov 127   ;;  %s1404_s12 = smov 126  }
   0x2   :  { %7 = vst [vmem:[#allocation0 + $0x8] sm:$0x3] %v1034_v0  ;;  %s1405_s13 = smov 124   ;;  %s1406_s14 = smov 122  }
   0x3   :  { %9 = vst [vmem:[#allocation0] sm:$0x3] %v8_v1  ;;  %s1407_s15 = smov 121   ;;  %s1408_s16 = smov 120  }
   0x4   :  { %s1409_s17 = smov 119   ;;  %s1410_s18 = smov 118  }
   0x5   :  { %s1411_s19 = smov 117   ;;  %s1412_s20 = smov 116  }
   0x6   :  { %s1413_s21 = smov 115   ;;  %s1414_s22 = smov 114  }
   0x7   :  { %s1415_s23 = smov 113   ;;  %s1416_s24 = smov 112  }
   0x8   :  { %s1417_s25 = smov 111   ;;  %s1418_s26 = smov 110  }
   0x9   :  { %s1419_s27 = smov 109   ;;  %s1420_s28 = smov 108  }
   0xa   :  { %v1544_v2 = vld.sshfl [vmem:[#allocation0] sm:$0xff pattern:$0x99999810]   ;;  %s1421_s29 = smov 107   ;;  %s1422_s30 = smov 106  }
   0xb   :  { %19 = vrot.lane.b32.xlu0 %v1544_v2, %s1401_s0  ;;  %35 = vrot.lane.b32.xlu1 %v1544_v2, %s1402_s10  ;;  %v1561_v3 = vld.sshfl [vmem:[#allocation0] sm:$0xff pattern:$0x88888901]   ;;  %s1423_s2 = smov 105   ;;  %s1424_s3 = smov 104  }
   0xc   :  { %51 = vrot.lane.b32.xlu2 %v1544_v2, %s1403_s11  ;;  %s1425_s4 = smov 103   ;;  %s1426_s5 = smov 102   ;;  %v826_v0 = vld.sshfl [vmem:[#allocation0] sm:$0xff pattern:$0x99999810]  }
   0xd   :  { %s1427_s6 = smov 101   ;;  %s1428_s7 = smov 100  }
   0xe   :  { %s1429_s8 = smov 99   ;;  %s1430_s9 = smov 98  }
   0xf   :  { %s1431_s0 = smov 97   ;;  %s1432_s10 = smov 96  }
  0x10   :  { %s1433_s11 = smov 95  }
  0x13   :  { %27 = vrot.lane.b32.xlu0 %v1544_v2, %s1404_s12  ;;  %43 = vrot.lane.b32.xlu1 %v1544_v2, %s1405_s13  ;;  %s1434_s12 = smov 94   ;;  %s1435_s13 = smov 93  }
  0x14   :  { %59 = vrot.lane.b32.xlu2 %v1544_v2, %s1406_s14  ;;  %s1436_s14 = smov 92  }
  0x1b   :  { %67 = vrot.lane.b32.xlu0 %v1544_v2, %s1407_s15  ;;  %75 = vrot.lane.b32.xlu1 %v1544_v2, %s1408_s16  ;;  %s1446_s16 = smov 82  }
  0x1c   :  { %83 = vrot.lane.b32.xlu2 %v1544_v2, %s1409_s17  ;;  %s1447_s17 = smov 81  }
  0x23   :  { %91 = vrot.lane.b32.xlu0 %v1544_v2, %s1410_s18  ;;  %99 = vrot.lane.b32.xlu1 %v1544_v2, %s1411_s19  ;;  %s1437_s19 = smov 91   ;;  %s1523_s18 = smov 5  }
  0x24   :  { %107 = vrot.lane.b32.xlu2 %v1544_v2, %s1412_s20  ;;  %s1438_s20 = smov 90  }
  0x2b   :  { %115 = vrot.lane.b32.xlu0 %v1544_v2, %s1413_s21  ;;  %123 = vrot.lane.b32.xlu1 %v1544_v2, %s1414_s22  ;;  %s1439_s21 = smov 89   ;;  %s1019_s22 = smov 3 }
  0x2c   :  { %131 = vrot.lane.b32.xlu2 %v1544_v2, %s1415_s23  ;;  %s931_s23 = smov 3 }
  0x33   :  { %139 = vrot.lane.b32.xlu0 %v1561_v3, %s1416_s24  ;;  %147 = vrot.lane.b32.xlu1 %v1561_v3, %s1417_s25  ;;  %s1514_s24 = smov 14   ;;  %s939_s25 = smov 3 }
  0x34   :  { %155 = vrot.lane.b32.xlu2 %v1561_v3, %s1418_s26  ;;  %s1440_s26 = smov 88  }
  0x3b   :  { %163 = vrot.lane.b32.xlu0 %v1561_v3, %s1419_s27  ;;  %171 = vrot.lane.b32.xlu1 %v1561_v3, %s1420_s28  ;;  %s1441_s27 = smov 87   ;;  %s1442_s28 = smov 86  }
  0x3c   :  { %179 = vrot.lane.b32.xlu2 %v1561_v3, %s1421_s29  ;;  %s979_s29 = smov 3 }
  0x43   :  { %187 = vrot.lane.b32.xlu0 %v1561_v3, %s1422_s30  ;;  %195 = vrot.lane.b32.xlu1 %v1561_v3, %s1423_s2  ;;  %s1449_s2 = smov 79   ;;  %s1520_s30 = smov 8  }
  0x44   :  { %203 = vrot.lane.b32.xlu2 %v1561_v3, %s1424_s3  ;;  %s1450_s3 = smov 78  }
  0x4b   :  { %211 = vrot.lane.b32.xlu0 %v1561_v3, %s1425_s4  ;;  %219 = vrot.lane.b32.xlu1 %v1561_v3, %s1426_s5  ;;  %s1443_s4 = smov 85   ;;  %s1444_s5 = smov 84  }
  0x4c   :  { %227 = vrot.lane.b32.xlu2 %v1561_v3, %s1427_s6  ;;  %s1445_s6 = smov 83  }
  0x53   :  { %235 = vrot.lane.b32.xlu0 %v1561_v3, %s1428_s7  ;;  %243 = vrot.lane.b32.xlu1 %v1561_v3, %s1429_s8  ;;  %s1511_s7 = smov 17   ;;  %s915_s8 = smov 3 }
  0x54   :  { %251 = vrot.lane.b32.xlu2 %v1561_v3, %s1430_s9  ;;  %s1516_s9 = smov 12  }
  0x5b   :  { %259 = vrot.lane.b32.xlu0 %v1561_v3, %s1431_s0  ;;  %267 = vrot.lane.b32.xlu1 %v1544_v2, %s1432_s10  ;;  %s923_s10 = smov 3 }
  0x5c   :  { %275 = vrot.lane.b32.xlu2 %v1544_v2, %s1433_s11  ;;  %s955_s11 = smov 3 }
  0x63   :  { %283 = vrot.lane.b32.xlu0 %v1544_v2, %s1434_s12  ;;  %291 = vrot.lane.b32.xlu1 %v1544_v2, %s1435_s13  ;;  %s1517_s12 = smov 11   ;;  %s963_s13 = smov 3 }
  0x64   :  { %299 = vrot.lane.b32.xlu2 %v1544_v2, %s1436_s14  ;;  %s1522_s14 = smov 6  }
  0x66   :  { %v52_v4 = vpop.permute.xlu2 %51  }
  0x67   :  { %1044 = vst.msk [vmem:[%s2615_s1 + $0x5] ss:$240 sm:$0x3] %vm11_vm0, %v52_v4  }
  0x68   :  { %1045 = vst.msk [vmem:[%s2615_s1 - $0x15b] ss:$240 sm:$0xc] %vm11_vm0, %v52_v4  }
  0x6b   :  { %307 = vrot.lane.b32.xlu0 %v1544_v2, %s1437_s19  ;;  %315 = vrot.lane.b32.xlu1 %v1544_v2, %s1438_s20  ;;  %s1448_s20 = smov 80   ;;  %s1512_s19 = smov 16  }
  0x6c   :  { %323 = vrot.lane.b32.xlu2 %v1544_v2, %s1439_s21 }
  0x6e   :  { %v60_v5 = vpop.permute.xlu2 %59  }
  0x6f   :  { %1046 = vst.msk [vmem:[%s2615_s1 + $0x6] ss:$240 sm:$0x3] %vm11_vm0, %v60_v5  }
  0x70   :  { %1047 = vst.msk [vmem:[%s2615_s1 - $0x15a] ss:$240 sm:$0xc] %vm11_vm0, %v60_v5  }
  0x73   :  { %331 = vrot.lane.b32.xlu0 %v1544_v2, %s1440_s26  ;;  %339 = vrot.lane.b32.xlu1 %v1544_v2, %s1441_s27  ;;  %s1519_s26 = smov 9  }
  0x74   :  { %347 = vrot.lane.b32.xlu2 %v1544_v2, %s1442_s28  ;;  %s947_s28 = smov 3 }
  0x76   :  { %v84_v6 = vpop.permute.xlu2 %83  }
  0x77   :  { %1052 = vst.msk [vmem:[%s2615_s1 + $0x9] ss:$240 sm:$0x3] %vm11_vm0, %v84_v6  }
  0x78   :  { %1053 = vst.msk [vmem:[%s2615_s1 - $0x157] ss:$240 sm:$0xc] %vm11_vm0, %v84_v6  }
  0x7b   :  { %355 = vrot.lane.b32.xlu0 %v1544_v2, %s1443_s4  ;;  %363 = vrot.lane.b32.xlu1 %v1544_v2, %s1444_s5  ;;  %s995_s5 = smov 3 }
  0x7c   :  { %371 = vrot.lane.b32.xlu2 %v1544_v2, %s1445_s6  ;;  %s1451_s6 = smov 77  }
  0x7d   :  { %v20_v7 = vpop.permute.xlu0 %19   ;;  %v36_v8 = vpop.permute.xlu1 %35  }
  0x7e   :  { %1036 = vst.msk [vmem:[%s2615_s1 + $0x1] ss:$240 sm:$0x3] %vm11_vm0, %v20_v7   ;;  %v108_v9 = vpop.permute.xlu2 %107  }
  0x7f   :  { %1037 = vst.msk [vmem:[%s2615_s1 - $0x15f] ss:$240 sm:$0xc] %vm11_vm0, %v20_v7  }
  0x80   :  { %1040 = vst.msk [vmem:[%s2615_s1 + $0x3] ss:$240 sm:$0x3] %vm11_vm0, %v36_v8  }
  0x81   :  { %1041 = vst.msk [vmem:[%s2615_s1 - $0x15d] ss:$240 sm:$0xc] %vm11_vm0, %v36_v8  }
  0x82   :  { %1058 = vst.msk [vmem:[%s2615_s1 + $0xc] ss:$240 sm:$0x3] %vm11_vm0, %v108_v9  }
  0x83   :  { %379 = vrot.lane.b32.xlu0 %v1544_v2, %s1446_s16  ;;  %387 = vrot.lane.b32.xlu1 %v1544_v2, %s1447_s17  ;;  %1059 = vst.msk [vmem:[%s2615_s1 - $0x154] ss:$240 sm:$0xc] %vm11_vm0, %v108_v9   ;;  %s1452_s16 = smov 76   ;;  %s1453_s17 = smov 75  }
  0x84   :  { %395 = vrot.lane.b32.xlu2 %v1561_v3, %s1448_s20  ;;  %s1454_s20 = smov 74  }
  0x85   :  { %v28_v10 = vpop.permute.xlu0 %27   ;;  %v44_v11 = vpop.permute.xlu1 %43  }
  0x86   :  { %1038 = vst.msk [vmem:[%s2615_s1 + $0x2] ss:$240 sm:$0x3] %vm11_vm0, %v28_v10   ;;  %v132_v12 = vpop.permute.xlu2 %131  }
  0x87   :  { %1039 = vst.msk [vmem:[%s2615_s1 - $0x15e] ss:$240 sm:$0xc] %vm11_vm0, %v28_v10  }
  0x88   :  { %1042 = vst.msk [vmem:[%s2615_s1 + $0x4] ss:$240 sm:$0x3] %vm11_vm0, %v44_v11  }
  0x89   :  { %1043 = vst.msk [vmem:[%s2615_s1 - $0x15c] ss:$240 sm:$0xc] %vm11_vm0, %v44_v11  }
  0x8a   :  { %1064 = vst.msk [vmem:[%s2615_s1 + $0xf] ss:$240 sm:$0x3] %vm11_vm0, %v132_v12  }
  0x8b   :  { %403 = vrot.lane.b32.xlu0 %v1561_v3, %s1449_s2  ;;  %411 = vrot.lane.b32.xlu1 %v1561_v3, %s1450_s3  ;;  %1065 = vst.msk [vmem:[%s2615_s1 - $0x151] ss:$240 sm:$0xc] %vm11_vm0, %v132_v12   ;;  %s1455_s2 = smov 73   ;;  %s1456_s3 = smov 72  }
  0x8c   :  { %419 = vrot.lane.b32.xlu2 %v1561_v3, %s1451_s6  ;;  %s1457_s6 = smov 71  }
  0x8d   :  { %v68_v13 = vpop.permute.xlu0 %67   ;;  %v76_v14 = vpop.permute.xlu1 %75  }
  0x8e   :  { %1048 = vst.msk [vmem:[%s2615_s1 + $0x7] ss:$240 sm:$0x3] %vm11_vm0, %v68_v13   ;;  %v156_v15 = vpop.permute.xlu2 %155  }
  0x8f   :  { %1049 = vst.msk [vmem:[%s2615_s1 - $0x159] ss:$240 sm:$0xc] %vm11_vm0, %v68_v13  }
  0x90   :  { %1050 = vst.msk [vmem:[%s2615_s1 + $0x8] ss:$240 sm:$0x3] %vm11_vm0, %v76_v14  }
  0x91   :  { %1051 = vst.msk [vmem:[%s2615_s1 - $0x158] ss:$240 sm:$0xc] %vm11_vm0, %v76_v14   ;;  %v916_v14 = vld [vmem:[#allocation0 + $0x1] ss:$-1 sm:%s915_s8]   ;;  %s1515_s8 = smov 13  }
  0x92   :  { %1070 = vst.msk [vmem:[%s2615_s1 + $0x102] ss:$-240 sm:$0x3] %vm11_vm0, %v156_v15  }
  0x93   :  { %427 = vrot.lane.b32.xlu0 %v1561_v3, %s1452_s16  ;;  %435 = vrot.lane.b32.xlu1 %v1561_v3, %s1453_s17  ;;  %1071 = vst.msk [vmem:[%s2615_s1 + $0x362] ss:$-240 sm:$0xc] %vm11_vm0, %v156_v15   ;;  %s1458_s16 = smov 70   ;;  %s1459_s17 = smov 69  }
  0x94   :  { %443 = vrot.lane.b32.xlu2 %v1561_v3, %s1454_s20  ;;  %s1460_s20 = smov 68   ;;  %v924_v15 = vld [vmem:[#allocation0 + $0x1] ss:$-1 sm:%s923_s10]  }
  0x95   :  { %v92_v16 = vpop.permute.xlu0 %91   ;;  %v100_v17 = vpop.permute.xlu1 %99  }
  0x96   :  { %1054 = vst.msk [vmem:[%s2615_s1 + $0xa] ss:$240 sm:$0x3] %vm11_vm0, %v92_v16   ;;  %v180_v18 = vpop.permute.xlu2 %179  }
  0x97   :  { %1055 = vst.msk [vmem:[%s2615_s1 - $0x156] ss:$240 sm:$0xc] %vm11_vm0, %v92_v16  }
  0x98   :  { %1056 = vst.msk [vmem:[%s2615_s1 + $0xb] ss:$240 sm:$0x3] %vm11_vm0, %v100_v17  }
  0x99   :  { %1057 = vst.msk [vmem:[%s2615_s1 - $0x155] ss:$240 sm:$0xc] %vm11_vm0, %v100_v17  }
  0x9a   :  { %1076 = vst.msk [vmem:[%s2615_s1 + $0x105] ss:$-240 sm:$0x3] %vm11_vm0, %v180_v18  }
  0x9b   :  { %451 = vrot.lane.b32.xlu0 %v1561_v3, %s1455_s2  ;;  %459 = vrot.lane.b32.xlu1 %v1561_v3, %s1456_s3  ;;  %1077 = vst.msk [vmem:[%s2615_s1 + $0x365] ss:$-240 sm:$0xc] %vm11_vm0, %v180_v18   ;;  %s1461_s2 = smov 67   ;;  %s1462_s3 = smov 66  }
  0x9c   :  { %467 = vrot.lane.b32.xlu2 %v1561_v3, %s1457_s6  ;;  %s1463_s6 = smov 65  }
  0x9d   :  { %v116_v19 = vpop.permute.xlu0 %115   ;;  %v124_v20 = vpop.permute.xlu1 %123  }
  0x9e   :  { %1060 = vst.msk [vmem:[%s2615_s1 + $0xd] ss:$240 sm:$0x3] %vm11_vm0, %v116_v19   ;;  %v204_v21 = vpop.permute.xlu2 %203  }
  0x9f   :  { %1061 = vst.msk [vmem:[%s2615_s1 - $0x153] ss:$240 sm:$0xc] %vm11_vm0, %v116_v19   ;;  %v932_v19 = vld [vmem:[#allocation0 + $0x1] ss:$-1 sm:%s931_s23]  }
  0xa0   :  { %1062 = vst.msk [vmem:[%s2615_s1 + $0xe] ss:$240 sm:$0x3] %vm11_vm0, %v124_v20  }
  0xa1   :  { %1063 = vst.msk [vmem:[%s2615_s1 - $0x152] ss:$240 sm:$0xc] %vm11_vm0, %v124_v20   ;;  %v940_v20 = vld [vmem:[#allocation0 + $0x1] ss:$-1 sm:%s939_s25]   ;;  %s1518_s25 = smov 10  }
  0xa2   :  { %1082 = vst.msk [vmem:[%s2615_s1 + $0x108] ss:$-240 sm:$0x3] %vm11_vm0, %v204_v21  }
  0xa3   :  { %475 = vrot.lane.b32.xlu0 %v1561_v3, %s1458_s16  ;;  %483 = vrot.lane.b32.xlu1 %v1561_v3, %s1459_s17  ;;  %1083 = vst.msk [vmem:[%s2615_s1 + $0x368] ss:$-240 sm:$0xc] %vm11_vm0, %v204_v21   ;;  %s1464_s16 = smov 64   ;;  %s1465_s17 = smov 63  }
  0xa4   :  { %491 = vrot.lane.b32.xlu2 %v1561_v3, %s1460_s20  ;;  %s1466_s20 = smov 62   ;;  %v948_v21 = vld [vmem:[#allocation0 + $0x1] ss:$-1 sm:%s947_s28]  }
  0xa5   :  { %v140_v22 = vpop.permute.xlu0 %139   ;;  %v148_v23 = vpop.permute.xlu1 %147  }
  0xa6   :  { %1066 = vst.msk [vmem:[%s2615_s1 + $0x100] ss:$-240 sm:$0x3] %vm11_vm0, %v140_v22   ;;  %v228_v24 = vpop.permute.xlu2 %227  }
  0xa7   :  { %1067 = vst.msk [vmem:[%s2615_s1 + $0x360] ss:$-240 sm:$0xc] %vm11_vm0, %v140_v22  }
  0xa8   :  { %1068 = vst.msk [vmem:[%s2615_s1 + $0x101] ss:$-240 sm:$0x3] %vm11_vm0, %v148_v23  }
  0xa9   :  { %1069 = vst.msk [vmem:[%s2615_s1 + $0x361] ss:$-240 sm:$0xc] %vm11_vm0, %v148_v23  }
  0xaa   :  { %1088 = vst.msk [vmem:[%s2615_s1 + $0x10b] ss:$-240 sm:$0x3] %vm11_vm0, %v228_v24  }
  0xab   :  { %499 = vrot.lane.b32.xlu0 %v1561_v3, %s1461_s2  ;;  %507 = vrot.lane.b32.xlu1 %v1561_v3, %s1462_s3  ;;  %1089 = vst.msk [vmem:[%s2615_s1 + $0x36b] ss:$-240 sm:$0xc] %vm11_vm0, %v228_v24   ;;  %s1467_s2 = smov 61   ;;  %s1468_s3 = smov 60  }
  0xac   :  { %515 = vrot.lane.b32.xlu2 %v1561_v3, %s1463_s6  ;;  %s1469_s6 = smov 59  }
  0xad   :  { %v164_v25 = vpop.permute.xlu0 %163   ;;  %v172_v26 = vpop.permute.xlu1 %171  }
  0xae   :  { %1072 = vst.msk [vmem:[%s2615_s1 + $0x103] ss:$-240 sm:$0x3] %vm11_vm0, %v164_v25   ;;  %v252_v27 = vpop.permute.xlu2 %251  }
  0xaf   :  { %1073 = vst.msk [vmem:[%s2615_s1 + $0x363] ss:$-240 sm:$0xc] %vm11_vm0, %v164_v25   ;;  %v956_v25 = vld [vmem:[#allocation0 + $0x1] ss:$-1 sm:%s955_s11]  }
  0xb0   :  { %1074 = vst.msk [vmem:[%s2615_s1 + $0x104] ss:$-240 sm:$0x3] %vm11_vm0, %v172_v26  }
  0xb1   :  { %1075 = vst.msk [vmem:[%s2615_s1 + $0x364] ss:$-240 sm:$0xc] %vm11_vm0, %v172_v26   ;;  %v964_v26 = vld [vmem:[#allocation0 + $0x1] ss:$-1 sm:%s963_s13]   ;;  %s1521_s13 = smov 7  }
  0xb2   :  { %1094 = vst.msk [vmem:[%s2615_s1 + $0x10e] ss:$-240 sm:$0x3] %vm11_vm0, %v252_v27  }
  0xb3   :  { %523 = vrot.lane.b32.xlu0 %v1544_v2, %s1464_s16  ;;  %531 = vrot.lane.b32.xlu1 %v1544_v2, %s1465_s17  ;;  %1095 = vst.msk [vmem:[%s2615_s1 + $0x36e] ss:$-240 sm:$0xc] %vm11_vm0, %v252_v27   ;;  %s1470_s16 = smov 58   ;;  %s1471_s17 = smov 57  }
  0xb4   :  { %539 = vrot.lane.b32.xlu2 %v1544_v2, %s1466_s20  ;;  %s1472_s20 = smov 56  }
  0xb5   :  { %v188_v28 = vpop.permute.xlu0 %187   ;;  %v196_v29 = vpop.permute.xlu1 %195  }
  0xb6   :  { %1078 = vst.msk [vmem:[%s2615_s1 + $0x106] ss:$-240 sm:$0x3] %vm11_vm0, %v188_v28   ;;  %v276_v30 = vpop.permute.xlu2 %275  }
  0xb7   :  { %1079 = vst.msk [vmem:[%s2615_s1 + $0x366] ss:$-240 sm:$0xc] %vm11_vm0, %v188_v28  }
  0xb8   :  { %1080 = vst.msk [vmem:[%s2615_s1 + $0x107] ss:$-240 sm:$0x3] %vm11_vm0, %v196_v29  }
  0xb9   :  { %1081 = vst.msk [vmem:[%s2615_s1 + $0x367] ss:$-240 sm:$0xc] %vm11_vm0, %v196_v29  }
  0xba   :  { %1100 = vst.msk [vmem:[%s2615_s1 + $0x21] ss:$240 sm:$0x3] %vm11_vm0, %v276_v30  }
  0xbb   :  { %547 = vrot.lane.b32.xlu0 %v1544_v2, %s1467_s2  ;;  %555 = vrot.lane.b32.xlu1 %v1544_v2, %s1468_s3  ;;  %1101 = vst.msk [vmem:[%s2615_s1 - $0x13f] ss:$240 sm:$0xc] %vm11_vm0, %v276_v30   ;;  %s1473_s2 = smov 55   ;;  %s1474_s3 = smov 54  }
  0xbc   :  { %563 = vrot.lane.b32.xlu2 %v1544_v2, %s1469_s6  ;;  %s1475_s6 = smov 53  }
  0xbd   :  { %v212_v31 = vpop.permute.xlu0 %211   ;;  %v220_v32 = vpop.permute.xlu1 %219  }
  0xbe   :  { %1084 = vst.msk [vmem:[%s2615_s1 + $0x109] ss:$-240 sm:$0x3] %vm11_vm0, %v212_v31   ;;  %v300_v33 = vpop.permute.xlu2 %299  }
  0xbf   :  { %1085 = vst.msk [vmem:[%s2615_s1 + $0x369] ss:$-240 sm:$0xc] %vm11_vm0, %v212_v31   ;;  %v980_v31 = vld [vmem:[#allocation0 + $0x1] ss:$-1 sm:%s979_s29]  }
  0xc0   :  { %1086 = vst.msk [vmem:[%s2615_s1 + $0x10a] ss:$-240 sm:$0x3] %vm11_vm0, %v220_v32  }
  0xc1   :  { %1087 = vst.msk [vmem:[%s2615_s1 + $0x36a] ss:$-240 sm:$0xc] %vm11_vm0, %v220_v32  }
  0xc2   :  { %1106 = vst.msk [vmem:[%s2615_s1 + $0x24] ss:$240 sm:$0x3] %vm11_vm0, %v300_v33  }
  0xc3   :  { %571 = vrot.lane.b32.xlu0 %v1544_v2, %s1470_s16  ;;  %579 = vrot.lane.b32.xlu1 %v1544_v2, %s1471_s17  ;;  %1107 = vst.msk [vmem:[%s2615_s1 - $0x13c] ss:$240 sm:$0xc] %vm11_vm0, %v300_v33   ;;  %s1476_s16 = smov 52   ;;  %s1477_s17 = smov 51  }
  0xc4   :  { %587 = vrot.lane.b32.xlu2 %v1544_v2, %s1472_s20  ;;  %s1478_s20 = smov 50   ;;  %v996_v33 = vld [vmem:[#allocation0 + $0x1] ss:$-1 sm:%s995_s5]  }
  0xc5   :  { %v236_v34 = vpop.permute.xlu0 %235   ;;  %v244_v35 = vpop.permute.xlu1 %243  }
  0xc6   :  { %1090 = vst.msk [vmem:[%s2615_s1 + $0x10c] ss:$-240 sm:$0x3] %vm11_vm0, %v236_v34   ;;  %v324_v36 = vpop.permute.xlu2 %323  }
  0xc7   :  { %1091 = vst.msk [vmem:[%s2615_s1 + $0x36c] ss:$-240 sm:$0xc] %vm11_vm0, %v236_v34  }
  0xc8   :  { %1092 = vst.msk [vmem:[%s2615_s1 + $0x10d] ss:$-240 sm:$0x3] %vm11_vm0, %v244_v35  }
  0xc9   :  { %1093 = vst.msk [vmem:[%s2615_s1 + $0x36d] ss:$-240 sm:$0xc] %vm11_vm0, %v244_v35  }
  0xca   :  { %1112 = vst.msk [vmem:[%s2615_s1 + $0x27] ss:$240 sm:$0x3] %vm11_vm0, %v324_v36  }
  0xcb   :  { %595 = vrot.lane.b32.xlu0 %v1544_v2, %s1473_s2  ;;  %603 = vrot.lane.b32.xlu1 %v1544_v2, %s1474_s3  ;;  %1113 = vst.msk [vmem:[%s2615_s1 - $0x139] ss:$240 sm:$0xc] %vm11_vm0, %v324_v36   ;;  %s1479_s2 = smov 49   ;;  %s1480_s3 = smov 48  }
  0xcc   :  { %611 = vrot.lane.b32.xlu2 %v1544_v2, %s1475_s6  ;;  %s1481_s6 = smov 47  }
  0xcd   :  { %v260_v37 = vpop.permute.xlu0 %259   ;;  %v268_v38 = vpop.permute.xlu1 %267  }
  0xce   :  { %1096 = vst.msk [vmem:[%s2615_s1 + $0x10f] ss:$-240 sm:$0x3] %vm11_vm0, %v260_v37   ;;  %v348_v39 = vpop.permute.xlu2 %347  }
  0xcf   :  { %1097 = vst.msk [vmem:[%s2615_s1 + $0x36f] ss:$-240 sm:$0xc] %vm11_vm0, %v260_v37  }
  0xd0   :  { %1098 = vst.msk [vmem:[%s2615_s1 + $0x20] ss:$240 sm:$0x3] %vm11_vm0, %v268_v38  }
  0xd1   :  { %1099 = vst.msk [vmem:[%s2615_s1 - $0x140] ss:$240 sm:$0xc] %vm11_vm0, %v268_v38  }
  0xd2   :  { %1118 = vst.msk [vmem:[%s2615_s1 + $0x2a] ss:$240 sm:$0x3] %vm11_vm0, %v348_v39  }
  0xd3   :  { %619 = vrot.lane.b32.xlu0 %v1544_v2, %s1476_s16  ;;  %627 = vrot.lane.b32.xlu1 %v1544_v2, %s1477_s17  ;;  %1119 = vst.msk [vmem:[%s2615_s1 - $0x136] ss:$240 sm:$0xc] %vm11_vm0, %v348_v39   ;;  %s1482_s16 = smov 46   ;;  %s1483_s17 = smov 45  }
  0xd4   :  { %635 = vrot.lane.b32.xlu2 %v1544_v2, %s1478_s20  ;;  %s1484_s20 = smov 44   ;;  %v1020_v39 = vld [vmem:[#allocation0 + $0x1] ss:$-1 sm:%s1019_s22]  }
  0xd5   :  { %v284_v40 = vpop.permute.xlu0 %283   ;;  %v292_v41 = vpop.permute.xlu1 %291  }
  0xd6   :  { %1102 = vst.msk [vmem:[%s2615_s1 + $0x22] ss:$240 sm:$0x3] %vm11_vm0, %v284_v40   ;;  %v372_v42 = vpop.permute.xlu2 %371  }
  0xd7   :  { %1103 = vst.msk [vmem:[%s2615_s1 - $0x13e] ss:$240 sm:$0xc] %vm11_vm0, %v284_v40  }
  0xd8   :  { %1104 = vst.msk [vmem:[%s2615_s1 + $0x23] ss:$240 sm:$0x3] %vm11_vm0, %v292_v41  }
  0xd9   :  { %1105 = vst.msk [vmem:[%s2615_s1 - $0x13d] ss:$240 sm:$0xc] %vm11_vm0, %v292_v41  }
  0xda   :  { %1124 = vst.msk [vmem:[%s2615_s1 + $0x2d] ss:$240 sm:$0x3] %vm11_vm0, %v372_v42  }
  0xdb   :  { %643 = vrot.lane.b32.xlu0 %v1544_v2, %s1479_s2  ;;  %651 = vrot.lane.b32.xlu1 %v1561_v3, %s1480_s3  ;;  %1125 = vst.msk [vmem:[%s2615_s1 - $0x133] ss:$240 sm:$0xc] %vm11_vm0, %v372_v42   ;;  %s1485_s2 = smov 43   ;;  %s1486_s3 = smov 42  }
  0xdc   :  { %659 = vrot.lane.b32.xlu2 %v1561_v3, %s1481_s6  ;;  %s1487_s6 = smov 41  }
  0xdd   :  { %v308_v43 = vpop.permute.xlu0 %307   ;;  %v316_v44 = vpop.permute.xlu1 %315  }
  0xde   :  { %1108 = vst.msk [vmem:[%s2615_s1 + $0x25] ss:$240 sm:$0x3] %vm11_vm0, %v308_v43   ;;  %v396_v45 = vpop.permute.xlu2 %395  }
  0xdf   :  { %1109 = vst.msk [vmem:[%s2615_s1 - $0x13b] ss:$240 sm:$0xc] %vm11_vm0, %v308_v43  }
  0xe0   :  { %1110 = vst.msk [vmem:[%s2615_s1 + $0x26] ss:$240 sm:$0x3] %vm11_vm0, %v316_v44  }
  0xe1   :  { %1111 = vst.msk [vmem:[%s2615_s1 - $0x13a] ss:$240 sm:$0xc] %vm11_vm0, %v316_v44  }
  0xe2   :  { %1130 = vst.msk [vmem:[%s2615_s1 + $0x120] ss:$-240 sm:$0x3] %vm11_vm0, %v396_v45  }
  0xe3   :  { %667 = vrot.lane.b32.xlu0 %v1561_v3, %s1482_s16  ;;  %675 = vrot.lane.b32.xlu1 %v1561_v3, %s1483_s17  ;;  %1131 = vst.msk [vmem:[%s2615_s1 + $0x380] ss:$-240 sm:$0xc] %vm11_vm0, %v396_v45   ;;  %s1488_s16 = smov 40   ;;  %s1489_s17 = smov 39  }
  0xe4   :  { %683 = vrot.lane.b32.xlu2 %v1561_v3, %s1484_s20  ;;  %s1490_s20 = smov 38  }
  0xe5   :  { %v332_v46 = vpop.permute.xlu0 %331   ;;  %v340_v47 = vpop.permute.xlu1 %339  }
  0xe6   :  { %1114 = vst.msk [vmem:[%s2615_s1 + $0x28] ss:$240 sm:$0x3] %vm11_vm0, %v332_v46   ;;  %v420_v48 = vpop.permute.xlu2 %419  }
  0xe7   :  { %1115 = vst.msk [vmem:[%s2615_s1 - $0x138] ss:$240 sm:$0xc] %vm11_vm0, %v332_v46  }
  0xe8   :  { %1116 = vst.msk [vmem:[%s2615_s1 + $0x29] ss:$240 sm:$0x3] %vm11_vm0, %v340_v47  }
  0xe9   :  { %1117 = vst.msk [vmem:[%s2615_s1 - $0x137] ss:$240 sm:$0xc] %vm11_vm0, %v340_v47  }
  0xea   :  { %1136 = vst.msk [vmem:[%s2615_s1 + $0x123] ss:$-240 sm:$0x3] %vm11_vm0, %v420_v48  }
  0xeb   :  { %691 = vrot.lane.b32.xlu0 %v1561_v3, %s1485_s2  ;;  %699 = vrot.lane.b32.xlu1 %v1561_v3, %s1486_s3  ;;  %1137 = vst.msk [vmem:[%s2615_s1 + $0x383] ss:$-240 sm:$0xc] %vm11_vm0, %v420_v48   ;;  %s1491_s2 = smov 37   ;;  %s1492_s3 = smov 36  }
  0xec   :  { %707 = vrot.lane.b32.xlu2 %v1561_v3, %s1487_s6  ;;  %s1493_s6 = smov 35  }
  0xed   :  { %v356_v49 = vpop.permute.xlu0 %355   ;;  %v364_v50 = vpop.permute.xlu1 %363  }
  0xee   :  { %1120 = vst.msk [vmem:[%s2615_s1 + $0x2b] ss:$240 sm:$0x3] %vm11_vm0, %v356_v49   ;;  %v444_v51 = vpop.permute.xlu2 %443  }
  0xef   :  { %1121 = vst.msk [vmem:[%s2615_s1 - $0x135] ss:$240 sm:$0xc] %vm11_vm0, %v356_v49  }
  0xf0   :  { %1122 = vst.msk [vmem:[%s2615_s1 + $0x2c] ss:$240 sm:$0x3] %vm11_vm0, %v364_v50  }
  0xf1   :  { %1123 = vst.msk [vmem:[%s2615_s1 - $0x134] ss:$240 sm:$0xc] %vm11_vm0, %v364_v50  }
  0xf2   :  { %1142 = vst.msk [vmem:[%s2615_s1 + $0x126] ss:$-240 sm:$0x3] %vm11_vm0, %v444_v51  }
  0xf3   :  { %715 = vrot.lane.b32.xlu0 %v1561_v3, %s1488_s16  ;;  %723 = vrot.lane.b32.xlu1 %v1561_v3, %s1489_s17  ;;  %1143 = vst.msk [vmem:[%s2615_s1 + $0x386] ss:$-240 sm:$0xc] %vm11_vm0, %v444_v51   ;;  %s1494_s16 = smov 34   ;;  %s1495_s17 = smov 33  }
  0xf4   :  { %731 = vrot.lane.b32.xlu2 %v1561_v3, %s1490_s20  ;;  %s1496_s20 = smov 32  }
  0xf5   :  { %v380_v52 = vpop.permute.xlu0 %379   ;;  %v388_v53 = vpop.permute.xlu1 %387  }
  0xf6   :  { %1126 = vst.msk [vmem:[%s2615_s1 + $0x2e] ss:$240 sm:$0x3] %vm11_vm0, %v380_v52   ;;  %v468_v54 = vpop.permute.xlu2 %467  }
  0xf7   :  { %1127 = vst.msk [vmem:[%s2615_s1 - $0x132] ss:$240 sm:$0xc] %vm11_vm0, %v380_v52  }
  0xf8   :  { %1128 = vst.msk [vmem:[%s2615_s1 + $0x2f] ss:$240 sm:$0x3] %vm11_vm0, %v388_v53  }
  0xf9   :  { %1129 = vst.msk [vmem:[%s2615_s1 - $0x131] ss:$240 sm:$0xc] %vm11_vm0, %v388_v53  }
  0xfa   :  { %1148 = vst.msk [vmem:[%s2615_s1 + $0x129] ss:$-240 sm:$0x3] %vm11_vm0, %v468_v54  }
  0xfb   :  { %739 = vrot.lane.b32.xlu0 %v1561_v3, %s1491_s2  ;;  %747 = vrot.lane.b32.xlu1 %v1561_v3, %s1492_s3  ;;  %1149 = vst.msk [vmem:[%s2615_s1 + $0x389] ss:$-240 sm:$0xc] %vm11_vm0, %v468_v54   ;;  %s1497_s2 = smov 31   ;;  %s1498_s3 = smov 30  }
  0xfc   :  { %755 = vrot.lane.b32.xlu2 %v1561_v3, %s1493_s6  ;;  %s1499_s6 = smov 29  }
  0xfd   :  { %v404_v55 = vpop.permute.xlu0 %403   ;;  %v412_v56 = vpop.permute.xlu1 %411  }
  0xfe   :  { %1132 = vst.msk [vmem:[%s2615_s1 + $0x121] ss:$-240 sm:$0x3] %vm11_vm0, %v404_v55   ;;  %v492_v57 = vpop.permute.xlu2 %491  }
  0xff   :  { %1133 = vst.msk [vmem:[%s2615_s1 + $0x381] ss:$-240 sm:$0xc] %vm11_vm0, %v404_v55  }
 0x100   :  { %1134 = vst.msk [vmem:[%s2615_s1 + $0x122] ss:$-240 sm:$0x3] %vm11_vm0, %v412_v56  }
 0x101   :  { %1135 = vst.msk [vmem:[%s2615_s1 + $0x382] ss:$-240 sm:$0xc] %vm11_vm0, %v412_v56  }
 0x102   :  { %1154 = vst.msk [vmem:[%s2615_s1 + $0x12c] ss:$-240 sm:$0x3] %vm11_vm0, %v492_v57  }
 0x103   :  { %763 = vrot.lane.b32.xlu0 %v1561_v3, %s1494_s16  ;;  %771 = vrot.lane.b32.xlu1 %v1561_v3, %s1495_s17  ;;  %1155 = vst.msk [vmem:[%s2615_s1 + $0x38c] ss:$-240 sm:$0xc] %vm11_vm0, %v492_v57   ;;  %s1500_s16 = smov 28   ;;  %s1501_s17 = smov 27  }
 0x104   :  { %779 = vrot.lane.b32.xlu2 %v1544_v2, %s1496_s20  ;;  %s1502_s20 = smov 26  }
 0x105   :  { %v428_v58 = vpop.permute.xlu0 %427   ;;  %v436_v59 = vpop.permute.xlu1 %435  }
 0x106   :  { %1138 = vst.msk [vmem:[%s2615_s1 + $0x124] ss:$-240 sm:$0x3] %vm11_vm0, %v428_v58   ;;  %v516_v60 = vpop.permute.xlu2 %515  }
 0x107   :  { %1139 = vst.msk [vmem:[%s2615_s1 + $0x384] ss:$-240 sm:$0xc] %vm11_vm0, %v428_v58  }
 0x108   :  { %1140 = vst.msk [vmem:[%s2615_s1 + $0x125] ss:$-240 sm:$0x3] %vm11_vm0, %v436_v59  }
 0x109   :  { %1141 = vst.msk [vmem:[%s2615_s1 + $0x385] ss:$-240 sm:$0xc] %vm11_vm0, %v436_v59  }
 0x10a   :  { %1160 = vst.msk [vmem:[%s2615_s1 + $0x12f] ss:$-240 sm:$0x3] %vm11_vm0, %v516_v60  }
 0x10b   :  { %787 = vrot.lane.b32.xlu0 %v1544_v2, %s1497_s2  ;;  %795 = vrot.lane.b32.xlu1 %v1544_v2, %s1498_s3  ;;  %1161 = vst.msk [vmem:[%s2615_s1 + $0x38f] ss:$-240 sm:$0xc] %vm11_vm0, %v516_v60   ;;  %s1503_s2 = smov 25   ;;  %s1504_s3 = smov 24  }
 0x10c   :  { %803 = vrot.lane.b32.xlu2 %v1544_v2, %s1499_s6  ;;  %s1505_s6 = smov 23  }
 0x10d   :  { %v452_v61 = vpop.permute.xlu0 %451   ;;  %v460_v62 = vpop.permute.xlu1 %459  }
 0x10e   :  { %1144 = vst.msk [vmem:[%s2615_s1 + $0x127] ss:$-240 sm:$0x3] %vm11_vm0, %v452_v61   ;;  %v540_v63 = vpop.permute.xlu2 %539  }
 0x10f   :  { %1145 = vst.msk [vmem:[%s2615_s1 + $0x387] ss:$-240 sm:$0xc] %vm11_vm0, %v452_v61  }
 0x110   :  { %1146 = vst.msk [vmem:[%s2615_s1 + $0x128] ss:$-240 sm:$0x3] %vm11_vm0, %v460_v62  }
 0x111   :  { %1147 = vst.msk [vmem:[%s2615_s1 + $0x388] ss:$-240 sm:$0xc] %vm11_vm0, %v460_v62  }
 0x112   :  { %1166 = vst.msk [vmem:[%s2615_s1 + $0x42] ss:$240 sm:$0x3] %vm11_vm0, %v540_v63  }
 0x113   :  { %811 = vrot.lane.b32.xlu0 %v1544_v2, %s1500_s16  ;;  %819 = vrot.lane.b32.xlu1 %v1544_v2, %s1501_s17  ;;  %1167 = vst.msk [vmem:[%s2615_s1 - $0x11e] ss:$240 sm:$0xc] %vm11_vm0, %v540_v63   ;;  %s1506_s16 = smov 22   ;;  %s1507_s17 = smov 21  }
 0x114   :  { %827 = vrot.lane.b32.xlu2 %v826_v0, %s1502_s20  ;;  %s1508_s20 = smov 20  }
 0x115   :  { %v476_v1 = vpop.permute.xlu0 %475   ;;  %v484_v3 = vpop.permute.xlu1 %483  }
 0x116   :  { %1150 = vst.msk [vmem:[%s2615_s1 + $0x12a] ss:$-240 sm:$0x3] %vm11_vm0, %v476_v1   ;;  %v564_v4 = vpop.permute.xlu2 %563  }
 0x117   :  { %1151 = vst.msk [vmem:[%s2615_s1 + $0x38a] ss:$-240 sm:$0xc] %vm11_vm0, %v476_v1  }
 0x118   :  { %1152 = vst.msk [vmem:[%s2615_s1 + $0x12b] ss:$-240 sm:$0x3] %vm11_vm0, %v484_v3  }
 0x119   :  { %1153 = vst.msk [vmem:[%s2615_s1 + $0x38b] ss:$-240 sm:$0xc] %vm11_vm0, %v484_v3  }
 0x11a   :  { %1172 = vst.msk [vmem:[%s2615_s1 + $0x45] ss:$240 sm:$0x3] %vm11_vm0, %v564_v4  }
 0x11b   :  { %835 = vrot.lane.b32.xlu0 %v1544_v2, %s1503_s2  ;;  %843 = vrot.lane.b32.xlu1 %v1544_v2, %s1504_s3  ;;  %1173 = vst.msk [vmem:[%s2615_s1 - $0x11b] ss:$240 sm:$0xc] %vm11_vm0, %v564_v4   ;;  %s1509_s2 = smov 19   ;;  %s1510_s3 = smov 18  }
 0x11c   :  { %851 = vrot.lane.b32.xlu2 %v826_v0, %s1505_s6  ;;  %s907_s6 = smov 3 }
 0x11d   :  { %v500_v5 = vpop.permute.xlu0 %499   ;;  %v508_v6 = vpop.permute.xlu1 %507   ;;  %v908_v13 = vld [vmem:[#allocation0 + $0x1] ss:$-1 sm:%s907_s6]   ;;  %s1526_s6 = smov 2  }
 0x11e   :  { %1156 = vst.msk [vmem:[%s2615_s1 + $0x12d] ss:$-240 sm:$0x3] %vm11_vm0, %v500_v5   ;;  %v588_v7 = vpop.permute.xlu2 %587  }
 0x11f   :  { %1157 = vst.msk [vmem:[%s2615_s1 + $0x38d] ss:$-240 sm:$0xc] %vm11_vm0, %v500_v5  }
 0x120   :  { %1158 = vst.msk [vmem:[%s2615_s1 + $0x12e] ss:$-240 sm:$0x3] %vm11_vm0, %v508_v6  }
 0x121   :  { %1159 = vst.msk [vmem:[%s2615_s1 + $0x38e] ss:$-240 sm:$0xc] %vm11_vm0, %v508_v6  }
 0x122   :  { %1178 = vst.msk [vmem:[%s2615_s1 + $0x48] ss:$240 sm:$0x3] %vm11_vm0, %v588_v7  }
 0x123   :  { %859 = vrot.lane.b32.xlu0 %v1544_v2, %s1506_s16  ;;  %867 = vrot.lane.b32.xlu1 %v1544_v2, %s1507_s17  ;;  %1179 = vst.msk [vmem:[%s2615_s1 - $0x118] ss:$240 sm:$0xc] %vm11_vm0, %v588_v7   ;;  %s971_s16 = smov 3  ;;  %s1003_s17 = smov 3 }
 0x124   :  { %875 = vrot.lane.b32.xlu2 %v826_v0, %s1508_s20  ;;  %s1513_s20 = smov 15   ;;  %v972_v27 = vld [vmem:[#allocation0 + $0x1] ss:$-1 sm:%s971_s16]  }
 0x125   :  { %v524_v8 = vpop.permute.xlu0 %523   ;;  %v532_v9 = vpop.permute.xlu1 %531   ;;  %v1004_v37 = vld [vmem:[#allocation0 + $0x1] ss:$-1 sm:%s1003_s17]   ;;  %s1527_s17 = smov 1  }
 0x126   :  { %1162 = vst.msk [vmem:[%s2615_s1 + $0x40] ss:$240 sm:$0x3] %vm11_vm0, %v524_v8   ;;  %v612_v10 = vpop.permute.xlu2 %611  }
 0x127   :  { %1163 = vst.msk [vmem:[%s2615_s1 - $0x120] ss:$240 sm:$0xc] %vm11_vm0, %v524_v8  }
 0x128   :  { %1164 = vst.msk [vmem:[%s2615_s1 + $0x41] ss:$240 sm:$0x3] %vm11_vm0, %v532_v9  }
 0x129   :  { %1165 = vst.msk [vmem:[%s2615_s1 - $0x11f] ss:$240 sm:$0xc] %vm11_vm0, %v532_v9  }
 0x12a   :  { %1184 = vst.msk [vmem:[%s2615_s1 + $0x4b] ss:$240 sm:$0x3] %vm11_vm0, %v612_v10  }
 0x12b   :  { %883 = vrot.lane.b32.xlu0 %v1544_v2, %s1509_s2  ;;  %891 = vrot.lane.b32.xlu1 %v826_v0, %s1510_s3  ;;  %1185 = vst.msk [vmem:[%s2615_s1 - $0x115] ss:$240 sm:$0xc] %vm11_vm0, %v612_v10   ;;  %s987_s2 = smov 3  ;;  %s1525_s3 = smov 3  }
 0x12c   :  { %899 = vrot.lane.b32.xlu2 %v826_v0, %s1511_s7  ;;  %v988_v32 = vld [vmem:[#allocation0 + $0x1] ss:$-1 sm:%s987_s2]   ;;  %s1524_s2 = smov 4   ;;  %s1027_s7 = smov 3 }
 0x12d   :  { %v548_v2 = vpop.permute.xlu0 %547   ;;  %v556_v11 = vpop.permute.xlu1 %555   ;;  %v1028_v43 = vld [vmem:[#allocation0 + $0x1] ss:$-1 sm:%s1027_s7]  }
 0x12e   :  { %1168 = vst.msk [vmem:[%s2615_s1 + $0x43] ss:$240 sm:$0x3] %vm11_vm0, %v548_v2   ;;  %v636_v12 = vpop.permute.xlu2 %635  }
 0x12f   :  { %1169 = vst.msk [vmem:[%s2615_s1 - $0x11d] ss:$240 sm:$0xc] %vm11_vm0, %v548_v2  }
 0x130   :  { %1170 = vst.msk [vmem:[%s2615_s1 + $0x44] ss:$240 sm:$0x3] %vm11_vm0, %v556_v11  }
 0x131   :  { %1171 = vst.msk [vmem:[%s2615_s1 - $0x11c] ss:$240 sm:$0xc] %vm11_vm0, %v556_v11  }
 0x132   :  { %1190 = vst.msk [vmem:[%s2615_s1 + $0x4e] ss:$240 sm:$0x3] %vm11_vm0, %v636_v12  }
 0x133   :  { %909 = vrot.lane.b32.xlu0 %v908_v13, %s1512_s19  ;;  %917 = vrot.lane.b32.xlu1 %v916_v14, %s1513_s20  ;;  %1191 = vst.msk [vmem:[%s2615_s1 - $0x112] ss:$240 sm:$0xc] %vm11_vm0, %v636_v12   ;;  %s1011_s19 = smov 3  ;;  %v10_v13 = vld [vmem:[#allocation0] sm:$0x3]  }
 0x134   :  { %925 = vrot.lane.b32.xlu2 %v924_v15, %s1514_s24  ;;  %v1012_v38 = vld [vmem:[#allocation0 + $0x1] ss:$-1 sm:%s1011_s19]   ;;  %v14_v14 = vld [vmem:[#allocation0 + $0x8] sm:$0x3]  }
 0x135   :  { %v572_v16 = vpop.permute.xlu0 %571   ;;  %v580_v17 = vpop.permute.xlu1 %579   ;;  %12 = vst.msk [vmem:[%s2615_s1] ss:$240 sm:$0x3] %vm11_vm0, %v10_v13  }
 0x136   :  { %1174 = vst.msk [vmem:[%s2615_s1 + $0x46] ss:$240 sm:$0x3] %vm11_vm0, %v572_v16   ;;  %v660_v18 = vpop.permute.xlu2 %659  }
 0x137   :  { %1175 = vst.msk [vmem:[%s2615_s1 - $0x11a] ss:$240 sm:$0xc] %vm11_vm0, %v572_v16  }
 0x138   :  { %1176 = vst.msk [vmem:[%s2615_s1 + $0x47] ss:$240 sm:$0x3] %vm11_vm0, %v580_v17  }
 0x139   :  { %1177 = vst.msk [vmem:[%s2615_s1 - $0x119] ss:$240 sm:$0xc] %vm11_vm0, %v580_v17  }
 0x13a   :  { %1196 = vst.msk [vmem:[%s2615_s1 + $0x141] ss:$-240 sm:$0x3] %vm11_vm0, %v660_v18  }
 0x13b   :  { %933 = vrot.lane.b32.xlu0 %v932_v19, %s1515_s8  ;;  %941 = vrot.lane.b32.xlu1 %v940_v20, %s1516_s9  ;;  %1197 = vst.msk [vmem:[%s2615_s1 + $0x3a1] ss:$-240 sm:$0xc] %vm11_vm0, %v660_v18  }
 0x13c   :  { %949 = vrot.lane.b32.xlu2 %v948_v21, %s1517_s12  ;;  %1035 = vst.msk [vmem:[%s2615_s1 + $0x80] ss:$240 sm:$0x3] %vm11_vm0, %v14_v14  }
 0x13d   :  { %v596_v22 = vpop.permute.xlu0 %595   ;;  %v604_v23 = vpop.permute.xlu1 %603  }
 0x13e   :  { %1180 = vst.msk [vmem:[%s2615_s1 + $0x49] ss:$240 sm:$0x3] %vm11_vm0, %v596_v22   ;;  %v684_v24 = vpop.permute.xlu2 %683  }
 0x13f   :  { %1181 = vst.msk [vmem:[%s2615_s1 - $0x117] ss:$240 sm:$0xc] %vm11_vm0, %v596_v22  }
 0x140   :  { %1182 = vst.msk [vmem:[%s2615_s1 + $0x4a] ss:$240 sm:$0x3] %vm11_vm0, %v604_v23  }
 0x141   :  { %1183 = vst.msk [vmem:[%s2615_s1 - $0x116] ss:$240 sm:$0xc] %vm11_vm0, %v604_v23  }
 0x142   :  { %1202 = vst.msk [vmem:[%s2615_s1 + $0x144] ss:$-240 sm:$0x3] %vm11_vm0, %v684_v24  }
 0x143   :  { %957 = vrot.lane.b32.xlu0 %v956_v25, %s1518_s25  ;;  %965 = vrot.lane.b32.xlu1 %v964_v26, %s1519_s26  ;;  %1203 = vst.msk [vmem:[%s2615_s1 + $0x3a4] ss:$-240 sm:$0xc] %vm11_vm0, %v684_v24  }
 0x144   :  { %973 = vrot.lane.b32.xlu2 %v972_v27, %s1520_s30 }
 0x145   :  { %v620_v28 = vpop.permute.xlu0 %619   ;;  %v628_v29 = vpop.permute.xlu1 %627  }
 0x146   :  { %1186 = vst.msk [vmem:[%s2615_s1 + $0x4c] ss:$240 sm:$0x3] %vm11_vm0, %v620_v28   ;;  %v708_v30 = vpop.permute.xlu2 %707  }
 0x147   :  { %1187 = vst.msk [vmem:[%s2615_s1 - $0x114] ss:$240 sm:$0xc] %vm11_vm0, %v620_v28  }
 0x148   :  { %1188 = vst.msk [vmem:[%s2615_s1 + $0x4d] ss:$240 sm:$0x3] %vm11_vm0, %v628_v29  }
 0x149   :  { %1189 = vst.msk [vmem:[%s2615_s1 - $0x113] ss:$240 sm:$0xc] %vm11_vm0, %v628_v29  }
 0x14a   :  { %1208 = vst.msk [vmem:[%s2615_s1 + $0x147] ss:$-240 sm:$0x3] %vm11_vm0, %v708_v30  }
 0x14b   :  { %981 = vrot.lane.b32.xlu0 %v980_v31, %s1521_s13  ;;  %989 = vrot.lane.b32.xlu1 %v988_v32, %s1522_s14  ;;  %1209 = vst.msk [vmem:[%s2615_s1 + $0x3a7] ss:$-240 sm:$0xc] %vm11_vm0, %v708_v30  }
 0x14c   :  { %997 = vrot.lane.b32.xlu2 %v996_v33, %s1523_s18 }
 0x14d   :  { %v644_v34 = vpop.permute.xlu0 %643   ;;  %v652_v35 = vpop.permute.xlu1 %651  }
 0x14e   :  { %1192 = vst.msk [vmem:[%s2615_s1 + $0x4f] ss:$240 sm:$0x3] %vm11_vm0, %v644_v34   ;;  %v732_v36 = vpop.permute.xlu2 %731  }
 0x14f   :  { %1193 = vst.msk [vmem:[%s2615_s1 - $0x111] ss:$240 sm:$0xc] %vm11_vm0, %v644_v34  }
 0x150   :  { %1194 = vst.msk [vmem:[%s2615_s1 + $0x140] ss:$-240 sm:$0x3] %vm11_vm0, %v652_v35  }
 0x151   :  { %1195 = vst.msk [vmem:[%s2615_s1 + $0x3a0] ss:$-240 sm:$0xc] %vm11_vm0, %v652_v35  }
 0x152   :  { %1214 = vst.msk [vmem:[%s2615_s1 + $0x14a] ss:$-240 sm:$0x3] %vm11_vm0, %v732_v36  }
 0x153   :  { %1005 = vrot.lane.b32.xlu0 %v1004_v37, %s1524_s2  ;;  %1013 = vrot.lane.b32.xlu1 %v1012_v38, %s1525_s3  ;;  %1215 = vst.msk [vmem:[%s2615_s1 + $0x3aa] ss:$-240 sm:$0xc] %vm11_vm0, %v732_v36  }
 0x154   :  { %1021 = vrot.lane.b32.xlu2 %v1020_v39, %s1526_s6 }
 0x155   :  { %v668_v40 = vpop.permute.xlu0 %667   ;;  %v676_v41 = vpop.permute.xlu1 %675  }
 0x156   :  { %1198 = vst.msk [vmem:[%s2615_s1 + $0x142] ss:$-240 sm:$0x3] %vm11_vm0, %v668_v40   ;;  %v756_v42 = vpop.permute.xlu2 %755  }
 0x157   :  { %1199 = vst.msk [vmem:[%s2615_s1 + $0x3a2] ss:$-240 sm:$0xc] %vm11_vm0, %v668_v40  }
 0x158   :  { %1200 = vst.msk [vmem:[%s2615_s1 + $0x143] ss:$-240 sm:$0x3] %vm11_vm0, %v676_v41  }
 0x159   :  { %1201 = vst.msk [vmem:[%s2615_s1 + $0x3a3] ss:$-240 sm:$0xc] %vm11_vm0, %v676_v41  }
 0x15a   :  { %1220 = vst.msk [vmem:[%s2615_s1 + $0x14d] ss:$-240 sm:$0x3] %vm11_vm0, %v756_v42  }
 0x15b   :  { %1029 = vrot.lane.b32.xlu0 %v1028_v43, %s1527_s17  ;;  %1221 = vst.msk [vmem:[%s2615_s1 + $0x3ad] ss:$-240 sm:$0xc] %vm11_vm0, %v756_v42  }
 0x15d   :  { %v692_v44 = vpop.permute.xlu0 %691   ;;  %v700_v45 = vpop.permute.xlu1 %699  }
 0x15e   :  { %1204 = vst.msk [vmem:[%s2615_s1 + $0x145] ss:$-240 sm:$0x3] %vm11_vm0, %v692_v44   ;;  %v780_v46 = vpop.permute.xlu2 %779  }
 0x15f   :  { %1205 = vst.msk [vmem:[%s2615_s1 + $0x3a5] ss:$-240 sm:$0xc] %vm11_vm0, %v692_v44  }
 0x160   :  { %1206 = vst.msk [vmem:[%s2615_s1 + $0x146] ss:$-240 sm:$0x3] %vm11_vm0, %v700_v45  }
 0x161   :  { %1207 = vst.msk [vmem:[%s2615_s1 + $0x3a6] ss:$-240 sm:$0xc] %vm11_vm0, %v700_v45  }
 0x162   :  { %1226 = vst.msk [vmem:[%s2615_s1 + $0x60] ss:$240 sm:$0x3] %vm11_vm0, %v780_v46  }
 0x163   :  { %1227 = vst.msk [vmem:[%s2615_s1 - $0x100] ss:$240 sm:$0xc] %vm11_vm0, %v780_v46  }
 0x165   :  { %v716_v47 = vpop.permute.xlu0 %715   ;;  %v724_v48 = vpop.permute.xlu1 %723  }
 0x166   :  { %1210 = vst.msk [vmem:[%s2615_s1 + $0x148] ss:$-240 sm:$0x3] %vm11_vm0, %v716_v47   ;;  %v804_v49 = vpop.permute.xlu2 %803  }
 0x167   :  { %1211 = vst.msk [vmem:[%s2615_s1 + $0x3a8] ss:$-240 sm:$0xc] %vm11_vm0, %v716_v47  }
 0x168   :  { %1212 = vst.msk [vmem:[%s2615_s1 + $0x149] ss:$-240 sm:$0x3] %vm11_vm0, %v724_v48  }
 0x169   :  { %1213 = vst.msk [vmem:[%s2615_s1 + $0x3a9] ss:$-240 sm:$0xc] %vm11_vm0, %v724_v48  }
 0x16a   :  { %1232 = vst.msk [vmem:[%s2615_s1 + $0x63] ss:$240 sm:$0x3] %vm11_vm0, %v804_v49  }
 0x16b   :  { %1233 = vst.msk [vmem:[%s2615_s1 - $0xfd] ss:$240 sm:$0xc] %vm11_vm0, %v804_v49  }
 0x16d   :  { %v740_v50 = vpop.permute.xlu0 %739   ;;  %v748_v51 = vpop.permute.xlu1 %747  }
 0x16e   :  { %1216 = vst.msk [vmem:[%s2615_s1 + $0x14b] ss:$-240 sm:$0x3] %vm11_vm0, %v740_v50   ;;  %v828_v52 = vpop.permute.xlu2 %827  }
 0x16f   :  { %1217 = vst.msk [vmem:[%s2615_s1 + $0x3ab] ss:$-240 sm:$0xc] %vm11_vm0, %v740_v50  }
 0x170   :  { %1218 = vst.msk [vmem:[%s2615_s1 + $0x14c] ss:$-240 sm:$0x3] %vm11_vm0, %v748_v51  }
 0x171   :  { %1219 = vst.msk [vmem:[%s2615_s1 + $0x3ac] ss:$-240 sm:$0xc] %vm11_vm0, %v748_v51  }
 0x172   :  { %1238 = vst.msk [vmem:[%s2615_s1 + $0x66] ss:$240 sm:$0x3] %vm11_vm0, %v828_v52  }
 0x173   :  { %1239 = vst.msk [vmem:[%s2615_s1 - $0xfa] ss:$240 sm:$0xc] %vm11_vm0, %v828_v52  }
 0x175   :  { %v764_v53 = vpop.permute.xlu0 %763   ;;  %v772_v54 = vpop.permute.xlu1 %771  }
 0x176   :  { %1222 = vst.msk [vmem:[%s2615_s1 + $0x14e] ss:$-240 sm:$0x3] %vm11_vm0, %v764_v53   ;;  %v852_v55 = vpop.permute.xlu2 %851  }
 0x177   :  { %1223 = vst.msk [vmem:[%s2615_s1 + $0x3ae] ss:$-240 sm:$0xc] %vm11_vm0, %v764_v53  }
 0x178   :  { %1224 = vst.msk [vmem:[%s2615_s1 + $0x14f] ss:$-240 sm:$0x3] %vm11_vm0, %v772_v54  }
 0x179   :  { %1225 = vst.msk [vmem:[%s2615_s1 + $0x3af] ss:$-240 sm:$0xc] %vm11_vm0, %v772_v54  }
 0x17a   :  { %1244 = vst.msk [vmem:[%s2615_s1 + $0x69] ss:$240 sm:$0x3] %vm11_vm0, %v852_v55  }
 0x17b   :  { %1245 = vst.msk [vmem:[%s2615_s1 - $0xf7] ss:$240 sm:$0xc] %vm11_vm0, %v852_v55  }
 0x17d   :  { %v788_v56 = vpop.permute.xlu0 %787   ;;  %v796_v57 = vpop.permute.xlu1 %795  }
 0x17e   :  { %1228 = vst.msk [vmem:[%s2615_s1 + $0x61] ss:$240 sm:$0x3] %vm11_vm0, %v788_v56   ;;  %v876_v58 = vpop.permute.xlu2 %875  }
 0x17f   :  { %1229 = vst.msk [vmem:[%s2615_s1 - $0xff] ss:$240 sm:$0xc] %vm11_vm0, %v788_v56  }
 0x180   :  { %1230 = vst.msk [vmem:[%s2615_s1 + $0x62] ss:$240 sm:$0x3] %vm11_vm0, %v796_v57  }
 0x181   :  { %1231 = vst.msk [vmem:[%s2615_s1 - $0xfe] ss:$240 sm:$0xc] %vm11_vm0, %v796_v57  }
 0x182   :  { %1250 = vst.msk [vmem:[%s2615_s1 + $0x6c] ss:$240 sm:$0x3] %vm11_vm0, %v876_v58  }
 0x183   :  { %1251 = vst.msk [vmem:[%s2615_s1 - $0xf4] ss:$240 sm:$0xc] %vm11_vm0, %v876_v58  }
 0x185   :  { %v812_v59 = vpop.permute.xlu0 %811   ;;  %v820_v60 = vpop.permute.xlu1 %819  }
 0x186   :  { %1234 = vst.msk [vmem:[%s2615_s1 + $0x64] ss:$240 sm:$0x3] %vm11_vm0, %v812_v59   ;;  %v900_v61 = vpop.permute.xlu2 %899  }
 0x187   :  { %1235 = vst.msk [vmem:[%s2615_s1 - $0xfc] ss:$240 sm:$0xc] %vm11_vm0, %v812_v59  }
 0x188   :  { %1236 = vst.msk [vmem:[%s2615_s1 + $0x65] ss:$240 sm:$0x3] %vm11_vm0, %v820_v60  }
 0x189   :  { %1237 = vst.msk [vmem:[%s2615_s1 - $0xfb] ss:$240 sm:$0xc] %vm11_vm0, %v820_v60  }
 0x18a   :  { %1256 = vst.msk [vmem:[%s2615_s1 + $0x6f] ss:$240 sm:$0x3] %vm11_vm0, %v900_v61  }
 0x18b   :  { %1257 = vst.msk [vmem:[%s2615_s1 - $0xf1] ss:$240 sm:$0xc] %vm11_vm0, %v900_v61  }
 0x18d   :  { %v836_v62 = vpop.permute.xlu0 %835   ;;  %v844_v63 = vpop.permute.xlu1 %843  }
 0x18e   :  { %1240 = vst.msk [vmem:[%s2615_s1 + $0x67] ss:$240 sm:$0x3] %vm11_vm0, %v836_v62   ;;  %v926_v0 = vpop.permute.xlu2 %925  }
 0x18f   :  { %1241 = vst.msk [vmem:[%s2615_s1 - $0xf9] ss:$240 sm:$0xc] %vm11_vm0, %v836_v62  }
 0x190   :  { %1242 = vst.msk [vmem:[%s2615_s1 + $0x68] ss:$240 sm:$0x3] %vm11_vm0, %v844_v63  }
 0x191   :  { %1243 = vst.msk [vmem:[%s2615_s1 - $0xf8] ss:$240 sm:$0xc] %vm11_vm0, %v844_v63  }
 0x192   :  { %1260 = vst.msk [vmem:[%s2615_s1 + $0x162] ss:$-240 sm:$0x3] %vm11_vm0, %v926_v0  }
 0x195   :  { %v860_v1 = vpop.permute.xlu0 %859   ;;  %v868_v3 = vpop.permute.xlu1 %867  }
 0x196   :  { %1246 = vst.msk [vmem:[%s2615_s1 + $0x6a] ss:$240 sm:$0x3] %vm11_vm0, %v860_v1   ;;  %v950_v4 = vpop.permute.xlu2 %949  }
 0x197   :  { %1247 = vst.msk [vmem:[%s2615_s1 - $0xf6] ss:$240 sm:$0xc] %vm11_vm0, %v860_v1  }
 0x198   :  { %1248 = vst.msk [vmem:[%s2615_s1 + $0x6b] ss:$240 sm:$0x3] %vm11_vm0, %v868_v3  }
 0x199   :  { %1249 = vst.msk [vmem:[%s2615_s1 - $0xf5] ss:$240 sm:$0xc] %vm11_vm0, %v868_v3  }
 0x19a   :  { %1263 = vst.msk [vmem:[%s2615_s1 + $0x165] ss:$-240 sm:$0x3] %vm11_vm0, %v950_v4  }
 0x19d   :  { %v884_v5 = vpop.permute.xlu0 %883   ;;  %v892_v6 = vpop.permute.xlu1 %891  }
 0x19e   :  { %1252 = vst.msk [vmem:[%s2615_s1 + $0x6d] ss:$240 sm:$0x3] %vm11_vm0, %v884_v5   ;;  %v974_v7 = vpop.permute.xlu2 %973  }
 0x19f   :  { %1253 = vst.msk [vmem:[%s2615_s1 - $0xf3] ss:$240 sm:$0xc] %vm11_vm0, %v884_v5  }
 0x1a0   :  { %1254 = vst.msk [vmem:[%s2615_s1 + $0x6e] ss:$240 sm:$0x3] %vm11_vm0, %v892_v6  }
 0x1a1   :  { %1255 = vst.msk [vmem:[%s2615_s1 - $0xf2] ss:$240 sm:$0xc] %vm11_vm0, %v892_v6  }
 0x1a2   :  { %1266 = vst.msk [vmem:[%s2615_s1 + $0x168] ss:$-240 sm:$0x3] %vm11_vm0, %v974_v7  }
 0x1a5   :  { %v910_v8 = vpop.permute.xlu0 %909   ;;  %v918_v9 = vpop.permute.xlu1 %917  }
 0x1a6   :  { %1258 = vst.msk [vmem:[%s2615_s1 + $0x160] ss:$-240 sm:$0x3] %vm11_vm0, %v910_v8   ;;  %v998_v10 = vpop.permute.xlu2 %997  }
 0x1a7   :  { %1259 = vst.msk [vmem:[%s2615_s1 + $0x161] ss:$-240 sm:$0x3] %vm11_vm0, %v918_v9  }
 0x1a8   :  { %1269 = vst.msk [vmem:[%s2615_s1 + $0x16b] ss:$-240 sm:$0x3] %vm11_vm0, %v998_v10  }
 0x1ad   :  { %v934_v2 = vpop.permute.xlu0 %933   ;;  %v942_v11 = vpop.permute.xlu1 %941  }
 0x1ae   :  { %1261 = vst.msk [vmem:[%s2615_s1 + $0x163] ss:$-240 sm:$0x3] %vm11_vm0, %v934_v2   ;;  %v1022_v12 = vpop.permute.xlu2 %1021  }
 0x1af   :  { %1262 = vst.msk [vmem:[%s2615_s1 + $0x164] ss:$-240 sm:$0x3] %vm11_vm0, %v942_v11  }
 0x1b0   :  { %1272 = vst.msk [vmem:[%s2615_s1 + $0x16e] ss:$-240 sm:$0x3] %vm11_vm0, %v1022_v12  }
 0x1b5   :  { %v958_v15 = vpop.permute.xlu0 %957   ;;  %v966_v16 = vpop.permute.xlu1 %965  }
 0x1b6   :  { %1264 = vst.msk [vmem:[%s2615_s1 + $0x166] ss:$-240 sm:$0x3] %vm11_vm0, %v958_v15  }
 0x1b7   :  { %1265 = vst.msk [vmem:[%s2615_s1 + $0x167] ss:$-240 sm:$0x3] %vm11_vm0, %v966_v16  }
 0x1bd   :  { %v982_v17 = vpop.permute.xlu0 %981   ;;  %v990_v18 = vpop.permute.xlu1 %989  }
 0x1be   :  { %1267 = vst.msk [vmem:[%s2615_s1 + $0x169] ss:$-240 sm:$0x3] %vm11_vm0, %v982_v17  }
 0x1bf   :  { %1268 = vst.msk [vmem:[%s2615_s1 + $0x16a] ss:$-240 sm:$0x3] %vm11_vm0, %v990_v18  }
 0x1c5   :  { %v1006_v19 = vpop.permute.xlu0 %1005   ;;  %v1014_v20 = vpop.permute.xlu1 %1013  }
 0x1c6   :  { %1270 = vst.msk [vmem:[%s2615_s1 + $0x16c] ss:$-240 sm:$0x3] %vm11_vm0, %v1006_v19  }
 0x1c7   :  { %1271 = vst.msk [vmem:[%s2615_s1 + $0x16d] ss:$-240 sm:$0x3] %vm11_vm0, %v1014_v20  }
 0x1cd   :  { %v1030_v21 = vpop.permute.xlu0 %1029  }
 0x1ce   :  { %1273 = vst.msk [vmem:[%s2615_s1 + $0x16f] ss:$-240 sm:$0x3] %vm11_vm0, %v1030_v21  }

// kernel: tile.18
= control target key start
LH: loop header
LB: loop body
LE: loop exit
PB: predicated region body
PF: predicated region fallthrough
CT: control target
= control target key end

     0   :  { %s22_s0 = inlined_call_operand.vmem [shape: f32[128], index: 0, kind: input, shape index: {}]   ;;  %s23_s1 = inlined_call_operand.vmem [shape: f32[2,128], index: 1, kind: output, shape index: {}]  }
   0x1   :  { %v4_v0 = vld [vmem:[%s22_s0] ss:$0 sm:$0xff] }
   0x2   :  { %5 = vst [vmem:[%s23_s1] sm:$0x3] %v4_v0 }

// kernel: gat_union_forward.6
= control target key start
LH: loop header
LB: loop body
LE: loop exit
PB: predicated region body
PF: predicated region fallthrough
CT: control target
= control target key end

     0   :  { %s1061_s24 = smov 0   ;;  %s1332_s0 = inlined_call_operand.vmem [shape: f32[256,32], index: 0, kind: input, shape index: {}]   ;;  %s1333_s1 = inlined_call_operand.vmem [shape: f32[32,64], index: 1, kind: input, shape index: {}]   ;;  %s1334_s2 = inlined_call_operand.vmem [shape: f32[1,32], index: 2, kind: input, shape index: {}]   ;;  %s1335_s3 = inlined_call_operand.vmem [shape: f32[256,1], index: 3, kind: input, shape index: {}]   ;;  %s1336_s4 = inlined_call_operand.vmem [shape: f32[256,32], index: 4, kind: output, shape index: {0}]   ;;  %s1337_s5 = inlined_call_operand.vmem [shape: f32[256,32], index: 5, kind: output, shape index: {1}]   ;;  %s1338_s6 = inlined_call_operand.vmem [shape: f32[2,1,32], index: 6, kind: output, shape index: {2}]   ;;  %s1339_s7 = inlined_call_operand.vmem [shape: f32[2,1,32], index: 7, kind: output, shape index: {3}]  }
   0x1 LB: > { %s1067_s25 = sadd.s32 4294967295, %s1016_s24   ;;  %p956_p0 = scmp.ge.s32.totalorder %s1016_s24, 1  ;;  %s1016_s24 = sphi %s1061_s24, %s18_s24  }
   0x2   : > { %p256_p1 = scmp.lt.s32.totalorder %s1016_s24, 3 }
   0x4   : > { %p257_p2 = pnand %p956_p0, %p256_p1 }
   0x5   : > { %s957_s9 = sshll.u32 (!%p257_p2), %s1067_s25, 4  ;;  %s1018_s12 = smov (!%p257_p2), 32  }
   0x6   : > { %260 = sbr.rel (%p257_p2) target bundleno = 330 (0x14a), region = 36  ;;  %p305_p3 = scmp.lt.s32.totalorder (!%p257_p2), %s957_s9, 31 }
   0x7   : > { %s1020_s27 = smov (!%p257_p2), 96   ;;  %p328_p4 = scmp.lt.s32.totalorder (!%p257_p2), %s1067_s25, 1 }
   0xb   : > { %v353_v0 = vld [vmem:[%s1333_s1 + $0x18] sm:$0xff]  ;;  %v1009_v1 = vld [vmem:[%s1334_s2] ss:$0 sm:$0xff]  ;;  %v352_v2 = vld [vmem:[%s1333_s1 + $0x10] sm:$0xff]  ;;  %s1341_s9 = smov (!%p305_p3, %s957_s9), 31  ;;  %v1019_v5 = vmov 0  }
   0xc   : > { %415 = vmatpush.msra.mxu0 %v353_v0  ;;  %983 = vmatpush.msra.mxu1 %v353_v0  ;;  %v351_v3 = vld [vmem:[%s1333_s1 + $0x8] sm:$0xff]  ;;  %v350_v4 = vld [vmem:[%s1333_s1] sm:$0xff]  ;;  %s1087_s15 = sshll.u32 %s1341_s9, 3  ;;  %vm354_vm0 = vcmask 261120   ;;  %vm698_vm1 = vcmask 523520   ;;  %s1343_s25 = smov (!%p328_p4, %s1067_s25), 1 }
   0xd   : > { %984 = vmatpush.msra.mxu2 %v353_v0  ;;  %985 = vmatpush.msra.mxu3 %v353_v0  ;;  %s1093_s18 = scalar_lea.vmem %s1335_s3, %s1087_s15  ;;  %s1099_s21 = scalar_lea.vmem %s1332_s0, %s1087_s15  ;;  %vm740_vm2 = vcmask 253952  }
   0xe   : > { %487 = vrot.lane.b32.xlu0 %v1009_v1, %s1018_s12  ;;  %416 = vmatpush.msra.mxu0 %v352_v2  ;;  %v586_v6 = vld [vmem:[%s1093_s18] sm:$0xff]  ;;  %v588_v11 = vld [vmem:[%s1093_s18 + $0x10] sm:$0xff]  ;;  %v587_v12 = vld [vmem:[%s1093_s18 + $0x8] sm:$0xff]  ;;  %s1153_s26 = scalar_lea.vmem %s1336_s4, %s1087_s15  ;;  %s1287_s30 = scalar_lea.vmem %s1337_s5, %s1087_s15 }
   0xf   : > { %986 = vmatpush.msra.mxu1 %v352_v2  ;;  %987 = vmatpush.msra.mxu2 %v352_v2  ;;  %v334_v7 = vld [vmem:[%s1099_s21] sm:$0xff]  ;;  %v589_v13 = vld [vmem:[%s1093_s18 + $0x18] sm:$0xff]  ;;  %v335_v14 = vld [vmem:[%s1099_s21 + $0x8] sm:$0xff]  ;;  %s333_s10 = scalar_lea.vmem %s1339_s7, %s1343_s25  ;;  %s330_s13 = scalar_lea.vmem %s1338_s6, %s1343_s25 }
  0x10   : > { %988 = vmatpush.msra.mxu3 %v352_v2  ;;  %417 = vmatpush.msra.mxu0 %v351_v3  ;;  %v338_v8 = vld [vmem:[%s1099_s21 + $0x20] sm:$0xff]  ;;  %v339_v15 = vld [vmem:[%s1099_s21 + $0x28] sm:$0xff]  ;;  %v593_v18 = vld [vmem:[%s1093_s18 + $0x38] sm:$0xff] }
  0x11   : > { %989 = vmatpush.msra.mxu1 %v351_v3  ;;  %990 = vmatpush.msra.mxu2 %v351_v3  ;;  %v342_v9 = vld [vmem:[%s1099_s21 + $0x40] sm:$0xff]  ;;  %v343_v16 = vld [vmem:[%s1099_s21 + $0x48] sm:$0xff]  ;;  %v336_v21 = vld [vmem:[%s1099_s21 + $0x10] sm:$0xff] }
  0x12   : > { %991 = vmatpush.msra.mxu3 %v351_v3  ;;  %1006 = vset.pattern.permute.xlu1 %v1019_v5  ;;  %v346_v10 = vld [vmem:[%s1099_s21 + $0x60] sm:$0xff]  ;;  %v347_v17 = vld [vmem:[%s1099_s21 + $0x68] sm:$0xff]  ;;  %v340_v22 = vld [vmem:[%s1099_s21 + $0x30] sm:$0xff] }
  0x13   : > { %418 = vmatpush.msra.mxu0 %v350_v4  ;;  %992 = vmatpush.msra.mxu1 %v350_v4  ;;  %v590_v19 = vld [vmem:[%s1093_s18 + $0x20] sm:$0xff]  ;;  %v591_v20 = vld [vmem:[%s1093_s18 + $0x28] sm:$0xff]  ;;  %v344_v23 = vld [vmem:[%s1099_s21 + $0x50] sm:$0xff] }
  0x14   : > { %993 = vmatpush.msra.mxu2 %v350_v4  ;;  %994 = vmatpush.msra.mxu3 %v350_v4  ;;  %v348_v24 = vld [vmem:[%s1099_s21 + $0x70] sm:$0xff]  ;;  %v594_v27 = vld [vmem:[%s1093_s18 + $0x40] sm:$0xff]  ;;  %v337_v28 = vld [vmem:[%s1099_s21 + $0x18] sm:$0xff] }
  0x15   : > { %604 = vperm.xlu1 %1006, %v586_v6   ;;  %965 = vmatmul.msk.f32.vlgmr.msra.gmra.mxu0 %vm354_vm0, %v334_v7  ;;  %v596_v25 = vld [vmem:[%s1093_s18 + $0x50] sm:$0xff]  ;;  %v341_v29 = vld [vmem:[%s1099_s21 + $0x38] sm:$0xff]  ;;  %v599_v32 = vld [vmem:[%s1093_s18 + $0x68] sm:$0xff] }
  0x16   : > { %969 = vmatmul.msk.f32.vlgmr.msra.gmra.mxu1 %vm354_vm0, %v338_v8  ;;  %973 = vmatmul.msk.f32.vlgmr.msra.gmra.mxu2 %vm354_vm0, %v342_v9  ;;  %v592_v26 = vld [vmem:[%s1093_s18 + $0x30] sm:$0xff]  ;;  %v345_v30 = vld [vmem:[%s1099_s21 + $0x58] sm:$0xff]  ;;  %v595_v33 = vld [vmem:[%s1093_s18 + $0x48] sm:$0xff] }
  0x17   : > { %977 = vmatmul.msk.f32.vlgmr.msra.gmra.mxu3 %vm354_vm0, %v346_v10  ;;  %1008 = vset.pattern.permute.xlu0 %v1019_v5  ;;  %v349_v31 = vld [vmem:[%s1099_s21 + $0x78] sm:$0xff]  ;;  %v598_v35 = vld [vmem:[%s1093_s18 + $0x60] sm:$0xff]  ;;  %v600_v36 = vld [vmem:[%s1093_s18 + $0x70] sm:$0xff] }
  0x18   : > { %614 = vperm.xlu0 %1008, %v588_v11   ;;  %1007 = vset.pattern.permute.xlu2 %v1019_v5  ;;  %v597_v34 = vld [vmem:[%s1093_s18 + $0x58] sm:$0xff] }
  0x19   : > { %609 = vperm.xlu2 %1007, %v587_v12   ;;  %v601_v37 = vld [vmem:[%s1093_s18 + $0x78] sm:$0xff] }
  0x1d   : > { %619 = vperm.xlu1 %1006, %v589_v13   ;;  %966 = vmatmul.msk.f32.gmra.mxu0 %vm354_vm0, %v335_v14 }
  0x1e   : > { %970 = vmatmul.msk.f32.gmra.mxu1 %vm354_vm0, %v339_v15  ;;  %974 = vmatmul.msk.f32.gmra.mxu2 %vm354_vm0, %v343_v16 }
  0x1f   : > { %978 = vmatmul.msk.f32.gmra.mxu3 %vm354_vm0, %v347_v17 }
  0x20   : > { %639 = vperm.xlu0 %1008, %v593_v18  }
  0x21   : > { %624 = vperm.xlu2 %1007, %v590_v19  }
  0x25   : > { %629 = vperm.xlu1 %1006, %v591_v20   ;;  %967 = vmatmul.msk.f32.gmra.mxu0 %vm354_vm0, %v336_v21 }
  0x26   : > { %971 = vmatmul.msk.f32.gmra.mxu1 %vm354_vm0, %v340_v22  ;;  %975 = vmatmul.msk.f32.gmra.mxu2 %vm354_vm0, %v344_v23 }
  0x27   : > { %979 = vmatmul.msk.f32.gmra.mxu3 %vm354_vm0, %v348_v24 }
  0x28   : > { %654 = vperm.xlu0 %1008, %v596_v25  }
  0x29   : > { %634 = vperm.xlu2 %1007, %v592_v26  }
  0x2d   : > { %644 = vperm.xlu1 %1006, %v594_v27   ;;  %968 = vmatmul.msk.f32.gmra.mxu0 %vm354_vm0, %v337_v28 }
  0x2e   : > { %972 = vmatmul.msk.f32.gmra.mxu1 %vm354_vm0, %v341_v29  ;;  %976 = vmatmul.msk.f32.gmra.mxu2 %vm354_vm0, %v345_v30 }
  0x2f   : > { %980 = vmatmul.msk.f32.gmra.mxu3 %vm354_vm0, %v349_v31 }
  0x30   : > { %669 = vperm.xlu0 %1008, %v599_v32  }
  0x31   : > { %649 = vperm.xlu2 %1007, %v595_v33  }
  0x35   : > { %659 = vperm.xlu1 %1006, %v597_v34  }
  0x39   : > { %664 = vperm.xlu2 %1007, %v598_v35  }
  0x3d   : > { %674 = vperm.xlu1 %1006, %v600_v36  }
  0x41   : > { %679 = vperm.xlu2 %1007, %v601_v37  }
  0x73   : > { %v610_v39 = vpop.permute.xlu2 %609 }
  0x7b   : > { %v625_v46 = vpop.permute.xlu2 %624 }
  0x80   : > { %v1155_v40 = vpop.permute.xlu0 %487 }
  0x83   : > { %v635_v56 = vpop.permute.xlu2 %634 }
  0x87   : > { %v605_v38 = vpop.permute.xlu1 %604 }
  0x8a   : > { %v615_v53 = vpop.permute.xlu0 %614 }
  0x8b   : > { %v650_v20 = vpop.permute.xlu2 %649 }
  0x8f   : > { %v1165_v45 = vpop.permute.xlu1 %619 }
  0x92   : > { %v420_v41 = vpop.f32.mrf.mxu0  ;;  %v640_v2 = vpop.permute.xlu0 %639 }
  0x93   : > { %468 = vst.msk [vmem:[%s1153_s26] sm:$0xff] %vm354_vm0, %v420_v41  ;;  %v490_v42 = vadd.f32 %v1155_v40, %v420_v41  ;;  %v432_v43 = vpop.f32.mrf.mxu1 }
  0x94   : > { %472 = vst.msk [vmem:[%s1153_s26 + $0x20] sm:$0xff] %vm354_vm0, %v432_v43  ;;  %v1163_v44 = vadd.f32 %v1155_v40, %v432_v43 }
  0x95   : > { %522 = vrot.lane.b32.xlu0 %v490_v42, %s1020_s27  ;;  %v682_v0 = vmul.f32 %v605_v38, %v490_v42 }
  0x96   : > { %530 = vrot.lane.b32.xlu2 %v1163_v44, %s1020_s27  ;;  %v686_v12 = vmul.f32 %v625_v46, %v1163_v44 }
  0x97   : > { %v630_v54 = vpop.permute.xlu1 %629  ;;  %v742_v7 = vmul.f32 %v682_v0, %v490_v42  ;;  %v699_v11 = vsel %vm698_vm1, %v682_v0, 0.0 }
  0x98   : > { %v746_v27 = vmul.f32 %v686_v12, %v1163_v44  ;;  %v706_v38 = vsel %vm698_vm1, %v686_v12, 0.0 }
  0x99   : > { %v444_v47 = vpop.f32.mrf.mxu2  ;;  %v758_v23 = vsel %vm698_vm1, %v742_v7, 0.0 }
  0x9a   : > { %476 = vst.msk [vmem:[%s1153_s26 + $0x40] sm:$0xff] %vm354_vm0, %v444_v47  ;;  %v1173_v48 = vadd.f32 %v1155_v40, %v444_v47  ;;  %v456_v49 = vpop.f32.mrf.mxu3  ;;  %v423_v50 = vpop.f32.mrf.mxu0  ;;  %v765_v44 = vsel %vm698_vm1, %v746_v27, 0.0 }
  0x9b   : > { %480 = vst.msk [vmem:[%s1153_s26 + $0x60] sm:$0xff] %vm354_vm0, %v456_v49  ;;  %v435_v51 = vpop.f32.mrf.mxu1  ;;  %v491_v52 = vadd.f32 %v1155_v40, %v423_v50  ;;  %v1188_v58 = vadd.f32 %v1155_v40, %v456_v49  ;;  %v655_v33 = vpop.permute.xlu0 %654 }
  0x9c   : > { %469 = vst.msk [vmem:[%s1153_s26 + $0x8] sm:$0xff] %vm354_vm0, %v423_v50  ;;  %v495_v4 = vadd.f32 %v1155_v40, %v435_v51 }
  0x9d   : > { %473 = vst.msk [vmem:[%s1153_s26 + $0x28] sm:$0xff] %vm354_vm0, %v435_v51  ;;  %538 = vrot.lane.b32.xlu0 %v1173_v48, %s1020_s27  ;;  %524 = vrot.lane.b32.xlu1 %v491_v52, %s1020_s27  ;;  %v683_v61 = vmul.f32 %v610_v39, %v491_v52 }
  0x9e   : > { %v687_v22 = vmul.f32 %v630_v54, %v495_v4 }
  0x9f   : > { %v743_v3 = vmul.f32 %v683_v61, %v491_v52  ;;  %v645_v5 = vpop.permute.xlu1 %644  ;;  %v700_v8 = vsel %vm698_vm1, %v683_v61, 0.0  ;;  %v665_v61 = vpop.permute.xlu2 %664 }
  0xa0   : > { %v701_v21 = vadd.f32 %v700_v8, %v699_v11  ;;  %v747_v34 = vmul.f32 %v687_v22, %v495_v4  ;;  %v708_v49 = vsel %vm698_vm1, %v687_v22, 0.0  ;;  %v690_v50 = vmul.f32 %v645_v5, %v1173_v48 }
  0xa1   : > { %v447_v55 = vpop.f32.mrf.mxu2  ;;  %v759_v16 = vsel %vm698_vm1, %v743_v3, 0.0 }
  0xa2   : > { %477 = vst.msk [vmem:[%s1153_s26 + $0x48] sm:$0xff] %vm354_vm0, %v447_v55  ;;  %v459_v57 = vpop.f32.mrf.mxu3  ;;  %v426_v59 = vpop.f32.mrf.mxu0  ;;  %v760_v28 = vadd.f32 %v759_v16, %v758_v23  ;;  %v499_v39 = vadd.f32 %v1155_v40, %v447_v55  ;;  %v714_v7 = vsel %vm698_vm1, %v690_v50, 0.0 }
  0xa3   : > { %481 = vst.msk [vmem:[%s1153_s26 + $0x68] sm:$0xff] %vm354_vm0, %v459_v57  ;;  %v438_v60 = vpop.f32.mrf.mxu1  ;;  %v1193_v62 = vadd.f32 %v1155_v40, %v459_v57  ;;  %v492_v63 = vadd.f32 %v1155_v40, %v426_v59  ;;  %v670_v11 = vpop.permute.xlu0 %669 }
  0xa4   : > { %470 = vst.msk [vmem:[%s1153_s26 + $0x10] sm:$0xff] %vm354_vm0, %v426_v59  ;;  %v496_v18 = vadd.f32 %v1155_v40, %v438_v60 }
  0xa5   : > { %474 = vst.msk [vmem:[%s1153_s26 + $0x30] sm:$0xff] %vm354_vm0, %v438_v60  ;;  %546 = vrot.lane.b32.xlu0 %v1188_v58, %s1020_s27  ;;  %v684_v1 = vmul.f32 %v615_v53, %v492_v63  ;;  %548 = vrot.lane.b32.xlu1 %v1193_v62, %s1020_s27  ;;  %v767_v53 = vsel %vm698_vm1, %v747_v34, 0.0  ;;  %v695_v23 = vmul.f32 %v670_v11, %v1193_v62 }
  0xa6   : > { %v688_v30 = vmul.f32 %v635_v56, %v496_v18  ;;  %v691_v56 = vmul.f32 %v650_v20, %v499_v39 }
  0xa7   : > { %v744_v9 = vmul.f32 %v684_v1, %v492_v63  ;;  %v702_v17 = vsel %vm698_vm1, %v684_v1, 0.0  ;;  %v750_v1 = vmul.f32 %v690_v50, %v1173_v48  ;;  %v694_v48 = vmul.f32 %v665_v61, %v1188_v58 }
  0xa8   : > { %v703_v29 = vadd.f32 %v702_v17, %v701_v21  ;;  %v748_v51 = vmul.f32 %v688_v30, %v496_v18  ;;  %v710_v57 = vsel %vm698_vm1, %v688_v30, 0.0  ;;  %v751_v8 = vmul.f32 %v691_v56, %v499_v39 }
  0xa9   : > { %v450_v6 = vpop.f32.mrf.mxu2  ;;  %v761_v24 = vsel %vm698_vm1, %v744_v9, 0.0  ;;  %v773_v16 = vsel %vm698_vm1, %v750_v1, 0.0  ;;  %v716_v17 = vsel %vm698_vm1, %v691_v56, 0.0  ;;  %v722_v34 = vsel %vm698_vm1, %v694_v48, 0.0 }
  0xaa   : > { %478 = vst.msk [vmem:[%s1153_s26 + $0x50] sm:$0xff] %vm354_vm0, %v450_v6  ;;  %v462_v10 = vpop.f32.mrf.mxu3  ;;  %v429_v14 = vpop.f32.mrf.mxu0  ;;  %v762_v35 = vadd.f32 %v761_v24, %v760_v28  ;;  %v500_v52 = vadd.f32 %v1155_v40, %v450_v6  ;;  %v775_v22 = vsel %vm698_vm1, %v751_v8, 0.0  ;;  %v754_v28 = vmul.f32 %v694_v48, %v1188_v58 }
  0xab   : > { %482 = vst.msk [vmem:[%s1153_s26 + $0x70] sm:$0xff] %vm354_vm0, %v462_v10  ;;  %v1213_v13 = vadd.f32 %v1155_v40, %v462_v10  ;;  %v441_v15 = vpop.f32.mrf.mxu1  ;;  %v493_v19 = vadd.f32 %v1155_v40, %v429_v14 }
  0xac   : > { %471 = vst.msk [vmem:[%s1153_s26 + $0x18] sm:$0xff] %vm354_vm0, %v429_v14  ;;  %v497_v26 = vadd.f32 %v1155_v40, %v441_v15  ;;  %v692_v3 = vmul.f32 %v655_v33, %v500_v52  ;;  %v781_v58 = vsel %vm698_vm1, %v754_v28, 0.0 }
  0xad   : > { %475 = vst.msk [vmem:[%s1153_s26 + $0x38] sm:$0xff] %vm354_vm0, %v441_v15  ;;  %550 = vrot.lane.b32.xlu2 %v1213_v13, %s1020_s27  ;;  %532 = vrot.lane.b32.xlu0 %v495_v4, %s1020_s27  ;;  %v685_v25 = vmul.f32 %v1165_v45, %v493_v19  ;;  %v660_v45 = vpop.permute.xlu1 %659 }
  0xae   : > { %526 = vrot.lane.b32.xlu1 %v492_v63, %s1020_s27  ;;  %v689_v42 = vmul.f32 %v640_v2, %v497_v26  ;;  %v769_v2 = vsel %vm698_vm1, %v748_v51, 0.0 }
  0xaf   : > { %v704_v31 = vsel %vm698_vm1, %v685_v25, 0.0  ;;  %v745_v32 = vmul.f32 %v685_v25, %v493_v19 }
  0xb0   : > { %v705_v36 = vadd.f32 %v704_v31, %v703_v29  ;;  %v749_v59 = vmul.f32 %v689_v42, %v497_v26  ;;  %v712_v4 = vsel %vm698_vm1, %v689_v42, 0.0  ;;  %v680_v31 = vpop.permute.xlu2 %679 }
  0xb1   : > { %v453_v37 = vpop.f32.mrf.mxu2  ;;  %v763_v41 = vsel %vm698_vm1, %v745_v32, 0.0 }
  0xb2   : > { %479 = vst.msk [vmem:[%s1153_s26 + $0x58] sm:$0xff] %vm354_vm0, %v453_v37  ;;  %v465_v43 = vpop.f32.mrf.mxu3  ;;  %v707_v46 = vadd.f32 %v706_v38, %v705_v36  ;;  %v764_v47 = vadd.f32 %v763_v41, %v762_v35  ;;  %v501_v60 = vadd.f32 %v1155_v40, %v453_v37  ;;  %v771_v9 = vsel %vm698_vm1, %v749_v59, 0.0 }
  0xb3   : > { %483 = vst.msk [vmem:[%s1153_s26 + $0x78] sm:$0xff] %vm354_vm0, %v465_v43  ;;  %v505_v15 = vadd.f32 %v1155_v40, %v465_v43  ;;  %v718_v40 = vsel %vm698_vm1, %v692_v3, 0.0  ;;  %v755_v35 = vmul.f32 %v695_v23, %v1193_v62  ;;  %v724_v41 = vsel %vm698_vm1, %v695_v23, 0.0 }
  0xb4   : > { %v766_v54 = vadd.f32 %v765_v44, %v764_v47  ;;  %v709_v55 = vadd.f32 %v708_v49, %v707_v46  ;;  %v693_v10 = vmul.f32 %v660_v45, %v501_v60 }
  0xb5   : > { %528 = vrot.lane.b32.xlu2 %v493_v19, %s1020_s27  ;;  %540 = vrot.lane.b32.xlu0 %v499_v39, %s1020_s27  ;;  %v675_v20 = vpop.permute.xlu1 %674  ;;  %v697_v37 = vmul.f32 %v680_v31, %v505_v15  ;;  %v783_v45 = vsel %vm698_vm1, %v755_v35, 0.0 }
  0xb6   : > { %534 = vrot.lane.b32.xlu1 %v496_v18, %s1020_s27  ;;  %v711_v63 = vadd.f32 %v710_v57, %v709_v55  ;;  %v768_v0 = vadd.f32 %v767_v53, %v766_v54  ;;  %v752_v18 = vmul.f32 %v692_v3, %v500_v52  ;;  %v753_v24 = vmul.f32 %v693_v10, %v501_v60 }
  0xb7   : > { %v696_v30 = vmul.f32 %v675_v20, %v1213_v13  ;;  %v757_v62 = vmul.f32 %v697_v37, %v505_v15  ;;  %v728_v51 = vsel %vm698_vm1, %v697_v37, 0.0 }
  0xb8   : > { %v713_v5 = vadd.f32 %v712_v4, %v711_v63  ;;  %v770_v6 = vadd.f32 %v769_v2, %v768_v0  ;;  %v777_v29 = vsel %vm698_vm1, %v752_v18, 0.0  ;;  %v779_v36 = vsel %vm698_vm1, %v753_v24, 0.0 }
  0xb9   : > { %v756_v42 = vmul.f32 %v696_v30, %v1213_v13  ;;  %v726_v46 = vsel %vm698_vm1, %v696_v30, 0.0  ;;  %v787_v54 = vsel %vm698_vm1, %v757_v62, 0.0 }
  0xba   : > { %v715_v12 = vadd.f32 %v714_v7, %v713_v5  ;;  %v772_v14 = vadd.f32 %v771_v9, %v770_v6 }
  0xbb   : > { %v785_v50 = vsel %vm698_vm1, %v756_v42, 0.0 }
  0xbc   : > { %v774_v19 = vadd.f32 %v773_v16, %v772_v14  ;;  %v717_v21 = vadd.f32 %v716_v17, %v715_v12 }
  0xbd   : > { %536 = vrot.lane.b32.xlu2 %v497_v26, %s1020_s27  ;;  %552 = vrot.lane.b32.xlu0 %v505_v15, %s1020_s27  ;;  %v720_v26 = vsel %vm698_vm1, %v693_v10, 0.0 }
  0xbe   : > { %542 = vrot.lane.b32.xlu1 %v500_v52, %s1020_s27  ;;  %v719_v25 = vadd.f32 %v718_v40, %v717_v21  ;;  %v776_v27 = vadd.f32 %v775_v22, %v774_v19 }
  0xc0   : > { %v721_v32 = vadd.f32 %v720_v26, %v719_v25  ;;  %v778_v33 = vadd.f32 %v777_v29, %v776_v27 }
  0xc2   : > { %v723_v38 = vadd.f32 %v722_v34, %v721_v32  ;;  %v780_v39 = vadd.f32 %v779_v36, %v778_v33 }
  0xc4   : > { %v782_v43 = vadd.f32 %v781_v58, %v780_v39  ;;  %v725_v44 = vadd.f32 %v724_v41, %v723_v38 }
  0xc5   : > { %544 = vrot.lane.b32.xlu2 %v501_v60, %s1020_s27 }
  0xc6   : > { %v727_v47 = vadd.f32 %v726_v46, %v725_v44  ;;  %v784_v49 = vadd.f32 %v783_v45, %v782_v43 }
  0xc8   : > { %v729_v52 = vadd.f32 %v728_v51, %v727_v47  ;;  %v786_v53 = vadd.f32 %v785_v50, %v784_v49 }
  0xca   : > { %v788_v13 = vadd.f32 %v787_v54, %v786_v53  ;;  %v730_v55 = vrot.slane %v729_v52, 4 }
  0xcc   : > { %v731_v56 = vadd.f32 %v730_v55, %v729_v52  ;;  %v789_v57 = vrot.slane %v788_v13, 4 }
  0xce   : > { %v732_v59 = vrot.slane %v731_v56, 2  ;;  %v790_v60 = vadd.f32 %v789_v57, %v788_v13 }
  0xd0   : > { %v733_v61 = vadd.f32 %v732_v59, %v731_v56  ;;  %v791_v63 = vrot.slane %v790_v60, 2 }
  0xd2   : > { %v734_v0 = vrot.slane %v733_v61, 1  ;;  %v792_v1 = vadd.f32 %v791_v63, %v790_v60 }
  0xd4   : > { %v735_v2 = vadd.f32 %v734_v0, %v733_v61  ;;  %v793_v3 = vrot.slane %v792_v1, 1 }
  0xd6   : > { %737 = vrot.lane.b32.xlu1 %v735_v2, %s1020_s27  ;;  %v794_v4 = vadd.f32 %v793_v3, %v792_v1 }
  0xd8   : > { %796 = vrot.lane.b32.xlu2 %v794_v4, %s1020_s27 }
  0xf0   : > { %v531_v5 = vpop.permute.xlu2 %530 }
  0xf1   : > { %574 = vst.msk [vmem:[%s1287_s30 + $0x20] sm:$0xff] %vm354_vm0, %v531_v5 }
 0x107   : > { %v551_v6 = vpop.permute.xlu2 %550  ;;  %v523_v7 = vpop.permute.xlu0 %522 }
 0x108   : > { %584 = vst.msk [vmem:[%s1287_s30 + $0x70] sm:$0xff] %vm354_vm0, %v551_v6 }
 0x109   : > { %570 = vst.msk [vmem:[%s1287_s30] sm:$0xff] %vm354_vm0, %v523_v7 }
 0x10f   : > { %v529_v8 = vpop.permute.xlu2 %528  ;;  %v539_v9 = vpop.permute.xlu0 %538 }
 0x110   : > { %573 = vst.msk [vmem:[%s1287_s30 + $0x18] sm:$0xff] %vm354_vm0, %v529_v8  ;;  %v525_v10 = vpop.permute.xlu1 %524 }
 0x111   : > { %578 = vst.msk [vmem:[%s1287_s30 + $0x40] sm:$0xff] %vm354_vm0, %v539_v9 }
 0x112   : > { %571 = vst.msk [vmem:[%s1287_s30 + $0x8] sm:$0xff] %vm354_vm0, %v525_v10 }
 0x117   : > { %v537_v11 = vpop.permute.xlu2 %536  ;;  %v547_v12 = vpop.permute.xlu0 %546 }
 0x118   : > { %577 = vst.msk [vmem:[%s1287_s30 + $0x38] sm:$0xff] %vm354_vm0, %v537_v11  ;;  %v549_v14 = vpop.permute.xlu1 %548 }
 0x119   : > { %582 = vst.msk [vmem:[%s1287_s30 + $0x60] sm:$0xff] %vm354_vm0, %v547_v12 }
 0x11a   : > { %583 = vst.msk [vmem:[%s1287_s30 + $0x68] sm:$0xff] %vm354_vm0, %v549_v14 }
 0x11f   : > { %v545_v15 = vpop.permute.xlu2 %544  ;;  %v533_v48 = vpop.permute.xlu0 %532 }
 0x120   : > { %581 = vst.msk [vmem:[%s1287_s30 + $0x58] sm:$0xff] %vm354_vm0, %v545_v15  ;;  %v527_v16 = vpop.permute.xlu1 %526 }
 0x121   : > { %575 = vst.msk [vmem:[%s1287_s30 + $0x28] sm:$0xff] %vm354_vm0, %v533_v48 }
 0x122   : > { %572 = vst.msk [vmem:[%s1287_s30 + $0x10] sm:$0xff] %vm354_vm0, %v527_v16 }
 0x127   : > { %v541_v17 = vpop.permute.xlu0 %540 }
 0x128   : > { %579 = vst.msk [vmem:[%s1287_s30 + $0x48] sm:$0xff] %vm354_vm0, %v541_v17  ;;  %v535_v18 = vpop.permute.xlu1 %534 }
 0x129   : > { %576 = vst.msk [vmem:[%s1287_s30 + $0x30] sm:$0xff] %vm354_vm0, %v535_v18 }
 0x12f   : > { %v553_v19 = vpop.permute.xlu0 %552 }
 0x130   : > { %585 = vst.msk [vmem:[%s1287_s30 + $0x78] sm:$0xff] %vm354_vm0, %v553_v19  ;;  %v543_v20 = vpop.permute.xlu1 %542 }
 0x131   : > { %580 = vst.msk [vmem:[%s1287_s30 + $0x50] sm:$0xff] %vm354_vm0, %v543_v20 }
 0x132   : > { %v797_v21 = vpop.permute.xlu2 %796 }
 0x133   : > { %799 = vst.msk [vmem:[%s333_s10] sm:$0x1] %vm740_vm2, %v797_v21 }
 0x148   : > { %v738_v22 = vpop.permute.xlu1 %737 }
 0x149   : > { %741 = vst.msk [vmem:[%s330_s13] sm:$0x1] %vm740_vm2, %v738_v22 }
 0x14a PF: > { %s18_s24 = sadd.s32 1, %s1016_s24  }
 0x14b   : > { %p15_p5 = scmp.ge.s32.totalorder %s18_s24, 4  }
 0x14d   :  { %17 = sbr.rel (!%p15_p5) target bundleno = 1 (0x1), region = 105 }

// kernel: gat_union_forward.5
= control target key start
LH: loop header
LB: loop body
LE: loop exit
PB: predicated region body
PF: predicated region fallthrough
CT: control target
= control target key end

     0   :  { %s1435_s24 = smov 0   ;;  %s2079_s0 = inlined_call_operand.vmem [shape: f32[480,32], index: 0, kind: input, shape index: {}]   ;;  %s2080_s1 = inlined_call_operand.vmem [shape: f32[32,64], index: 1, kind: input, shape index: {}]   ;;  %s2081_s2 = inlined_call_operand.vmem [shape: f32[1,32], index: 2, kind: input, shape index: {}]   ;;  %s2082_s3 = inlined_call_operand.vmem [shape: f32[480,1], index: 3, kind: input, shape index: {}]   ;;  %s2083_s4 = inlined_call_operand.vmem [shape: f32[480,32], index: 4, kind: output, shape index: {0}]   ;;  %s2084_s5 = inlined_call_operand.vmem [shape: f32[480,32], index: 5, kind: output, shape index: {1}]   ;;  %s2085_s6 = inlined_call_operand.vmem [shape: f32[2,1,32], index: 6, kind: output, shape index: {2}]   ;;  %s2086_s7 = inlined_call_operand.vmem [shape: f32[2,1,32], index: 7, kind: output, shape index: {3}]  }
   0x1 LB: > { %s1441_s25 = sadd.s32 4294967295, %s1390_s24   ;;  %p1320_p0 = scmp.ge.s32.totalorder %s1390_s24, 1  ;;  %s1390_s24 = sphi %s1435_s24, %s18_s24  }
   0x2   : > { %p256_p1 = scmp.lt.s32.totalorder %s1390_s24, 3 }
   0x4   : > { %p257_p2 = pnand %p1320_p0, %p256_p1 }
   0x5   : > { %s304_s9 = smul.u32 (!%p257_p2), 30, %s1441_s25  ;;  %s1392_s12 = smov (!%p257_p2), 32  }
   0x6   : > { %260 = sbr.rel (%p257_p2) target bundleno = 487 (0x1e7), region = 36  ;;  %s1394_s27 = smov (!%p257_p2), 96  }
   0x7   : > { %p305_p3 = scmp.lt.s32.totalorder (!%p257_p2), %s304_s9, 59  ;;  %p328_p4 = scmp.lt.s32.totalorder (!%p257_p2), %s1441_s25, 1 }
   0xb   : > { %v367_v0 = vld [vmem:[%s2080_s1 + $0x18] sm:$0xff]  ;;  %v1383_v1 = vld [vmem:[%s2081_s2] ss:$0 sm:$0xff]  ;;  %v366_v2 = vld [vmem:[%s2080_s1 + $0x10] sm:$0xff]  ;;  %s2088_s9 = smov (!%p305_p3, %s304_s9), 59  ;;  %v1393_v5 = vmov 0  }
   0xc   : > { %471 = vmatpush.msra.mxu0 %v367_v0  ;;  %1357 = vmatpush.msra.mxu1 %v367_v0  ;;  %v365_v3 = vld [vmem:[%s2080_s1 + $0x8] sm:$0xff]  ;;  %v364_v4 = vld [vmem:[%s2080_s1] sm:$0xff]  ;;  %s1461_s15 = sshll.u32 %s2088_s9, 3  ;;  %vm368_vm0 = vcmask 261120   ;;  %vm992_vm1 = vcmask 523520   ;;  %s2090_s25 = smov (!%p328_p4, %s1441_s25), 1 }
   0xd   : > { %1358 = vmatpush.msra.mxu2 %v367_v0  ;;  %1359 = vmatpush.msra.mxu3 %v367_v0  ;;  %s1467_s18 = scalar_lea.vmem %s2082_s3, %s1461_s15  ;;  %s1473_s21 = scalar_lea.vmem %s2079_s0, %s1461_s15  ;;  %vm1062_vm2 = vcmask 253952  }
   0xe   : > { %599 = vrot.lane.b32.xlu0 %v1383_v1, %s1392_s12  ;;  %472 = vmatpush.msra.mxu0 %v366_v2  ;;  %v783_v6 = vld [vmem:[%s1467_s18 + $0x8] sm:$0xff]  ;;  %v782_v7 = vld [vmem:[%s1467_s18] sm:$0xff]  ;;  %v341_v9 = vld [vmem:[%s1473_s21 + $0x38] sm:$0xff]  ;;  %s1582_s26 = scalar_lea.vmem %s2083_s4, %s1461_s15  ;;  %s1980_s30 = scalar_lea.vmem %s2084_s5, %s1461_s15 }
   0xf   : > { %1360 = vmatpush.msra.mxu1 %v366_v2  ;;  %1361 = vmatpush.msra.mxu2 %v366_v2  ;;  %v334_v8 = vld [vmem:[%s1473_s21] sm:$0xff]  ;;  %v349_v10 = vld [vmem:[%s1473_s21 + $0x78] sm:$0xff]  ;;  %v784_v12 = vld [vmem:[%s1467_s18 + $0x10] sm:$0xff]  ;;  %s330_s10 = scalar_lea.vmem %s2085_s6, %s2090_s25  ;;  %s333_s13 = scalar_lea.vmem %s2086_s7, %s2090_s25 }
  0x10   : > { %1362 = vmatpush.msra.mxu3 %v366_v2  ;;  %473 = vmatpush.msra.mxu0 %v365_v3  ;;  %v357_v11 = vld [vmem:[%s1473_s21 + $0xb8] sm:$0xff]  ;;  %v786_v13 = vld [vmem:[%s1467_s18 + $0x20] sm:$0xff]  ;;  %v335_v15 = vld [vmem:[%s1473_s21 + $0x8] sm:$0xff] }
  0x11   : > { %1363 = vmatpush.msra.mxu1 %v365_v3  ;;  %1364 = vmatpush.msra.mxu2 %v365_v3  ;;  %v785_v14 = vld [vmem:[%s1467_s18 + $0x18] sm:$0xff]  ;;  %v342_v16 = vld [vmem:[%s1473_s21 + $0x40] sm:$0xff]  ;;  %v788_v20 = vld [vmem:[%s1467_s18 + $0x30] sm:$0xff] }
  0x12   : > { %1365 = vmatpush.msra.mxu3 %v365_v3  ;;  %1381 = vset.pattern.permute.xlu2 %v1393_v5  ;;  %v350_v17 = vld [vmem:[%s1473_s21 + $0x80] sm:$0xff]  ;;  %v789_v19 = vld [vmem:[%s1467_s18 + $0x38] sm:$0xff]  ;;  %v787_v21 = vld [vmem:[%s1467_s18 + $0x28] sm:$0xff] }
  0x13   : > { %1380 = vset.pattern.permute.xlu1 %v1393_v5  ;;  %474 = vmatpush.msra.mxu0 %v364_v4  ;;  %v358_v18 = vld [vmem:[%s1473_s21 + $0xc0] sm:$0xff]  ;;  %v336_v22 = vld [vmem:[%s1473_s21 + $0x10] sm:$0xff]  ;;  %v343_v23 = vld [vmem:[%s1473_s21 + $0x48] sm:$0xff] }
  0x14   : > { %1366 = vmatpush.msra.mxu1 %v364_v4  ;;  %1367 = vmatpush.msra.mxu2 %v364_v4  ;;  %v351_v24 = vld [vmem:[%s1473_s21 + $0x88] sm:$0xff]  ;;  %v792_v26 = vld [vmem:[%s1467_s18 + $0x50] sm:$0xff]  ;;  %v790_v28 = vld [vmem:[%s1467_s18 + $0x40] sm:$0xff] }
  0x15   : > { %1368 = vmatpush.msra.mxu3 %v364_v4  ;;  %819 = vperm.xlu2 %1381, %v783_v6   ;;  %v359_v25 = vld [vmem:[%s1473_s21 + $0xc8] sm:$0xff]  ;;  %v337_v29 = vld [vmem:[%s1473_s21 + $0x18] sm:$0xff]  ;;  %v344_v30 = vld [vmem:[%s1473_s21 + $0x50] sm:$0xff] }
  0x16   : > { %814 = vperm.xlu1 %1380, %v782_v7   ;;  %1325 = vmatmul.msk.f32.vlgmr.msra.gmra.mxu0 %vm368_vm0, %v334_v8  ;;  %v791_v27 = vld [vmem:[%s1467_s18 + $0x48] sm:$0xff]  ;;  %v352_v31 = vld [vmem:[%s1473_s21 + $0x90] sm:$0xff]  ;;  %v794_v34 = vld [vmem:[%s1467_s18 + $0x60] sm:$0xff] }
  0x17   : > { %1332 = vmatmul.msk.f32.vlgmr.msra.gmra.mxu1 %vm368_vm0, %v341_v9  ;;  %1340 = vmatmul.msk.f32.vlgmr.msra.gmra.mxu2 %vm368_vm0, %v349_v10  ;;  %v360_v32 = vld [vmem:[%s1473_s21 + $0xd0] sm:$0xff]  ;;  %v795_v33 = vld [vmem:[%s1467_s18 + $0x68] sm:$0xff]  ;;  %v793_v35 = vld [vmem:[%s1467_s18 + $0x58] sm:$0xff] }
  0x18   : > { %1348 = vmatmul.msk.f32.vlgmr.msra.gmra.mxu3 %vm368_vm0, %v357_v11  ;;  %1382 = vset.pattern.permute.xlu0 %v1393_v5  ;;  %v338_v36 = vld [vmem:[%s1473_s21 + $0x20] sm:$0xff]  ;;  %v345_v37 = vld [vmem:[%s1473_s21 + $0x58] sm:$0xff]  ;;  %v796_v42 = vld [vmem:[%s1467_s18 + $0x70] sm:$0xff] }
  0x19   : > { %824 = vperm.xlu0 %1382, %v784_v12   ;;  %v353_v38 = vld [vmem:[%s1473_s21 + $0x98] sm:$0xff]  ;;  %v798_v40 = vld [vmem:[%s1467_s18 + $0x80] sm:$0xff]  ;;  %v339_v43 = vld [vmem:[%s1473_s21 + $0x28] sm:$0xff] }
  0x1a   : > { %v361_v39 = vld [vmem:[%s1473_s21 + $0xd8] sm:$0xff]  ;;  %v346_v44 = vld [vmem:[%s1473_s21 + $0x60] sm:$0xff]  ;;  %v800_v48 = vld [vmem:[%s1467_s18 + $0x90] sm:$0xff] }
  0x1b   : > { %v797_v41 = vld [vmem:[%s1467_s18 + $0x78] sm:$0xff]  ;;  %v354_v45 = vld [vmem:[%s1473_s21 + $0xa0] sm:$0xff]  ;;  %v799_v49 = vld [vmem:[%s1467_s18 + $0x88] sm:$0xff] }
  0x1c   : > { %v362_v46 = vld [vmem:[%s1473_s21 + $0xe0] sm:$0xff]  ;;  %v801_v47 = vld [vmem:[%s1467_s18 + $0x98] sm:$0xff]  ;;  %v340_v50 = vld [vmem:[%s1473_s21 + $0x30] sm:$0xff] }
  0x1d   : > { %834 = vperm.xlu2 %1381, %v786_v13   ;;  %v347_v51 = vld [vmem:[%s1473_s21 + $0x68] sm:$0xff]  ;;  %v804_v54 = vld [vmem:[%s1467_s18 + $0xb0] sm:$0xff]  ;;  %v802_v56 = vld [vmem:[%s1467_s18 + $0xa0] sm:$0xff] }
  0x1e   : > { %829 = vperm.xlu1 %1380, %v785_v14   ;;  %1326 = vmatmul.msk.f32.gmra.mxu0 %vm368_vm0, %v335_v15  ;;  %v355_v52 = vld [vmem:[%s1473_s21 + $0xa8] sm:$0xff]  ;;  %v348_v57 = vld [vmem:[%s1473_s21 + $0x70] sm:$0xff]  ;;  %v806_v60 = vld [vmem:[%s1467_s18 + $0xc0] sm:$0xff] }
  0x1f   : > { %1333 = vmatmul.msk.f32.gmra.mxu1 %vm368_vm0, %v342_v16  ;;  %1341 = vmatmul.msk.f32.gmra.mxu2 %vm368_vm0, %v350_v17  ;;  %v363_v53 = vld [vmem:[%s1473_s21 + $0xe8] sm:$0xff]  ;;  %v356_v58 = vld [vmem:[%s1473_s21 + $0xb0] sm:$0xff]  ;;  %v805_v61 = vld [vmem:[%s1467_s18 + $0xb8] sm:$0xff] }
  0x20   : > { %1349 = vmatmul.msk.f32.gmra.mxu3 %vm368_vm0, %v358_v18  ;;  %v803_v55 = vld [vmem:[%s1467_s18 + $0xa8] sm:$0xff]  ;;  %v810_v62 = vld [vmem:[%s1467_s18 + $0xe0] sm:$0xff]  ;;  %v809_v63 = vld [vmem:[%s1467_s18 + $0xd8] sm:$0xff] }
  0x21   : > { %849 = vperm.xlu0 %1382, %v789_v19   ;;  %v807_v59 = vld [vmem:[%s1467_s18 + $0xc8] sm:$0xff]  ;;  %v808_v0 = vld [vmem:[%s1467_s18 + $0xd0] sm:$0xff] }
  0x25   : > { %844 = vperm.xlu2 %1381, %v788_v20  }
  0x26   : > { %839 = vperm.xlu1 %1380, %v787_v21   ;;  %1327 = vmatmul.msk.f32.gmra.mxu0 %vm368_vm0, %v336_v22 }
  0x27   : > { %1334 = vmatmul.msk.f32.gmra.mxu1 %vm368_vm0, %v343_v23  ;;  %1342 = vmatmul.msk.f32.gmra.mxu2 %vm368_vm0, %v351_v24 }
  0x28   : > { %1350 = vmatmul.msk.f32.gmra.mxu3 %vm368_vm0, %v359_v25 }
  0x29   : > { %864 = vperm.xlu0 %1382, %v792_v26  }
  0x2d   : > { %859 = vperm.xlu2 %1381, %v791_v27  }
  0x2e   : > { %854 = vperm.xlu1 %1380, %v790_v28   ;;  %1328 = vmatmul.msk.f32.gmra.mxu0 %vm368_vm0, %v337_v29 }
  0x2f   : > { %1335 = vmatmul.msk.f32.gmra.mxu1 %vm368_vm0, %v344_v30  ;;  %1343 = vmatmul.msk.f32.gmra.mxu2 %vm368_vm0, %v352_v31 }
  0x30   : > { %1351 = vmatmul.msk.f32.gmra.mxu3 %vm368_vm0, %v360_v32 }
  0x31   : > { %879 = vperm.xlu0 %1382, %v795_v33  }
  0x35   : > { %874 = vperm.xlu2 %1381, %v794_v34  }
  0x36   : > { %869 = vperm.xlu1 %1380, %v793_v35   ;;  %1329 = vmatmul.msk.f32.gmra.mxu0 %vm368_vm0, %v338_v36 }
  0x37   : > { %1336 = vmatmul.msk.f32.gmra.mxu1 %vm368_vm0, %v345_v37  ;;  %1344 = vmatmul.msk.f32.gmra.mxu2 %vm368_vm0, %v353_v38 }
  0x38   : > { %1352 = vmatmul.msk.f32.gmra.mxu3 %vm368_vm0, %v361_v39 }
  0x39   : > { %894 = vperm.xlu0 %1382, %v798_v40  }
  0x3d   : > { %889 = vperm.xlu2 %1381, %v797_v41  }
  0x3e   : > { %884 = vperm.xlu1 %1380, %v796_v42   ;;  %1330 = vmatmul.msk.f32.gmra.mxu0 %vm368_vm0, %v339_v43 }
  0x3f   : > { %1337 = vmatmul.msk.f32.gmra.mxu1 %vm368_vm0, %v346_v44  ;;  %1345 = vmatmul.msk.f32.gmra.mxu2 %vm368_vm0, %v354_v45 }
  0x40   : > { %1353 = vmatmul.msk.f32.gmra.mxu3 %vm368_vm0, %v362_v46 }
  0x41   : > { %909 = vperm.xlu0 %1382, %v801_v47  }
  0x45   : > { %904 = vperm.xlu2 %1381, %v800_v48  }
  0x46   : > { %899 = vperm.xlu1 %1380, %v799_v49   ;;  %1331 = vmatmul.msk.f32.gmra.mxu0 %vm368_vm0, %v340_v50 }
  0x47   : > { %1338 = vmatmul.msk.f32.gmra.mxu1 %vm368_vm0, %v347_v51  ;;  %1346 = vmatmul.msk.f32.gmra.mxu2 %vm368_vm0, %v355_v52 }
  0x48   : > { %1354 = vmatmul.msk.f32.gmra.mxu3 %vm368_vm0, %v363_v53 }
  0x49   : > { %924 = vperm.xlu0 %1382, %v804_v54  }
  0x4d   : > { %919 = vperm.xlu2 %1381, %v803_v55  }
  0x4e   : > { %914 = vperm.xlu1 %1380, %v802_v56  }
  0x4f   : > { %1339 = vmatmul.msk.f32.gmra.mxu1 %vm368_vm0, %v348_v57  ;;  %1347 = vmatmul.msk.f32.gmra.mxu2 %vm368_vm0, %v356_v58 }
  0x51   : > { %939 = vperm.xlu0 %1382, %v807_v59  }
  0x55   : > { %934 = vperm.xlu2 %1381, %v806_v60  }
  0x56   : > { %929 = vperm.xlu1 %1380, %v805_v61  }
  0x59   : > { %954 = vperm.xlu0 %1382, %v810_v62  }
  0x5d   : > { %949 = vperm.xlu2 %1381, %v809_v63  }
  0x5e   : > { %944 = vperm.xlu1 %1380, %v808_v0  }
  0x6f   : > { %v820_v1 = vpop.permute.xlu2 %819 }
  0x77   : > { %v1564_v2 = vpop.permute.xlu2 %834 }
  0x7f   : > { %v1566_v3 = vpop.permute.xlu2 %844 }
  0x80   : > { %v1568_v4 = vpop.permute.xlu0 %599 }
  0x87   : > { %v1570_v5 = vpop.permute.xlu2 %859 }
  0x88   : > { %v815_v6 = vpop.permute.xlu1 %814 }
  0x8b   : > { %v1572_v7 = vpop.permute.xlu0 %824 }
  0x8f   : > { %v1574_v8 = vpop.permute.xlu2 %874 }
  0x90   : > { %v1576_v9 = vpop.permute.xlu1 %829 }
  0x93   : > { %v850_v10 = vpop.permute.xlu0 %849  ;;  %v476_v11 = vpop.f32.mrf.mxu0 }
  0x94   : > { %566 = vst.msk [vmem:[%s1582_s26] sm:$0xff] %vm368_vm0, %v476_v11  ;;  %v602_v12 = vadd.f32 %v1568_v4, %v476_v11  ;;  %v497_v13 = vpop.f32.mrf.mxu1 }
  0x95   : > { %573 = vst.msk [vmem:[%s1582_s26 + $0x38] sm:$0xff] %vm368_vm0, %v497_v13  ;;  %v609_v14 = vadd.f32 %v1568_v4, %v497_v13 }
  0x96   : > { %v962_v15 = vmul.f32 %v815_v6, %v602_v12  ;;  %662 = vrot.lane.b32.xlu0 %v602_v12, %s1394_s27 }
  0x97   : > { %v1591_v16 = vmul.f32 %v850_v10, %v609_v14  ;;  %v890_v17 = vpop.permute.xlu2 %889  ;;  %676 = vrot.lane.b32.xlu2 %v609_v14, %s1394_s27 }
  0x98   : > { %v1064_v18 = vmul.f32 %v962_v15, %v602_v12  ;;  %v1594_v19 = vpop.permute.xlu1 %839  ;;  %v993_v35 = vsel %vm992_vm1, %v962_v15, 0.0 }
  0x99   : > { %v1597_v20 = vmul.f32 %v1591_v16, %v609_v14 }
  0x9a   : > { %v521_v21 = vpop.f32.mrf.mxu2  ;;  %v1094_v41 = vsel %vm992_vm1, %v1064_v18, 0.0 }
  0x9b   : > { %581 = vst.msk [vmem:[%s1582_s26 + $0x78] sm:$0xff] %vm368_vm0, %v521_v21  ;;  %v617_v22 = vadd.f32 %v1568_v4, %v521_v21  ;;  %v545_v23 = vpop.f32.mrf.mxu3  ;;  %v1602_v24 = vpop.permute.xlu0 %864 }
  0x9c   : > { %589 = vst.msk [vmem:[%s1582_s26 + $0xb8] sm:$0xff] %vm368_vm0, %v545_v23  ;;  %v1607_v25 = vadd.f32 %v1568_v4, %v545_v23  ;;  %v479_v26 = vpop.f32.mrf.mxu0  ;;  %v500_v27 = vpop.f32.mrf.mxu1 }
  0x9d   : > { %v1609_v28 = vmul.f32 %v890_v17, %v617_v22  ;;  %567 = vst.msk [vmem:[%s1582_s26 + $0x8] sm:$0xff] %vm368_vm0, %v479_v26  ;;  %v603_v29 = vadd.f32 %v1568_v4, %v479_v26  ;;  %692 = vrot.lane.b32.xlu1 %v617_v22, %s1394_s27  ;;  %v610_v32 = vadd.f32 %v1568_v4, %v500_v27 }
  0x9e   : > { %574 = vst.msk [vmem:[%s1582_s26 + $0x40] sm:$0xff] %vm368_vm0, %v500_v27  ;;  %708 = vrot.lane.b32.xlu0 %v1607_v25, %s1394_s27 }
  0x9f   : > { %v1620_v30 = vmul.f32 %v1609_v28, %v617_v22  ;;  %v963_v31 = vmul.f32 %v820_v1, %v603_v29  ;;  %v1623_v33 = vpop.permute.xlu2 %904 }
  0xa0   : > { %v855_v34 = vpop.permute.xlu1 %854 }
  0xa1   : > { %v994_v36 = vsel %vm992_vm1, %v963_v31, 0.0  ;;  %v1065_v37 = vmul.f32 %v963_v31, %v603_v29  ;;  %v1627_v38 = vmul.f32 %v855_v34, %v610_v32 }
  0xa2   : > { %v995_v39 = vadd.f32 %v994_v36, %v993_v35  ;;  %v524_v40 = vpop.f32.mrf.mxu2 }
  0xa3   : > { %v1095_v42 = vsel %vm992_vm1, %v1065_v37, 0.0  ;;  %v1632_v43 = vmul.f32 %v1627_v38, %v610_v32  ;;  %582 = vst.msk [vmem:[%s1582_s26 + $0x80] sm:$0xff] %vm368_vm0, %v524_v40  ;;  %v618_v44 = vadd.f32 %v1568_v4, %v524_v40  ;;  %v548_v45 = vpop.f32.mrf.mxu3  ;;  %v1637_v46 = vpop.permute.xlu0 %879 }
  0xa4   : > { %v1096_v47 = vadd.f32 %v1095_v42, %v1094_v41  ;;  %590 = vst.msk [vmem:[%s1582_s26 + $0xc0] sm:$0xff] %vm368_vm0, %v548_v45  ;;  %v482_v48 = vpop.f32.mrf.mxu0  ;;  %v503_v49 = vpop.f32.mrf.mxu1  ;;  %v626_v61 = vadd.f32 %v1568_v4, %v548_v45 }
  0xa5   : > { %568 = vst.msk [vmem:[%s1582_s26 + $0x10] sm:$0xff] %vm368_vm0, %v482_v48  ;;  %v604_v50 = vadd.f32 %v1568_v4, %v482_v48  ;;  %v1645_v51 = vadd.f32 %v1568_v4, %v503_v49  ;;  %694 = vrot.lane.b32.xlu2 %v618_v44, %s1394_s27  ;;  %664 = vrot.lane.b32.xlu1 %v603_v29, %s1394_s27 }
  0xa6   : > { %575 = vst.msk [vmem:[%s1582_s26 + $0x48] sm:$0xff] %vm368_vm0, %v503_v49  ;;  %678 = vrot.lane.b32.xlu0 %v610_v32, %s1394_s27 }
  0xa7   : > { %v964_v52 = vmul.f32 %v1572_v7, %v604_v50  ;;  %v1655_v53 = vmul.f32 %v1570_v5, %v1645_v51  ;;  %v1657_v54 = vpop.permute.xlu2 %919 }
  0xa8   : > { %v870_v55 = vpop.permute.xlu1 %869 }
  0xa9   : > { %v996_v56 = vsel %vm992_vm1, %v964_v52, 0.0  ;;  %v1066_v57 = vmul.f32 %v964_v52, %v604_v50  ;;  %v1662_v58 = vmul.f32 %v1655_v53, %v1645_v51 }
  0xaa   : > { %v997_v59 = vadd.f32 %v996_v56, %v995_v39  ;;  %v527_v60 = vpop.f32.mrf.mxu2 }
  0xab   : > { %v1097_v62 = vsel %vm992_vm1, %v1066_v57, 0.0  ;;  %583 = vst.msk [vmem:[%s1582_s26 + $0x88] sm:$0xff] %vm368_vm0, %v527_v60  ;;  %v551_v63 = vpop.f32.mrf.mxu3  ;;  %v895_v0 = vpop.permute.xlu0 %894  ;;  %v619_v5 = vadd.f32 %v1568_v4, %v527_v60 }
  0xac   : > { %v1098_v1 = vadd.f32 %v1097_v62, %v1096_v47  ;;  %591 = vst.msk [vmem:[%s1582_s26 + $0xc8] sm:$0xff] %vm368_vm0, %v551_v63  ;;  %v1672_v6 = vadd.f32 %v1568_v4, %v551_v63  ;;  %v1674_v7 = vmul.f32 %v895_v0, %v618_v44  ;;  %v485_v10 = vpop.f32.mrf.mxu0  ;;  %v506_v11 = vpop.f32.mrf.mxu1 }
  0xad   : > { %569 = vst.msk [vmem:[%s1582_s26 + $0x18] sm:$0xff] %vm368_vm0, %v485_v10  ;;  %v605_v12 = vadd.f32 %v1568_v4, %v485_v10  ;;  %v612_v13 = vadd.f32 %v1568_v4, %v506_v11  ;;  %710 = vrot.lane.b32.xlu1 %v626_v61, %s1394_s27 }
  0xae   : > { %v1682_v14 = vmul.f32 %v1674_v7, %v618_v44  ;;  %576 = vst.msk [vmem:[%s1582_s26 + $0x50] sm:$0xff] %vm368_vm0, %v506_v11  ;;  %712 = vrot.lane.b32.xlu2 %v1672_v6, %s1394_s27  ;;  %696 = vrot.lane.b32.xlu0 %v619_v5, %s1394_s27 }
  0xaf   : > { %v965_v15 = vmul.f32 %v1576_v9, %v605_v12  ;;  %v1691_v17 = vmul.f32 %v1602_v24, %v612_v13  ;;  %v935_v18 = vpop.permute.xlu2 %934 }
  0xb0   : > { %v1693_v21 = vmul.f32 %v935_v18, %v626_v61  ;;  %v1695_v22 = vpop.permute.xlu1 %884 }
  0xb1   : > { %v998_v23 = vsel %vm992_vm1, %v965_v15, 0.0  ;;  %v1067_v26 = vmul.f32 %v965_v15, %v605_v12  ;;  %v1699_v27 = vmul.f32 %v1691_v17, %v612_v13 }
  0xb2   : > { %v999_v29 = vadd.f32 %v998_v23, %v997_v59  ;;  %v1702_v31 = vmul.f32 %v1693_v21, %v626_v61  ;;  %v530_v9 = vpop.f32.mrf.mxu2 }
  0xb3   : > { %v1099_v24 = vsel %vm992_vm1, %v1067_v26, 0.0  ;;  %584 = vst.msk [vmem:[%s1582_s26 + $0x90] sm:$0xff] %vm368_vm0, %v530_v9  ;;  %v1708_v32 = vadd.f32 %v1568_v4, %v530_v9  ;;  %v554_v34 = vpop.f32.mrf.mxu3  ;;  %v910_v35 = vpop.permute.xlu0 %909 }
  0xb4   : > { %v1100_v36 = vadd.f32 %v1099_v24, %v1098_v1  ;;  %592 = vst.msk [vmem:[%s1582_s26 + $0xd0] sm:$0xff] %vm368_vm0, %v554_v34  ;;  %v1713_v37 = vadd.f32 %v1568_v4, %v554_v34  ;;  %v488_v39 = vpop.f32.mrf.mxu0  ;;  %v509_v40 = vpop.f32.mrf.mxu1 }
  0xb5   : > { %v1717_v41 = vmul.f32 %v1623_v33, %v1708_v32  ;;  %570 = vst.msk [vmem:[%s1582_s26 + $0x20] sm:$0xff] %vm368_vm0, %v488_v39  ;;  %v1722_v42 = vadd.f32 %v1568_v4, %v488_v39  ;;  %v613_v44 = vadd.f32 %v1568_v4, %v509_v40  ;;  %666 = vrot.lane.b32.xlu1 %v604_v50, %s1394_s27 }
  0xb6   : > { %577 = vst.msk [vmem:[%s1582_s26 + $0x58] sm:$0xff] %vm368_vm0, %v509_v40  ;;  %668 = vrot.lane.b32.xlu2 %v605_v12, %s1394_s27  ;;  %714 = vrot.lane.b32.xlu0 %v1713_v37, %s1394_s27 }
  0xb7   : > { %v1733_v33 = vmul.f32 %v1717_v41, %v1708_v32  ;;  %v966_v45 = vmul.f32 %v1564_v2, %v1722_v42  ;;  %v1737_v47 = vmul.f32 %v870_v55, %v613_v44  ;;  %v950_v60 = vpop.permute.xlu2 %949 }
  0xb8   : > { %v900_v48 = vpop.permute.xlu1 %899 }
  0xb9   : > { %v1000_v49 = vsel %vm992_vm1, %v966_v45, 0.0  ;;  %v1068_v50 = vmul.f32 %v966_v45, %v1722_v42  ;;  %v1742_v56 = vmul.f32 %v1737_v47, %v613_v44  ;;  %v1744_v57 = vmul.f32 %v900_v48, %v619_v5 }
  0xba   : > { %v1001_v52 = vadd.f32 %v1000_v49, %v999_v29  ;;  %v533_v59 = vpop.f32.mrf.mxu2 }
  0xbb   : > { %v1101_v2 = vsel %vm992_vm1, %v1068_v50, 0.0  ;;  %585 = vst.msk [vmem:[%s1582_s26 + $0x98] sm:$0xff] %vm368_vm0, %v533_v59  ;;  %v1750_v55 = vadd.f32 %v1568_v4, %v533_v59  ;;  %v557_v61 = vpop.f32.mrf.mxu3  ;;  %v1752_v62 = vpop.permute.xlu0 %924  ;;  %v1755_v0 = vmul.f32 %v1744_v57, %v619_v5 }
  0xbc   : > { %v1102_v63 = vadd.f32 %v1101_v2, %v1100_v36  ;;  %593 = vst.msk [vmem:[%s1582_s26 + $0xd8] sm:$0xff] %vm368_vm0, %v557_v61  ;;  %v491_v1 = vpop.f32.mrf.mxu0  ;;  %v512_v10 = vpop.f32.mrf.mxu1  ;;  %v1763_v12 = vadd.f32 %v1568_v4, %v557_v61 }
  0xbd   : > { %v1760_v11 = vmul.f32 %v910_v35, %v1750_v55  ;;  %571 = vst.msk [vmem:[%s1582_s26 + $0x28] sm:$0xff] %vm368_vm0, %v491_v1  ;;  %v607_v15 = vadd.f32 %v1568_v4, %v491_v1  ;;  %v1769_v18 = vadd.f32 %v1568_v4, %v512_v10  ;;  %680 = vrot.lane.b32.xlu1 %v1645_v51, %s1394_s27 }
  0xbe   : > { %578 = vst.msk [vmem:[%s1582_s26 + $0x60] sm:$0xff] %vm368_vm0, %v512_v10  ;;  %682 = vrot.lane.b32.xlu2 %v612_v13, %s1394_s27  ;;  %v1781_v23 = vmul.f32 %v950_v60, %v1763_v12  ;;  %684 = vrot.lane.b32.xlu0 %v613_v44, %s1394_s27 }
  0xbf   : > { %v1778_v5 = vmul.f32 %v1760_v11, %v1750_v55  ;;  %v967_v26 = vmul.f32 %v1594_v19, %v607_v15  ;;  %v1787_v29 = vmul.f32 %v1574_v8, %v1769_v18 }
  0xc0   : > { %v915_v9 = vpop.permute.xlu1 %914  ;;  %v1791_v51 = vmul.f32 %v1781_v23, %v1763_v12 }
  0xc1   : > { %v1002_v13 = vsel %vm992_vm1, %v967_v26, 0.0  ;;  %v1069_v34 = vmul.f32 %v967_v26, %v607_v15  ;;  %v1796_v35 = vmul.f32 %v1787_v29, %v1769_v18 }
  0xc2   : > { %v1003_v24 = vadd.f32 %v1002_v13, %v1001_v52  ;;  %v536_v19 = vpop.f32.mrf.mxu2 }
  0xc3   : > { %586 = vst.msk [vmem:[%s1582_s26 + $0xa0] sm:$0xff] %vm368_vm0, %v536_v19  ;;  %v622_v8 = vadd.f32 %v1568_v4, %v536_v19  ;;  %v560_v36 = vpop.f32.mrf.mxu3  ;;  %v940_v39 = vpop.permute.xlu0 %939  ;;  %v1103_v40 = vsel %vm992_vm1, %v1069_v34, 0.0  ;;  %v1107_v19 = vsel %vm992_vm1, %v1597_v20, 0.0 }
  0xc4   : > { %594 = vst.msk [vmem:[%s1582_s26 + $0xe0] sm:$0xff] %vm368_vm0, %v560_v36  ;;  %v1805_v44 = vmul.f32 %v940_v39, %v1672_v6  ;;  %v494_v45 = vpop.f32.mrf.mxu0  ;;  %v515_v48 = vpop.f32.mrf.mxu1  ;;  %v1104_v49 = vadd.f32 %v1103_v40, %v1102_v63 }
  0xc5   : > { %v1807_v50 = vmul.f32 %v915_v9, %v622_v8  ;;  %572 = vst.msk [vmem:[%s1582_s26 + $0x30] sm:$0xff] %vm368_vm0, %v494_v45  ;;  %v1812_v52 = vadd.f32 %v1568_v4, %v494_v45  ;;  %v1815_v59 = vadd.f32 %v1568_v4, %v515_v48  ;;  %698 = vrot.lane.b32.xlu1 %v1708_v32, %s1394_s27 }
  0xc6   : > { %v1819_v60 = vmul.f32 %v1805_v44, %v1672_v6  ;;  %579 = vst.msk [vmem:[%s1582_s26 + $0x68] sm:$0xff] %vm368_vm0, %v515_v48  ;;  %670 = vrot.lane.b32.xlu2 %v1722_v42, %s1394_s27  ;;  %672 = vrot.lane.b32.xlu0 %v607_v15, %s1394_s27  ;;  %v630_v15 = vadd.f32 %v1568_v4, %v560_v36  ;;  %v1008_v36 = vsel %vm992_vm1, %v1627_v38, 0.0  ;;  %v1010_v38 = vsel %vm992_vm1, %v1655_v53, 0.0 }
  0xc7   : > { %v1828_v2 = vmul.f32 %v1807_v50, %v622_v8  ;;  %v968_v61 = vmul.f32 %v1566_v3, %v1812_v52  ;;  %v1834_v63 = vmul.f32 %v1637_v46, %v1815_v59  ;;  %v1006_v46 = vsel %vm992_vm1, %v1591_v16, 0.0 }
  0xc8   : > { %v930_v6 = vpop.permute.xlu1 %929  ;;  %v1012_v53 = vsel %vm992_vm1, %v1691_v17, 0.0 }
  0xc9   : > { %v1004_v1 = vsel %vm992_vm1, %v968_v61, 0.0  ;;  %v1070_v32 = vmul.f32 %v968_v61, %v1812_v52  ;;  %v1077_v42 = vmul.f32 %v1834_v63, %v1815_v59  ;;  %v1842_v26 = vmul.f32 %v930_v6, %v1607_v25 }
  0xca   : > { %v1005_v10 = vadd.f32 %v1004_v1, %v1003_v24  ;;  %v539_v3 = vpop.f32.mrf.mxu2 }
  0xcb   : > { %v1105_v9 = vsel %vm992_vm1, %v1070_v32, 0.0  ;;  %587 = vst.msk [vmem:[%s1582_s26 + $0xa8] sm:$0xff] %vm368_vm0, %v539_v3  ;;  %v1851_v13 = vadd.f32 %v1568_v4, %v539_v3  ;;  %v563_v24 = vpop.f32.mrf.mxu3  ;;  %v955_v34 = vpop.permute.xlu0 %954  ;;  %v1861_v45 = vmul.f32 %v1842_v26, %v1607_v25  ;;  %v1109_v25 = vsel %vm992_vm1, %v1632_v43, 0.0 }
  0xcc   : > { %v1007_v39 = vadd.f32 %v1006_v46, %v1005_v10  ;;  %v1106_v40 = vadd.f32 %v1105_v9, %v1104_v49  ;;  %595 = vst.msk [vmem:[%s1582_s26 + $0xe8] sm:$0xff] %vm368_vm0, %v563_v24  ;;  %v518_v16 = vpop.f32.mrf.mxu1  ;;  %v1867_v61 = vmul.f32 %v955_v34, %v630_v15  ;;  %v1111_v43 = vsel %vm992_vm1, %v1662_v58, 0.0 }
  0xcd   : > { %v1865_v48 = vmul.f32 %v1657_v54, %v1851_v13  ;;  %580 = vst.msk [vmem:[%s1582_s26 + $0x70] sm:$0xff] %vm368_vm0, %v518_v16  ;;  %v616_v6 = vadd.f32 %v1568_v4, %v518_v16  ;;  %716 = vrot.lane.b32.xlu1 %v1763_v12, %s1394_s27  ;;  %v1016_v16 = vsel %vm992_vm1, %v1787_v29, 0.0 }
  0xce   : > { %v1009_v20 = vadd.f32 %v1008_v36, %v1007_v39  ;;  %v1108_v49 = vadd.f32 %v1107_v19, %v1106_v40  ;;  %700 = vrot.lane.b32.xlu2 %v1750_v55, %s1394_s27  ;;  %702 = vrot.lane.b32.xlu0 %v622_v8, %s1394_s27  ;;  %v1886_v12 = vmul.f32 %v1867_v61, %v630_v15  ;;  %v1113_v8 = vsel %vm992_vm1, %v1699_v27, 0.0 }
  0xcf   : > { %v1882_v54 = vmul.f32 %v1865_v48, %v1851_v13  ;;  %v976_v55 = vmul.f32 %v1695_v22, %v616_v6  ;;  %v1014_v19 = vsel %vm992_vm1, %v1737_v47, 0.0  ;;  %v1115_v27 = vsel %vm992_vm1, %v1742_v56, 0.0 }
  0xd0   : > { %v1011_v1 = vadd.f32 %v1010_v38, %v1009_v20  ;;  %v1110_v32 = vadd.f32 %v1109_v25, %v1108_v49  ;;  %v945_v10 = vpop.permute.xlu1 %944  ;;  %v1912_v36 = vadd.f32 %v1568_v4, %v563_v24  ;;  %v1117_v49 = vsel %vm992_vm1, %v1796_v35, 0.0 }
  0xd1   : > { %v1894_v3 = vmul.f32 %v945_v10, %v1713_v37  ;;  %v1078_v22 = vmul.f32 %v976_v55, %v616_v6  ;;  %v1018_v56 = vsel %vm992_vm1, %v1834_v63, 0.0  ;;  %v1020_v24 = vsel %vm992_vm1, %v976_v55, 0.0 }
  0xd2   : > { %v1112_v46 = vadd.f32 %v1111_v43, %v1110_v32  ;;  %v1013_v9 = vadd.f32 %v1012_v53, %v1011_v1  ;;  %v542_v34 = vpop.f32.mrf.mxu2  ;;  %v1123_v63 = vsel %vm992_vm1, %v1620_v30, 0.0  ;;  %v1024_v10 = vsel %vm992_vm1, %v1674_v7, 0.0 }
  0xd3   : > { %v1902_v39 = vmul.f32 %v1894_v3, %v1713_v37  ;;  %588 = vst.msk [vmem:[%s1582_s26 + $0xb0] sm:$0xff] %vm368_vm0, %v542_v34  ;;  %v624_v58 = vadd.f32 %v1568_v4, %v542_v34  ;;  %v1121_v35 = vsel %vm992_vm1, %v1078_v22, 0.0  ;;  %v1028_v7 = vsel %vm992_vm1, %v1717_v41, 0.0 }
  0xd4   : > { %v1015_v17 = vadd.f32 %v1014_v19, %v1013_v9  ;;  %v1114_v40 = vadd.f32 %v1113_v8, %v1112_v46  ;;  %v1127_v8 = vsel %vm992_vm1, %v1755_v0, 0.0  ;;  %v1032_v41 = vsel %vm992_vm1, %v1807_v50, 0.0 }
  0xd5   : > { %v984_v47 = vmul.f32 %v1752_v62, %v624_v58  ;;  %686 = vrot.lane.b32.xlu1 %v1769_v18, %s1394_s27  ;;  %v1119_v62 = vsel %vm992_vm1, %v1077_v42, 0.0  ;;  %v1026_v42 = vsel %vm992_vm1, %v1744_v57, 0.0  ;;  %v1034_v0 = vsel %vm992_vm1, %v1865_v48, 0.0 }
  0xd6   : > { %v1017_v20 = vadd.f32 %v1016_v16, %v1015_v17  ;;  %v1116_v37 = vadd.f32 %v1115_v27, %v1114_v40  ;;  %718 = vrot.lane.b32.xlu2 %v630_v15, %s1394_s27  ;;  %720 = vrot.lane.b32.xlu0 %v1912_v36, %s1394_s27  ;;  %v1022_v15 = vsel %vm992_vm1, %v1609_v28, 0.0  ;;  %v1125_v28 = vsel %vm992_vm1, %v1682_v14, 0.0  ;;  %v811_v27 = vld [vmem:[%s1467_s18 + $0xe8] sm:$0xff] }
  0xd7   : > { %v1086_v25 = vmul.f32 %v984_v47, %v624_v58  ;;  %v1030_v14 = vsel %vm992_vm1, %v1760_v11, 0.0  ;;  %v1036_v50 = vsel %vm992_vm1, %v984_v47, 0.0  ;;  %v1040_v48 = vsel %vm992_vm1, %v1693_v21, 0.0 }
  0xd8   : > { %v1019_v4 = vadd.f32 %v1018_v56, %v1017_v20  ;;  %v1118_v29 = vadd.f32 %v1117_v49, %v1116_v37  ;;  %v1139_v20 = vsel %vm992_vm1, %v1861_v45, 0.0  ;;  %v1141_v47 = vsel %vm992_vm1, %v1702_v31, 0.0 }
  0xd9   : > { %v1143_v45 = vsel %vm992_vm1, %v1819_v60, 0.0  ;;  %v1044_v56 = vsel %vm992_vm1, %v1894_v3, 0.0  ;;  %v1147_v3 = vsel %vm992_vm1, %v1791_v51, 0.0 }
  0xda   : > { %v1120_v38 = vadd.f32 %v1119_v62, %v1118_v29  ;;  %v1021_v18 = vadd.f32 %v1020_v24, %v1019_v4  ;;  %v1046_v4 = vsel %vm992_vm1, %v1781_v23, 0.0  ;;  %v1145_v29 = vsel %vm992_vm1, %v1902_v39, 0.0 }
  0xdb   : > { %v1048_v24 = vsel %vm992_vm1, %v1867_v61, 0.0  ;;  %v1149_v23 = vsel %vm992_vm1, %v1886_v12, 0.0 }
  0xdc   : > { %v1023_v1 = vadd.f32 %v1022_v15, %v1021_v18  ;;  %v1122_v32 = vadd.f32 %v1121_v35, %v1120_v38 }
  0xdd   : > { %674 = vrot.lane.b32.xlu1 %v1812_v52, %s1394_s27  ;;  %v1129_v52 = vsel %vm992_vm1, %v1733_v33, 0.0  ;;  %v1133_v33 = vsel %vm992_vm1, %v1828_v2, 0.0 }
  0xde   : > { %v1025_v43 = vadd.f32 %v1024_v10, %v1023_v1  ;;  %v1124_v53 = vadd.f32 %v1123_v63, %v1122_v32  ;;  %688 = vrot.lane.b32.xlu2 %v1815_v59, %s1394_s27  ;;  %690 = vrot.lane.b32.xlu0 %v616_v6, %s1394_s27  ;;  %v1131_v6 = vsel %vm992_vm1, %v1778_v5, 0.0  ;;  %v1135_v5 = vsel %vm992_vm1, %v1882_v54, 0.0 }
  0xe0   : > { %v1027_v30 = vadd.f32 %v1026_v42, %v1025_v43  ;;  %v1126_v55 = vadd.f32 %v1125_v28, %v1124_v53 }
  0xe2   : > { %v1128_v59 = vadd.f32 %v1127_v8, %v1126_v55  ;;  %v1029_v46 = vadd.f32 %v1028_v7, %v1027_v30 }
  0xe4   : > { %v1031_v9 = vadd.f32 %v1030_v14, %v1029_v46  ;;  %v1130_v57 = vadd.f32 %v1129_v52, %v1128_v59 }
  0xe5   : > { %704 = vrot.lane.b32.xlu1 %v1851_v13, %s1394_s27  ;;  %v1137_v13 = vsel %vm992_vm1, %v1086_v25, 0.0 }
  0xe6   : > { %v1033_v34 = vadd.f32 %v1032_v41, %v1031_v9  ;;  %v1132_v19 = vadd.f32 %v1131_v6, %v1130_v57  ;;  %706 = vrot.lane.b32.xlu2 %v624_v58, %s1394_s27  ;;  %v1038_v58 = vsel %vm992_vm1, %v1842_v26, 0.0  ;;  %v1042_v26 = vsel %vm992_vm1, %v1805_v44, 0.0 }
  0xe8   : > { %v1035_v11 = vadd.f32 %v1034_v0, %v1033_v34  ;;  %v1134_v22 = vadd.f32 %v1133_v33, %v1132_v19 }
  0xea   : > { %v1037_v17 = vadd.f32 %v1036_v50, %v1035_v11  ;;  %v1136_v40 = vadd.f32 %v1135_v5, %v1134_v22 }
  0xec   : > { %v1039_v2 = vadd.f32 %v1038_v58, %v1037_v17  ;;  %v1138_v16 = vadd.f32 %v1137_v13, %v1136_v40 }
  0xed   : > { %959 = vperm.xlu1 %1380, %v811_v27  }
  0xee   : > { %v1041_v54 = vadd.f32 %v1040_v48, %v1039_v2  ;;  %v1140_v37 = vadd.f32 %v1139_v20, %v1138_v16 }
  0xf0   : > { %v1142_v49 = vadd.f32 %v1141_v47, %v1140_v37  ;;  %v1043_v21 = vadd.f32 %v1042_v26, %v1041_v54 }
  0xf1   : > { %v677_v25 = vpop.permute.xlu2 %676 }
  0xf2   : > { %759 = vst.msk [vmem:[%s1980_s30 + $0x38] sm:$0xff] %vm368_vm0, %v677_v25  ;;  %v1045_v31 = vadd.f32 %v1044_v56, %v1043_v21  ;;  %v1144_v44 = vadd.f32 %v1143_v45, %v1142_v49 }
  0xf4   : > { %v1047_v62 = vadd.f32 %v1046_v4, %v1045_v31  ;;  %v1146_v60 = vadd.f32 %v1145_v29, %v1144_v44 }
  0xf6   : > { %v1996_v38 = vadd.f32 %v1048_v24, %v1047_v62  ;;  %v1148_v18 = vadd.f32 %v1147_v3, %v1146_v60 }
  0xf8   : > { %v2000_v15 = vadd.f32 %v1149_v23, %v1148_v18 }
  0xff   : > { %v695_v39 = vpop.permute.xlu2 %694 }
 0x100   : > { %768 = vst.msk [vmem:[%s1980_s30 + $0x80] sm:$0xff] %vm368_vm0, %v695_v39 }
 0x108   : > { %v713_v51 = vpop.permute.xlu2 %712  ;;  %v663_v35 = vpop.permute.xlu0 %662 }
 0x109   : > { %777 = vst.msk [vmem:[%s1980_s30 + $0xc8] sm:$0xff] %vm368_vm0, %v713_v51 }
 0x10a   : > { %752 = vst.msk [vmem:[%s1980_s30] sm:$0xff] %vm368_vm0, %v663_v35 }
 0x10f   : > { %v693_v61 = vpop.permute.xlu1 %692 }
 0x110   : > { %767 = vst.msk [vmem:[%s1980_s30 + $0x78] sm:$0xff] %vm368_vm0, %v693_v61  ;;  %v669_v12 = vpop.permute.xlu2 %668  ;;  %v709_v1 = vpop.permute.xlu0 %708 }
 0x111   : > { %755 = vst.msk [vmem:[%s1980_s30 + $0x18] sm:$0xff] %vm368_vm0, %v669_v12 }
 0x112   : > { %775 = vst.msk [vmem:[%s1980_s30 + $0xb8] sm:$0xff] %vm368_vm0, %v709_v1 }
 0x117   : > { %v665_v32 = vpop.permute.xlu1 %664 }
 0x118   : > { %753 = vst.msk [vmem:[%s1980_s30 + $0x8] sm:$0xff] %vm368_vm0, %v665_v32  ;;  %v683_v63 = vpop.permute.xlu2 %682  ;;  %v679_v10 = vpop.permute.xlu0 %678 }
 0x119   : > { %762 = vst.msk [vmem:[%s1980_s30 + $0x50] sm:$0xff] %vm368_vm0, %v683_v63 }
 0x11a   : > { %760 = vst.msk [vmem:[%s1980_s30 + $0x40] sm:$0xff] %vm368_vm0, %v679_v10 }
 0x11f   : > { %v711_v43 = vpop.permute.xlu1 %710 }
 0x120   : > { %776 = vst.msk [vmem:[%s1980_s30 + $0xc0] sm:$0xff] %vm368_vm0, %v711_v43  ;;  %v671_v53 = vpop.permute.xlu2 %670  ;;  %v697_v28 = vpop.permute.xlu0 %696 }
 0x121   : > { %756 = vst.msk [vmem:[%s1980_s30 + $0x20] sm:$0xff] %vm368_vm0, %v671_v53 }
 0x122   : > { %769 = vst.msk [vmem:[%s1980_s30 + $0x88] sm:$0xff] %vm368_vm0, %v697_v28 }
 0x127   : > { %v667_v42 = vpop.permute.xlu1 %666 }
 0x128   : > { %754 = vst.msk [vmem:[%s1980_s30 + $0x10] sm:$0xff] %vm368_vm0, %v667_v42  ;;  %v701_v30 = vpop.permute.xlu2 %700  ;;  %v715_v55 = vpop.permute.xlu0 %714 }
 0x129   : > { %771 = vst.msk [vmem:[%s1980_s30 + $0x98] sm:$0xff] %vm368_vm0, %v701_v30 }
 0x12a   : > { %778 = vst.msk [vmem:[%s1980_s30 + $0xd0] sm:$0xff] %vm368_vm0, %v715_v55 }
 0x12f   : > { %v681_v7 = vpop.permute.xlu1 %680 }
 0x130   : > { %v719_v8 = vpop.permute.xlu2 %718  ;;  %761 = vst.msk [vmem:[%s1980_s30 + $0x48] sm:$0xff] %vm368_vm0, %v681_v7  ;;  %v685_v59 = vpop.permute.xlu0 %684 }
 0x131   : > { %780 = vst.msk [vmem:[%s1980_s30 + $0xe0] sm:$0xff] %vm368_vm0, %v719_v8 }
 0x132   : > { %763 = vst.msk [vmem:[%s1980_s30 + $0x58] sm:$0xff] %vm368_vm0, %v685_v59 }
 0x137   : > { %v699_v46 = vpop.permute.xlu1 %698 }
 0x138   : > { %v689_v52 = vpop.permute.xlu2 %688  ;;  %770 = vst.msk [vmem:[%s1980_s30 + $0x90] sm:$0xff] %vm368_vm0, %v699_v46  ;;  %v673_v14 = vpop.permute.xlu0 %672 }
 0x139   : > { %765 = vst.msk [vmem:[%s1980_s30 + $0x68] sm:$0xff] %vm368_vm0, %v689_v52 }
 0x13a   : > { %757 = vst.msk [vmem:[%s1980_s30 + $0x28] sm:$0xff] %vm368_vm0, %v673_v14 }
 0x13f   : > { %v717_v9 = vpop.permute.xlu1 %716 }
 0x140   : > { %v707_v57 = vpop.permute.xlu2 %706  ;;  %779 = vst.msk [vmem:[%s1980_s30 + $0xd8] sm:$0xff] %vm368_vm0, %v717_v9  ;;  %v703_v6 = vpop.permute.xlu0 %702 }
 0x141   : > { %774 = vst.msk [vmem:[%s1980_s30 + $0xb0] sm:$0xff] %vm368_vm0, %v707_v57 }
 0x142   : > { %772 = vst.msk [vmem:[%s1980_s30 + $0xa0] sm:$0xff] %vm368_vm0, %v703_v6 }
 0x147   : > { %v687_v41 = vpop.permute.xlu1 %686 }
 0x148   : > { %764 = vst.msk [vmem:[%s1980_s30 + $0x60] sm:$0xff] %vm368_vm0, %v687_v41  ;;  %v721_v34 = vpop.permute.xlu0 %720 }
 0x149   : > { %781 = vst.msk [vmem:[%s1980_s30 + $0xe8] sm:$0xff] %vm368_vm0, %v721_v34 }
 0x14f   : > { %v675_v19 = vpop.permute.xlu1 %674 }
 0x150   : > { %758 = vst.msk [vmem:[%s1980_s30 + $0x30] sm:$0xff] %vm368_vm0, %v675_v19  ;;  %v691_v33 = vpop.permute.xlu0 %690 }
 0x151   : > { %766 = vst.msk [vmem:[%s1980_s30 + $0x70] sm:$0xff] %vm368_vm0, %v691_v33 }
 0x157   : > { %v705_v0 = vpop.permute.xlu1 %704 }
 0x158   : > { %773 = vst.msk [vmem:[%s1980_s30 + $0xa8] sm:$0xff] %vm368_vm0, %v705_v0 }
 0x15f   : > { %v960_v11 = vpop.permute.xlu1 %959 }
 0x160   : > { %v991_v22 = vmul.f32 %v960_v11, %v1912_v36 }
 0x162   : > { %v1050_v5 = vsel %vm992_vm1, %v991_v22, 0.0  ;;  %v1093_v50 = vmul.f32 %v991_v22, %v1912_v36 }
 0x163   : > { %v1051_v17 = vadd.f32 %v1050_v5, %v1996_v38 }
 0x164   : > { %v1151_v40 = vsel %vm992_vm1, %v1093_v50, 0.0 }
 0x165   : > { %v1052_v58 = vrot.slane %v1051_v17, 4  ;;  %v1152_v13 = vadd.f32 %v1151_v40, %v2000_v15 }
 0x167   : > { %v1053_v27 = vadd.f32 %v1052_v58, %v1051_v17  ;;  %v1153_v2 = vrot.slane %v1152_v13, 4 }
 0x169   : > { %v1054_v16 = vrot.slane %v1053_v27, 2  ;;  %v1154_v48 = vadd.f32 %v1153_v2, %v1152_v13 }
 0x16b   : > { %v1055_v20 = vadd.f32 %v1054_v16, %v1053_v27  ;;  %v1155_v54 = vrot.slane %v1154_v48, 2 }
 0x16d   : > { %v1056_v37 = vrot.slane %v1055_v20, 1  ;;  %v1156_v47 = vadd.f32 %v1155_v54, %v1154_v48 }
 0x16f   : > { %v1057_v26 = vadd.f32 %v1056_v37, %v1055_v20  ;;  %v1157_v49 = vrot.slane %v1156_v47, 1 }
 0x171   : > { %1059 = vrot.lane.b32.xlu2 %v1057_v26, %s1394_s27  ;;  %v1158_v36 = vadd.f32 %v1157_v49, %v1156_v47 }
 0x173   : > { %1160 = vrot.lane.b32.xlu0 %v1158_v36, %s1394_s27 }
 0x1cb   : > { %v1060_v21 = vpop.permute.xlu2 %1059 }
 0x1cc   : > { %1063 = vst.msk [vmem:[%s330_s10] sm:$0x1] %vm1062_vm2, %v1060_v21 }
 0x1e5   : > { %v1161_v45 = vpop.permute.xlu0 %1160 }
 0x1e6   : > { %1163 = vst.msk [vmem:[%s333_s13] sm:$0x1] %vm1062_vm2, %v1161_v45 }
 0x1e7 PF: > { %s18_s24 = sadd.s32 1, %s1390_s24  }
 0x1e8   : > { %p15_p5 = scmp.ge.s32.totalorder %s18_s24, 4  }
 0x1ea   :  { %17 = sbr.rel (!%p15_p5) target bundleno = 1 (0x1), region = 105 }

// kernel: gat_union_forward.8
= control target key start
LH: loop header
LB: loop body
LE: loop exit
PB: predicated region body
PF: predicated region fallthrough
CT: control target
= control target key end

     0   :  { %s1481_s30 = smov 0   ;;  %s2059_s0 = inlined_call_operand.vmem [shape: f32[480,32], index: 0, kind: input, shape index: {}]   ;;  %s2060_s1 = inlined_call_operand.vmem [shape: f32[1,32], index: 1, kind: input, shape index: {}]   ;;  %s2061_s2 = inlined_call_operand.vmem [shape: f32[1,32], index: 2, kind: input, shape index: {}]   ;;  %s2062_s3 = inlined_call_operand.vmem [shape: f32[480,32], index: 3, kind: input, shape index: {}]   ;;  %s2063_s4 = inlined_call_operand.vmem [shape: f32[32,32], index: 4, kind: input, shape index: {}]   ;;  %s2064_s5 = inlined_call_operand.vmem [shape: f32[1,32], index: 5, kind: input, shape index: {}]   ;;  %s2065_s6 = inlined_call_operand.vmem [shape: f32[480,1], index: 6, kind: input, shape index: {}]   ;;  %s2066_s7 = inlined_call_operand.vmem [shape: f32[480,32], index: 7, kind: output, shape index: {0}]   ;;  %s2067_s8 = inlined_call_operand.vmem [shape: f32[2,1,32], index: 8, kind: output, shape index: {1}]   ;;  %s2068_s9 = inlined_call_operand.vmem [shape: f32[2,1,32], index: 9, kind: output, shape index: {2}]  }
   0x1 LB: > { %s1487_s10 = sadd.s32 4294967295, %s1428_s30   ;;  %p1358_p0 = scmp.ge.s32.totalorder %s1428_s30, 1  ;;  %s1428_s30 = sphi %s1481_s30, %s20_s30  }
   0x2   : > { %p315_p1 = scmp.lt.s32.totalorder %s1428_s30, 3 }
   0x4   : > { %p316_p2 = pnand %p1358_p0, %p315_p1 }
   0x5   : > { %s367_s13 = smul.u32 (!%p316_p2), 30, %s1487_s10  ;;  %p391_p4 = scmp.lt.s32.totalorder (!%p316_p2), %s1487_s10, 1 }
   0x6   : > { %319 = sbr.rel (%p316_p2) target bundleno = 268 (0x10c), region = 48 }
   0x7   : > { %p368_p3 = scmp.lt.s32.totalorder (!%p316_p2), %s367_s13, 59 }
   0xb   : > { %v558_v0 = vld [vmem:[%s2063_s4 + $0x18] sm:$0xff]  ;;  %v1430_v1 = vmov 0   ;;  %v557_v2 = vld [vmem:[%s2063_s4 + $0x10] sm:$0xff]  ;;  %v556_v3 = vld [vmem:[%s2063_s4 + $0x8] sm:$0xff]  ;;  %s2070_s13 = smov (!%p368_p3, %s367_s13), 59  ;;  %vm559_vm0 = vcmask 261120  }
   0xc   : > { %1418 = vset.pattern.permute.xlu2 %v1430_v1  ;;  %1417 = vset.pattern.permute.xlu1 %v1430_v1  ;;  %v555_v4 = vld [vmem:[%s2063_s4] sm:$0xff]  ;;  %s1504_s20 = sshll.u32 %s2070_s13, 3  ;;  %s2072_s10 = smov (!%p391_p4, %s1487_s10), 1  ;;  %vm1126_vm1 = vcmask 253952  }
   0xd   : > { %1416 = vset.pattern.permute.xlu0 %v1430_v1  ;;  %662 = vmatpush.msra.mxu0 %v558_v0  ;;  %v1509_v5 = vld [vmem:[%s2060_s1] ss:$0 sm:$0xff]  ;;  %s1515_s25 = scalar_lea.vmem %s2065_s6, %s1504_s20  ;;  %s1521_s28 = scalar_lea.vmem %s2059_s0, %s1504_s20 }
   0xe   : > { %1395 = vmatpush.msra.mxu1 %v558_v0  ;;  %1396 = vmatpush.msra.mxu2 %v558_v0  ;;  %v1526_v6 = vld [vmem:[%s2061_s2] ss:$0 sm:$0xff]  ;;  %v853_v8 = vld [vmem:[%s1515_s25 + $0x10] sm:$0xff]  ;;  %v404_v11 = vld [vmem:[%s1521_s28 + $0x38] sm:$0xff]  ;;  %s1686_s14 = scalar_lea.vmem %s2062_s3, %s1504_s20  ;;  %s1703_s19 = scalar_lea.vmem %s2066_s7, %s1504_s20 }
   0xf   : > { %1397 = vmatpush.msra.mxu3 %v558_v0  ;;  %663 = vmatpush.msra.mxu0 %v557_v2  ;;  %v855_v7 = vld [vmem:[%s1515_s25 + $0x20] sm:$0xff]  ;;  %v412_v12 = vld [vmem:[%s1521_s28 + $0x78] sm:$0xff]  ;;  %v438_v14 = vmul.f32 %v1509_v5, %v404_v11  ;;  %v398_v18 = vld [vmem:[%s1521_s28 + $0x8] sm:$0xff]  ;;  %s393_s22 = scalar_lea.vmem %s2067_s8, %s2072_s10 }
  0x10   : > { %1398 = vmatpush.msra.mxu1 %v557_v2  ;;  %1399 = vmatpush.msra.mxu2 %v557_v2  ;;  %v851_v9 = vld [vmem:[%s1515_s25] sm:$0xff]  ;;  %v446_v15 = vmul.f32 %v1509_v5, %v412_v12  ;;  %v420_v16 = vld [vmem:[%s1521_s28 + $0xb8] sm:$0xff]  ;;  %v432_v23 = vmul.f32 %v1509_v5, %v398_v18  ;;  %v856_v34 = vld [vmem:[%s1515_s25 + $0x28] sm:$0xff] }
  0x11   : > { %1400 = vmatpush.msra.mxu3 %v557_v2  ;;  %664 = vmatpush.msra.mxu0 %v556_v3  ;;  %v397_v10 = vld [vmem:[%s1521_s28] sm:$0xff]  ;;  %v454_v17 = vmul.f32 %v1509_v5, %v420_v16  ;;  %v472_v21 = vadd.f32 %v1526_v6, %v438_v14  ;;  %v854_v35 = vld [vmem:[%s1515_s25 + $0x18] sm:$0xff]  ;;  %v852_v36 = vld [vmem:[%s1515_s25 + $0x8] sm:$0xff] }
  0x12   : > { %1401 = vmatpush.msra.mxu1 %v556_v3  ;;  %1402 = vmatpush.msra.mxu2 %v556_v3  ;;  %v431_v13 = vmul.f32 %v1509_v5, %v397_v10  ;;  %v405_v19 = vld [vmem:[%s1521_s28 + $0x40] sm:$0xff]  ;;  %v480_v22 = vadd.f32 %v1526_v6, %v446_v15  ;;  %v466_v37 = vadd.f32 %v1526_v6, %v432_v23  ;;  %v399_v41 = vld [vmem:[%s1521_s28 + $0x10] sm:$0xff]  ;;  %v406_v42 = vld [vmem:[%s1521_s28 + $0x48] sm:$0xff] }
  0x13   : > { %1403 = vmatpush.msra.mxu3 %v556_v3  ;;  %665 = vmatpush.msra.mxu0 %v555_v4  ;;  %v413_v24 = vld [vmem:[%s1521_s28 + $0x80] sm:$0xff]  ;;  %v488_v26 = vadd.f32 %v1526_v6, %v454_v17  ;;  %v439_v27 = vmul.f32 %v1509_v5, %v405_v19  ;;  %v502_v31 = vmax.f32 %v472_v21, 0.0  ;;  %v414_v43 = vld [vmem:[%s1521_s28 + $0x88] sm:$0xff]  ;;  %v433_v47 = vmul.f32 %v1509_v5, %v399_v41  ;;  %v858_v54 = vld [vmem:[%s1515_s25 + $0x38] sm:$0xff] }
  0x14   : > { %903 = vperm.xlu2 %1418, %v855_v7   ;;  %893 = vperm.xlu1 %1417, %v853_v8   ;;  %v465_v20 = vadd.f32 %v1526_v6, %v431_v13  ;;  %v421_v25 = vld [vmem:[%s1521_s28 + $0xc0] sm:$0xff]  ;;  %v447_v28 = vmul.f32 %v1509_v5, %v413_v24  ;;  %v510_v32 = vmax.f32 %v480_v22, 0.0  ;;  %v422_v44 = vld [vmem:[%s1521_s28 + $0xc8] sm:$0xff]  ;;  %v496_v45 = vmax.f32 %v466_v37, 0.0  ;;  %v857_v55 = vld [vmem:[%s1515_s25 + $0x30] sm:$0xff] }
  0x15   : > { %883 = vperm.xlu0 %1416, %v851_v9   ;;  %1404 = vmatpush.msra.mxu1 %v555_v4  ;;  %v455_v29 = vmul.f32 %v1509_v5, %v421_v25  ;;  %v518_v33 = vmax.f32 %v488_v26, 0.0  ;;  %v473_v38 = vadd.f32 %v1526_v6, %v439_v27  ;;  %v440_v48 = vmul.f32 %v1509_v5, %v406_v42  ;;  %v859_v53 = vld [vmem:[%s1515_s25 + $0x40] sm:$0xff]  ;;  %v400_v60 = vld [vmem:[%s1521_s28 + $0x18] sm:$0xff]  ;;  %v407_v61 = vld [vmem:[%s1521_s28 + $0x50] sm:$0xff] }
  0x16   : > { %1405 = vmatpush.msra.mxu2 %v555_v4  ;;  %1406 = vmatpush.msra.mxu3 %v555_v4  ;;  %v495_v30 = vmax.f32 %v465_v20, 0.0  ;;  %v481_v39 = vadd.f32 %v1526_v6, %v447_v28  ;;  %v448_v51 = vmul.f32 %v1509_v5, %v414_v43  ;;  %v456_v52 = vmul.f32 %v1509_v5, %v422_v44  ;;  %v415_v62 = vld [vmem:[%s1521_s28 + $0x90] sm:$0xff]  ;;  %v862_v10 = vld [vmem:[%s1515_s25 + $0x58] sm:$0xff]  ;;  %v860_v12 = vld [vmem:[%s1515_s25 + $0x48] sm:$0xff] }
  0x17   : > { %1370 = vmatmul.msk.f32.vlgmr.msra.gmra.mxu1 %vm559_vm0, %v502_v31  ;;  %1378 = vmatmul.msk.f32.vlgmr.msra.gmra.mxu2 %vm559_vm0, %v510_v32  ;;  %v489_v40 = vadd.f32 %v1526_v6, %v455_v29  ;;  %v503_v46 = vmax.f32 %v473_v38, 0.0  ;;  %v467_v56 = vadd.f32 %v1526_v6, %v433_v47  ;;  %v474_v57 = vadd.f32 %v1526_v6, %v440_v48  ;;  %v423_v63 = vld [vmem:[%s1521_s28 + $0xd0] sm:$0xff]  ;;  %v401_v17 = vld [vmem:[%s1521_s28 + $0x20] sm:$0xff]  ;;  %v408_v18 = vld [vmem:[%s1521_s28 + $0x58] sm:$0xff] }
  0x18   : > { %1363 = vmatmul.msk.f32.vlgmr.msra.gmra.mxu0 %vm559_vm0, %v495_v30  ;;  %1386 = vmatmul.msk.f32.vlgmr.msra.gmra.mxu3 %vm559_vm0, %v518_v33  ;;  %v511_v49 = vmax.f32 %v481_v39, 0.0  ;;  %v482_v58 = vadd.f32 %v1526_v6, %v448_v51  ;;  %v490_v59 = vadd.f32 %v1526_v6, %v456_v52  ;;  %v434_v2 = vmul.f32 %v1509_v5, %v400_v60  ;;  %v861_v11 = vld [vmem:[%s1515_s25 + $0x50] sm:$0xff]  ;;  %v416_v19 = vld [vmem:[%s1521_s28 + $0x98] sm:$0xff]  ;;  %v864_v30 = vld [vmem:[%s1515_s25 + $0x68] sm:$0xff] }
  0x19   : > { %v519_v50 = vmax.f32 %v489_v40, 0.0  ;;  %v497_v0 = vmax.f32 %v467_v56, 0.0  ;;  %v504_v1 = vmax.f32 %v474_v57, 0.0  ;;  %v441_v3 = vmul.f32 %v1509_v5, %v407_v61  ;;  %v424_v20 = vld [vmem:[%s1521_s28 + $0xd8] sm:$0xff]  ;;  %v865_v29 = vld [vmem:[%s1515_s25 + $0x70] sm:$0xff]  ;;  %v863_v31 = vld [vmem:[%s1515_s25 + $0x60] sm:$0xff] }
  0x1a   : > { %v512_v4 = vmax.f32 %v482_v58, 0.0  ;;  %v520_v7 = vmax.f32 %v490_v59, 0.0  ;;  %v449_v8 = vmul.f32 %v1509_v5, %v415_v62  ;;  %v457_v9 = vmul.f32 %v1509_v5, %v423_v63  ;;  %v409_v37 = vld [vmem:[%s1521_s28 + $0x60] sm:$0xff]  ;;  %v868_v48 = vld [vmem:[%s1515_s25 + $0x88] sm:$0xff] }
  0x1b   : > { %v468_v13 = vadd.f32 %v1526_v6, %v434_v2  ;;  %v475_v14 = vadd.f32 %v1526_v6, %v441_v3  ;;  %v435_v23 = vmul.f32 %v1509_v5, %v401_v17  ;;  %v442_v24 = vmul.f32 %v1509_v5, %v408_v18  ;;  %v417_v38 = vld [vmem:[%s1521_s28 + $0xa0] sm:$0xff]  ;;  %v410_v56 = vld [vmem:[%s1521_s28 + $0x68] sm:$0xff] }
  0x1c   : > { %908 = vperm.xlu2 %1418, %v856_v34   ;;  %898 = vperm.xlu1 %1417, %v854_v35   ;;  %v483_v15 = vadd.f32 %v1526_v6, %v449_v8  ;;  %v491_v16 = vadd.f32 %v1526_v6, %v457_v9  ;;  %v450_v27 = vmul.f32 %v1509_v5, %v416_v19  ;;  %v425_v39 = vld [vmem:[%s1521_s28 + $0xe0] sm:$0xff]  ;;  %v418_v57 = vld [vmem:[%s1521_s28 + $0xa8] sm:$0xff] }
  0x1d   : > { %888 = vperm.xlu0 %1416, %v852_v36   ;;  %v498_v21 = vmax.f32 %v468_v13, 0.0  ;;  %v505_v22 = vmax.f32 %v475_v14, 0.0  ;;  %v458_v28 = vmul.f32 %v1509_v5, %v424_v20  ;;  %v469_v32 = vadd.f32 %v1526_v6, %v435_v23  ;;  %v402_v36 = vld [vmem:[%s1521_s28 + $0x28] sm:$0xff]  ;;  %v871_v3 = vld [vmem:[%s1515_s25 + $0xa0] sm:$0xff]  ;;  %v419_v13 = vld [vmem:[%s1521_s28 + $0xb0] sm:$0xff] }
  0x1e   : > { %v513_v25 = vmax.f32 %v483_v15, 0.0  ;;  %v521_v26 = vmax.f32 %v491_v16, 0.0  ;;  %v476_v33 = vadd.f32 %v1526_v6, %v442_v24  ;;  %v484_v34 = vadd.f32 %v1526_v6, %v450_v27  ;;  %v426_v58 = vld [vmem:[%s1521_s28 + $0xe8] sm:$0xff]  ;;  %v874_v20 = vld [vmem:[%s1515_s25 + $0xb8] sm:$0xff] }
  0x1f   : > { %1371 = vmatmul.msk.f32.gmra.mxu1 %vm559_vm0, %v503_v46  ;;  %1379 = vmatmul.msk.f32.gmra.mxu2 %vm559_vm0, %v511_v49  ;;  %v492_v35 = vadd.f32 %v1526_v6, %v458_v28  ;;  %v499_v40 = vmax.f32 %v469_v32, 0.0  ;;  %v436_v42 = vmul.f32 %v1509_v5, %v402_v36  ;;  %v443_v43 = vmul.f32 %v1509_v5, %v409_v37  ;;  %v867_v49 = vld [vmem:[%s1515_s25 + $0x80] sm:$0xff]  ;;  %v876_v27 = vld [vmem:[%s1515_s25 + $0xc8] sm:$0xff] }
  0x20   : > { %1364 = vmatmul.msk.f32.gmra.mxu0 %vm559_vm0, %v496_v45  ;;  %1387 = vmatmul.msk.f32.gmra.mxu3 %vm559_vm0, %v519_v50  ;;  %v506_v41 = vmax.f32 %v476_v33, 0.0  ;;  %v514_v44 = vmax.f32 %v484_v34, 0.0  ;;  %v451_v46 = vmul.f32 %v1509_v5, %v417_v38  ;;  %v459_v47 = vmul.f32 %v1509_v5, %v425_v39  ;;  %v866_v50 = vld [vmem:[%s1515_s25 + $0x78] sm:$0xff]  ;;  %v875_v28 = vld [vmem:[%s1515_s25 + $0xc0] sm:$0xff] }
  0x21   : > { %v522_v45 = vmax.f32 %v492_v35, 0.0  ;;  %v470_v51 = vadd.f32 %v1526_v6, %v436_v42  ;;  %v477_v52 = vadd.f32 %v1526_v6, %v443_v43  ;;  %v444_v62 = vmul.f32 %v1509_v5, %v410_v56  ;;  %v525_v33 = vld [vmem:[%s1686_s14] sm:$0xff]  ;;  %v532_v35 = vld [vmem:[%s1686_s14 + $0x38] sm:$0xff] }
  0x22   : > { %v460_v2 = vmul.f32 %v1509_v5, %v426_v58  ;;  %v453_v19 = vmul.f32 %v1509_v5, %v419_v13  ;;  %v1692_v34 = vld [vmem:[%s2064_s5] ss:$0 sm:$0xff] }
  0x23   : > { %v500_v59 = vmax.f32 %v470_v51, 0.0  ;;  %v507_v60 = vmax.f32 %v477_v52, 0.0  ;;  %v478_v9 = vadd.f32 %v1526_v6, %v444_v62  ;;  %v533_v52 = vld [vmem:[%s1686_s14 + $0x40] sm:$0xff] }
  0x24   : > { %923 = vperm.xlu2 %1418, %v859_v53   ;;  %918 = vperm.xlu1 %1417, %v858_v54   ;;  %v485_v53 = vadd.f32 %v1526_v6, %v451_v46  ;;  %v493_v54 = vadd.f32 %v1526_v6, %v459_v47  ;;  %v487_v24 = vadd.f32 %v1526_v6, %v453_v19 }
  0x25   : > { %913 = vperm.xlu0 %1416, %v857_v55   ;;  %v403_v55 = vld [vmem:[%s1521_s28 + $0x30] sm:$0xff]  ;;  %v508_v15 = vmax.f32 %v478_v9, 0.0 }
  0x26   : > { %v437_v61 = vmul.f32 %v1509_v5, %v403_v55  ;;  %v515_v63 = vmax.f32 %v485_v53, 0.0 }
  0x27   : > { %1372 = vmatmul.msk.f32.gmra.mxu1 %vm559_vm0, %v504_v1  ;;  %1380 = vmatmul.msk.f32.gmra.mxu2 %vm559_vm0, %v512_v4  ;;  %v452_v1 = vmul.f32 %v1509_v5, %v418_v57  ;;  %v870_v4 = vld [vmem:[%s1515_s25 + $0x98] sm:$0xff] }
  0x28   : > { %1365 = vmatmul.msk.f32.gmra.mxu0 %vm559_vm0, %v497_v0  ;;  %1388 = vmatmul.msk.f32.gmra.mxu3 %vm559_vm0, %v520_v7  ;;  %v523_v0 = vmax.f32 %v493_v54, 0.0  ;;  %v869_v7 = vld [vmem:[%s1515_s25 + $0x90] sm:$0xff]  ;;  %v471_v8 = vadd.f32 %v1526_v6, %v437_v61 }
  0x2a   : > { %v501_v14 = vmax.f32 %v471_v8, 0.0 }
  0x2c   : > { %938 = vperm.xlu2 %1418, %v862_v10   ;;  %933 = vperm.xlu1 %1417, %v861_v11   ;;  %v486_v10 = vadd.f32 %v1526_v6, %v452_v1  ;;  %v494_v11 = vadd.f32 %v1526_v6, %v460_v2 }
  0x2d   : > { %928 = vperm.xlu0 %1416, %v860_v12   ;;  %v411_v12 = vld [vmem:[%s1521_s28 + $0x70] sm:$0xff] }
  0x2e   : > { %v445_v16 = vmul.f32 %v1509_v5, %v411_v12  ;;  %v516_v17 = vmax.f32 %v486_v10, 0.0  ;;  %v524_v18 = vmax.f32 %v494_v11, 0.0  ;;  %v534_v11 = vld [vmem:[%s1686_s14 + $0x48] sm:$0xff] }
  0x2f   : > { %1373 = vmatmul.msk.f32.gmra.mxu1 %vm559_vm0, %v505_v22  ;;  %1381 = vmatmul.msk.f32.gmra.mxu2 %vm559_vm0, %v513_v25  ;;  %v872_v22 = vld [vmem:[%s1515_s25 + $0xa8] sm:$0xff]  ;;  %v517_v25 = vmax.f32 %v487_v24, 0.0 }
  0x30   : > { %1366 = vmatmul.msk.f32.gmra.mxu0 %vm559_vm0, %v498_v21  ;;  %1389 = vmatmul.msk.f32.gmra.mxu3 %vm559_vm0, %v521_v26  ;;  %v873_v21 = vld [vmem:[%s1515_s25 + $0xb0] sm:$0xff]  ;;  %v479_v23 = vadd.f32 %v1526_v6, %v445_v16  ;;  %v878_v6 = vld [vmem:[%s1515_s25 + $0xd8] sm:$0xff] }
  0x31   : > { %v877_v26 = vld [vmem:[%s1515_s25 + $0xd0] sm:$0xff] }
  0x32   : > { %v509_v5 = vmax.f32 %v479_v23, 0.0 }
  0x34   : > { %953 = vperm.xlu2 %1418, %v865_v29   ;;  %948 = vperm.xlu1 %1417, %v864_v30   ;;  %v880_v29 = vld [vmem:[%s1515_s25 + $0xe8] sm:$0xff]  ;;  %v879_v30 = vld [vmem:[%s1515_s25 + $0xe0] sm:$0xff]  ;;  %s396_s25 = scalar_lea.vmem %s2068_s9, %s2072_s10 }
  0x35   : > { %943 = vperm.xlu0 %1416, %v863_v31  }
  0x37   : > { %1374 = vmatmul.msk.f32.gmra.mxu1 %vm559_vm0, %v506_v41  ;;  %1382 = vmatmul.msk.f32.gmra.mxu2 %vm559_vm0, %v514_v44  ;;  %v540_v44 = vld [vmem:[%s1686_s14 + $0x78] sm:$0xff] }
  0x38   : > { %1367 = vmatmul.msk.f32.gmra.mxu0 %vm559_vm0, %v499_v40  ;;  %1390 = vmatmul.msk.f32.gmra.mxu3 %vm559_vm0, %v522_v45  ;;  %v548_v45 = vld [vmem:[%s1686_s14 + $0xb8] sm:$0xff] }
  0x3c   : > { %968 = vperm.xlu2 %1418, %v868_v48   ;;  %963 = vperm.xlu1 %1417, %v867_v49   ;;  %v526_v49 = vld [vmem:[%s1686_s14 + $0x8] sm:$0xff] }
  0x3d   : > { %958 = vperm.xlu0 %1416, %v866_v50  }
  0x3f   : > { %1375 = vmatmul.msk.f32.gmra.mxu1 %vm559_vm0, %v507_v60  ;;  %1383 = vmatmul.msk.f32.gmra.mxu2 %vm559_vm0, %v515_v63  ;;  %v541_v63 = vld [vmem:[%s1686_s14 + $0x80] sm:$0xff] }
  0x40   : > { %1368 = vmatmul.msk.f32.gmra.mxu0 %vm559_vm0, %v500_v59  ;;  %1391 = vmatmul.msk.f32.gmra.mxu3 %vm559_vm0, %v523_v0  ;;  %v549_v0 = vld [vmem:[%s1686_s14 + $0xc0] sm:$0xff] }
  0x44   : > { %983 = vperm.xlu2 %1418, %v871_v3   ;;  %978 = vperm.xlu1 %1417, %v870_v4   ;;  %v527_v3 = vld [vmem:[%s1686_s14 + $0x10] sm:$0xff] }
  0x45   : > { %973 = vperm.xlu0 %1416, %v869_v7  }
  0x47   : > { %1376 = vmatmul.msk.f32.gmra.mxu1 %vm559_vm0, %v508_v15  ;;  %1384 = vmatmul.msk.f32.gmra.mxu2 %vm559_vm0, %v516_v17 }
  0x48   : > { %1369 = vmatmul.msk.f32.gmra.mxu0 %vm559_vm0, %v501_v14  ;;  %1392 = vmatmul.msk.f32.gmra.mxu3 %vm559_vm0, %v524_v18  ;;  %v542_v18 = vld [vmem:[%s1686_s14 + $0x88] sm:$0xff] }
  0x4c   : > { %998 = vperm.xlu2 %1418, %v874_v20   ;;  %993 = vperm.xlu1 %1417, %v873_v21   ;;  %v550_v21 = vld [vmem:[%s1686_s14 + $0xc8] sm:$0xff] }
  0x4d   : > { %988 = vperm.xlu0 %1416, %v872_v22  }
  0x4f   : > { %1377 = vmatmul.msk.f32.gmra.mxu1 %vm559_vm0, %v509_v5  ;;  %1385 = vmatmul.msk.f32.gmra.mxu2 %vm559_vm0, %v517_v25 }
  0x54   : > { %1013 = vperm.xlu2 %1418, %v877_v26   ;;  %1008 = vperm.xlu1 %1417, %v876_v27   ;;  %v528_v26 = vld [vmem:[%s1686_s14 + $0x18] sm:$0xff] }
  0x55   : > { %1003 = vperm.xlu0 %1416, %v875_v28  }
  0x5c   : > { %1028 = vperm.xlu2 %1418, %v880_v29   ;;  %1023 = vperm.xlu1 %1417, %v879_v30   ;;  %v535_v30 = vld [vmem:[%s1686_s14 + $0x50] sm:$0xff] }
  0x5d   : > { %1018 = vperm.xlu0 %1416, %v878_v6  }
  0x6e   : > { %v1716_v46 = vpop.permute.xlu2 %903 }
  0x76   : > { %v1751_v4 = vpop.permute.xlu2 %908 }
  0x7e   : > { %v1785_v28 = vpop.permute.xlu2 %923 }
  0x86   : > { %v1697_v40 = vpop.permute.xlu1 %893 }
  0x87   : > { %v1678_v31 = vpop.permute.xlu0 %883 }
  0x8e   : > { %v1729_v60 = vpop.permute.xlu1 %898 }
  0x8f   : > { %v1680_v32 = vpop.permute.xlu0 %888 }
  0x94   : > { %v688_v39 = vpop.f32.mrf.mxu1 }
  0x95   : > { %v667_v37 = vpop.f32.mrf.mxu0  ;;  %v764_v41 = vadd.f32 %v688_v39, %v532_v35  ;;  %v543_v39 = vld [vmem:[%s1686_s14 + $0x90] sm:$0xff] }
  0x96   : > { %v757_v38 = vadd.f32 %v667_v37, %v525_v33  ;;  %v1772_v19 = vpop.permute.xlu1 %918 }
  0x97   : > { %v1695_v36 = vpop.permute.xlu0 %913  ;;  %v1709_v43 = vadd.f32 %v1692_v34, %v764_v41  ;;  %v551_v41 = vld [vmem:[%s1686_s14 + $0xd0] sm:$0xff] }
  0x98   : > { %v1706_v42 = vadd.f32 %v1692_v34, %v757_v38 }
  0x99   : > { %828 = vst.msk [vmem:[%s1703_s19 + $0x38] sm:$0xff] %vm559_vm0, %v1709_v43 }
  0x9a   : > { %821 = vst.msk [vmem:[%s1703_s19] sm:$0xff] %vm559_vm0, %v1706_v42  ;;  %v712_v47 = vpop.f32.mrf.mxu2 }
  0x9b   : > { %v736_v48 = vpop.f32.mrf.mxu3  ;;  %v772_v50 = vadd.f32 %v712_v47, %v540_v44 }
  0x9c   : > { %v780_v51 = vadd.f32 %v736_v48, %v548_v45  ;;  %v691_v57 = vpop.f32.mrf.mxu1 }
  0x9d   : > { %v670_v54 = vpop.f32.mrf.mxu0  ;;  %v806_v55 = vadd.f32 %v1692_v34, %v772_v50  ;;  %v765_v59 = vadd.f32 %v691_v57, %v533_v52 }
  0x9e   : > { %v758_v56 = vadd.f32 %v670_v54, %v526_v49  ;;  %v1727_v58 = vadd.f32 %v1692_v34, %v780_v51  ;;  %v529_v49 = vld [vmem:[%s1686_s14 + $0x20] sm:$0xff]  ;;  %v1809_v50 = vpop.permute.xlu1 %933 }
  0x9f   : > { %v1723_v53 = vpop.permute.xlu0 %928  ;;  %836 = vst.msk [vmem:[%s1703_s19 + $0x78] sm:$0xff] %vm559_vm0, %v806_v55  ;;  %v1740_v62 = vadd.f32 %v1692_v34, %v765_v59  ;;  %v536_v59 = vld [vmem:[%s1686_s14 + $0x58] sm:$0xff] }
  0xa0   : > { %v1734_v61 = vadd.f32 %v1692_v34, %v758_v56  ;;  %844 = vst.msk [vmem:[%s1703_s19 + $0xb8] sm:$0xff] %vm559_vm0, %v1727_v58 }
  0xa1   : > { %829 = vst.msk [vmem:[%s1703_s19 + $0x40] sm:$0xff] %vm559_vm0, %v1740_v62 }
  0xa2   : > { %822 = vst.msk [vmem:[%s1703_s19 + $0x8] sm:$0xff] %vm559_vm0, %v1734_v61  ;;  %v715_v1 = vpop.f32.mrf.mxu2 }
  0xa3   : > { %v739_v2 = vpop.f32.mrf.mxu3  ;;  %v773_v7 = vadd.f32 %v715_v1, %v541_v63  ;;  %v1826_v1 = vpop.permute.xlu2 %938 }
  0xa4   : > { %v781_v8 = vadd.f32 %v739_v2, %v549_v0  ;;  %v694_v14 = vpop.f32.mrf.mxu1 }
  0xa5   : > { %v673_v10 = vpop.f32.mrf.mxu0  ;;  %v1757_v12 = vadd.f32 %v1692_v34, %v773_v7  ;;  %v766_v17 = vadd.f32 %v694_v14, %v534_v11  ;;  %v544_v7 = vld [vmem:[%s1686_s14 + $0x98] sm:$0xff] }
  0xa6   : > { %v759_v13 = vadd.f32 %v673_v10, %v527_v3  ;;  %v1760_v15 = vadd.f32 %v1692_v34, %v781_v8  ;;  %v552_v8 = vld [vmem:[%s1686_s14 + $0xd8] sm:$0xff]  ;;  %v1032_v10 = vmul.f32 %v1680_v32, %v1734_v61 }
  0xa7   : > { %v1753_v9 = vpop.permute.xlu0 %943  ;;  %837 = vst.msk [vmem:[%s1703_s19 + $0x80] sm:$0xff] %vm559_vm0, %v1757_v12  ;;  %v1778_v20 = vadd.f32 %v1692_v34, %v766_v17  ;;  %v530_v17 = vld [vmem:[%s1686_s14 + $0x28] sm:$0xff] }
  0xa8   : > { %v1766_v16 = vadd.f32 %v1692_v34, %v759_v13  ;;  %845 = vst.msk [vmem:[%s1703_s19 + $0xc0] sm:$0xff] %vm559_vm0, %v1760_v15 }
  0xa9   : > { %830 = vst.msk [vmem:[%s1703_s19 + $0x48] sm:$0xff] %vm559_vm0, %v1778_v20 }
  0xaa   : > { %823 = vst.msk [vmem:[%s1703_s19 + $0x10] sm:$0xff] %vm559_vm0, %v1766_v16  ;;  %v718_v22 = vpop.f32.mrf.mxu2 }
  0xab   : > { %v742_v23 = vpop.f32.mrf.mxu3  ;;  %v774_v24 = vadd.f32 %v718_v22, %v542_v18  ;;  %v1031_v18 = vmul.f32 %v1678_v31, %v1706_v42 }
  0xac   : > { %v782_v5 = vadd.f32 %v742_v23, %v550_v21  ;;  %v697_v6 = vpop.f32.mrf.mxu1  ;;  %v537_v23 = vld [vmem:[%s1686_s14 + $0x60] sm:$0xff] }
  0xad   : > { %v676_v27 = vpop.f32.mrf.mxu0  ;;  %v1788_v29 = vadd.f32 %v1692_v34, %v774_v24  ;;  %v767_v38 = vadd.f32 %v697_v6, %v535_v30  ;;  %v1033_v24 = vmul.f32 %v1697_v40, %v1766_v16  ;;  %v1129_v30 = vmul.f32 %v1032_v10, %v1734_v61 }
  0xae   : > { %v1792_v33 = vadd.f32 %v1692_v34, %v782_v5  ;;  %v760_v37 = vadd.f32 %v676_v27, %v528_v26  ;;  %v1853_v5 = vpop.permute.xlu1 %948 }
  0xaf   : > { %v959_v25 = vpop.permute.xlu0 %958  ;;  %838 = vst.msk [vmem:[%s1703_s19 + $0x88] sm:$0xff] %vm559_vm0, %v1788_v29  ;;  %v1812_v51 = vadd.f32 %v1692_v34, %v767_v38  ;;  %v1062_v38 = vsel %vm559_vm0, %v1032_v10, 0.0 }
  0xb0   : > { %v1797_v35 = vmul.f32 %v959_v25, %v806_v55  ;;  %846 = vst.msk [vmem:[%s1703_s19 + $0xc8] sm:$0xff] %vm559_vm0, %v1792_v33  ;;  %v794_v45 = vadd.f32 %v1692_v34, %v760_v37  ;;  %v1128_v37 = vmul.f32 %v1031_v18, %v1706_v42  ;;  %v545_v42 = vld [vmem:[%s1686_s14 + $0xa0] sm:$0xff] }
  0xb1   : > { %831 = vst.msk [vmem:[%s1703_s19 + $0x50] sm:$0xff] %vm559_vm0, %v1812_v51 }
  0xb2   : > { %v1805_v44 = vmul.f32 %v1797_v35, %v806_v55  ;;  %v721_v47 = vpop.f32.mrf.mxu2  ;;  %824 = vst.msk [vmem:[%s1703_s19 + $0x18] sm:$0xff] %vm559_vm0, %v794_v45  ;;  %v1034_v25 = vmul.f32 %v1729_v60, %v794_v45 }
  0xb3   : > { %v745_v48 = vpop.f32.mrf.mxu3  ;;  %v775_v52 = vadd.f32 %v721_v47, %v543_v39  ;;  %v1130_v39 = vmul.f32 %v1033_v24, %v1766_v16  ;;  %v1878_v47 = vpop.permute.xlu2 %953  ;;  %v1159_v16 = vsel %vm559_vm0, %v1129_v30, 0.0 }
  0xb4   : > { %v783_v54 = vadd.f32 %v745_v48, %v551_v41  ;;  %v700_v63 = vpop.f32.mrf.mxu1  ;;  %v1131_v48 = vmul.f32 %v1034_v25, %v794_v45 }
  0xb5   : > { %v679_v55 = vpop.f32.mrf.mxu0  ;;  %v1820_v56 = vadd.f32 %v1692_v34, %v775_v52  ;;  %v768_v3 = vadd.f32 %v700_v63, %v536_v59  ;;  %v1061_v52 = vsel %vm559_vm0, %v1031_v18, 0.0  ;;  %v1158_v59 = vsel %vm559_vm0, %v1128_v37, 0.0 }
  0xb6   : > { %v761_v57 = vadd.f32 %v679_v55, %v529_v49  ;;  %v1824_v0 = vadd.f32 %v1692_v34, %v783_v54  ;;  %v553_v49 = vld [vmem:[%s1686_s14 + $0xe0] sm:$0xff]  ;;  %v1063_v45 = vadd.f32 %v1062_v38, %v1061_v52  ;;  %v1163_v18 = vsel %vm559_vm0, %v1131_v48, 0.0  ;;  %v1905_v30 = vpop.permute.xlu1 %963 }
  0xb7   : > { %839 = vst.msk [vmem:[%s1703_s19 + $0x90] sm:$0xff] %vm559_vm0, %v1820_v56  ;;  %v1842_v11 = vadd.f32 %v1692_v34, %v768_v3  ;;  %v531_v3 = vld [vmem:[%s1686_s14 + $0x30] sm:$0xff]  ;;  %v1040_v52 = vmul.f32 %v1723_v53, %v1778_v20 }
  0xb8   : > { %v795_v2 = vadd.f32 %v1692_v34, %v761_v57  ;;  %847 = vst.msk [vmem:[%s1703_s19 + $0xd0] sm:$0xff] %vm559_vm0, %v1824_v0 }
  0xb9   : > { %832 = vst.msk [vmem:[%s1703_s19 + $0x58] sm:$0xff] %vm559_vm0, %v1842_v11 }
  0xba   : > { %825 = vst.msk [vmem:[%s1703_s19 + $0x20] sm:$0xff] %vm559_vm0, %v795_v2  ;;  %v724_v13 = vpop.f32.mrf.mxu2  ;;  %v1035_v41 = vmul.f32 %v1716_v46, %v795_v2  ;;  %v1064_v46 = vsel %vm559_vm0, %v1033_v24, 0.0 }
  0xbb   : > { %v748_v14 = vpop.f32.mrf.mxu3  ;;  %v776_v21 = vadd.f32 %v724_v13, %v544_v7  ;;  %v1161_v7 = vsel %vm559_vm0, %v1130_v39, 0.0 }
  0xbc   : > { %v784_v22 = vadd.f32 %v748_v14, %v552_v8  ;;  %v703_v27 = vpop.f32.mrf.mxu1  ;;  %v1066_v8 = vsel %vm559_vm0, %v1034_v25, 0.0  ;;  %v1132_v10 = vmul.f32 %v1035_v41, %v795_v2  ;;  %v1068_v24 = vsel %vm559_vm0, %v1035_v41, 0.0  ;;  %v546_v41 = vld [vmem:[%s1686_s14 + $0xa8] sm:$0xff] }
  0xbd   : > { %v682_v32 = vpop.f32.mrf.mxu0  ;;  %v1857_v26 = vadd.f32 %v1692_v34, %v776_v21  ;;  %v769_v6 = vadd.f32 %v703_v27, %v537_v23 }
  0xbe   : > { %v762_v31 = vadd.f32 %v682_v32, %v530_v17  ;;  %v1861_v40 = vadd.f32 %v1692_v34, %v784_v22  ;;  %v1065_v17 = vadd.f32 %v1064_v46, %v1063_v45  ;;  %v538_v22 = vld [vmem:[%s1686_s14 + $0x68] sm:$0xff]  ;;  %v1165_v37 = vsel %vm559_vm0, %v1132_v10, 0.0 }
  0xbf   : > { %840 = vst.msk [vmem:[%s1703_s19 + $0x98] sm:$0xff] %vm559_vm0, %v1857_v26  ;;  %v1875_v61 = vadd.f32 %v1692_v34, %v769_v6 }
  0xc0   : > { %v796_v60 = vadd.f32 %v1692_v34, %v762_v31  ;;  %848 = vst.msk [vmem:[%s1703_s19 + $0xd8] sm:$0xff] %vm559_vm0, %v1861_v40  ;;  %v1038_v31 = vmul.f32 %v1772_v19, %v1709_v43  ;;  %v1067_v6 = vadd.f32 %v1066_v8, %v1065_v17  ;;  %v554_v19 = vld [vmem:[%s1686_s14 + $0xe8] sm:$0xff] }
  0xc1   : > { %833 = vst.msk [vmem:[%s1703_s19 + $0x60] sm:$0xff] %vm559_vm0, %v1875_v61 }
  0xc2   : > { %826 = vst.msk [vmem:[%s1703_s19 + $0x28] sm:$0xff] %vm559_vm0, %v796_v60  ;;  %v1036_v54 = vmul.f32 %v1751_v4, %v796_v60  ;;  %v727_v55 = vpop.f32.mrf.mxu2  ;;  %v1160_v4 = vadd.f32 %v1159_v16, %v1158_v59  ;;  %v1927_v59 = vpop.permute.xlu2 %968 }
  0xc3   : > { %v751_v57 = vpop.f32.mrf.mxu3  ;;  %v777_v63 = vadd.f32 %v727_v55, %v545_v42  ;;  %v1039_v42 = vmul.f32 %v1785_v28, %v1740_v62 }
  0xc4   : > { %v785_v13 = vadd.f32 %v751_v57, %v553_v49  ;;  %v706_v23 = vpop.f32.mrf.mxu1  ;;  %v1133_v32 = vmul.f32 %v1036_v54, %v796_v60  ;;  %v1162_v27 = vadd.f32 %v1161_v7, %v1160_v4  ;;  %v1070_v38 = vsel %vm559_vm0, %v1036_v54, 0.0 }
  0xc5   : > { %v685_v14 = vpop.f32.mrf.mxu0  ;;  %v1896_v21 = vadd.f32 %v1692_v34, %v777_v63  ;;  %v770_v39 = vadd.f32 %v706_v23, %v538_v22  ;;  %v1069_v49 = vadd.f32 %v1068_v24, %v1067_v6  ;;  %v1135_v7 = vmul.f32 %v1038_v31, %v1709_v43  ;;  %v974_v23 = vpop.permute.xlu0 %973 }
  0xc6   : > { %v1901_v2 = vadd.f32 %v1692_v34, %v785_v13  ;;  %v763_v25 = vadd.f32 %v685_v14, %v531_v3  ;;  %v1164_v48 = vadd.f32 %v1163_v18, %v1162_v27  ;;  %v1167_v16 = vsel %vm559_vm0, %v1133_v32, 0.0  ;;  %v979_v6 = vpop.permute.xlu1 %978 }
  0xc7   : > { %841 = vst.msk [vmem:[%s1703_s19 + $0xa0] sm:$0xff] %vm559_vm0, %v1896_v21  ;;  %v804_v54 = vadd.f32 %v1692_v34, %v770_v39  ;;  %v1071_v28 = vadd.f32 %v1070_v38, %v1069_v49  ;;  %v1136_v4 = vmul.f32 %v1039_v42, %v1740_v62  ;;  %v1041_v43 = vmul.f32 %v1809_v50, %v1812_v51  ;;  %v547_v38 = vld [vmem:[%s1686_s14 + $0xb0] sm:$0xff] }
  0xc8   : > { %849 = vst.msk [vmem:[%s1703_s19 + $0xe0] sm:$0xff] %vm559_vm0, %v1901_v2  ;;  %v797_v60 = vadd.f32 %v1692_v34, %v763_v25  ;;  %v1166_v45 = vadd.f32 %v1165_v37, %v1164_v48  ;;  %v1137_v22 = vmul.f32 %v1040_v52, %v1778_v20  ;;  %v1171_v25 = vsel %vm559_vm0, %v1135_v7, 0.0 }
  0xc9   : > { %834 = vst.msk [vmem:[%s1703_s19 + $0x68] sm:$0xff] %vm559_vm0, %v804_v54  ;;  %v1076_v62 = vsel %vm559_vm0, %v1039_v42, 0.0  ;;  %v1042_v50 = vmul.f32 %v1826_v1, %v1842_v11  ;;  %v1078_v39 = vsel %vm559_vm0, %v1040_v52, 0.0 }
  0xca   : > { %827 = vst.msk [vmem:[%s1703_s19 + $0x30] sm:$0xff] %vm559_vm0, %v797_v60  ;;  %v1037_v46 = vmul.f32 %v1695_v36, %v797_v60  ;;  %v730_v55 = vpop.f32.mrf.mxu2  ;;  %v1074_v36 = vsel %vm559_vm0, %v1038_v31, 0.0  ;;  %v1168_v10 = vadd.f32 %v1167_v16, %v1166_v45  ;;  %v539_v31 = vld [vmem:[%s1686_s14 + $0x70] sm:$0xff]  ;;  %v1175_v1 = vsel %vm559_vm0, %v1137_v22, 0.0  ;;  %v984_v52 = vpop.permute.xlu2 %983 }
  0xcb   : > { %v754_v57 = vpop.f32.mrf.mxu3  ;;  %v778_v63 = vadd.f32 %v730_v55, %v546_v41  ;;  %v1138_v41 = vmul.f32 %v1041_v43, %v1812_v51  ;;  %v1139_v55 = vmul.f32 %v1042_v50, %v1842_v11 }
  0xcc   : > { %v786_v3 = vadd.f32 %v754_v57, %v554_v19  ;;  %v1072_v53 = vsel %vm559_vm0, %v1037_v46, 0.0  ;;  %v1134_v8 = vmul.f32 %v1037_v46, %v797_v60  ;;  %v709_v27 = vpop.f32.mrf.mxu1  ;;  %v1173_v60 = vsel %vm559_vm0, %v1136_v4, 0.0 }
  0xcd   : > { %v1073_v13 = vadd.f32 %v1072_v53, %v1071_v28  ;;  %v1935_v14 = vadd.f32 %v1692_v34, %v778_v63  ;;  %v1043_v19 = vmul.f32 %v1753_v9, %v1875_v61  ;;  %v771_v16 = vadd.f32 %v709_v27, %v539_v31  ;;  %v989_v4 = vpop.permute.xlu0 %988 }
  0xce   : > { %v1169_v17 = vsel %vm559_vm0, %v1134_v8, 0.0  ;;  %v1942_v18 = vadd.f32 %v1692_v34, %v786_v3  ;;  %v1080_v46 = vsel %vm559_vm0, %v1041_v43, 0.0  ;;  %v1044_v57 = vmul.f32 %v1853_v5, %v804_v54 }
  0xcf   : > { %v1075_v24 = vadd.f32 %v1074_v36, %v1073_v13  ;;  %v1170_v32 = vadd.f32 %v1169_v17, %v1168_v10  ;;  %842 = vst.msk [vmem:[%s1703_s19 + $0xa8] sm:$0xff] %vm559_vm0, %v1935_v14  ;;  %v805_v9 = vadd.f32 %v1692_v34, %v771_v16  ;;  %v1177_v63 = vsel %vm559_vm0, %v1138_v41, 0.0 }
  0xd0   : > { %850 = vst.msk [vmem:[%s1703_s19 + $0xe8] sm:$0xff] %vm559_vm0, %v1942_v18  ;;  %v1082_v3 = vsel %vm559_vm0, %v1042_v50, 0.0  ;;  %v1140_v7 = vmul.f32 %v1043_v19, %v1875_v61  ;;  %v1179_v36 = vsel %vm559_vm0, %v1139_v55, 0.0  ;;  %v1084_v10 = vsel %vm559_vm0, %v1043_v19, 0.0 }
  0xd1   : > { %v1077_v20 = vadd.f32 %v1076_v62, %v1075_v24  ;;  %v1172_v37 = vadd.f32 %v1171_v25, %v1170_v32  ;;  %835 = vst.msk [vmem:[%s1703_s19 + $0x70] sm:$0xff] %vm559_vm0, %v805_v9  ;;  %v1045_v5 = vmul.f32 %v1878_v47, %v805_v9  ;;  %v1141_v13 = vmul.f32 %v1044_v57, %v804_v54  ;;  %v994_v47 = vpop.permute.xlu1 %993 }
  0xd2   : > { %v733_v42 = vpop.f32.mrf.mxu2  ;;  %v1181_v17 = vsel %vm559_vm0, %v1140_v7, 0.0  ;;  %v1086_v22 = vsel %vm559_vm0, %v1044_v57, 0.0  ;;  %v1048_v54 = vmul.f32 %v1927_v59, %v1788_v29  ;;  %v1051_v16 = vmul.f32 %v984_v52, %v1896_v21 }
  0xd3   : > { %v1079_v48 = vadd.f32 %v1078_v39, %v1077_v20  ;;  %v1174_v49 = vadd.f32 %v1173_v60, %v1172_v37  ;;  %v779_v45 = vadd.f32 %v733_v42, %v547_v38  ;;  %v1142_v24 = vmul.f32 %v1045_v5, %v805_v9  ;;  %v999_v60 = vpop.permute.xlu2 %998 }
  0xd4   : > { %v1183_v62 = vsel %vm559_vm0, %v1141_v13, 0.0  ;;  %v1088_v50 = vsel %vm559_vm0, %v1045_v5, 0.0  ;;  %v1049_v37 = vmul.f32 %v974_v23, %v1820_v56  ;;  %v1145_v59 = vmul.f32 %v1048_v54, %v1788_v29 }
  0xd5   : > { %v1176_v51 = vadd.f32 %v1175_v1, %v1174_v49  ;;  %v1081_v28 = vadd.f32 %v1080_v46, %v1079_v48  ;;  %v1971_v53 = vadd.f32 %v1692_v34, %v779_v45  ;;  %v1047_v34 = vmul.f32 %v1905_v30, %v1757_v12  ;;  %v1004_v46 = vpop.permute.xlu0 %1003 }
  0xd6   : > { %v1090_v30 = vsel %vm559_vm0, %v1797_v35, 0.0  ;;  %v1185_v38 = vsel %vm559_vm0, %v1142_v24, 0.0  ;;  %v1187_v42 = vsel %vm559_vm0, %v1805_v44, 0.0  ;;  %v1050_v1 = vmul.f32 %v979_v6, %v1857_v26 }
  0xd7   : > { %v1083_v8 = vadd.f32 %v1082_v3, %v1081_v28  ;;  %v1178_v11 = vadd.f32 %v1177_v63, %v1176_v51  ;;  %843 = vst.msk [vmem:[%s1703_s19 + $0xb0] sm:$0xff] %vm559_vm0, %v1971_v53  ;;  %v1144_v20 = vmul.f32 %v1047_v34, %v1757_v12  ;;  %v1092_v19 = vsel %vm559_vm0, %v1047_v34, 0.0 }
  0xd8   : > { %v1094_v35 = vsel %vm559_vm0, %v1048_v54, 0.0  ;;  %v1146_v49 = vmul.f32 %v1049_v37, %v1820_v56  ;;  %v1191_v57 = vsel %vm559_vm0, %v1145_v59, 0.0  ;;  %v1096_v45 = vsel %vm559_vm0, %v1049_v37, 0.0 }
  0xd9   : > { %v1085_v43 = vadd.f32 %v1084_v10, %v1083_v8  ;;  %v1180_v61 = vadd.f32 %v1179_v36, %v1178_v11  ;;  %v1189_v23 = vsel %vm559_vm0, %v1144_v20, 0.0  ;;  %v1147_v44 = vmul.f32 %v1050_v1, %v1857_v26  ;;  %v1009_v51 = vpop.permute.xlu1 %1008 }
  0xda   : > { %v1052_v6 = vmul.f32 %v989_v4, %v1935_v14  ;;  %v1193_v63 = vsel %vm559_vm0, %v1146_v49, 0.0  ;;  %v1098_v56 = vsel %vm559_vm0, %v1050_v1, 0.0  ;;  %v1148_v52 = vmul.f32 %v1051_v16, %v1896_v21 }
  0xdb   : > { %v1087_v32 = vadd.f32 %v1086_v22, %v1085_v43  ;;  %v1182_v25 = vadd.f32 %v1181_v17, %v1180_v61  ;;  %v1053_v3 = vmul.f32 %v994_v47, %v1971_v53  ;;  %v1054_v11 = vmul.f32 %v999_v60, %v1727_v58  ;;  %v1014_v10 = vpop.permute.xlu2 %1013 }
  0xdc   : > { %v1195_v5 = vsel %vm559_vm0, %v1147_v44, 0.0  ;;  %v1100_v26 = vsel %vm559_vm0, %v1051_v16, 0.0  ;;  %v1149_v36 = vmul.f32 %v1052_v6, %v1935_v14  ;;  %v1197_v43 = vsel %vm559_vm0, %v1148_v52, 0.0 }
  0xdd   : > { %v1184_v31 = vadd.f32 %v1183_v62, %v1182_v25  ;;  %v1089_v27 = vadd.f32 %v1088_v50, %v1087_v32  ;;  %v1055_v61 = vmul.f32 %v1004_v46, %v1760_v15  ;;  %v1102_v21 = vsel %vm559_vm0, %v1052_v6, 0.0  ;;  %v1019_v25 = vpop.permute.xlu0 %1018 }
  0xde   : > { %v1150_v34 = vmul.f32 %v1053_v3, %v1971_v53  ;;  %v1151_v24 = vmul.f32 %v1054_v11, %v1727_v58  ;;  %v1056_v47 = vmul.f32 %v1009_v51, %v1792_v33  ;;  %v1199_v32 = vsel %vm559_vm0, %v1149_v36, 0.0 }
  0xdf   : > { %v1091_v39 = vadd.f32 %v1090_v30, %v1089_v27  ;;  %v1186_v41 = vadd.f32 %v1185_v38, %v1184_v31  ;;  %v1104_v14 = vsel %vm559_vm0, %v1053_v3, 0.0  ;;  %v1106_v50 = vsel %vm559_vm0, %v1054_v11, 0.0 }
  0xe0   : > { %v1057_v31 = vmul.f32 %v1014_v10, %v1824_v0  ;;  %v1152_v27 = vmul.f32 %v1055_v61, %v1760_v15  ;;  %v1201_v53 = vsel %vm559_vm0, %v1150_v34, 0.0  ;;  %v1203_v37 = vsel %vm559_vm0, %v1151_v24, 0.0 }
  0xe1   : > { %v1093_v12 = vadd.f32 %v1092_v19, %v1091_v39  ;;  %v1188_v48 = vadd.f32 %v1187_v42, %v1186_v41  ;;  %v1024_v20 = vpop.permute.xlu1 %1023  ;;  %v1153_v38 = vmul.f32 %v1056_v47, %v1792_v33  ;;  %v1108_v60 = vsel %vm559_vm0, %v1055_v61, 0.0 }
  0xe2   : > { %v1058_v39 = vmul.f32 %v1019_v25, %v1861_v40  ;;  %v1154_v19 = vmul.f32 %v1057_v31, %v1824_v0  ;;  %v1110_v42 = vsel %vm559_vm0, %v1056_v47, 0.0  ;;  %v1205_v15 = vsel %vm559_vm0, %v1152_v27, 0.0 }
  0xe3   : > { %v1095_v55 = vadd.f32 %v1094_v35, %v1093_v12  ;;  %v1190_v29 = vadd.f32 %v1189_v23, %v1188_v48  ;;  %v1059_v1 = vmul.f32 %v1024_v20, %v1901_v2  ;;  %v1029_v12 = vpop.permute.xlu2 %1028  ;;  %v1112_v23 = vsel %vm559_vm0, %v1057_v31, 0.0 }
  0xe4   : > { %v1207_v33 = vsel %vm559_vm0, %v1153_v38, 0.0  ;;  %v1060_v49 = vmul.f32 %v1029_v12, %v1942_v18  ;;  %v1155_v16 = vmul.f32 %v1058_v39, %v1861_v40  ;;  %v1209_v0 = vsel %vm559_vm0, %v1154_v19, 0.0 }
  0xe5   : > { %v1192_v28 = vadd.f32 %v1191_v57, %v1190_v29  ;;  %v1097_v9 = vadd.f32 %v1096_v45, %v1095_v55  ;;  %v1156_v29 = vmul.f32 %v1059_v1, %v1901_v2  ;;  %v1114_v57 = vsel %vm559_vm0, %v1058_v39, 0.0 }
  0xe6   : > { %v1157_v6 = vmul.f32 %v1060_v49, %v1942_v18  ;;  %v1116_v51 = vsel %vm559_vm0, %v1059_v1, 0.0 }
  0xe7   : > { %v1099_v7 = vadd.f32 %v1098_v56, %v1097_v9  ;;  %v1194_v8 = vadd.f32 %v1193_v63, %v1192_v28  ;;  %v1211_v28 = vsel %vm559_vm0, %v1155_v16, 0.0  ;;  %v1118_v63 = vsel %vm559_vm0, %v1060_v49, 0.0 }
  0xe8   : > { %v1213_v56 = vsel %vm559_vm0, %v1156_v29, 0.0  ;;  %v1215_v3 = vsel %vm559_vm0, %v1157_v6, 0.0 }
  0xe9   : > { %v1101_v13 = vadd.f32 %v1100_v26, %v1099_v7  ;;  %v1196_v4 = vadd.f32 %v1195_v5, %v1194_v8 }
  0xeb   : > { %v1103_v17 = vadd.f32 %v1102_v21, %v1101_v13  ;;  %v1198_v22 = vadd.f32 %v1197_v43, %v1196_v4 }
  0xed   : > { %v1105_v54 = vadd.f32 %v1104_v14, %v1103_v17  ;;  %v1200_v62 = vadd.f32 %v1199_v32, %v1198_v22 }
  0xef   : > { %v1107_v30 = vadd.f32 %v1106_v50, %v1105_v54  ;;  %v1202_v58 = vadd.f32 %v1201_v53, %v1200_v62 }
  0xf1   : > { %v1109_v41 = vadd.f32 %v1108_v60, %v1107_v30  ;;  %v1204_v59 = vadd.f32 %v1203_v37, %v1202_v58 }
  0xf3   : > { %v1111_v48 = vadd.f32 %v1110_v42, %v1109_v41  ;;  %v1206_v35 = vadd.f32 %v1205_v15, %v1204_v59 }
  0xf5   : > { %v1113_v46 = vadd.f32 %v1112_v23, %v1111_v48  ;;  %v1208_v55 = vadd.f32 %v1207_v33, %v1206_v35 }
  0xf7   : > { %v1115_v45 = vadd.f32 %v1114_v57, %v1113_v46  ;;  %v1210_v44 = vadd.f32 %v1209_v0, %v1208_v55 }
  0xf9   : > { %v1117_v9 = vadd.f32 %v1116_v51, %v1115_v45  ;;  %v1212_v40 = vadd.f32 %v1211_v28, %v1210_v44 }
  0xfb   : > { %v1119_v52 = vadd.f32 %v1118_v63, %v1117_v9  ;;  %v1214_v2 = vadd.f32 %v1213_v56, %v1212_v40 }
  0xfd   : > { %v1120_v7 = vrot.slane %v1119_v52, 4  ;;  %v1216_v8 = vadd.f32 %v1215_v3, %v1214_v2 }
  0xff   : > { %v1121_v11 = vadd.f32 %v1120_v7, %v1119_v52  ;;  %v1217_v18 = vrot.slane %v1216_v8, 4 }
 0x101   : > { %v1122_v5 = vrot.slane %v1121_v11, 2  ;;  %v1218_v26 = vadd.f32 %v1217_v18, %v1216_v8 }
 0x103   : > { %v1123_v36 = vadd.f32 %v1122_v5, %v1121_v11  ;;  %v1219_v10 = vrot.slane %v1218_v26, 2 }
 0x105   : > { %v1124_v13 = vrot.slane %v1123_v36, 1  ;;  %v1220_v4 = vadd.f32 %v1219_v10, %v1218_v26 }
 0x107   : > { %v1125_v43 = vadd.f32 %v1124_v13, %v1123_v36  ;;  %v1221_v61 = vrot.slane %v1220_v4, 1 }
 0x109   : > { %1127 = vst.msk [vmem:[%s393_s22] sm:$0x1] %vm1126_vm1, %v1125_v43  ;;  %v1222_v21 = vadd.f32 %v1221_v61, %v1220_v4 }
 0x10b   : > { %1223 = vst.msk [vmem:[%s396_s25] sm:$0x1] %vm1126_vm1, %v1222_v21 }
 0x10c PF: > { %s20_s30 = sadd.s32 1, %s1428_s30  }
 0x10d   : > { %p17_p5 = scmp.ge.s32.totalorder %s20_s30, 4  }
 0x10f   :  { %19 = sbr.rel (!%p17_p5) target bundleno = 1 (0x1), region = 108 }

// kernel: gat_union_forward.9
= control target key start
LH: loop header
LB: loop body
LE: loop exit
PB: predicated region body
PF: predicated region fallthrough
CT: control target
= control target key end

     0   :  { %s436_s12 = smov 0   ;;  %s617_s0 = inlined_call_operand.vmem [shape: f32[480,32], index: 0, kind: input, shape index: {}]   ;;  %s618_s1 = inlined_call_operand.vmem [shape: f32[1,32], index: 1, kind: input, shape index: {}]   ;;  %s619_s2 = inlined_call_operand.vmem [shape: f32[1,32], index: 2, kind: input, shape index: {}]   ;;  %s620_s3 = inlined_call_operand.vmem [shape: f32[480,32], index: 3, kind: output, shape index: {}]  }
   0x1 LB: > { %s389_s13 = sadd.s32 4294967295, %s414_s12   ;;  %p393_p0 = scmp.ge.s32.totalorder %s414_s12, 1  ;;  %s414_s12 = sphi %s436_s12, %s13_s12  }
   0x2   : > { %p138_p1 = scmp.lt.s32.totalorder %s414_s12, 3 }
   0x4   : > { %p139_p2 = pnand %p393_p0, %p138_p1 }
   0x5   : > { %s162_s14 = smul.u32 (!%p139_p2), 30, %s389_s13 }
   0x6   : > { %142 = sbr.rel (%p139_p2) target bundleno = 51 (0x33), region = 32 }
   0x7   : > { %p163_p3 = scmp.lt.s32.totalorder (!%p139_p2), %s162_s14, 59 }
   0xb   : > { %s622_s14 = smov (!%p163_p3, %s162_s14), 59  ;;  %v447_v0 = vld [vmem:[%s618_s1] ss:$0 sm:$0xff]  ;;  %vm302_vm0 = vcmask 261120  }
   0xc   : > { %s394_s17 = sshll.u32 %s622_s14, 3  ;;  %v457_v1 = vld [vmem:[%s619_s2] ss:$0 sm:$0xff] }
   0xd   : > { %s452_s20 = scalar_lea.vmem %s617_s0, %s394_s17  ;;  %s480_s25 = scalar_lea.vmem %s620_s3, %s394_s17 }
   0xe   : > { %v174_v2 = vld [vmem:[%s452_s20] sm:$0xff]  ;;  %v175_v3 = vld [vmem:[%s452_s20 + $0x8] sm:$0xff]  ;;  %v176_v4 = vld [vmem:[%s452_s20 + $0x10] sm:$0xff] }
   0xf   : > { %v208_v5 = vmul.f32 %v447_v0, %v174_v2  ;;  %v209_v6 = vmul.f32 %v447_v0, %v175_v3  ;;  %v210_v7 = vmul.f32 %v447_v0, %v176_v4  ;;  %v177_v8 = vld [vmem:[%s452_s20 + $0x18] sm:$0xff]  ;;  %v178_v9 = vld [vmem:[%s452_s20 + $0x20] sm:$0xff]  ;;  %v179_v10 = vld [vmem:[%s452_s20 + $0x28] sm:$0xff] }
  0x10   : > { %v211_v11 = vmul.f32 %v447_v0, %v177_v8  ;;  %v212_v12 = vmul.f32 %v447_v0, %v178_v9  ;;  %v213_v13 = vmul.f32 %v447_v0, %v179_v10  ;;  %v180_v14 = vld [vmem:[%s452_s20 + $0x30] sm:$0xff]  ;;  %v181_v15 = vld [vmem:[%s452_s20 + $0x38] sm:$0xff]  ;;  %v182_v24 = vld [vmem:[%s452_s20 + $0x40] sm:$0xff] }
  0x11   : > { %v242_v16 = vadd.f32 %v457_v1, %v208_v5  ;;  %v243_v17 = vadd.f32 %v457_v1, %v209_v6  ;;  %v244_v18 = vadd.f32 %v457_v1, %v210_v7  ;;  %v214_v19 = vmul.f32 %v447_v0, %v180_v14  ;;  %v183_v25 = vld [vmem:[%s452_s20 + $0x48] sm:$0xff]  ;;  %v184_v26 = vld [vmem:[%s452_s20 + $0x50] sm:$0xff]  ;;  %v185_v31 = vld [vmem:[%s452_s20 + $0x58] sm:$0xff] }
  0x12   : > { %v245_v20 = vadd.f32 %v457_v1, %v211_v11  ;;  %v246_v21 = vadd.f32 %v457_v1, %v212_v12  ;;  %v247_v22 = vadd.f32 %v457_v1, %v213_v13  ;;  %v215_v23 = vmul.f32 %v447_v0, %v181_v15  ;;  %v186_v32 = vld [vmem:[%s452_s20 + $0x60] sm:$0xff]  ;;  %v187_v33 = vld [vmem:[%s452_s20 + $0x68] sm:$0xff]  ;;  %v188_v37 = vld [vmem:[%s452_s20 + $0x70] sm:$0xff] }
  0x13   : > { %v272_v27 = vmax.f32 %v242_v16, 0.0  ;;  %v273_v28 = vmax.f32 %v243_v17, 0.0  ;;  %v274_v29 = vmax.f32 %v244_v18, 0.0  ;;  %v248_v30 = vadd.f32 %v457_v1, %v214_v19  ;;  %v189_v42 = vld [vmem:[%s452_s20 + $0x78] sm:$0xff]  ;;  %v190_v54 = vld [vmem:[%s452_s20 + $0x80] sm:$0xff]  ;;  %v191_v55 = vld [vmem:[%s452_s20 + $0x88] sm:$0xff] }
  0x14   : > { %v275_v34 = vmax.f32 %v245_v20, 0.0  ;;  %v276_v35 = vmax.f32 %v246_v21, 0.0  ;;  %v249_v36 = vadd.f32 %v457_v1, %v215_v23  ;;  %v277_v38 = vmax.f32 %v247_v22, 0.0  ;;  %v192_v56 = vld [vmem:[%s452_s20 + $0x90] sm:$0xff]  ;;  %v193_v59 = vld [vmem:[%s452_s20 + $0x98] sm:$0xff]  ;;  %v194_v63 = vld [vmem:[%s452_s20 + $0xa0] sm:$0xff] }
  0x15   : > { %303 = vst.msk [vmem:[%s480_s25] sm:$0xff] %vm302_vm0, %v272_v27  ;;  %v216_v39 = vmul.f32 %v447_v0, %v182_v24  ;;  %v217_v40 = vmul.f32 %v447_v0, %v183_v25  ;;  %v218_v41 = vmul.f32 %v447_v0, %v184_v26  ;;  %v278_v43 = vmax.f32 %v248_v30, 0.0  ;;  %v195_v6 = vld [vmem:[%s452_s20 + $0xa8] sm:$0xff]  ;;  %v196_v10 = vld [vmem:[%s452_s20 + $0xb0] sm:$0xff]  ;;  %v197_v14 = vld [vmem:[%s452_s20 + $0xb8] sm:$0xff] }
  0x16   : > { %304 = vst.msk [vmem:[%s480_s25 + $0x8] sm:$0xff] %vm302_vm0, %v273_v28  ;;  %v219_v44 = vmul.f32 %v447_v0, %v185_v31  ;;  %v220_v45 = vmul.f32 %v447_v0, %v186_v32  ;;  %v221_v46 = vmul.f32 %v447_v0, %v187_v33  ;;  %v222_v50 = vmul.f32 %v447_v0, %v188_v37  ;;  %v198_v18 = vld [vmem:[%s452_s20 + $0xc0] sm:$0xff]  ;;  %v199_v22 = vld [vmem:[%s452_s20 + $0xc8] sm:$0xff]  ;;  %v200_v26 = vld [vmem:[%s452_s20 + $0xd0] sm:$0xff] }
  0x17   : > { %305 = vst.msk [vmem:[%s480_s25 + $0x10] sm:$0xff] %vm302_vm0, %v274_v29  ;;  %v250_v47 = vadd.f32 %v457_v1, %v216_v39  ;;  %v251_v48 = vadd.f32 %v457_v1, %v217_v40  ;;  %v252_v49 = vadd.f32 %v457_v1, %v218_v41  ;;  %v279_v51 = vmax.f32 %v249_v36, 0.0  ;;  %v201_v30 = vld [vmem:[%s452_s20 + $0xd8] sm:$0xff] }
  0x18   : > { %306 = vst.msk [vmem:[%s480_s25 + $0x18] sm:$0xff] %vm302_vm0, %v275_v34  ;;  %v253_v52 = vadd.f32 %v457_v1, %v219_v44  ;;  %v223_v53 = vmul.f32 %v447_v0, %v189_v42  ;;  %v254_v58 = vadd.f32 %v457_v1, %v220_v45  ;;  %v255_v62 = vadd.f32 %v457_v1, %v221_v46  ;;  %v202_v34 = vld [vmem:[%s452_s20 + $0xe0] sm:$0xff] }
  0x19   : > { %307 = vst.msk [vmem:[%s480_s25 + $0x20] sm:$0xff] %vm302_vm0, %v276_v35  ;;  %v280_v57 = vmax.f32 %v250_v47, 0.0  ;;  %v281_v60 = vmax.f32 %v251_v48, 0.0  ;;  %v282_v61 = vmax.f32 %v252_v49, 0.0  ;;  %v256_v2 = vadd.f32 %v457_v1, %v222_v50 }
  0x1a   : > { %308 = vst.msk [vmem:[%s480_s25 + $0x28] sm:$0xff] %vm302_vm0, %v277_v38  ;;  %v224_v3 = vmul.f32 %v447_v0, %v190_v54  ;;  %v225_v4 = vmul.f32 %v447_v0, %v191_v55  ;;  %v226_v5 = vmul.f32 %v447_v0, %v192_v56  ;;  %v283_v7 = vmax.f32 %v253_v52, 0.0  ;;  %v203_v38 = vld [vmem:[%s452_s20 + $0xe8] sm:$0xff] }
  0x1b   : > { %309 = vst.msk [vmem:[%s480_s25 + $0x30] sm:$0xff] %vm302_vm0, %v278_v43  ;;  %v257_v8 = vadd.f32 %v457_v1, %v223_v53  ;;  %v227_v9 = vmul.f32 %v447_v0, %v193_v59  ;;  %v284_v11 = vmax.f32 %v254_v58, 0.0  ;;  %v228_v13 = vmul.f32 %v447_v0, %v194_v63 }
  0x1c   : > { %310 = vst.msk [vmem:[%s480_s25 + $0x38] sm:$0xff] %vm302_vm0, %v279_v51  ;;  %v258_v12 = vadd.f32 %v457_v1, %v224_v3  ;;  %v285_v15 = vmax.f32 %v255_v62, 0.0  ;;  %v259_v16 = vadd.f32 %v457_v1, %v225_v4  ;;  %v229_v17 = vmul.f32 %v447_v0, %v195_v6 }
  0x1d   : > { %311 = vst.msk [vmem:[%s480_s25 + $0x40] sm:$0xff] %vm302_vm0, %v280_v57  ;;  %v286_v19 = vmax.f32 %v256_v2, 0.0  ;;  %v260_v20 = vadd.f32 %v457_v1, %v226_v5  ;;  %v230_v21 = vmul.f32 %v447_v0, %v196_v10  ;;  %v287_v23 = vmax.f32 %v257_v8, 0.0 }
  0x1e   : > { %312 = vst.msk [vmem:[%s480_s25 + $0x48] sm:$0xff] %vm302_vm0, %v281_v60  ;;  %v261_v24 = vadd.f32 %v457_v1, %v227_v9  ;;  %v231_v25 = vmul.f32 %v447_v0, %v197_v14  ;;  %v288_v27 = vmax.f32 %v258_v12, 0.0  ;;  %v262_v28 = vadd.f32 %v457_v1, %v228_v13 }
  0x1f   : > { %313 = vst.msk [vmem:[%s480_s25 + $0x50] sm:$0xff] %vm302_vm0, %v282_v61  ;;  %v232_v29 = vmul.f32 %v447_v0, %v198_v18  ;;  %v289_v31 = vmax.f32 %v259_v16, 0.0  ;;  %v263_v32 = vadd.f32 %v457_v1, %v229_v17  ;;  %v233_v33 = vmul.f32 %v447_v0, %v199_v22 }
  0x20   : > { %314 = vst.msk [vmem:[%s480_s25 + $0x58] sm:$0xff] %vm302_vm0, %v283_v7  ;;  %v290_v35 = vmax.f32 %v260_v20, 0.0  ;;  %v264_v36 = vadd.f32 %v457_v1, %v230_v21  ;;  %v234_v37 = vmul.f32 %v447_v0, %v200_v26  ;;  %v291_v39 = vmax.f32 %v261_v24, 0.0 }
  0x21   : > { %315 = vst.msk [vmem:[%s480_s25 + $0x60] sm:$0xff] %vm302_vm0, %v284_v11  ;;  %v265_v40 = vadd.f32 %v457_v1, %v231_v25  ;;  %v235_v41 = vmul.f32 %v447_v0, %v201_v30  ;;  %v292_v42 = vmax.f32 %v262_v28, 0.0  ;;  %v266_v43 = vadd.f32 %v457_v1, %v232_v29 }
  0x22   : > { %316 = vst.msk [vmem:[%s480_s25 + $0x68] sm:$0xff] %vm302_vm0, %v285_v15  ;;  %v236_v44 = vmul.f32 %v447_v0, %v202_v34  ;;  %v293_v45 = vmax.f32 %v263_v32, 0.0  ;;  %v267_v46 = vadd.f32 %v457_v1, %v233_v33  ;;  %v237_v47 = vmul.f32 %v447_v0, %v203_v38 }
  0x23   : > { %317 = vst.msk [vmem:[%s480_s25 + $0x70] sm:$0xff] %vm302_vm0, %v286_v19  ;;  %v294_v48 = vmax.f32 %v264_v36, 0.0  ;;  %v268_v49 = vadd.f32 %v457_v1, %v234_v37  ;;  %v295_v50 = vmax.f32 %v265_v40, 0.0  ;;  %v269_v51 = vadd.f32 %v457_v1, %v235_v41 }
  0x24   : > { %318 = vst.msk [vmem:[%s480_s25 + $0x78] sm:$0xff] %vm302_vm0, %v287_v23  ;;  %v296_v52 = vmax.f32 %v266_v43, 0.0  ;;  %v270_v0 = vadd.f32 %v457_v1, %v236_v44  ;;  %v297_v53 = vmax.f32 %v267_v46, 0.0  ;;  %v271_v54 = vadd.f32 %v457_v1, %v237_v47 }
  0x25   : > { %319 = vst.msk [vmem:[%s480_s25 + $0x80] sm:$0xff] %vm302_vm0, %v288_v27  ;;  %v298_v55 = vmax.f32 %v268_v49, 0.0  ;;  %v299_v56 = vmax.f32 %v269_v51, 0.0 }
  0x26   : > { %320 = vst.msk [vmem:[%s480_s25 + $0x88] sm:$0xff] %vm302_vm0, %v289_v31  ;;  %v300_v57 = vmax.f32 %v270_v0, 0.0  ;;  %v301_v58 = vmax.f32 %v271_v54, 0.0 }
  0x27   : > { %321 = vst.msk [vmem:[%s480_s25 + $0x90] sm:$0xff] %vm302_vm0, %v290_v35 }
  0x28   : > { %322 = vst.msk [vmem:[%s480_s25 + $0x98] sm:$0xff] %vm302_vm0, %v291_v39 }
  0x29   : > { %323 = vst.msk [vmem:[%s480_s25 + $0xa0] sm:$0xff] %vm302_vm0, %v292_v42 }
  0x2a   : > { %324 = vst.msk [vmem:[%s480_s25 + $0xa8] sm:$0xff] %vm302_vm0, %v293_v45 }
  0x2b   : > { %325 = vst.msk [vmem:[%s480_s25 + $0xb0] sm:$0xff] %vm302_vm0, %v294_v48 }
  0x2c   : > { %326 = vst.msk [vmem:[%s480_s25 + $0xb8] sm:$0xff] %vm302_vm0, %v295_v50 }
  0x2d   : > { %327 = vst.msk [vmem:[%s480_s25 + $0xc0] sm:$0xff] %vm302_vm0, %v296_v52 }
  0x2e   : > { %328 = vst.msk [vmem:[%s480_s25 + $0xc8] sm:$0xff] %vm302_vm0, %v297_v53 }
  0x2f   : > { %329 = vst.msk [vmem:[%s480_s25 + $0xd0] sm:$0xff] %vm302_vm0, %v298_v55 }
  0x30   : > { %330 = vst.msk [vmem:[%s480_s25 + $0xd8] sm:$0xff] %vm302_vm0, %v299_v56 }
  0x31   : > { %331 = vst.msk [vmem:[%s480_s25 + $0xe0] sm:$0xff] %vm302_vm0, %v300_v57 }
  0x32   : > { %332 = vst.msk [vmem:[%s480_s25 + $0xe8] sm:$0xff] %vm302_vm0, %v301_v58 }
  0x33 PF: > { %s13_s12 = sadd.s32 1, %s414_s12  }
  0x34   : > { %p10_p4 = scmp.ge.s32.totalorder %s13_s12, 4  }
  0x36   :  { %12 = sbr.rel (!%p10_p4) target bundleno = 1 (0x1), region = 62 }

// kernel: gat_union_forward.7
= control target key start
LH: loop header
LB: loop body
LE: loop exit
PB: predicated region body
PF: predicated region fallthrough
CT: control target
= control target key end

     0   :  { %s3510_s24 = smov 0   ;;  %s3512_s25 = smov 0   ;;  %s4918_s0 = inlined_call_operand.vmem [shape: f32[2,240,32], index: 0, kind: input, shape index: {}]   ;;  %s4919_s1 = inlined_call_operand.vmem [shape: f32[2,128,32], index: 1, kind: input, shape index: {}]   ;;  %s4920_s2 = inlined_call_operand.vmem [shape: f32[2,128,32], index: 2, kind: input, shape index: {}]   ;;  %s4921_s3 = inlined_call_operand.vmem [shape: f32[1,128], index: 3, kind: input, shape index: {}]   ;;  %s4922_s4 = inlined_call_operand.vmem [shape: f32[1,32], index: 4, kind: input, shape index: {}]   ;;  %s4923_s5 = inlined_call_operand.vmem [shape: f32[1,32], index: 5, kind: input, shape index: {}]   ;;  %s4924_s6 = inlined_call_operand.vmem [shape: f32[32,32], index: 6, kind: input, shape index: {}]   ;;  %s4925_s7 = inlined_call_operand.vmem [shape: f32[2,240,32], index: 7, kind: output, shape index: {}]  }
   0x1   :  { %s3514_s26 = smov 0   ;;  %s3516_s27 = smov 0  }
   0x2   :  { %s3518_s28 = smov 0  }
   0x3 LB: > { %s26_s29 = sadd.s32 1, %s3460_s26  ;;  %s29_s30 = sadd.s32 1, %s3464_s27  ;;  %s3468_s28 = sphi %s3518_s28, %s17_s28   ;;  %s3464_s27 = sphi %s3516_s27, %s4929_s27   ;;  %s3460_s26 = sphi %s3514_s26, %s4928_s26   ;;  %s3456_s25 = sphi %s3512_s25, %s4927_s25   ;;  %s3452_s24 = sphi %s3510_s24, %s4926_s24  }
   0x4   : > { %p27_p0 = scmp.ge.s32.totalorder %s26_s29, 2  ;;  %p3222_p1 = scmp.ge.s32.totalorder %s3468_s28, 1 }
   0x5   : > { %p278_p2 = scmp.lt.s32.totalorder %s3468_s28, 5 }
   0x6   : > { %s4931_s29 = smov (%p27_p0, %s26_s29), 0  ;;  %s4933_s30 = smov (!%p27_p0, %s29_s30), %s3464_s27 }
   0x7   : > { %p279_p3 = pnand %p3222_p1, %p278_p2  ;;  %p31_p4 = scmp.ge.s32.totalorder %s4933_s30, 2 }
   0x8   : > { %p329_p5 = scmp.lt.s32.totalorder (!%p279_p3), %s3456_s25, 1  ;;  %s328_s12 = smul.u32 (!%p279_p3), 15, %s3452_s24 }
   0x9   : > { %s4935_s30 = smov (%p31_p4, %s4933_s30), 0  ;;  %282 = sbr.rel (%p279_p3) target bundleno = 4697 (0x1259), region = 48 }
   0xa   : > { %p331_p6 = scmp.lt.s32.totalorder (!%p279_p3), %s328_s12, 29 }
   0xe   : > { %s4937_s25 = smov (!%p329_p5, %s3456_s25), 1  ;;  %vm389_vm0 = vcmask 261120   ;;  %s4939_s12 = smov (!%p331_p6, %s328_s12), 29  ;;  %v3648_v43 = vld [vmem:[%s4921_s3] ss:$0 sm:$0xff] }
   0xf   : > { %s3292_s8 = sshll.u32 %s4937_s25, 7  ;;  %s3326_s13 = smul.u32 30, %s4937_s25 }
  0x10   : > { %s3550_s11 = scalar_lea.vmem %s4919_s1, %s3292_s8  ;;  %s4717_s23 = scalar_lea.vmem %s4920_s2, %s3292_s8 }
  0x11   : > { %v388_v0 = vld [vmem:[%s3550_s11 + $0x78] sm:$0xff]  ;;  %v387_v1 = vld [vmem:[%s3550_s11 + $0x70] sm:$0xff]  ;;  %v386_v2 = vld [vmem:[%s3550_s11 + $0x68] sm:$0xff]  ;;  %s3594_s14 = sadd.s32 %s3326_s13, %s4939_s12 }
  0x12   : > { %3229 = vmatpush.xpose.msk.msra.mxu0 %vm389_vm0, %v388_v0  ;;  %3294 = vmatpush.xpose.msk.msra.mxu3 %vm389_vm0, %v388_v0  ;;  %v385_v3 = vld [vmem:[%s3550_s11 + $0x60] sm:$0xff]  ;;  %v384_v4 = vld [vmem:[%s3550_s11 + $0x58] sm:$0xff]  ;;  %v383_v5 = vld [vmem:[%s3550_s11 + $0x50] sm:$0xff]  ;;  %s3223_s15 = sshll.u32 %s3594_s14, 3 }
  0x13   : > { %v382_v6 = vld [vmem:[%s3550_s11 + $0x48] sm:$0xff]  ;;  %v381_v7 = vld [vmem:[%s3550_s11 + $0x40] sm:$0xff]  ;;  %v380_v8 = vld [vmem:[%s3550_s11 + $0x38] sm:$0xff]  ;;  %s3608_s18 = scalar_lea.vmem %s4918_s0, %s3223_s15  ;;  %s4863_s22 = scalar_lea.vmem %s4925_s7, %s3223_s15 }
  0x14   : > { %v379_v9 = vld [vmem:[%s3550_s11 + $0x30] sm:$0xff]  ;;  %v378_v10 = vld [vmem:[%s3550_s11 + $0x28] sm:$0xff]  ;;  %v377_v11 = vld [vmem:[%s3550_s11 + $0x20] sm:$0xff] }
  0x15   : > { %v376_v12 = vld [vmem:[%s3550_s11 + $0x18] sm:$0xff]  ;;  %v375_v13 = vld [vmem:[%s3550_s11 + $0x10] sm:$0xff]  ;;  %v374_v14 = vld [vmem:[%s3550_s11 + $0x8] sm:$0xff] }
  0x16   : > { %3230 = vmatpush.xpose.msk.msra.mxu0 %vm389_vm0, %v387_v1  ;;  %3295 = vmatpush.xpose.msk.msra.mxu3 %vm389_vm0, %v387_v1  ;;  %v373_v15 = vld [vmem:[%s3550_s11] sm:$0xff]  ;;  %v359_v17 = vld [vmem:[%s3608_s18 + $0x8] sm:$0xff]  ;;  %v360_v18 = vld [vmem:[%s3608_s18 + $0x10] sm:$0xff] }
  0x17   : > { %v358_v16 = vld [vmem:[%s3608_s18] sm:$0xff]  ;;  %v361_v19 = vld [vmem:[%s3608_s18 + $0x18] sm:$0xff]  ;;  %v363_v21 = vld [vmem:[%s3608_s18 + $0x28] sm:$0xff] }
  0x18   : > { %v362_v20 = vld [vmem:[%s3608_s18 + $0x20] sm:$0xff]  ;;  %v364_v22 = vld [vmem:[%s3608_s18 + $0x30] sm:$0xff]  ;;  %v365_v23 = vld [vmem:[%s3608_s18 + $0x38] sm:$0xff] }
  0x19   : > { %v367_v24 = vld [vmem:[%s3608_s18 + $0x48] sm:$0xff]  ;;  %v366_v25 = vld [vmem:[%s3608_s18 + $0x40] sm:$0xff]  ;;  %v368_v26 = vld [vmem:[%s3608_s18 + $0x50] sm:$0xff] }
  0x1a   : > { %3231 = vmatpush.xpose.msk.msra.mxu0 %vm389_vm0, %v386_v2  ;;  %3296 = vmatpush.xpose.msk.msra.mxu3 %vm389_vm0, %v386_v2  ;;  %v369_v27 = vld [vmem:[%s3608_s18 + $0x58] sm:$0xff]  ;;  %v370_v28 = vld [vmem:[%s3608_s18 + $0x60] sm:$0xff]  ;;  %v371_v30 = vld [vmem:[%s3608_s18 + $0x68] sm:$0xff] }
  0x1b   : > { %v372_v32 = vld [vmem:[%s3608_s18 + $0x70] sm:$0xff] }
  0x1e   : > { %3232 = vmatpush.xpose.msk.msra.mxu0 %vm389_vm0, %v385_v3  ;;  %3297 = vmatpush.xpose.msk.msra.mxu3 %vm389_vm0, %v385_v3 }
  0x22   : > { %3233 = vmatpush.xpose.msk.msra.mxu0 %vm389_vm0, %v384_v4  ;;  %3298 = vmatpush.xpose.msk.msra.mxu3 %vm389_vm0, %v384_v4 }
  0x26   : > { %3234 = vmatpush.xpose.msk.msra.mxu0 %vm389_vm0, %v383_v5  ;;  %3299 = vmatpush.xpose.msk.msra.mxu3 %vm389_vm0, %v383_v5 }
  0x2a   : > { %3235 = vmatpush.xpose.msk.msra.mxu0 %vm389_vm0, %v382_v6  ;;  %3300 = vmatpush.xpose.msk.msra.mxu3 %vm389_vm0, %v382_v6 }
  0x2e   : > { %3236 = vmatpush.xpose.msk.msra.mxu0 %vm389_vm0, %v381_v7  ;;  %3301 = vmatpush.xpose.msk.msra.mxu3 %vm389_vm0, %v381_v7 }
  0x32   : > { %3237 = vmatpush.xpose.msk.msra.mxu0 %vm389_vm0, %v380_v8  ;;  %3302 = vmatpush.xpose.msk.msra.mxu3 %vm389_vm0, %v380_v8 }
  0x36   : > { %3238 = vmatpush.xpose.msk.msra.mxu0 %vm389_vm0, %v379_v9  ;;  %3303 = vmatpush.xpose.msk.msra.mxu3 %vm389_vm0, %v379_v9 }
  0x3a   : > { %3239 = vmatpush.xpose.msk.msra.mxu0 %vm389_vm0, %v378_v10  ;;  %3304 = vmatpush.xpose.msk.msra.mxu3 %vm389_vm0, %v378_v10 }
  0x3e   : > { %3240 = vmatpush.xpose.msk.msra.mxu0 %vm389_vm0, %v377_v11  ;;  %3305 = vmatpush.xpose.msk.msra.mxu3 %vm389_vm0, %v377_v11 }
  0x42   : > { %3241 = vmatpush.xpose.msk.msra.mxu0 %vm389_vm0, %v376_v12  ;;  %3306 = vmatpush.xpose.msk.msra.mxu3 %vm389_vm0, %v376_v12 }
  0x46   : > { %3242 = vmatpush.xpose.msk.msra.mxu0 %vm389_vm0, %v375_v13  ;;  %3307 = vmatpush.xpose.msk.msra.mxu3 %vm389_vm0, %v375_v13 }
  0x4a   : > { %3243 = vmatpush.xpose.msk.msra.mxu0 %vm389_vm0, %v374_v14  ;;  %3308 = vmatpush.xpose.msk.msra.mxu3 %vm389_vm0, %v374_v14 }
  0x4e   : > { %3244 = vmatpush.xpose.msk.msra.mxu0 %vm389_vm0, %v373_v15  ;;  %3309 = vmatpush.xpose.msk.msra.mxu3 %vm389_vm0, %v373_v15 }
  0x51   : > { %3245 = vmatmul.msk.f32.vlgmr.msra.gmra.mxu0 %vm389_vm0, %v358_v16  ;;  %3254 = vmatmul.msk.f32.vlgmr.msra.gmra.mxu3 %vm389_vm0, %v367_v24 }
  0x59   : > { %3246 = vmatmul.msk.f32.gmra.mxu0 %vm389_vm0, %v359_v17  ;;  %3255 = vmatmul.msk.f32.gmra.mxu3 %vm389_vm0, %v368_v26 }
  0x61   : > { %3247 = vmatmul.msk.f32.gmra.mxu0 %vm389_vm0, %v360_v18  ;;  %3256 = vmatmul.msk.f32.gmra.mxu3 %vm389_vm0, %v369_v27 }
  0x69   : > { %3248 = vmatmul.msk.f32.gmra.mxu0 %vm389_vm0, %v361_v19  ;;  %3257 = vmatmul.msk.f32.gmra.mxu3 %vm389_vm0, %v370_v28 }
  0x71   : > { %3249 = vmatmul.msk.f32.gmra.mxu0 %vm389_vm0, %v362_v20  ;;  %3258 = vmatmul.msk.f32.gmra.mxu3 %vm389_vm0, %v371_v30 }
  0x79   : > { %3250 = vmatmul.msk.f32.gmra.mxu0 %vm389_vm0, %v363_v21  ;;  %3259 = vmatmul.msk.f32.gmra.mxu3 %vm389_vm0, %v372_v32 }
  0x81   : > { %3251 = vmatmul.msk.f32.gmra.mxu0 %vm389_vm0, %v364_v22 }
  0x89   : > { %3252 = vmatmul.msk.f32.gmra.mxu0 %vm389_vm0, %v365_v23 }
  0x91   : > { %3253 = vmatmul.msk.f32.gmra.mxu0 %vm389_vm0, %v366_v25 }
  0xce   : > { %v500_v29 = vpop.f32.mrf.mxu0 }
  0xcf   : > { %546 = vmax.xlane.f32.xlu0 %v500_v29 }
  0xd4   : > { %v3650_v45 = vpop.f32.mrf.mxu3 }
  0xd6   : > { %v503_v31 = vpop.f32.mrf.mxu0 }
  0xd7   : > { %548 = vmax.xlane.f32.xlu0 %v503_v31 }
  0xdc   : > { %v3658_v54 = vpop.f32.mrf.mxu3 }
  0xde   : > { %v506_v33 = vpop.f32.mrf.mxu0 }
  0xdf   : > { %550 = vmax.xlane.f32.xlu1 %v506_v33 }
  0xe4   : > { %v3668_v61 = vpop.f32.mrf.mxu3 }
  0xe6   : > { %v509_v34 = vpop.f32.mrf.mxu0 }
  0xe7   : > { %552 = vmax.xlane.f32.xlu1 %v509_v34 }
  0xec   : > { %v3677_v3 = vpop.f32.mrf.mxu3 }
  0xee   : > { %v512_v35 = vpop.f32.mrf.mxu0 }
  0xef   : > { %554 = vmax.xlane.f32.xlu2 %v512_v35 }
  0xf4   : > { %v3684_v11 = vpop.f32.mrf.mxu3 }
  0xf6   : > { %v515_v36 = vpop.f32.mrf.mxu0 }
  0xf7   : > { %556 = vmax.xlane.f32.xlu2 %v515_v36 }
  0xfc   : > { %v3693_v19 = vpop.f32.mrf.mxu3 }
  0xfe   : > { %v518_v37 = vpop.f32.mrf.mxu0 }
  0xff   : > { %558 = vmax.xlane.f32.xlu0 %v518_v37 }
 0x106   : > { %v3642_v38 = vpop.f32.mrf.mxu0 }
 0x107   : > { %560 = vmax.xlane.f32.xlu2 %v3642_v38 }
 0x10e   : > { %v3656_v53 = vpop.f32.mrf.mxu0 }
 0x142   : > { %v547_v39 = vpop.xlane.xlu0 %546 }
 0x143   : > { %v576_v40 = vsub.f32 %v500_v29, %v547_v39 }
 0x145   : > { %v591_v41 = vmul.f32 1.442695, %v576_v40 }
 0x147   : > { %3370 = vpow2.f32 %v591_v41 }
 0x14a   : > { %v549_v42 = vpop.xlane.xlu0 %548 }
 0x14b   : > { %v577_v44 = vsub.f32 %v503_v31, %v549_v42 }
 0x14d   : > { %v3371_v46 = vpop.eup %3370  ;;  %v593_v47 = vmul.f32 1.442695, %v577_v44 }
 0x14e   : > { %v3653_v48 = vmul.f32 %v3371_v46, %v3648_v43 }
 0x14f   : > { %3372 = vpow2.f32 %v593_v47 }
 0x150   : > { %639 = vadd.xlane.f32.xlu1 %v3653_v48 }
 0x152   : > { %v551_v49 = vpop.xlane.xlu1 %550 }
 0x153   : > { %v578_v50 = vsub.f32 %v506_v33, %v551_v49 }
 0x155   : > { %v3373_v51 = vpop.eup %3372  ;;  %v595_v52 = vmul.f32 1.442695, %v578_v50 }
 0x156   : > { %v3661_v55 = vmul.f32 %v3373_v51, %v3648_v43 }
 0x157   : > { %3374 = vpow2.f32 %v595_v52 }
 0x158   : > { %641 = vadd.xlane.f32.xlu0 %v3661_v55  ;;  %562 = vmax.xlane.f32.xlu1 %v3656_v53 }
 0x15a   : > { %v553_v56 = vpop.xlane.xlu1 %552 }
 0x15b   : > { %v579_v57 = vsub.f32 %v509_v34, %v553_v56 }
 0x15d   : > { %v3375_v58 = vpop.eup %3374  ;;  %v597_v59 = vmul.f32 1.442695, %v579_v57 }
 0x15e   : > { %v3666_v60 = vmul.f32 %v3375_v58, %v3648_v43 }
 0x15f   : > { %3376 = vpow2.f32 %v597_v59 }
 0x160   : > { %564 = vmax.xlane.f32.xlu0 %v3650_v45  ;;  %643 = vadd.xlane.f32.xlu2 %v3666_v60 }
 0x162   : > { %v555_v62 = vpop.xlane.xlu2 %554 }
 0x163   : > { %v580_v63 = vsub.f32 %v512_v35, %v555_v62 }
 0x165   : > { %v3377_v0 = vpop.eup %3376  ;;  %v599_v1 = vmul.f32 1.442695, %v580_v63 }
 0x166   : > { %v3673_v2 = vmul.f32 %v3377_v0, %v3648_v43 }
 0x167   : > { %3378 = vpow2.f32 %v599_v1 }
 0x168   : > { %566 = vmax.xlane.f32.xlu2 %v3658_v54  ;;  %645 = vadd.xlane.f32.xlu1 %v3673_v2 }
 0x16a   : > { %v557_v4 = vpop.xlane.xlu2 %556 }
 0x16b   : > { %v581_v5 = vsub.f32 %v515_v36, %v557_v4 }
 0x16d   : > { %v3379_v6 = vpop.eup %3378  ;;  %v601_v7 = vmul.f32 1.442695, %v581_v5 }
 0x16e   : > { %v3680_v8 = vmul.f32 %v3379_v6, %v3648_v43 }
 0x16f   : > { %3380 = vpow2.f32 %v601_v7 }
 0x170   : > { %647 = vadd.xlane.f32.xlu0 %v3680_v8  ;;  %568 = vmax.xlane.f32.xlu1 %v3668_v61 }
 0x172   : > { %v559_v9 = vpop.xlane.xlu0 %558 }
 0x173   : > { %v582_v10 = vsub.f32 %v518_v37, %v559_v9 }
 0x175   : > { %v3381_v12 = vpop.eup %3380  ;;  %v603_v13 = vmul.f32 1.442695, %v582_v10 }
 0x176   : > { %v3687_v14 = vmul.f32 %v3381_v12, %v3648_v43 }
 0x177   : > { %3382 = vpow2.f32 %v603_v13 }
 0x178   : > { %570 = vmax.xlane.f32.xlu0 %v3677_v3  ;;  %649 = vadd.xlane.f32.xlu2 %v3687_v14 }
 0x179   : > { %572 = vmax.xlane.f32.xlu1 %v3684_v11 }
 0x17a   : > { %v561_v15 = vpop.xlane.xlu2 %560 }
 0x17b   : > { %v583_v16 = vsub.f32 %v3642_v38, %v561_v15 }
 0x17d   : > { %v3383_v17 = vpop.eup %3382  ;;  %v605_v18 = vmul.f32 1.442695, %v583_v16 }
 0x17e   : > { %v3696_v20 = vmul.f32 %v3383_v17, %v3648_v43 }
 0x17f   : > { %3384 = vpow2.f32 %v605_v18 }
 0x180   : > { %574 = vmax.xlane.f32.xlu0 %v3693_v19  ;;  %651 = vadd.xlane.f32.xlu2 %v3696_v20 }
 0x185   : > { %v3385_v21 = vpop.eup %3384 }
 0x186   : > { %v3701_v22 = vmul.f32 %v3385_v21, %v3648_v43 }
 0x188   : > { %653 = vadd.xlane.f32.xlu1 %v3701_v22 }
 0x1c3   : > { %v640_v23 = vpop.xlane.xlu1 %639 }
 0x1c4   : > { %3386 = vrcp.f32 %v640_v23  ;;  %v680_v30 = vand.u32 2147483648, %v640_v23  ;;  %v678_v32 = vand.u32 2147483647, %v640_v23  ;;  %vm674_vm2 = vweird.f32 %v640_v23 }
 0x1c6   : > { %v681_v36 = vor.u32 1.1754944e-38, %v680_v30  ;;  %vm679_vm4 = vcmp.eq.f32.partialorder %v678_v32, 8.507059e+37 }
 0x1ca   : > { %v3387_v24 = vpop.eup %3386 }
 0x1cb   : > { %v670_v25 = vmul.f32 %v3387_v24, %v640_v23  ;;  %v642_v26 = vpop.xlane.xlu0 %641  ;;  %v563_v27 = vpop.xlane.xlu1 %562  ;;  %vm675_vm1 = vweird.f32 %v3387_v24 }
 0x1cc   : > { %3388 = vrcp.f32 %v642_v26  ;;  %v584_v29 = vsub.f32 %v3656_v53, %v563_v27  ;;  %vm676_vm3 = vmor %vm674_vm2, %vm675_vm1  ;;  %v695_v47 = vand.u32 2147483648, %v642_v26  ;;  %v693_v52 = vand.u32 2147483647, %v642_v26 }
 0x1cd   : > { %v671_v28 = vsub.f32 1.0, %v670_v25  ;;  %vm689_vm7 = vweird.f32 %v642_v26 }
 0x1ce   : > { %v607_v33 = vmul.f32 1.442695, %v584_v29  ;;  %v696_v57 = vor.u32 1.1754944e-38, %v695_v47  ;;  %vm694_vm9 = vcmp.eq.f32.partialorder %v693_v52, 8.507059e+37 }
 0x1cf   : > { %v672_v31 = vmul.f32 %v3387_v24, %v671_v28 }
 0x1d0   : > { %3390 = vpow2.f32 %v607_v33 }
 0x1d1   : > { %v673_v34 = vadd.f32 %v3387_v24, %v672_v31 }
 0x1d2   : > { %v3389_v35 = vpop.eup %3388 }
 0x1d3   : > { %v677_v37 = vsel %vm676_vm3, %v3387_v24, %v673_v34  ;;  %v685_v38 = vmul.f32 %v3389_v35, %v642_v26  ;;  %v565_v39 = vpop.xlane.xlu0 %564  ;;  %v644_v40 = vpop.xlane.xlu2 %643  ;;  %vm690_vm5 = vweird.f32 %v3389_v35 }
 0x1d4   : > { %v682_v41 = vsel %vm679_vm4, %v681_v36, %v677_v37  ;;  %v585_v42 = vsub.f32 %v3650_v45, %v565_v39  ;;  %3392 = vrcp.f32 %v644_v40  ;;  %vm691_vm8 = vmor %vm689_vm7, %vm690_vm5  ;;  %v710_v7 = vand.u32 2147483648, %v644_v40 }
 0x1d5   : > { %v3707_v44 = vmul.f32 %v682_v41, %v3653_v48  ;;  %v686_v46 = vsub.f32 1.0, %v685_v38  ;;  %v708_v12 = vand.u32 2147483647, %v644_v40  ;;  %vm704_vm12 = vweird.f32 %v644_v40 }
 0x1d6   : > { %v609_v49 = vmul.f32 1.442695, %v585_v42  ;;  %v3391_v50 = vpop.eup %3390  ;;  %v711_v16 = vor.u32 1.1754944e-38, %v710_v7 }
 0x1d7   : > { %v687_v51 = vmul.f32 %v3389_v35, %v686_v46  ;;  %vm894_vm6 = vcmp.lt.f32.partialorder %v3707_v44, inf  ;;  %v3712_v56 = vmul.f32 %v3391_v50, %v3648_v43  ;;  %vm709_vm14 = vcmp.eq.f32.partialorder %v708_v12, 8.507059e+37 }
 0x1d8   : > { %3394 = vpow2.f32 %v609_v49  ;;  %v909_v53 = vsel %vm894_vm6, %v3707_v44, -1.0 }
 0x1d9   : > { %v688_v45 = vadd.f32 %v3389_v35, %v687_v51  ;;  %924 = vmax.xlane.f32.xlu2 %v909_v53  ;;  %655 = vadd.xlane.f32.xlu0 %v3712_v56 }
 0x1da   : > { %v3393_v48 = vpop.eup %3392 }
 0x1db   : > { %v692_v58 = vsel %vm691_vm8, %v3389_v35, %v688_v45  ;;  %v700_v59 = vmul.f32 %v3393_v48, %v644_v40  ;;  %v567_v62 = vpop.xlane.xlu2 %566  ;;  %v646_v63 = vpop.xlane.xlu1 %645  ;;  %vm705_vm10 = vweird.f32 %v3393_v48 }
 0x1dc   : > { %v697_v0 = vsel %vm694_vm9, %v696_v57, %v692_v58  ;;  %v586_v1 = vsub.f32 %v3658_v54, %v567_v62  ;;  %3396 = vrcp.f32 %v646_v63  ;;  %vm706_vm13 = vmor %vm704_vm12, %vm705_vm10  ;;  %v723_v29 = vand.u32 2147483647, %v646_v63 }
 0x1dd   : > { %v3717_v4 = vmul.f32 %v697_v0, %v3661_v55  ;;  %v701_v5 = vsub.f32 1.0, %v700_v59  ;;  %v725_v30 = vand.u32 2147483648, %v646_v63  ;;  %vm719_vm2 = vweird.f32 %v646_v63 }
 0x1de   : > { %v3395_v6 = vpop.eup %3394  ;;  %v611_v9 = vmul.f32 1.442695, %v586_v1  ;;  %vm724_vm4 = vcmp.eq.f32.partialorder %v723_v29, 8.507059e+37 }
 0x1df   : > { %v702_v10 = vmul.f32 %v3393_v48, %v701_v5  ;;  %v3720_v13 = vmul.f32 %v3395_v6, %v3648_v43  ;;  %vm895_vm11 = vcmp.lt.f32.partialorder %v3717_v4, inf  ;;  %v726_v36 = vor.u32 1.1754944e-38, %v725_v30 }
 0x1e0   : > { %3398 = vpow2.f32 %v611_v9  ;;  %v910_v54 = vsel %vm895_vm11, %v3717_v4, -1.0 }
 0x1e1   : > { %v703_v15 = vadd.f32 %v3393_v48, %v702_v10  ;;  %657 = vadd.xlane.f32.xlu2 %v3720_v13  ;;  %926 = vmax.xlane.f32.xlu1 %v910_v54 }
 0x1e2   : > { %v3397_v55 = vpop.eup %3396 }
 0x1e3   : > { %v707_v17 = vsel %vm706_vm13, %v3393_v48, %v703_v15  ;;  %v715_v18 = vmul.f32 %v3397_v55, %v646_v63  ;;  %v648_v21 = vpop.xlane.xlu0 %647  ;;  %v569_v23 = vpop.xlane.xlu1 %568  ;;  %vm720_vm15 = vweird.f32 %v3397_v55 }
 0x1e4   : > { %v712_v24 = vsel %vm709_vm14, %v711_v16, %v707_v17  ;;  %3400 = vrcp.f32 %v648_v21  ;;  %v587_v27 = vsub.f32 %v3668_v61, %v569_v23  ;;  %vm721_vm3 = vmor %vm719_vm2, %vm720_vm15  ;;  %v740_v49 = vand.u32 2147483648, %v648_v21 }
 0x1e5   : > { %v3726_v25 = vmul.f32 %v712_v24, %v3666_v60  ;;  %v716_v26 = vsub.f32 1.0, %v715_v18  ;;  %v738_v45 = vand.u32 2147483647, %v648_v21  ;;  %vm734_vm7 = vweird.f32 %v648_v21 }
 0x1e6   : > { %v3399_v28 = vpop.eup %3398  ;;  %v613_v32 = vmul.f32 1.442695, %v587_v27  ;;  %v741_v59 = vor.u32 1.1754944e-38, %v740_v49 }
 0x1e7   : > { %v717_v31 = vmul.f32 %v3397_v55, %v716_v26  ;;  %v3730_v33 = vmul.f32 %v3399_v28, %v3648_v43  ;;  %vm896_vm1 = vcmp.lt.f32.partialorder %v3726_v25, inf  ;;  %vm739_vm9 = vcmp.eq.f32.partialorder %v738_v45, 8.507059e+37 }
 0x1e8   : > { %3402 = vpow2.f32 %v613_v32  ;;  %v911_v60 = vsel %vm896_vm1, %v3726_v25, -1.0 }
 0x1e9   : > { %v718_v34 = vadd.f32 %v3397_v55, %v717_v31  ;;  %659 = vadd.xlane.f32.xlu1 %v3730_v33  ;;  %928 = vmax.xlane.f32.xlu0 %v911_v60 }
 0x1ea   : > { %v3401_v35 = vpop.eup %3400 }
 0x1eb   : > { %v722_v61 = vsel %vm721_vm3, %v3397_v55, %v718_v34  ;;  %v730_v37 = vmul.f32 %v3401_v35, %v648_v21  ;;  %v571_v38 = vpop.xlane.xlu0 %570  ;;  %v650_v39 = vpop.xlane.xlu2 %649  ;;  %vm735_vm5 = vweird.f32 %v3401_v35 }
 0x1ec   : > { %v727_v40 = vsel %vm724_vm4, %v726_v36, %v722_v61  ;;  %v588_v41 = vsub.f32 %v3677_v3, %v571_v38  ;;  %3404 = vrcp.f32 %v650_v39  ;;  %v573_v42 = vpop.xlane.xlu1 %572  ;;  %vm736_vm8 = vmor %vm734_vm7, %vm735_vm5  ;;  %v755_v10 = vand.u32 2147483648, %v650_v39 }
 0x1ed   : > { %v3737_v46 = vmul.f32 %v727_v40, %v3673_v2  ;;  %v731_v47 = vsub.f32 1.0, %v730_v37  ;;  %v589_v51 = vsub.f32 %v3684_v11, %v573_v42  ;;  %v753_v54 = vand.u32 2147483647, %v650_v39 }
 0x1ee   : > { %v615_v50 = vmul.f32 1.442695, %v588_v41  ;;  %v3403_v52 = vpop.eup %3402  ;;  %vm749_vm12 = vweird.f32 %v650_v39  ;;  %v756_v21 = vor.u32 1.1754944e-38, %v755_v10 }
 0x1ef   : > { %v732_v53 = vmul.f32 %v3401_v35, %v731_v47  ;;  %vm897_vm6 = vcmp.lt.f32.partialorder %v3737_v46, inf  ;;  %v617_v48 = vmul.f32 1.442695, %v589_v51  ;;  %v3743_v57 = vmul.f32 %v3403_v52, %v3648_v43 }
 0x1f0   : > { %3406 = vpow2.f32 %v615_v50  ;;  %v912_v3 = vsel %vm897_vm6, %v3737_v46, -1.0  ;;  %vm754_vm14 = vcmp.eq.f32.partialorder %v753_v54, 8.507059e+37 }
 0x1f1   : > { %v733_v2 = vadd.f32 %v3401_v35, %v732_v53  ;;  %930 = vmax.xlane.f32.xlu2 %v912_v3  ;;  %3408 = vpow2.f32 %v617_v48  ;;  %661 = vadd.xlane.f32.xlu0 %v3743_v57 }
 0x1f2   : > { %v3405_v58 = vpop.eup %3404 }
 0x1f3   : > { %v737_v11 = vsel %vm736_vm8, %v3401_v35, %v733_v2  ;;  %v745_v62 = vmul.f32 %v3405_v58, %v650_v39  ;;  %v575_v63 = vpop.xlane.xlu0 %574  ;;  %v652_v0 = vpop.xlane.xlu2 %651  ;;  %vm750_vm10 = vweird.f32 %v3405_v58 }
 0x1f4   : > { %v742_v1 = vsel %vm739_vm9, %v741_v59, %v737_v11  ;;  %v590_v5 = vsub.f32 %v3693_v19, %v575_v63  ;;  %3410 = vrcp.f32 %v652_v0  ;;  %vm751_vm13 = vmor %vm749_vm12, %vm750_vm10  ;;  %v768_v31 = vand.u32 2147483647, %v652_v0 }
 0x1f5   : > { %v3748_v6 = vmul.f32 %v742_v1, %v3680_v8  ;;  %v746_v7 = vsub.f32 1.0, %v745_v62  ;;  %v770_v32 = vand.u32 2147483648, %v652_v0  ;;  %vm764_vm2 = vweird.f32 %v652_v0 }
 0x1f6   : > { %v3407_v9 = vpop.eup %3406  ;;  %v619_v12 = vmul.f32 1.442695, %v590_v5  ;;  %vm769_vm4 = vcmp.eq.f32.partialorder %v768_v31, 8.507059e+37 }
 0x1f7   : > { %v747_v15 = vmul.f32 %v3405_v58, %v746_v7  ;;  %vm898_vm11 = vcmp.lt.f32.partialorder %v3748_v6, inf  ;;  %v3409_v55 = vpop.eup %3408  ;;  %v3753_v17 = vmul.f32 %v3407_v9, %v3648_v43 }
 0x1f8   : > { %3412 = vpow2.f32 %v619_v12  ;;  %v913_v16 = vsel %vm898_vm11, %v3748_v6, -1.0  ;;  %v3756_v8 = vmul.f32 %v3409_v55, %v3648_v43 }
 0x1f9   : > { %v748_v19 = vadd.f32 %v3405_v58, %v747_v15  ;;  %932 = vmax.xlane.f32.xlu1 %v913_v16  ;;  %663 = vadd.xlane.f32.xlu2 %v3753_v17 }
 0x1fa   : > { %v3411_v18 = vpop.eup %3410  ;;  %665 = vadd.xlane.f32.xlu0 %v3756_v8 }
 0x1fb   : > { %v752_v23 = vsel %vm751_vm13, %v3405_v58, %v748_v19  ;;  %v760_v24 = vmul.f32 %v3411_v18, %v652_v0  ;;  %v654_v26 = vpop.xlane.xlu1 %653  ;;  %vm765_vm15 = vweird.f32 %v3411_v18 }
 0x1fc   : > { %v757_v27 = vsel %vm754_vm14, %v756_v21, %v752_v23  ;;  %3414 = vrcp.f32 %v654_v26  ;;  %vm766_vm3 = vmor %vm764_vm2, %vm765_vm15  ;;  %v783_v47 = vand.u32 2147483647, %v654_v26  ;;  %vm779_vm7 = vweird.f32 %v654_v26 }
 0x1fd   : > { %v3761_v28 = vmul.f32 %v757_v27, %v3687_v14  ;;  %v761_v29 = vsub.f32 1.0, %v760_v24  ;;  %v771_v14 = vor.u32 1.1754944e-38, %v770_v32 }
 0x1fe   : > { %v3413_v30 = vpop.eup %3412  ;;  %vm784_vm9 = vcmp.eq.f32.partialorder %v783_v47, 8.507059e+37 }
 0x1ff   : > { %v762_v34 = vmul.f32 %v3411_v18, %v761_v29  ;;  %vm899_vm1 = vcmp.lt.f32.partialorder %v3761_v28, inf  ;;  %v3765_v60 = vmul.f32 %v3413_v30, %v3648_v43  ;;  %v785_v43 = vand.u32 2147483648, %v654_v26 }
 0x200   : > { %v914_v35 = vsel %vm899_vm1, %v3761_v28, -1.0 }
 0x201   : > { %v763_v36 = vadd.f32 %v3411_v18, %v762_v34  ;;  %934 = vmax.xlane.f32.xlu1 %v914_v35  ;;  %v786_v51 = vor.u32 1.1754944e-38, %v785_v43 }
 0x202   : > { %v3415_v61 = vpop.eup %3414  ;;  %667 = vadd.xlane.f32.xlu0 %v3765_v60 }
 0x203   : > { %v767_v37 = vsel %vm766_vm3, %v3411_v18, %v763_v36  ;;  %v775_v38 = vmul.f32 %v3415_v61, %v654_v26  ;;  %vm780_vm5 = vweird.f32 %v3415_v61 }
 0x204   : > { %v772_v39 = vsel %vm769_vm4, %v771_v14, %v767_v37  ;;  %vm781_vm8 = vmor %vm779_vm7, %vm780_vm5 }
 0x205   : > { %v3770_v40 = vmul.f32 %v772_v39, %v3696_v20  ;;  %v776_v41 = vsub.f32 1.0, %v775_v38 }
 0x207   : > { %v777_v42 = vmul.f32 %v3415_v61, %v776_v41  ;;  %vm900_vm6 = vcmp.lt.f32.partialorder %v3770_v40, inf }
 0x208   : > { %v915_v49 = vsel %vm900_vm6, %v3770_v40, -1.0 }
 0x209   : > { %v778_v50 = vadd.f32 %v3415_v61, %v777_v42  ;;  %936 = vmax.xlane.f32.xlu1 %v915_v49 }
 0x20b   : > { %v782_v52 = vsel %vm781_vm8, %v3415_v61, %v778_v50 }
 0x20c   : > { %v787_v53 = vsel %vm784_vm9, %v786_v51, %v782_v52 }
 0x20d   : > { %v3775_v20 = vmul.f32 %v787_v53, %v3701_v22 }
 0x20f   : > { %vm901_vm10 = vcmp.lt.f32.partialorder %v3775_v20, inf }
 0x210   : > { %v916_v45 = vsel %vm901_vm10, %v3775_v20, -1.0 }
 0x211   : > { %938 = vmax.xlane.f32.xlu0 %v916_v45 }
 0x24c   : > { %v925_v48 = vpop.xlane.xlu2 %924  ;;  %v656_v3 = vpop.xlane.xlu0 %655 }
 0x24d   : > { %vm954_vm11 = vcmp.lt.f32.partialorder %v3707_v44, %v925_v48  ;;  %3416 = vrcp.f32 %v656_v3  ;;  %v800_v0 = vand.u32 2147483648, %v656_v3  ;;  %v798_v5 = vand.u32 2147483647, %v656_v3 }
 0x24e   : > { %v969_v2 = vsel %vm954_vm11, %v3707_v44, -1.0  ;;  %vm794_vm14 = vweird.f32 %v656_v3 }
 0x24f   : > { %984 = vmax.xlane.f32.xlu2 %v969_v2  ;;  %v801_v10 = vor.u32 1.1754944e-38, %v800_v0  ;;  %vm799_vm1 = vcmp.eq.f32.partialorder %v798_v5, 8.507059e+37 }
 0x253   : > { %v3417_v58 = vpop.eup %3416 }
 0x254   : > { %v658_v59 = vpop.xlane.xlu2 %657  ;;  %v790_v11 = vmul.f32 %v3417_v58, %v656_v3  ;;  %v927_v62 = vpop.xlane.xlu1 %926  ;;  %vm795_vm13 = vweird.f32 %v3417_v58 }
 0x255   : > { %3418 = vrcp.f32 %v658_v59  ;;  %vm955_vm12 = vcmp.lt.f32.partialorder %v3717_v4, %v927_v62  ;;  %vm796_vm15 = vmor %vm794_vm14, %vm795_vm13  ;;  %v815_v21 = vand.u32 2147483648, %v658_v59  ;;  %v813_v24 = vand.u32 2147483647, %v658_v59 }
 0x256   : > { %v791_v22 = vsub.f32 1.0, %v790_v11  ;;  %v970_v63 = vsel %vm955_vm12, %v3717_v4, -1.0  ;;  %vm809_vm5 = vweird.f32 %v658_v59 }
 0x257   : > { %986 = vmax.xlane.f32.xlu2 %v970_v63  ;;  %v816_v30 = vor.u32 1.1754944e-38, %v815_v21  ;;  %vm814_vm7 = vcmp.eq.f32.partialorder %v813_v24, 8.507059e+37 }
 0x258   : > { %v792_v1 = vmul.f32 %v3417_v58, %v791_v22 }
 0x25a   : > { %v793_v9 = vadd.f32 %v3417_v58, %v792_v1 }
 0x25b   : > { %v3419_v7 = vpop.eup %3418 }
 0x25c   : > { %v805_v12 = vmul.f32 %v3419_v7, %v658_v59  ;;  %v797_v15 = vsel %vm796_vm15, %v3417_v58, %v793_v9  ;;  %v929_v54 = vpop.xlane.xlu0 %928  ;;  %v660_v55 = vpop.xlane.xlu1 %659  ;;  %vm810_vm3 = vweird.f32 %v3419_v7 }
 0x25d   : > { %v802_v16 = vsel %vm799_vm1, %v801_v10, %v797_v15  ;;  %3420 = vrcp.f32 %v660_v55  ;;  %vm956_vm2 = vcmp.lt.f32.partialorder %v3726_v25, %v929_v54  ;;  %vm811_vm6 = vmor %vm809_vm5, %vm810_vm3  ;;  %v830_v38 = vand.u32 2147483648, %v660_v55 }
 0x25e   : > { %v806_v19 = vsub.f32 1.0, %v805_v12  ;;  %v3784_v18 = vmul.f32 %v802_v16, %v3712_v56  ;;  %v971_v26 = vsel %vm956_vm2, %v3726_v25, -1.0  ;;  %v828_v41 = vand.u32 2147483647, %v660_v55 }
 0x25f   : > { %988 = vmax.xlane.f32.xlu1 %v971_v26  ;;  %vm824_vm11 = vweird.f32 %v660_v55 }
 0x260   : > { %v807_v23 = vmul.f32 %v3419_v7, %v806_v19  ;;  %vm902_vm4 = vcmp.lt.f32.partialorder %v3784_v18, inf  ;;  %vm829_vm13 = vcmp.eq.f32.partialorder %v828_v41, 8.507059e+37 }
 0x261   : > { %v917_v29 = vsel %vm902_vm4, %v3784_v18, -1.0 }
 0x262   : > { %v808_v27 = vadd.f32 %v3419_v7, %v807_v23  ;;  %940 = vmax.xlane.f32.xlu2 %v917_v29 }
 0x263   : > { %v3421_v56 = vpop.eup %3420 }
 0x264   : > { %v812_v31 = vsel %vm811_vm6, %v3419_v7, %v808_v27  ;;  %v931_v32 = vpop.xlane.xlu2 %930  ;;  %v820_v35 = vmul.f32 %v3421_v56, %v660_v55  ;;  %v662_v36 = vpop.xlane.xlu0 %661  ;;  %vm825_vm10 = vweird.f32 %v3421_v56 }
 0x265   : > { %v817_v34 = vsel %vm814_vm7, %v816_v30, %v812_v31  ;;  %vm957_vm8 = vcmp.lt.f32.partialorder %v3737_v46, %v931_v32  ;;  %3422 = vrcp.f32 %v662_v36  ;;  %vm826_vm12 = vmor %vm824_vm11, %vm825_vm10  ;;  %v843_v2 = vand.u32 2147483647, %v662_v36 }
 0x266   : > { %v3792_v61 = vmul.f32 %v817_v34, %v3720_v13  ;;  %v821_v14 = vsub.f32 1.0, %v820_v35  ;;  %v972_v37 = vsel %vm957_vm8, %v3737_v46, -1.0  ;;  %v831_v13 = vor.u32 1.1754944e-38, %v830_v38 }
 0x267   : > { %990 = vmax.xlane.f32.xlu0 %v972_v37  ;;  %v845_v58 = vand.u32 2147483648, %v662_v36  ;;  %vm839_vm2 = vweird.f32 %v662_v36  ;;  %vm844_vm4 = vcmp.eq.f32.partialorder %v843_v2, 8.507059e+37 }
 0x268   : > { %vm903_vm9 = vcmp.lt.f32.partialorder %v3792_v61, inf  ;;  %v822_v39 = vmul.f32 %v3421_v56, %v821_v14 }
 0x269   : > { %v918_v43 = vsel %vm903_vm9, %v3792_v61, -1.0 }
 0x26a   : > { %942 = vmax.xlane.f32.xlu1 %v918_v43  ;;  %v823_v42 = vadd.f32 %v3421_v56, %v822_v39 }
 0x26b   : > { %v3423_v47 = vpop.eup %3422 }
 0x26c   : > { %v933_v49 = vpop.xlane.xlu1 %932  ;;  %v827_v50 = vsel %vm826_vm12, %v3421_v56, %v823_v42  ;;  %v835_v51 = vmul.f32 %v3423_v47, %v662_v36  ;;  %v664_v52 = vpop.xlane.xlu2 %663  ;;  %vm840_vm15 = vweird.f32 %v3423_v47 }
 0x26d   : > { %v832_v53 = vsel %vm829_vm13, %v831_v13, %v827_v50  ;;  %3424 = vrcp.f32 %v664_v52  ;;  %v666_v45 = vpop.xlane.xlu0 %665  ;;  %vm958_vm14 = vcmp.lt.f32.partialorder %v3748_v6, %v933_v49  ;;  %vm841_vm3 = vmor %vm839_vm2, %vm840_vm15  ;;  %v858_v16 = vand.u32 2147483647, %v664_v52 }
 0x26e   : > { %v3799_v48 = vmul.f32 %v832_v53, %v3730_v33  ;;  %v836_v3 = vsub.f32 1.0, %v835_v51  ;;  %3426 = vrcp.f32 %v666_v45  ;;  %v973_v11 = vsel %vm958_vm14, %v3748_v6, -1.0 }
 0x26f   : > { %992 = vmax.xlane.f32.xlu2 %v973_v11  ;;  %v846_v33 = vor.u32 1.1754944e-38, %v845_v58  ;;  %v860_v19 = vand.u32 2147483648, %v664_v52  ;;  %v875_v24 = vand.u32 2147483648, %v666_v45  ;;  %v873_v27 = vand.u32 2147483647, %v666_v45 }
 0x270   : > { %v837_v59 = vmul.f32 %v3423_v47, %v836_v3  ;;  %vm904_vm1 = vcmp.lt.f32.partialorder %v3799_v48, inf  ;;  %vm854_vm9 = vweird.f32 %v664_v52  ;;  %vm869_vm11 = vweird.f32 %v666_v45 }
 0x271   : > { %v919_v62 = vsel %vm904_vm1, %v3799_v48, -1.0  ;;  %vm859_vm12 = vcmp.eq.f32.partialorder %v858_v16, 8.507059e+37  ;;  %v876_v35 = vor.u32 1.1754944e-38, %v875_v24  ;;  %vm874_vm15 = vcmp.eq.f32.partialorder %v873_v27, 8.507059e+37 }
 0x272   : > { %v838_v22 = vadd.f32 %v3423_v47, %v837_v59  ;;  %944 = vmax.xlane.f32.xlu0 %v919_v62 }
 0x273   : > { %v3425_v63 = vpop.eup %3424 }
 0x274   : > { %v935_v0 = vpop.xlane.xlu1 %934  ;;  %v3427_v1 = vpop.eup %3426  ;;  %v842_v5 = vsel %vm841_vm3, %v3423_v47, %v838_v22  ;;  %v850_v7 = vmul.f32 %v3425_v63, %v664_v52  ;;  %vm855_vm6 = vweird.f32 %v3425_v63 }
 0x275   : > { %vm959_vm5 = vcmp.lt.f32.partialorder %v3761_v28, %v935_v0  ;;  %v847_v9 = vsel %vm844_vm4, %v846_v33, %v842_v5  ;;  %v865_v10 = vmul.f32 %v3427_v1, %v666_v45  ;;  %v668_v12 = vpop.xlane.xlu0 %667  ;;  %vm870_vm8 = vweird.f32 %v3427_v1  ;;  %vm856_vm10 = vmor %vm854_vm9, %vm855_vm6 }
 0x276   : > { %v974_v15 = vsel %vm959_vm5, %v3761_v28, -1.0  ;;  %v3807_v54 = vmul.f32 %v847_v9, %v3743_v57  ;;  %v851_v55 = vsub.f32 1.0, %v850_v7  ;;  %3428 = vrcp.f32 %v668_v12  ;;  %vm871_vm13 = vmor %vm869_vm11, %vm870_vm8 }
 0x277   : > { %994 = vmax.xlane.f32.xlu1 %v974_v15  ;;  %v866_v21 = vsub.f32 1.0, %v865_v10  ;;  %v861_v57 = vor.u32 1.1754944e-38, %v860_v19  ;;  %v890_v47 = vand.u32 2147483648, %v668_v12  ;;  %v888_v49 = vand.u32 2147483647, %v668_v12 }
 0x278   : > { %v852_v23 = vmul.f32 %v3425_v63, %v851_v55  ;;  %vm905_vm7 = vcmp.lt.f32.partialorder %v3807_v54, inf  ;;  %vm884_vm3 = vweird.f32 %v668_v12 }
 0x279   : > { %v867_v26 = vmul.f32 %v3427_v1, %v866_v21  ;;  %v920_v29 = vsel %vm905_vm7, %v3807_v54, -1.0  ;;  %vm889_vm6 = vcmp.eq.f32.partialorder %v888_v49, 8.507059e+37 }
 0x27a   : > { %v853_v30 = vadd.f32 %v3425_v63, %v852_v23  ;;  %946 = vmax.xlane.f32.xlu0 %v920_v29 }
 0x27b   : > { %v868_v56 = vadd.f32 %v3427_v1, %v867_v26 }
 0x27c   : > { %v937_v31 = vpop.xlane.xlu1 %936  ;;  %v3429_v32 = vpop.eup %3428  ;;  %v857_v34 = vsel %vm856_vm10, %v3425_v63, %v853_v30 }
 0x27d   : > { %vm960_vm14 = vcmp.lt.f32.partialorder %v3770_v40, %v937_v31  ;;  %v862_v36 = vsel %vm859_vm12, %v861_v57, %v857_v34  ;;  %v872_v14 = vsel %vm871_vm13, %v3427_v1, %v868_v56  ;;  %v880_v37 = vmul.f32 %v3429_v32, %v668_v12 }
 0x27e   : > { %v3813_v38 = vmul.f32 %v862_v36, %v3753_v17  ;;  %v877_v39 = vsel %vm874_vm15, %v876_v35, %v872_v14  ;;  %v975_v41 = vsel %vm960_vm14, %v3770_v40, -1.0  ;;  %vm885_vm2 = vweird.f32 %v3429_v32 }
 0x27f   : > { %v3817_v43 = vmul.f32 %v877_v39, %v3756_v8  ;;  %v881_v42 = vsub.f32 1.0, %v880_v37  ;;  %996 = vmax.xlane.f32.xlu1 %v975_v41  ;;  %vm886_vm5 = vmor %vm884_vm3, %vm885_vm2  ;;  %v891_v17 = vor.u32 1.1754944e-38, %v890_v47 }
 0x280   : > { %vm906_vm1 = vcmp.lt.f32.partialorder %v3813_v38, inf }
 0x281   : > { %v882_v13 = vmul.f32 %v3429_v32, %v881_v42  ;;  %v921_v50 = vsel %vm906_vm1, %v3813_v38, -1.0  ;;  %vm907_vm4 = vcmp.lt.f32.partialorder %v3817_v43, inf }
 0x282   : > { %948 = vmax.xlane.f32.xlu0 %v921_v50  ;;  %v922_v53 = vsel %vm907_vm4, %v3817_v43, -1.0 }
 0x283   : > { %v883_v51 = vadd.f32 %v3429_v32, %v882_v13 }
 0x285   : > { %v887_v52 = vsel %vm886_vm5, %v3429_v32, %v883_v51 }
 0x286   : > { %v892_v8 = vsel %vm889_vm6, %v891_v17, %v887_v52 }
 0x287   : > { %v3824_v45 = vmul.f32 %v892_v8, %v3765_v60  ;;  %950 = vmax.xlane.f32.xlu1 %v922_v53  ;;  %v939_v60 = vpop.xlane.xlu0 %938 }
 0x288   : > { %vm961_vm10 = vcmp.lt.f32.partialorder %v3775_v20, %v939_v60 }
 0x289   : > { %vm908_vm7 = vcmp.lt.f32.partialorder %v3824_v45, inf  ;;  %v976_v22 = vsel %vm961_vm10, %v3775_v20, -1.0 }
 0x28a   : > { %v923_v3 = vsel %vm908_vm7, %v3824_v45, -1.0 }
 0x28f   : > { %952 = vmax.xlane.f32.xlu1 %v923_v3 }
 0x2c2   : > { %v985_v2 = vpop.xlane.xlu2 %984 }
 0x2c3   : > { %vm1014_vm8 = vcmp.lt.f32.partialorder %v3707_v44, %v985_v2 }
 0x2c4   : > { %v1029_v58 = vsel %vm1014_vm8, %v3707_v44, -1.0 }
 0x2c5   : > { %1044 = vmax.xlane.f32.xlu2 %v1029_v58 }
 0x2ca   : > { %v987_v59 = vpop.xlane.xlu2 %986 }
 0x2cb   : > { %vm1015_vm9 = vcmp.lt.f32.partialorder %v3717_v4, %v987_v59 }
 0x2cc   : > { %v1030_v11 = vsel %vm1015_vm9, %v3717_v4, -1.0 }
 0x2cd   : > { %1046 = vmax.xlane.f32.xlu2 %v1030_v11 }
 0x2d2   : > { %v989_v62 = vpop.xlane.xlu1 %988 }
 0x2d3   : > { %vm1016_vm11 = vcmp.lt.f32.partialorder %v3726_v25, %v989_v62 }
 0x2d4   : > { %v1031_v63 = vsel %vm1016_vm11, %v3726_v25, -1.0 }
 0x2d5   : > { %998 = vmax.xlane.f32.xlu2 %v976_v22  ;;  %v941_v33 = vpop.xlane.xlu2 %940  ;;  %1048 = vmax.xlane.f32.xlu0 %v1031_v63 }
 0x2d6   : > { %vm962_vm12 = vcmp.lt.f32.partialorder %v3784_v18, %v941_v33 }
 0x2d7   : > { %v977_v1 = vsel %vm962_vm12, %v3784_v18, -1.0 }
 0x2da   : > { %v991_v0 = vpop.xlane.xlu0 %990 }
 0x2db   : > { %vm1017_vm13 = vcmp.lt.f32.partialorder %v3737_v46, %v991_v0 }
 0x2dc   : > { %v1032_v5 = vsel %vm1017_vm13, %v3737_v46, -1.0 }
 0x2dd   : > { %v943_v7 = vpop.xlane.xlu1 %942  ;;  %1000 = vmax.xlane.f32.xlu2 %v977_v1  ;;  %1050 = vmax.xlane.f32.xlu0 %v1032_v5 }
 0x2de   : > { %vm963_vm14 = vcmp.lt.f32.partialorder %v3792_v61, %v943_v7 }
 0x2df   : > { %v978_v9 = vsel %vm963_vm14, %v3792_v61, -1.0 }
 0x2e0   : > { %1002 = vmax.xlane.f32.xlu1 %v978_v9 }
 0x2e2   : > { %v993_v10 = vpop.xlane.xlu2 %992 }
 0x2e3   : > { %vm1018_vm15 = vcmp.lt.f32.partialorder %v3748_v6, %v993_v10 }
 0x2e4   : > { %v1033_v15 = vsel %vm1018_vm15, %v3748_v6, -1.0 }
 0x2e5   : > { %v945_v12 = vpop.xlane.xlu0 %944  ;;  %1052 = vmax.xlane.f32.xlu2 %v1033_v15 }
 0x2e6   : > { %vm964_vm1 = vcmp.lt.f32.partialorder %v3799_v48, %v945_v12 }
 0x2e7   : > { %v979_v55 = vsel %vm964_vm1, %v3799_v48, -1.0 }
 0x2e8   : > { %1004 = vmax.xlane.f32.xlu0 %v979_v55 }
 0x2ea   : > { %v995_v16 = vpop.xlane.xlu1 %994 }
 0x2eb   : > { %vm1019_vm2 = vcmp.lt.f32.partialorder %v3761_v28, %v995_v16 }
 0x2ec   : > { %v1034_v19 = vsel %vm1019_vm2, %v3761_v28, -1.0 }
 0x2ed   : > { %1054 = vmax.xlane.f32.xlu1 %v1034_v19  ;;  %v947_v21 = vpop.xlane.xlu0 %946 }
 0x2ee   : > { %vm965_vm3 = vcmp.lt.f32.partialorder %v3807_v54, %v947_v21 }
 0x2ef   : > { %v980_v23 = vsel %vm965_vm3, %v3807_v54, -1.0 }
 0x2f0   : > { %1006 = vmax.xlane.f32.xlu0 %v980_v23 }
 0x2f2   : > { %v997_v24 = vpop.xlane.xlu1 %996 }
 0x2f3   : > { %vm1020_vm4 = vcmp.lt.f32.partialorder %v3770_v40, %v997_v24 }
 0x2f4   : > { %v1035_v26 = vsel %vm1020_vm4, %v3770_v40, -1.0 }
 0x2f5   : > { %v949_v27 = vpop.xlane.xlu0 %948  ;;  %1056 = vmax.xlane.f32.xlu1 %v1035_v26 }
 0x2f6   : > { %vm966_vm5 = vcmp.lt.f32.partialorder %v3813_v38, %v949_v27 }
 0x2f7   : > { %v981_v29 = vsel %vm966_vm5, %v3813_v38, -1.0 }
 0x2f8   : > { %1008 = vmax.xlane.f32.xlu0 %v981_v29 }
 0x2fa   : > { %v951_v30 = vpop.xlane.xlu1 %950 }
 0x2fb   : > { %vm967_vm6 = vcmp.lt.f32.partialorder %v3817_v43, %v951_v30 }
 0x2fc   : > { %v982_v57 = vsel %vm967_vm6, %v3817_v43, -1.0 }
 0x2fd   : > { %1010 = vmax.xlane.f32.xlu1 %v982_v57 }
 0x302   : > { %v953_v56 = vpop.xlane.xlu1 %952 }
 0x303   : > { %vm968_vm7 = vcmp.lt.f32.partialorder %v3824_v45, %v953_v56 }
 0x304   : > { %v983_v31 = vsel %vm968_vm7, %v3824_v45, -1.0 }
 0x305   : > { %1012 = vmax.xlane.f32.xlu1 %v983_v31 }
 0x338   : > { %v1045_v32 = vpop.xlane.xlu2 %1044 }
 0x339   : > { %vm1074_vm8 = vcmp.lt.f32.partialorder %v3707_v44, %v1045_v32 }
 0x33a   : > { %v1089_v34 = vsel %vm1074_vm8, %v3707_v44, -1.0 }
 0x33b   : > { %1104 = vmax.xlane.f32.xlu2 %v1089_v34 }
 0x340   : > { %v1047_v35 = vpop.xlane.xlu2 %1046 }
 0x341   : > { %vm1075_vm9 = vcmp.lt.f32.partialorder %v3717_v4, %v1047_v35 }
 0x342   : > { %v1090_v36 = vsel %vm1075_vm9, %v3717_v4, -1.0 }
 0x343   : > { %1106 = vmax.xlane.f32.xlu2 %v1090_v36 }
 0x348   : > { %v999_v14 = vpop.xlane.xlu2 %998  ;;  %v1049_v37 = vpop.xlane.xlu0 %1048 }
 0x349   : > { %vm1021_vm10 = vcmp.lt.f32.partialorder %v3775_v20, %v999_v14  ;;  %vm1076_vm11 = vcmp.lt.f32.partialorder %v3726_v25, %v1049_v37 }
 0x34a   : > { %v1036_v39 = vsel %vm1021_vm10, %v3775_v20, -1.0  ;;  %v1091_v41 = vsel %vm1076_vm11, %v3726_v25, -1.0 }
 0x34b   : > { %1058 = vmax.xlane.f32.xlu2 %v1036_v39  ;;  %1108 = vmax.xlane.f32.xlu0 %v1091_v41 }
 0x350   : > { %v1001_v42 = vpop.xlane.xlu2 %1000  ;;  %v1051_v47 = vpop.xlane.xlu0 %1050 }
 0x351   : > { %vm1022_vm12 = vcmp.lt.f32.partialorder %v3784_v18, %v1001_v42  ;;  %vm1077_vm13 = vcmp.lt.f32.partialorder %v3737_v46, %v1051_v47 }
 0x352   : > { %v1037_v13 = vsel %vm1022_vm12, %v3784_v18, -1.0  ;;  %v1092_v50 = vsel %vm1077_vm13, %v3737_v46, -1.0 }
 0x353   : > { %v1003_v49 = vpop.xlane.xlu1 %1002  ;;  %1060 = vmax.xlane.f32.xlu2 %v1037_v13  ;;  %1110 = vmax.xlane.f32.xlu0 %v1092_v50 }
 0x354   : > { %vm1023_vm14 = vcmp.lt.f32.partialorder %v3792_v61, %v1003_v49 }
 0x355   : > { %v1038_v51 = vsel %vm1023_vm14, %v3792_v61, -1.0 }
 0x356   : > { %1062 = vmax.xlane.f32.xlu1 %v1038_v51 }
 0x358   : > { %v1053_v17 = vpop.xlane.xlu2 %1052 }
 0x359   : > { %vm1078_vm15 = vcmp.lt.f32.partialorder %v3748_v6, %v1053_v17 }
 0x35a   : > { %v1093_v8 = vsel %vm1078_vm15, %v3748_v6, -1.0 }
 0x35b   : > { %v1005_v52 = vpop.xlane.xlu0 %1004  ;;  %1112 = vmax.xlane.f32.xlu2 %v1093_v8 }
 0x35c   : > { %vm1024_vm1 = vcmp.lt.f32.partialorder %v3799_v48, %v1005_v52 }
 0x35d   : > { %v1039_v53 = vsel %vm1024_vm1, %v3799_v48, -1.0 }
 0x35e   : > { %1064 = vmax.xlane.f32.xlu0 %v1039_v53 }
 0x360   : > { %v1055_v3 = vpop.xlane.xlu1 %1054 }
 0x361   : > { %vm1079_vm2 = vcmp.lt.f32.partialorder %v3761_v28, %v1055_v3 }
 0x362   : > { %v1094_v2 = vsel %vm1079_vm2, %v3761_v28, -1.0 }
 0x363   : > { %1114 = vmax.xlane.f32.xlu1 %v1094_v2  ;;  %v1007_v58 = vpop.xlane.xlu0 %1006 }
 0x364   : > { %vm1025_vm3 = vcmp.lt.f32.partialorder %v3807_v54, %v1007_v58 }
 0x365   : > { %v1040_v59 = vsel %vm1025_vm3, %v3807_v54, -1.0 }
 0x366   : > { %1066 = vmax.xlane.f32.xlu0 %v1040_v59 }
 0x368   : > { %v1057_v11 = vpop.xlane.xlu1 %1056 }
 0x369   : > { %vm1080_vm4 = vcmp.lt.f32.partialorder %v3770_v40, %v1057_v11 }
 0x36a   : > { %v1095_v60 = vsel %vm1080_vm4, %v3770_v40, -1.0 }
 0x36b   : > { %v1009_v62 = vpop.xlane.xlu0 %1008  ;;  %1116 = vmax.xlane.f32.xlu1 %v1095_v60 }
 0x36c   : > { %vm1026_vm5 = vcmp.lt.f32.partialorder %v3813_v38, %v1009_v62 }
 0x36d   : > { %v1041_v22 = vsel %vm1026_vm5, %v3813_v38, -1.0 }
 0x36e   : > { %1068 = vmax.xlane.f32.xlu0 %v1041_v22 }
 0x370   : > { %v1011_v63 = vpop.xlane.xlu1 %1010 }
 0x371   : > { %vm1027_vm6 = vcmp.lt.f32.partialorder %v3817_v43, %v1011_v63 }
 0x372   : > { %v1042_v33 = vsel %vm1027_vm6, %v3817_v43, -1.0 }
 0x373   : > { %1070 = vmax.xlane.f32.xlu1 %v1042_v33 }
 0x378   : > { %v1013_v0 = vpop.xlane.xlu1 %1012 }
 0x379   : > { %vm1028_vm7 = vcmp.lt.f32.partialorder %v3824_v45, %v1013_v0 }
 0x37a   : > { %v1043_v1 = vsel %vm1028_vm7, %v3824_v45, -1.0 }
 0x37b   : > { %1072 = vmax.xlane.f32.xlu1 %v1043_v1 }
 0x3ae   : > { %v1105_v5 = vpop.xlane.xlu2 %1104 }
 0x3af   : > { %vm1134_vm8 = vcmp.lt.f32.partialorder %v3707_v44, %v1105_v5 }
 0x3b0   : > { %v1149_v7 = vsel %vm1134_vm8, %v3707_v44, -1.0 }
 0x3b1   : > { %1164 = vmax.xlane.f32.xlu2 %v1149_v7 }
 0x3b6   : > { %v1107_v9 = vpop.xlane.xlu2 %1106 }
 0x3b7   : > { %vm1135_vm9 = vcmp.lt.f32.partialorder %v3717_v4, %v1107_v9 }
 0x3b8   : > { %v1150_v10 = vsel %vm1135_vm9, %v3717_v4, -1.0 }
 0x3b9   : > { %1166 = vmax.xlane.f32.xlu2 %v1150_v10 }
 0x3be   : > { %v1059_v12 = vpop.xlane.xlu2 %1058  ;;  %v1109_v15 = vpop.xlane.xlu0 %1108 }
 0x3bf   : > { %vm1081_vm10 = vcmp.lt.f32.partialorder %v3775_v20, %v1059_v12  ;;  %vm1136_vm11 = vcmp.lt.f32.partialorder %v3726_v25, %v1109_v15 }
 0x3c0   : > { %v1096_v55 = vsel %vm1081_vm10, %v3775_v20, -1.0  ;;  %v1151_v16 = vsel %vm1136_vm11, %v3726_v25, -1.0 }
 0x3c1   : > { %1118 = vmax.xlane.f32.xlu2 %v1096_v55  ;;  %1168 = vmax.xlane.f32.xlu0 %v1151_v16 }
 0x3c6   : > { %v1061_v19 = vpop.xlane.xlu2 %1060  ;;  %v1111_v21 = vpop.xlane.xlu0 %1110 }
 0x3c7   : > { %vm1082_vm12 = vcmp.lt.f32.partialorder %v3784_v18, %v1061_v19  ;;  %vm1137_vm13 = vcmp.lt.f32.partialorder %v3737_v46, %v1111_v21 }
 0x3c8   : > { %v1097_v23 = vsel %vm1082_vm12, %v3784_v18, -1.0  ;;  %v1152_v26 = vsel %vm1137_vm13, %v3737_v46, -1.0 }
 0x3c9   : > { %v1063_v24 = vpop.xlane.xlu1 %1062  ;;  %1120 = vmax.xlane.f32.xlu2 %v1097_v23  ;;  %1170 = vmax.xlane.f32.xlu0 %v1152_v26 }
 0x3ca   : > { %vm1083_vm14 = vcmp.lt.f32.partialorder %v3792_v61, %v1063_v24 }
 0x3cb   : > { %v1098_v27 = vsel %vm1083_vm14, %v3792_v61, -1.0 }
 0x3cc   : > { %1122 = vmax.xlane.f32.xlu1 %v1098_v27 }
 0x3ce   : > { %v1113_v29 = vpop.xlane.xlu2 %1112 }
 0x3cf   : > { %vm1138_vm15 = vcmp.lt.f32.partialorder %v3748_v6, %v1113_v29 }
 0x3d0   : > { %v1153_v57 = vsel %vm1138_vm15, %v3748_v6, -1.0 }
 0x3d1   : > { %v1065_v30 = vpop.xlane.xlu0 %1064  ;;  %1172 = vmax.xlane.f32.xlu2 %v1153_v57 }
 0x3d2   : > { %vm1084_vm1 = vcmp.lt.f32.partialorder %v3799_v48, %v1065_v30 }
 0x3d3   : > { %v1099_v56 = vsel %vm1084_vm1, %v3799_v48, -1.0 }
 0x3d4   : > { %1124 = vmax.xlane.f32.xlu0 %v1099_v56 }
 0x3d6   : > { %v1115_v31 = vpop.xlane.xlu1 %1114 }
 0x3d7   : > { %vm1139_vm2 = vcmp.lt.f32.partialorder %v3761_v28, %v1115_v31 }
 0x3d8   : > { %v1154_v32 = vsel %vm1139_vm2, %v3761_v28, -1.0 }
 0x3d9   : > { %1174 = vmax.xlane.f32.xlu1 %v1154_v32  ;;  %v1067_v34 = vpop.xlane.xlu0 %1066 }
 0x3da   : > { %vm1085_vm3 = vcmp.lt.f32.partialorder %v3807_v54, %v1067_v34 }
 0x3db   : > { %v1100_v35 = vsel %vm1085_vm3, %v3807_v54, -1.0 }
 0x3dc   : > { %1126 = vmax.xlane.f32.xlu0 %v1100_v35 }
 0x3de   : > { %v1117_v36 = vpop.xlane.xlu1 %1116 }
 0x3df   : > { %vm1140_vm4 = vcmp.lt.f32.partialorder %v3770_v40, %v1117_v36 }
 0x3e0   : > { %v1155_v14 = vsel %vm1140_vm4, %v3770_v40, -1.0 }
 0x3e1   : > { %v1069_v37 = vpop.xlane.xlu0 %1068  ;;  %1176 = vmax.xlane.f32.xlu1 %v1155_v14 }
 0x3e2   : > { %vm1086_vm5 = vcmp.lt.f32.partialorder %v3813_v38, %v1069_v37 }
 0x3e3   : > { %v1101_v39 = vsel %vm1086_vm5, %v3813_v38, -1.0 }
 0x3e4   : > { %1128 = vmax.xlane.f32.xlu0 %v1101_v39 }
 0x3e6   : > { %v1071_v41 = vpop.xlane.xlu1 %1070 }
 0x3e7   : > { %vm1087_vm6 = vcmp.lt.f32.partialorder %v3817_v43, %v1071_v41 }
 0x3e8   : > { %v1102_v42 = vsel %vm1087_vm6, %v3817_v43, -1.0 }
 0x3e9   : > { %1130 = vmax.xlane.f32.xlu1 %v1102_v42 }
 0x3ee   : > { %v1073_v47 = vpop.xlane.xlu1 %1072 }
 0x3ef   : > { %vm1088_vm7 = vcmp.lt.f32.partialorder %v3824_v45, %v1073_v47 }
 0x3f0   : > { %v1103_v13 = vsel %vm1088_vm7, %v3824_v45, -1.0 }
 0x3f1   : > { %1132 = vmax.xlane.f32.xlu1 %v1103_v13 }
 0x424   : > { %v1165_v49 = vpop.xlane.xlu2 %1164 }
 0x425   : > { %vm1194_vm8 = vcmp.lt.f32.partialorder %v3707_v44, %v1165_v49 }
 0x426   : > { %v1209_v50 = vsel %vm1194_vm8, %v3707_v44, -1.0 }
 0x427   : > { %1224 = vmax.xlane.f32.xlu2 %v1209_v50 }
 0x42c   : > { %v1167_v51 = vpop.xlane.xlu2 %1166 }
 0x42d   : > { %vm1195_vm9 = vcmp.lt.f32.partialorder %v3717_v4, %v1167_v51 }
 0x42e   : > { %v1210_v17 = vsel %vm1195_vm9, %v3717_v4, -1.0 }
 0x42f   : > { %1226 = vmax.xlane.f32.xlu2 %v1210_v17 }
 0x434   : > { %v1119_v52 = vpop.xlane.xlu2 %1118  ;;  %v1169_v8 = vpop.xlane.xlu0 %1168 }
 0x435   : > { %vm1141_vm10 = vcmp.lt.f32.partialorder %v3775_v20, %v1119_v52  ;;  %vm1196_vm11 = vcmp.lt.f32.partialorder %v3726_v25, %v1169_v8 }
 0x436   : > { %v1156_v53 = vsel %vm1141_vm10, %v3775_v20, -1.0  ;;  %v1211_v3 = vsel %vm1196_vm11, %v3726_v25, -1.0 }
 0x437   : > { %1178 = vmax.xlane.f32.xlu2 %v1156_v53  ;;  %1228 = vmax.xlane.f32.xlu0 %v1211_v3 }
 0x43c   : > { %v1121_v2 = vpop.xlane.xlu2 %1120  ;;  %v1171_v58 = vpop.xlane.xlu0 %1170 }
 0x43d   : > { %vm1142_vm12 = vcmp.lt.f32.partialorder %v3784_v18, %v1121_v2  ;;  %vm1197_vm13 = vcmp.lt.f32.partialorder %v3737_v46, %v1171_v58 }
 0x43e   : > { %v1157_v59 = vsel %vm1142_vm12, %v3784_v18, -1.0  ;;  %v1212_v60 = vsel %vm1197_vm13, %v3737_v46, -1.0 }
 0x43f   : > { %v1123_v11 = vpop.xlane.xlu1 %1122  ;;  %1180 = vmax.xlane.f32.xlu2 %v1157_v59  ;;  %1230 = vmax.xlane.f32.xlu0 %v1212_v60 }
 0x440   : > { %vm1143_vm14 = vcmp.lt.f32.partialorder %v3792_v61, %v1123_v11 }
 0x441   : > { %v1158_v62 = vsel %vm1143_vm14, %v3792_v61, -1.0 }
 0x442   : > { %1182 = vmax.xlane.f32.xlu1 %v1158_v62 }
 0x444   : > { %v1173_v22 = vpop.xlane.xlu2 %1172 }
 0x445   : > { %vm1198_vm15 = vcmp.lt.f32.partialorder %v3748_v6, %v1173_v22 }
 0x446   : > { %v1213_v33 = vsel %vm1198_vm15, %v3748_v6, -1.0 }
 0x447   : > { %v1125_v63 = vpop.xlane.xlu0 %1124  ;;  %1232 = vmax.xlane.f32.xlu2 %v1213_v33 }
 0x448   : > { %vm1144_vm1 = vcmp.lt.f32.partialorder %v3799_v48, %v1125_v63 }
 0x449   : > { %v1159_v0 = vsel %vm1144_vm1, %v3799_v48, -1.0 }
 0x44a   : > { %1184 = vmax.xlane.f32.xlu0 %v1159_v0 }
 0x44c   : > { %v1175_v1 = vpop.xlane.xlu1 %1174 }
 0x44d   : > { %vm1199_vm2 = vcmp.lt.f32.partialorder %v3761_v28, %v1175_v1 }
 0x44e   : > { %v1214_v5 = vsel %vm1199_vm2, %v3761_v28, -1.0 }
 0x44f   : > { %1234 = vmax.xlane.f32.xlu1 %v1214_v5  ;;  %v1127_v7 = vpop.xlane.xlu0 %1126 }
 0x450   : > { %vm1145_vm3 = vcmp.lt.f32.partialorder %v3807_v54, %v1127_v7 }
 0x451   : > { %v1160_v9 = vsel %vm1145_vm3, %v3807_v54, -1.0 }
 0x452   : > { %1186 = vmax.xlane.f32.xlu0 %v1160_v9 }
 0x454   : > { %v1177_v10 = vpop.xlane.xlu1 %1176 }
 0x455   : > { %vm1200_vm4 = vcmp.lt.f32.partialorder %v3770_v40, %v1177_v10 }
 0x456   : > { %v1215_v12 = vsel %vm1200_vm4, %v3770_v40, -1.0 }
 0x457   : > { %v1129_v15 = vpop.xlane.xlu0 %1128  ;;  %1236 = vmax.xlane.f32.xlu1 %v1215_v12 }
 0x458   : > { %vm1146_vm5 = vcmp.lt.f32.partialorder %v3813_v38, %v1129_v15 }
 0x459   : > { %v1161_v55 = vsel %vm1146_vm5, %v3813_v38, -1.0 }
 0x45a   : > { %1188 = vmax.xlane.f32.xlu0 %v1161_v55 }
 0x45c   : > { %v1131_v16 = vpop.xlane.xlu1 %1130 }
 0x45d   : > { %vm1147_vm6 = vcmp.lt.f32.partialorder %v3817_v43, %v1131_v16 }
 0x45e   : > { %v1162_v19 = vsel %vm1147_vm6, %v3817_v43, -1.0 }
 0x45f   : > { %1190 = vmax.xlane.f32.xlu1 %v1162_v19 }
 0x464   : > { %v1133_v21 = vpop.xlane.xlu1 %1132 }
 0x465   : > { %vm1148_vm7 = vcmp.lt.f32.partialorder %v3824_v45, %v1133_v21 }
 0x466   : > { %v1163_v23 = vsel %vm1148_vm7, %v3824_v45, -1.0 }
 0x467   : > { %1192 = vmax.xlane.f32.xlu1 %v1163_v23 }
 0x49a   : > { %v1225_v24 = vpop.xlane.xlu2 %1224 }
 0x49b   : > { %vm1254_vm8 = vcmp.lt.f32.partialorder %v3707_v44, %v1225_v24 }
 0x49c   : > { %v1269_v26 = vsel %vm1254_vm8, %v3707_v44, -1.0 }
 0x49d   : > { %1284 = vmax.xlane.f32.xlu2 %v1269_v26 }
 0x4a2   : > { %v1227_v27 = vpop.xlane.xlu2 %1226 }
 0x4a3   : > { %vm1255_vm9 = vcmp.lt.f32.partialorder %v3717_v4, %v1227_v27 }
 0x4a4   : > { %v1270_v29 = vsel %vm1255_vm9, %v3717_v4, -1.0 }
 0x4a5   : > { %1286 = vmax.xlane.f32.xlu2 %v1270_v29 }
 0x4aa   : > { %v1179_v30 = vpop.xlane.xlu2 %1178  ;;  %v1229_v57 = vpop.xlane.xlu0 %1228 }
 0x4ab   : > { %vm1201_vm10 = vcmp.lt.f32.partialorder %v3775_v20, %v1179_v30  ;;  %vm1256_vm11 = vcmp.lt.f32.partialorder %v3726_v25, %v1229_v57 }
 0x4ac   : > { %v1216_v56 = vsel %vm1201_vm10, %v3775_v20, -1.0  ;;  %v1271_v31 = vsel %vm1256_vm11, %v3726_v25, -1.0 }
 0x4ad   : > { %1238 = vmax.xlane.f32.xlu2 %v1216_v56  ;;  %1288 = vmax.xlane.f32.xlu0 %v1271_v31 }
 0x4b2   : > { %v1181_v32 = vpop.xlane.xlu2 %1180  ;;  %v1231_v34 = vpop.xlane.xlu0 %1230 }
 0x4b3   : > { %vm1202_vm12 = vcmp.lt.f32.partialorder %v3784_v18, %v1181_v32  ;;  %vm1257_vm13 = vcmp.lt.f32.partialorder %v3737_v46, %v1231_v34 }
 0x4b4   : > { %v1217_v35 = vsel %vm1202_vm12, %v3784_v18, -1.0  ;;  %v1272_v14 = vsel %vm1257_vm13, %v3737_v46, -1.0 }
 0x4b5   : > { %v1183_v36 = vpop.xlane.xlu1 %1182  ;;  %1240 = vmax.xlane.f32.xlu2 %v1217_v35  ;;  %1290 = vmax.xlane.f32.xlu0 %v1272_v14 }
 0x4b6   : > { %vm1203_vm14 = vcmp.lt.f32.partialorder %v3792_v61, %v1183_v36 }
 0x4b7   : > { %v1218_v37 = vsel %vm1203_vm14, %v3792_v61, -1.0 }
 0x4b8   : > { %1242 = vmax.xlane.f32.xlu1 %v1218_v37 }
 0x4ba   : > { %v1233_v39 = vpop.xlane.xlu2 %1232 }
 0x4bb   : > { %vm1258_vm15 = vcmp.lt.f32.partialorder %v3748_v6, %v1233_v39 }
 0x4bc   : > { %v1273_v42 = vsel %vm1258_vm15, %v3748_v6, -1.0 }
 0x4bd   : > { %v1185_v41 = vpop.xlane.xlu0 %1184  ;;  %1292 = vmax.xlane.f32.xlu2 %v1273_v42 }
 0x4be   : > { %vm1204_vm1 = vcmp.lt.f32.partialorder %v3799_v48, %v1185_v41 }
 0x4bf   : > { %v1219_v47 = vsel %vm1204_vm1, %v3799_v48, -1.0 }
 0x4c0   : > { %1244 = vmax.xlane.f32.xlu0 %v1219_v47 }
 0x4c2   : > { %v1235_v13 = vpop.xlane.xlu1 %1234 }
 0x4c3   : > { %vm1259_vm2 = vcmp.lt.f32.partialorder %v3761_v28, %v1235_v13 }
 0x4c4   : > { %v1274_v49 = vsel %vm1259_vm2, %v3761_v28, -1.0 }
 0x4c5   : > { %1294 = vmax.xlane.f32.xlu1 %v1274_v49  ;;  %v1187_v50 = vpop.xlane.xlu0 %1186 }
 0x4c6   : > { %vm1205_vm3 = vcmp.lt.f32.partialorder %v3807_v54, %v1187_v50 }
 0x4c7   : > { %v1220_v51 = vsel %vm1205_vm3, %v3807_v54, -1.0 }
 0x4c8   : > { %1246 = vmax.xlane.f32.xlu0 %v1220_v51 }
 0x4ca   : > { %v1237_v17 = vpop.xlane.xlu1 %1236 }
 0x4cb   : > { %vm1260_vm4 = vcmp.lt.f32.partialorder %v3770_v40, %v1237_v17 }
 0x4cc   : > { %v1275_v52 = vsel %vm1260_vm4, %v3770_v40, -1.0 }
 0x4cd   : > { %v1189_v8 = vpop.xlane.xlu0 %1188  ;;  %1296 = vmax.xlane.f32.xlu1 %v1275_v52 }
 0x4ce   : > { %vm1206_vm5 = vcmp.lt.f32.partialorder %v3813_v38, %v1189_v8 }
 0x4cf   : > { %v1221_v53 = vsel %vm1206_vm5, %v3813_v38, -1.0 }
 0x4d0   : > { %1248 = vmax.xlane.f32.xlu0 %v1221_v53 }
 0x4d2   : > { %v1191_v3 = vpop.xlane.xlu1 %1190 }
 0x4d3   : > { %vm1207_vm6 = vcmp.lt.f32.partialorder %v3817_v43, %v1191_v3 }
 0x4d4   : > { %v1222_v2 = vsel %vm1207_vm6, %v3817_v43, -1.0 }
 0x4d5   : > { %1250 = vmax.xlane.f32.xlu1 %v1222_v2 }
 0x4da   : > { %v1193_v58 = vpop.xlane.xlu1 %1192 }
 0x4db   : > { %vm1208_vm7 = vcmp.lt.f32.partialorder %v3824_v45, %v1193_v58 }
 0x4dc   : > { %v1223_v59 = vsel %vm1208_vm7, %v3824_v45, -1.0 }
 0x4dd   : > { %1252 = vmax.xlane.f32.xlu1 %v1223_v59 }
 0x510   : > { %v1285_v11 = vpop.xlane.xlu2 %1284 }
 0x511   : > { %vm1314_vm8 = vcmp.lt.f32.partialorder %v3707_v44, %v1285_v11 }
 0x512   : > { %v1329_v60 = vsel %vm1314_vm8, %v3707_v44, -1.0 }
 0x513   : > { %1344 = vmax.xlane.f32.xlu2 %v1329_v60 }
 0x518   : > { %v1287_v62 = vpop.xlane.xlu2 %1286 }
 0x519   : > { %vm1315_vm9 = vcmp.lt.f32.partialorder %v3717_v4, %v1287_v62 }
 0x51a   : > { %v1330_v22 = vsel %vm1315_vm9, %v3717_v4, -1.0 }
 0x51b   : > { %1346 = vmax.xlane.f32.xlu2 %v1330_v22 }
 0x520   : > { %v1239_v63 = vpop.xlane.xlu2 %1238  ;;  %v1289_v33 = vpop.xlane.xlu0 %1288 }
 0x521   : > { %vm1261_vm10 = vcmp.lt.f32.partialorder %v3775_v20, %v1239_v63  ;;  %vm1316_vm11 = vcmp.lt.f32.partialorder %v3726_v25, %v1289_v33 }
 0x522   : > { %v1276_v0 = vsel %vm1261_vm10, %v3775_v20, -1.0  ;;  %v1331_v1 = vsel %vm1316_vm11, %v3726_v25, -1.0 }
 0x523   : > { %1298 = vmax.xlane.f32.xlu2 %v1276_v0  ;;  %1348 = vmax.xlane.f32.xlu0 %v1331_v1 }
 0x528   : > { %v1241_v5 = vpop.xlane.xlu2 %1240  ;;  %v1291_v7 = vpop.xlane.xlu0 %1290 }
 0x529   : > { %vm1262_vm12 = vcmp.lt.f32.partialorder %v3784_v18, %v1241_v5  ;;  %vm1317_vm13 = vcmp.lt.f32.partialorder %v3737_v46, %v1291_v7 }
 0x52a   : > { %v1277_v9 = vsel %vm1262_vm12, %v3784_v18, -1.0  ;;  %v1332_v12 = vsel %vm1317_vm13, %v3737_v46, -1.0 }
 0x52b   : > { %v1243_v10 = vpop.xlane.xlu1 %1242  ;;  %1300 = vmax.xlane.f32.xlu2 %v1277_v9  ;;  %1350 = vmax.xlane.f32.xlu0 %v1332_v12 }
 0x52c   : > { %vm1263_vm14 = vcmp.lt.f32.partialorder %v3792_v61, %v1243_v10 }
 0x52d   : > { %v1278_v15 = vsel %vm1263_vm14, %v3792_v61, -1.0 }
 0x52e   : > { %1302 = vmax.xlane.f32.xlu1 %v1278_v15 }
 0x530   : > { %v1293_v55 = vpop.xlane.xlu2 %1292 }
 0x531   : > { %vm1318_vm15 = vcmp.lt.f32.partialorder %v3748_v6, %v1293_v55 }
 0x532   : > { %v1333_v19 = vsel %vm1318_vm15, %v3748_v6, -1.0 }
 0x533   : > { %v1245_v16 = vpop.xlane.xlu0 %1244  ;;  %1352 = vmax.xlane.f32.xlu2 %v1333_v19 }
 0x534   : > { %vm1264_vm1 = vcmp.lt.f32.partialorder %v3799_v48, %v1245_v16 }
 0x535   : > { %v1279_v21 = vsel %vm1264_vm1, %v3799_v48, -1.0 }
 0x536   : > { %1304 = vmax.xlane.f32.xlu0 %v1279_v21 }
 0x538   : > { %v1295_v23 = vpop.xlane.xlu1 %1294 }
 0x539   : > { %vm1319_vm2 = vcmp.lt.f32.partialorder %v3761_v28, %v1295_v23 }
 0x53a   : > { %v1334_v24 = vsel %vm1319_vm2, %v3761_v28, -1.0 }
 0x53b   : > { %1354 = vmax.xlane.f32.xlu1 %v1334_v24  ;;  %v1247_v26 = vpop.xlane.xlu0 %1246 }
 0x53c   : > { %vm1265_vm3 = vcmp.lt.f32.partialorder %v3807_v54, %v1247_v26 }
 0x53d   : > { %v1280_v27 = vsel %vm1265_vm3, %v3807_v54, -1.0 }
 0x53e   : > { %1306 = vmax.xlane.f32.xlu0 %v1280_v27 }
 0x540   : > { %v1297_v29 = vpop.xlane.xlu1 %1296 }
 0x541   : > { %vm1320_vm4 = vcmp.lt.f32.partialorder %v3770_v40, %v1297_v29 }
 0x542   : > { %v1335_v30 = vsel %vm1320_vm4, %v3770_v40, -1.0 }
 0x543   : > { %v1249_v57 = vpop.xlane.xlu0 %1248  ;;  %1356 = vmax.xlane.f32.xlu1 %v1335_v30 }
 0x544   : > { %vm1266_vm5 = vcmp.lt.f32.partialorder %v3813_v38, %v1249_v57 }
 0x545   : > { %v1281_v56 = vsel %vm1266_vm5, %v3813_v38, -1.0 }
 0x546   : > { %1308 = vmax.xlane.f32.xlu0 %v1281_v56 }
 0x548   : > { %v1251_v31 = vpop.xlane.xlu1 %1250 }
 0x549   : > { %vm1267_vm6 = vcmp.lt.f32.partialorder %v3817_v43, %v1251_v31 }
 0x54a   : > { %v1282_v32 = vsel %vm1267_vm6, %v3817_v43, -1.0 }
 0x54b   : > { %1310 = vmax.xlane.f32.xlu1 %v1282_v32 }
 0x550   : > { %v1253_v34 = vpop.xlane.xlu1 %1252 }
 0x551   : > { %vm1268_vm7 = vcmp.lt.f32.partialorder %v3824_v45, %v1253_v34 }
 0x552   : > { %v1283_v35 = vsel %vm1268_vm7, %v3824_v45, -1.0 }
 0x553   : > { %1312 = vmax.xlane.f32.xlu1 %v1283_v35 }
 0x586   : > { %v1345_v36 = vpop.xlane.xlu2 %1344 }
 0x587   : > { %vm1374_vm8 = vcmp.lt.f32.partialorder %v3707_v44, %v1345_v36 }
 0x588   : > { %v1389_v14 = vsel %vm1374_vm8, %v3707_v44, -1.0 }
 0x589   : > { %1404 = vmax.xlane.f32.xlu2 %v1389_v14 }
 0x58e   : > { %v1347_v37 = vpop.xlane.xlu2 %1346 }
 0x58f   : > { %vm1375_vm9 = vcmp.lt.f32.partialorder %v3717_v4, %v1347_v37 }
 0x590   : > { %v1390_v39 = vsel %vm1375_vm9, %v3717_v4, -1.0 }
 0x591   : > { %1406 = vmax.xlane.f32.xlu2 %v1390_v39 }
 0x596   : > { %v1299_v41 = vpop.xlane.xlu2 %1298  ;;  %v1349_v42 = vpop.xlane.xlu0 %1348 }
 0x597   : > { %vm1321_vm10 = vcmp.lt.f32.partialorder %v3775_v20, %v1299_v41  ;;  %vm1376_vm11 = vcmp.lt.f32.partialorder %v3726_v25, %v1349_v42 }
 0x598   : > { %v1336_v47 = vsel %vm1321_vm10, %v3775_v20, -1.0  ;;  %v1391_v13 = vsel %vm1376_vm11, %v3726_v25, -1.0 }
 0x599   : > { %1358 = vmax.xlane.f32.xlu2 %v1336_v47  ;;  %1408 = vmax.xlane.f32.xlu0 %v1391_v13 }
 0x59e   : > { %v1301_v49 = vpop.xlane.xlu2 %1300  ;;  %v1351_v50 = vpop.xlane.xlu0 %1350 }
 0x59f   : > { %vm1322_vm12 = vcmp.lt.f32.partialorder %v3784_v18, %v1301_v49  ;;  %vm1377_vm13 = vcmp.lt.f32.partialorder %v3737_v46, %v1351_v50 }
 0x5a0   : > { %v1337_v51 = vsel %vm1322_vm12, %v3784_v18, -1.0  ;;  %v1392_v52 = vsel %vm1377_vm13, %v3737_v46, -1.0 }
 0x5a1   : > { %v1303_v17 = vpop.xlane.xlu1 %1302  ;;  %1360 = vmax.xlane.f32.xlu2 %v1337_v51  ;;  %1410 = vmax.xlane.f32.xlu0 %v1392_v52 }
 0x5a2   : > { %vm1323_vm14 = vcmp.lt.f32.partialorder %v3792_v61, %v1303_v17 }
 0x5a3   : > { %v1338_v8 = vsel %vm1323_vm14, %v3792_v61, -1.0 }
 0x5a4   : > { %1362 = vmax.xlane.f32.xlu1 %v1338_v8 }
 0x5a6   : > { %v1353_v53 = vpop.xlane.xlu2 %1352 }
 0x5a7   : > { %vm1378_vm15 = vcmp.lt.f32.partialorder %v3748_v6, %v1353_v53 }
 0x5a8   : > { %v1393_v2 = vsel %vm1378_vm15, %v3748_v6, -1.0 }
 0x5a9   : > { %v1305_v3 = vpop.xlane.xlu0 %1304  ;;  %1412 = vmax.xlane.f32.xlu2 %v1393_v2 }
 0x5aa   : > { %vm1324_vm1 = vcmp.lt.f32.partialorder %v3799_v48, %v1305_v3 }
 0x5ab   : > { %v1339_v58 = vsel %vm1324_vm1, %v3799_v48, -1.0 }
 0x5ac   : > { %1364 = vmax.xlane.f32.xlu0 %v1339_v58 }
 0x5ae   : > { %v1355_v59 = vpop.xlane.xlu1 %1354 }
 0x5af   : > { %vm1379_vm2 = vcmp.lt.f32.partialorder %v3761_v28, %v1355_v59 }
 0x5b0   : > { %v1394_v11 = vsel %vm1379_vm2, %v3761_v28, -1.0 }
 0x5b1   : > { %1414 = vmax.xlane.f32.xlu1 %v1394_v11  ;;  %v1307_v60 = vpop.xlane.xlu0 %1306 }
 0x5b2   : > { %vm1325_vm3 = vcmp.lt.f32.partialorder %v3807_v54, %v1307_v60 }
 0x5b3   : > { %v1340_v62 = vsel %vm1325_vm3, %v3807_v54, -1.0 }
 0x5b4   : > { %1366 = vmax.xlane.f32.xlu0 %v1340_v62 }
 0x5b6   : > { %v1357_v22 = vpop.xlane.xlu1 %1356 }
 0x5b7   : > { %vm1380_vm4 = vcmp.lt.f32.partialorder %v3770_v40, %v1357_v22 }
 0x5b8   : > { %v1395_v63 = vsel %vm1380_vm4, %v3770_v40, -1.0 }
 0x5b9   : > { %v1309_v33 = vpop.xlane.xlu0 %1308  ;;  %1416 = vmax.xlane.f32.xlu1 %v1395_v63 }
 0x5ba   : > { %vm1326_vm5 = vcmp.lt.f32.partialorder %v3813_v38, %v1309_v33 }
 0x5bb   : > { %v1341_v0 = vsel %vm1326_vm5, %v3813_v38, -1.0 }
 0x5bc   : > { %1368 = vmax.xlane.f32.xlu0 %v1341_v0 }
 0x5be   : > { %v1311_v1 = vpop.xlane.xlu1 %1310 }
 0x5bf   : > { %vm1327_vm6 = vcmp.lt.f32.partialorder %v3817_v43, %v1311_v1 }
 0x5c0   : > { %v1342_v5 = vsel %vm1327_vm6, %v3817_v43, -1.0 }
 0x5c1   : > { %1370 = vmax.xlane.f32.xlu1 %v1342_v5 }
 0x5c6   : > { %v1313_v7 = vpop.xlane.xlu1 %1312 }
 0x5c7   : > { %vm1328_vm7 = vcmp.lt.f32.partialorder %v3824_v45, %v1313_v7 }
 0x5c8   : > { %v1343_v9 = vsel %vm1328_vm7, %v3824_v45, -1.0 }
 0x5c9   : > { %1372 = vmax.xlane.f32.xlu1 %v1343_v9 }
 0x5fc   : > { %v1405_v10 = vpop.xlane.xlu2 %1404 }
 0x5fd   : > { %vm1434_vm8 = vcmp.lt.f32.partialorder %v3707_v44, %v1405_v10 }
 0x5fe   : > { %v1449_v12 = vsel %vm1434_vm8, %v3707_v44, -1.0 }
 0x5ff   : > { %1464 = vmax.xlane.f32.xlu2 %v1449_v12 }
 0x604   : > { %v1407_v15 = vpop.xlane.xlu2 %1406 }
 0x605   : > { %vm1435_vm9 = vcmp.lt.f32.partialorder %v3717_v4, %v1407_v15 }
 0x606   : > { %v1450_v55 = vsel %vm1435_vm9, %v3717_v4, -1.0 }
 0x607   : > { %1466 = vmax.xlane.f32.xlu2 %v1450_v55 }
 0x60c   : > { %v1359_v16 = vpop.xlane.xlu2 %1358  ;;  %v1409_v19 = vpop.xlane.xlu0 %1408 }
 0x60d   : > { %vm1381_vm10 = vcmp.lt.f32.partialorder %v3775_v20, %v1359_v16  ;;  %vm1436_vm11 = vcmp.lt.f32.partialorder %v3726_v25, %v1409_v19 }
 0x60e   : > { %v1396_v21 = vsel %vm1381_vm10, %v3775_v20, -1.0  ;;  %v1451_v23 = vsel %vm1436_vm11, %v3726_v25, -1.0 }
 0x60f   : > { %1418 = vmax.xlane.f32.xlu2 %v1396_v21  ;;  %1468 = vmax.xlane.f32.xlu0 %v1451_v23 }
 0x614   : > { %v1361_v24 = vpop.xlane.xlu2 %1360  ;;  %v1411_v26 = vpop.xlane.xlu0 %1410 }
 0x615   : > { %vm1382_vm12 = vcmp.lt.f32.partialorder %v3784_v18, %v1361_v24  ;;  %vm1437_vm13 = vcmp.lt.f32.partialorder %v3737_v46, %v1411_v26 }
 0x616   : > { %v1397_v27 = vsel %vm1382_vm12, %v3784_v18, -1.0  ;;  %v1452_v30 = vsel %vm1437_vm13, %v3737_v46, -1.0 }
 0x617   : > { %v1363_v29 = vpop.xlane.xlu1 %1362  ;;  %1420 = vmax.xlane.f32.xlu2 %v1397_v27  ;;  %1470 = vmax.xlane.f32.xlu0 %v1452_v30 }
 0x618   : > { %vm1383_vm14 = vcmp.lt.f32.partialorder %v3792_v61, %v1363_v29 }
 0x619   : > { %v1398_v57 = vsel %vm1383_vm14, %v3792_v61, -1.0 }
 0x61a   : > { %1422 = vmax.xlane.f32.xlu1 %v1398_v57 }
 0x61c   : > { %v1413_v56 = vpop.xlane.xlu2 %1412 }
 0x61d   : > { %vm1438_vm15 = vcmp.lt.f32.partialorder %v3748_v6, %v1413_v56 }
 0x61e   : > { %v1453_v32 = vsel %vm1438_vm15, %v3748_v6, -1.0 }
 0x61f   : > { %v1365_v31 = vpop.xlane.xlu0 %1364  ;;  %1472 = vmax.xlane.f32.xlu2 %v1453_v32 }
 0x620   : > { %vm1384_vm1 = vcmp.lt.f32.partialorder %v3799_v48, %v1365_v31 }
 0x621   : > { %v1399_v34 = vsel %vm1384_vm1, %v3799_v48, -1.0 }
 0x622   : > { %1424 = vmax.xlane.f32.xlu0 %v1399_v34 }
 0x624   : > { %v1415_v35 = vpop.xlane.xlu1 %1414 }
 0x625   : > { %vm1439_vm2 = vcmp.lt.f32.partialorder %v3761_v28, %v1415_v35 }
 0x626   : > { %v1454_v36 = vsel %vm1439_vm2, %v3761_v28, -1.0 }
 0x627   : > { %1474 = vmax.xlane.f32.xlu1 %v1454_v36  ;;  %v1367_v14 = vpop.xlane.xlu0 %1366 }
 0x628   : > { %vm1385_vm3 = vcmp.lt.f32.partialorder %v3807_v54, %v1367_v14 }
 0x629   : > { %v1400_v37 = vsel %vm1385_vm3, %v3807_v54, -1.0 }
 0x62a   : > { %1426 = vmax.xlane.f32.xlu0 %v1400_v37 }
 0x62c   : > { %v1417_v39 = vpop.xlane.xlu1 %1416 }
 0x62d   : > { %vm1440_vm4 = vcmp.lt.f32.partialorder %v3770_v40, %v1417_v39 }
 0x62e   : > { %v1455_v41 = vsel %vm1440_vm4, %v3770_v40, -1.0 }
 0x62f   : > { %v1369_v42 = vpop.xlane.xlu0 %1368  ;;  %1476 = vmax.xlane.f32.xlu1 %v1455_v41 }
 0x630   : > { %vm1386_vm5 = vcmp.lt.f32.partialorder %v3813_v38, %v1369_v42 }
 0x631   : > { %v1401_v47 = vsel %vm1386_vm5, %v3813_v38, -1.0 }
 0x632   : > { %1428 = vmax.xlane.f32.xlu0 %v1401_v47 }
 0x634   : > { %v1371_v13 = vpop.xlane.xlu1 %1370 }
 0x635   : > { %vm1387_vm6 = vcmp.lt.f32.partialorder %v3817_v43, %v1371_v13 }
 0x636   : > { %v1402_v49 = vsel %vm1387_vm6, %v3817_v43, -1.0 }
 0x637   : > { %1430 = vmax.xlane.f32.xlu1 %v1402_v49 }
 0x63c   : > { %v1373_v50 = vpop.xlane.xlu1 %1372 }
 0x63d   : > { %vm1388_vm7 = vcmp.lt.f32.partialorder %v3824_v45, %v1373_v50 }
 0x63e   : > { %v1403_v51 = vsel %vm1388_vm7, %v3824_v45, -1.0 }
 0x63f   : > { %1432 = vmax.xlane.f32.xlu1 %v1403_v51 }
 0x672   : > { %v1465_v17 = vpop.xlane.xlu2 %1464 }
 0x673   : > { %vm1494_vm8 = vcmp.lt.f32.partialorder %v3707_v44, %v1465_v17 }
 0x674   : > { %v1509_v52 = vsel %vm1494_vm8, %v3707_v44, -1.0 }
 0x675   : > { %1524 = vmax.xlane.f32.xlu2 %v1509_v52 }
 0x67a   : > { %v1467_v8 = vpop.xlane.xlu2 %1466 }
 0x67b   : > { %vm1495_vm9 = vcmp.lt.f32.partialorder %v3717_v4, %v1467_v8 }
 0x67c   : > { %v1510_v53 = vsel %vm1495_vm9, %v3717_v4, -1.0 }
 0x67d   : > { %1526 = vmax.xlane.f32.xlu2 %v1510_v53 }
 0x682   : > { %v1419_v3 = vpop.xlane.xlu2 %1418  ;;  %v1469_v2 = vpop.xlane.xlu0 %1468 }
 0x683   : > { %vm1441_vm10 = vcmp.lt.f32.partialorder %v3775_v20, %v1419_v3  ;;  %vm1496_vm11 = vcmp.lt.f32.partialorder %v3726_v25, %v1469_v2 }
 0x684   : > { %v1456_v58 = vsel %vm1441_vm10, %v3775_v20, -1.0  ;;  %v1511_v59 = vsel %vm1496_vm11, %v3726_v25, -1.0 }
 0x685   : > { %1478 = vmax.xlane.f32.xlu2 %v1456_v58  ;;  %1528 = vmax.xlane.f32.xlu0 %v1511_v59 }
 0x68a   : > { %v1421_v11 = vpop.xlane.xlu2 %1420  ;;  %v1471_v60 = vpop.xlane.xlu0 %1470 }
 0x68b   : > { %vm1442_vm12 = vcmp.lt.f32.partialorder %v3784_v18, %v1421_v11  ;;  %vm1497_vm13 = vcmp.lt.f32.partialorder %v3737_v46, %v1471_v60 }
 0x68c   : > { %v1457_v62 = vsel %vm1442_vm12, %v3784_v18, -1.0  ;;  %v1512_v63 = vsel %vm1497_vm13, %v3737_v46, -1.0 }
 0x68d   : > { %v1423_v22 = vpop.xlane.xlu1 %1422  ;;  %1480 = vmax.xlane.f32.xlu2 %v1457_v62  ;;  %1530 = vmax.xlane.f32.xlu0 %v1512_v63 }
 0x68e   : > { %vm1443_vm14 = vcmp.lt.f32.partialorder %v3792_v61, %v1423_v22 }
 0x68f   : > { %v1458_v33 = vsel %vm1443_vm14, %v3792_v61, -1.0 }
 0x690   : > { %1482 = vmax.xlane.f32.xlu1 %v1458_v33 }
 0x692   : > { %v1473_v0 = vpop.xlane.xlu2 %1472 }
 0x693   : > { %vm1498_vm15 = vcmp.lt.f32.partialorder %v3748_v6, %v1473_v0 }
 0x694   : > { %v1513_v5 = vsel %vm1498_vm15, %v3748_v6, -1.0 }
 0x695   : > { %v1425_v1 = vpop.xlane.xlu0 %1424  ;;  %1532 = vmax.xlane.f32.xlu2 %v1513_v5 }
 0x696   : > { %vm1444_vm1 = vcmp.lt.f32.partialorder %v3799_v48, %v1425_v1 }
 0x697   : > { %v1459_v7 = vsel %vm1444_vm1, %v3799_v48, -1.0 }
 0x698   : > { %1484 = vmax.xlane.f32.xlu0 %v1459_v7 }
 0x69a   : > { %v1475_v9 = vpop.xlane.xlu1 %1474 }
 0x69b   : > { %vm1499_vm2 = vcmp.lt.f32.partialorder %v3761_v28, %v1475_v9 }
 0x69c   : > { %v1514_v10 = vsel %vm1499_vm2, %v3761_v28, -1.0 }
 0x69d   : > { %1534 = vmax.xlane.f32.xlu1 %v1514_v10  ;;  %v1427_v12 = vpop.xlane.xlu0 %1426 }
 0x69e   : > { %vm1445_vm3 = vcmp.lt.f32.partialorder %v3807_v54, %v1427_v12 }
 0x69f   : > { %v1460_v15 = vsel %vm1445_vm3, %v3807_v54, -1.0 }
 0x6a0   : > { %1486 = vmax.xlane.f32.xlu0 %v1460_v15 }
 0x6a2   : > { %v1477_v55 = vpop.xlane.xlu1 %1476 }
 0x6a3   : > { %vm1500_vm4 = vcmp.lt.f32.partialorder %v3770_v40, %v1477_v55 }
 0x6a4   : > { %v1515_v16 = vsel %vm1500_vm4, %v3770_v40, -1.0 }
 0x6a5   : > { %v1429_v19 = vpop.xlane.xlu0 %1428  ;;  %1536 = vmax.xlane.f32.xlu1 %v1515_v16 }
 0x6a6   : > { %vm1446_vm5 = vcmp.lt.f32.partialorder %v3813_v38, %v1429_v19 }
 0x6a7   : > { %v1461_v21 = vsel %vm1446_vm5, %v3813_v38, -1.0 }
 0x6a8   : > { %1488 = vmax.xlane.f32.xlu0 %v1461_v21 }
 0x6aa   : > { %v1431_v23 = vpop.xlane.xlu1 %1430 }
 0x6ab   : > { %vm1447_vm6 = vcmp.lt.f32.partialorder %v3817_v43, %v1431_v23 }
 0x6ac   : > { %v1462_v24 = vsel %vm1447_vm6, %v3817_v43, -1.0 }
 0x6ad   : > { %1490 = vmax.xlane.f32.xlu1 %v1462_v24 }
 0x6b2   : > { %v1433_v26 = vpop.xlane.xlu1 %1432 }
 0x6b3   : > { %vm1448_vm7 = vcmp.lt.f32.partialorder %v3824_v45, %v1433_v26 }
 0x6b4   : > { %v1463_v27 = vsel %vm1448_vm7, %v3824_v45, -1.0 }
 0x6b5   : > { %1492 = vmax.xlane.f32.xlu1 %v1463_v27 }
 0x6e8   : > { %v1525_v29 = vpop.xlane.xlu2 %1524 }
 0x6e9   : > { %vm1554_vm8 = vcmp.lt.f32.partialorder %v3707_v44, %v1525_v29 }
 0x6ea   : > { %v1569_v30 = vsel %vm1554_vm8, %v3707_v44, -1.0 }
 0x6eb   : > { %1584 = vmax.xlane.f32.xlu2 %v1569_v30 }
 0x6f0   : > { %v1527_v57 = vpop.xlane.xlu2 %1526 }
 0x6f1   : > { %vm1555_vm9 = vcmp.lt.f32.partialorder %v3717_v4, %v1527_v57 }
 0x6f2   : > { %v1570_v56 = vsel %vm1555_vm9, %v3717_v4, -1.0 }
 0x6f3   : > { %1586 = vmax.xlane.f32.xlu2 %v1570_v56 }
 0x6f8   : > { %v1479_v31 = vpop.xlane.xlu2 %1478  ;;  %v1529_v32 = vpop.xlane.xlu0 %1528 }
 0x6f9   : > { %vm1501_vm10 = vcmp.lt.f32.partialorder %v3775_v20, %v1479_v31  ;;  %vm1556_vm11 = vcmp.lt.f32.partialorder %v3726_v25, %v1529_v32 }
 0x6fa   : > { %v1516_v34 = vsel %vm1501_vm10, %v3775_v20, -1.0  ;;  %v1571_v35 = vsel %vm1556_vm11, %v3726_v25, -1.0 }
 0x6fb   : > { %1538 = vmax.xlane.f32.xlu2 %v1516_v34  ;;  %1588 = vmax.xlane.f32.xlu0 %v1571_v35 }
 0x700   : > { %v1481_v36 = vpop.xlane.xlu2 %1480  ;;  %v1531_v14 = vpop.xlane.xlu0 %1530 }
 0x701   : > { %vm1502_vm12 = vcmp.lt.f32.partialorder %v3784_v18, %v1481_v36  ;;  %vm1557_vm13 = vcmp.lt.f32.partialorder %v3737_v46, %v1531_v14 }
 0x702   : > { %v1517_v37 = vsel %vm1502_vm12, %v3784_v18, -1.0  ;;  %v1572_v41 = vsel %vm1557_vm13, %v3737_v46, -1.0 }
 0x703   : > { %v1483_v39 = vpop.xlane.xlu1 %1482  ;;  %1540 = vmax.xlane.f32.xlu2 %v1517_v37  ;;  %1590 = vmax.xlane.f32.xlu0 %v1572_v41 }
 0x704   : > { %vm1503_vm14 = vcmp.lt.f32.partialorder %v3792_v61, %v1483_v39 }
 0x705   : > { %v1518_v42 = vsel %vm1503_vm14, %v3792_v61, -1.0 }
 0x706   : > { %1542 = vmax.xlane.f32.xlu1 %v1518_v42 }
 0x708   : > { %v1533_v47 = vpop.xlane.xlu2 %1532 }
 0x709   : > { %vm1558_vm15 = vcmp.lt.f32.partialorder %v3748_v6, %v1533_v47 }
 0x70a   : > { %v1573_v49 = vsel %vm1558_vm15, %v3748_v6, -1.0 }
 0x70b   : > { %v1485_v13 = vpop.xlane.xlu0 %1484  ;;  %1592 = vmax.xlane.f32.xlu2 %v1573_v49 }
 0x70c   : > { %vm1504_vm1 = vcmp.lt.f32.partialorder %v3799_v48, %v1485_v13 }
 0x70d   : > { %v1519_v50 = vsel %vm1504_vm1, %v3799_v48, -1.0 }
 0x70e   : > { %1544 = vmax.xlane.f32.xlu0 %v1519_v50 }
 0x710   : > { %v1535_v51 = vpop.xlane.xlu1 %1534 }
 0x711   : > { %vm1559_vm2 = vcmp.lt.f32.partialorder %v3761_v28, %v1535_v51 }
 0x712   : > { %v1574_v17 = vsel %vm1559_vm2, %v3761_v28, -1.0 }
 0x713   : > { %1594 = vmax.xlane.f32.xlu1 %v1574_v17  ;;  %v1487_v52 = vpop.xlane.xlu0 %1486 }
 0x714   : > { %vm1505_vm3 = vcmp.lt.f32.partialorder %v3807_v54, %v1487_v52 }
 0x715   : > { %v1520_v8 = vsel %vm1505_vm3, %v3807_v54, -1.0 }
 0x716   : > { %1546 = vmax.xlane.f32.xlu0 %v1520_v8 }
 0x718   : > { %v1537_v53 = vpop.xlane.xlu1 %1536 }
 0x719   : > { %vm1560_vm4 = vcmp.lt.f32.partialorder %v3770_v40, %v1537_v53 }
 0x71a   : > { %v1575_v3 = vsel %vm1560_vm4, %v3770_v40, -1.0 }
 0x71b   : > { %v1489_v2 = vpop.xlane.xlu0 %1488  ;;  %1596 = vmax.xlane.f32.xlu1 %v1575_v3 }
 0x71c   : > { %vm1506_vm5 = vcmp.lt.f32.partialorder %v3813_v38, %v1489_v2 }
 0x71d   : > { %v1521_v58 = vsel %vm1506_vm5, %v3813_v38, -1.0 }
 0x71e   : > { %1548 = vmax.xlane.f32.xlu0 %v1521_v58 }
 0x720   : > { %v1491_v59 = vpop.xlane.xlu1 %1490 }
 0x721   : > { %vm1507_vm6 = vcmp.lt.f32.partialorder %v3817_v43, %v1491_v59 }
 0x722   : > { %v1522_v11 = vsel %vm1507_vm6, %v3817_v43, -1.0 }
 0x723   : > { %1550 = vmax.xlane.f32.xlu1 %v1522_v11 }
 0x728   : > { %v1493_v60 = vpop.xlane.xlu1 %1492 }
 0x729   : > { %vm1508_vm7 = vcmp.lt.f32.partialorder %v3824_v45, %v1493_v60 }
 0x72a   : > { %v1523_v62 = vsel %vm1508_vm7, %v3824_v45, -1.0 }
 0x72b   : > { %1552 = vmax.xlane.f32.xlu1 %v1523_v62 }
 0x75e   : > { %v1585_v22 = vpop.xlane.xlu2 %1584 }
 0x75f   : > { %vm1614_vm8 = vcmp.lt.f32.partialorder %v3707_v44, %v1585_v22 }
 0x760   : > { %v1629_v63 = vsel %vm1614_vm8, %v3707_v44, -1.0 }
 0x761   : > { %1644 = vmax.xlane.f32.xlu2 %v1629_v63 }
 0x766   : > { %v1587_v33 = vpop.xlane.xlu2 %1586 }
 0x767   : > { %vm1615_vm9 = vcmp.lt.f32.partialorder %v3717_v4, %v1587_v33 }
 0x768   : > { %v1630_v0 = vsel %vm1615_vm9, %v3717_v4, -1.0 }
 0x769   : > { %1646 = vmax.xlane.f32.xlu2 %v1630_v0 }
 0x76e   : > { %v1539_v1 = vpop.xlane.xlu2 %1538  ;;  %v1589_v5 = vpop.xlane.xlu0 %1588 }
 0x76f   : > { %vm1561_vm10 = vcmp.lt.f32.partialorder %v3775_v20, %v1539_v1  ;;  %vm1616_vm11 = vcmp.lt.f32.partialorder %v3726_v25, %v1589_v5 }
 0x770   : > { %v1576_v7 = vsel %vm1561_vm10, %v3775_v20, -1.0  ;;  %v1631_v9 = vsel %vm1616_vm11, %v3726_v25, -1.0 }
 0x771   : > { %1598 = vmax.xlane.f32.xlu2 %v1576_v7  ;;  %1648 = vmax.xlane.f32.xlu0 %v1631_v9 }
 0x776   : > { %v1541_v10 = vpop.xlane.xlu2 %1540  ;;  %v1591_v12 = vpop.xlane.xlu0 %1590 }
 0x777   : > { %vm1562_vm12 = vcmp.lt.f32.partialorder %v3784_v18, %v1541_v10  ;;  %vm1617_vm13 = vcmp.lt.f32.partialorder %v3737_v46, %v1591_v12 }
 0x778   : > { %v1577_v15 = vsel %vm1562_vm12, %v3784_v18, -1.0  ;;  %v1632_v16 = vsel %vm1617_vm13, %v3737_v46, -1.0 }
 0x779   : > { %v1543_v55 = vpop.xlane.xlu1 %1542  ;;  %1600 = vmax.xlane.f32.xlu2 %v1577_v15  ;;  %1650 = vmax.xlane.f32.xlu0 %v1632_v16 }
 0x77a   : > { %vm1563_vm14 = vcmp.lt.f32.partialorder %v3792_v61, %v1543_v55 }
 0x77b   : > { %v1578_v19 = vsel %vm1563_vm14, %v3792_v61, -1.0 }
 0x77c   : > { %1602 = vmax.xlane.f32.xlu1 %v1578_v19 }
 0x77e   : > { %v1593_v21 = vpop.xlane.xlu2 %1592 }
 0x77f   : > { %vm1618_vm15 = vcmp.lt.f32.partialorder %v3748_v6, %v1593_v21 }
 0x780   : > { %v1633_v24 = vsel %vm1618_vm15, %v3748_v6, -1.0 }
 0x781   : > { %v1545_v23 = vpop.xlane.xlu0 %1544  ;;  %1652 = vmax.xlane.f32.xlu2 %v1633_v24 }
 0x782   : > { %vm1564_vm1 = vcmp.lt.f32.partialorder %v3799_v48, %v1545_v23 }
 0x783   : > { %v1579_v26 = vsel %vm1564_vm1, %v3799_v48, -1.0 }
 0x784   : > { %1604 = vmax.xlane.f32.xlu0 %v1579_v26 }
 0x786   : > { %v1595_v27 = vpop.xlane.xlu1 %1594 }
 0x787   : > { %vm1619_vm2 = vcmp.lt.f32.partialorder %v3761_v28, %v1595_v27 }
 0x788   : > { %v1634_v29 = vsel %vm1619_vm2, %v3761_v28, -1.0 }
 0x789   : > { %1654 = vmax.xlane.f32.xlu1 %v1634_v29  ;;  %v1547_v30 = vpop.xlane.xlu0 %1546 }
 0x78a   : > { %vm1565_vm3 = vcmp.lt.f32.partialorder %v3807_v54, %v1547_v30 }
 0x78b   : > { %v1580_v57 = vsel %vm1565_vm3, %v3807_v54, -1.0 }
 0x78c   : > { %1606 = vmax.xlane.f32.xlu0 %v1580_v57 }
 0x78e   : > { %v1597_v56 = vpop.xlane.xlu1 %1596 }
 0x78f   : > { %vm1620_vm4 = vcmp.lt.f32.partialorder %v3770_v40, %v1597_v56 }
 0x790   : > { %v1635_v31 = vsel %vm1620_vm4, %v3770_v40, -1.0 }
 0x791   : > { %v1549_v32 = vpop.xlane.xlu0 %1548  ;;  %1656 = vmax.xlane.f32.xlu1 %v1635_v31 }
 0x792   : > { %vm1566_vm5 = vcmp.lt.f32.partialorder %v3813_v38, %v1549_v32 }
 0x793   : > { %v1581_v34 = vsel %vm1566_vm5, %v3813_v38, -1.0 }
 0x794   : > { %1608 = vmax.xlane.f32.xlu0 %v1581_v34 }
 0x796   : > { %v1551_v35 = vpop.xlane.xlu1 %1550 }
 0x797   : > { %vm1567_vm6 = vcmp.lt.f32.partialorder %v3817_v43, %v1551_v35 }
 0x798   : > { %v1582_v36 = vsel %vm1567_vm6, %v3817_v43, -1.0 }
 0x799   : > { %1610 = vmax.xlane.f32.xlu1 %v1582_v36 }
 0x79e   : > { %v1553_v14 = vpop.xlane.xlu1 %1552 }
 0x79f   : > { %vm1568_vm7 = vcmp.lt.f32.partialorder %v3824_v45, %v1553_v14 }
 0x7a0   : > { %v1583_v37 = vsel %vm1568_vm7, %v3824_v45, -1.0 }
 0x7a1   : > { %1612 = vmax.xlane.f32.xlu1 %v1583_v37 }
 0x7d4   : > { %v1645_v39 = vpop.xlane.xlu2 %1644 }
 0x7d5   : > { %vm1674_vm8 = vcmp.lt.f32.partialorder %v3707_v44, %v1645_v39 }
 0x7d6   : > { %v1689_v41 = vsel %vm1674_vm8, %v3707_v44, -1.0 }
 0x7d7   : > { %1704 = vmax.xlane.f32.xlu2 %v1689_v41 }
 0x7dc   : > { %v1647_v42 = vpop.xlane.xlu2 %1646 }
 0x7dd   : > { %vm1675_vm9 = vcmp.lt.f32.partialorder %v3717_v4, %v1647_v42 }
 0x7de   : > { %v1690_v47 = vsel %vm1675_vm9, %v3717_v4, -1.0 }
 0x7df   : > { %1706 = vmax.xlane.f32.xlu2 %v1690_v47 }
 0x7e4   : > { %v1599_v13 = vpop.xlane.xlu2 %1598  ;;  %v1649_v49 = vpop.xlane.xlu0 %1648 }
 0x7e5   : > { %vm1621_vm10 = vcmp.lt.f32.partialorder %v3775_v20, %v1599_v13  ;;  %vm1676_vm11 = vcmp.lt.f32.partialorder %v3726_v25, %v1649_v49 }
 0x7e6   : > { %v1636_v50 = vsel %vm1621_vm10, %v3775_v20, -1.0  ;;  %v1691_v51 = vsel %vm1676_vm11, %v3726_v25, -1.0 }
 0x7e7   : > { %1658 = vmax.xlane.f32.xlu2 %v1636_v50  ;;  %1708 = vmax.xlane.f32.xlu0 %v1691_v51 }
 0x7ec   : > { %v1601_v17 = vpop.xlane.xlu2 %1600  ;;  %v1651_v52 = vpop.xlane.xlu0 %1650 }
 0x7ed   : > { %vm1622_vm12 = vcmp.lt.f32.partialorder %v3784_v18, %v1601_v17  ;;  %vm1677_vm13 = vcmp.lt.f32.partialorder %v3737_v46, %v1651_v52 }
 0x7ee   : > { %v1637_v8 = vsel %vm1622_vm12, %v3784_v18, -1.0  ;;  %v1692_v3 = vsel %vm1677_vm13, %v3737_v46, -1.0 }
 0x7ef   : > { %v1603_v53 = vpop.xlane.xlu1 %1602  ;;  %1660 = vmax.xlane.f32.xlu2 %v1637_v8  ;;  %1710 = vmax.xlane.f32.xlu0 %v1692_v3 }
 0x7f0   : > { %vm1623_vm14 = vcmp.lt.f32.partialorder %v3792_v61, %v1603_v53 }
 0x7f1   : > { %v1638_v2 = vsel %vm1623_vm14, %v3792_v61, -1.0 }
 0x7f2   : > { %1662 = vmax.xlane.f32.xlu1 %v1638_v2 }
 0x7f4   : > { %v1653_v58 = vpop.xlane.xlu2 %1652 }
 0x7f5   : > { %vm1678_vm15 = vcmp.lt.f32.partialorder %v3748_v6, %v1653_v58 }
 0x7f6   : > { %v1693_v11 = vsel %vm1678_vm15, %v3748_v6, -1.0 }
 0x7f7   : > { %v1605_v59 = vpop.xlane.xlu0 %1604  ;;  %1712 = vmax.xlane.f32.xlu2 %v1693_v11 }
 0x7f8   : > { %vm1624_vm1 = vcmp.lt.f32.partialorder %v3799_v48, %v1605_v59 }
 0x7f9   : > { %v1639_v60 = vsel %vm1624_vm1, %v3799_v48, -1.0 }
 0x7fa   : > { %1664 = vmax.xlane.f32.xlu0 %v1639_v60 }
 0x7fc   : > { %v1655_v62 = vpop.xlane.xlu1 %1654 }
 0x7fd   : > { %vm1679_vm2 = vcmp.lt.f32.partialorder %v3761_v28, %v1655_v62 }
 0x7fe   : > { %v1694_v22 = vsel %vm1679_vm2, %v3761_v28, -1.0 }
 0x7ff   : > { %1714 = vmax.xlane.f32.xlu1 %v1694_v22  ;;  %v1607_v63 = vpop.xlane.xlu0 %1606 }
 0x800   : > { %vm1625_vm3 = vcmp.lt.f32.partialorder %v3807_v54, %v1607_v63 }
 0x801   : > { %v1640_v33 = vsel %vm1625_vm3, %v3807_v54, -1.0 }
 0x802   : > { %1666 = vmax.xlane.f32.xlu0 %v1640_v33 }
 0x804   : > { %v1657_v0 = vpop.xlane.xlu1 %1656 }
 0x805   : > { %vm1680_vm4 = vcmp.lt.f32.partialorder %v3770_v40, %v1657_v0 }
 0x806   : > { %v1695_v1 = vsel %vm1680_vm4, %v3770_v40, -1.0 }
 0x807   : > { %v1609_v5 = vpop.xlane.xlu0 %1608  ;;  %1716 = vmax.xlane.f32.xlu1 %v1695_v1 }
 0x808   : > { %vm1626_vm5 = vcmp.lt.f32.partialorder %v3813_v38, %v1609_v5 }
 0x809   : > { %v1641_v7 = vsel %vm1626_vm5, %v3813_v38, -1.0 }
 0x80a   : > { %1668 = vmax.xlane.f32.xlu0 %v1641_v7 }
 0x80c   : > { %v1611_v9 = vpop.xlane.xlu1 %1610 }
 0x80d   : > { %vm1627_vm6 = vcmp.lt.f32.partialorder %v3817_v43, %v1611_v9 }
 0x80e   : > { %v1642_v10 = vsel %vm1627_vm6, %v3817_v43, -1.0 }
 0x80f   : > { %1670 = vmax.xlane.f32.xlu1 %v1642_v10 }
 0x814   : > { %v1613_v12 = vpop.xlane.xlu1 %1612 }
 0x815   : > { %vm1628_vm7 = vcmp.lt.f32.partialorder %v3824_v45, %v1613_v12 }
 0x816   : > { %v1643_v15 = vsel %vm1628_vm7, %v3824_v45, -1.0 }
 0x817   : > { %1672 = vmax.xlane.f32.xlu1 %v1643_v15 }
 0x84a   : > { %v1705_v55 = vpop.xlane.xlu2 %1704 }
 0x84b   : > { %vm1734_vm8 = vcmp.lt.f32.partialorder %v3707_v44, %v1705_v55 }
 0x84c   : > { %v1749_v16 = vsel %vm1734_vm8, %v3707_v44, -1.0 }
 0x84d   : > { %1764 = vmax.xlane.f32.xlu2 %v1749_v16 }
 0x852   : > { %v1707_v19 = vpop.xlane.xlu2 %1706 }
 0x853   : > { %vm1735_vm9 = vcmp.lt.f32.partialorder %v3717_v4, %v1707_v19 }
 0x854   : > { %v1750_v21 = vsel %vm1735_vm9, %v3717_v4, -1.0 }
 0x855   : > { %1766 = vmax.xlane.f32.xlu2 %v1750_v21 }
 0x85a   : > { %v1659_v23 = vpop.xlane.xlu2 %1658  ;;  %v1709_v24 = vpop.xlane.xlu0 %1708 }
 0x85b   : > { %vm1681_vm10 = vcmp.lt.f32.partialorder %v3775_v20, %v1659_v23  ;;  %vm1736_vm11 = vcmp.lt.f32.partialorder %v3726_v25, %v1709_v24 }
 0x85c   : > { %v1696_v26 = vsel %vm1681_vm10, %v3775_v20, -1.0  ;;  %v1751_v27 = vsel %vm1736_vm11, %v3726_v25, -1.0 }
 0x85d   : > { %1718 = vmax.xlane.f32.xlu2 %v1696_v26  ;;  %1768 = vmax.xlane.f32.xlu0 %v1751_v27 }
 0x862   : > { %v1661_v29 = vpop.xlane.xlu2 %1660  ;;  %v1711_v30 = vpop.xlane.xlu0 %1710 }
 0x863   : > { %vm1682_vm12 = vcmp.lt.f32.partialorder %v3784_v18, %v1661_v29  ;;  %vm1737_vm13 = vcmp.lt.f32.partialorder %v3737_v46, %v1711_v30 }
 0x864   : > { %v1697_v57 = vsel %vm1682_vm12, %v3784_v18, -1.0  ;;  %v1752_v31 = vsel %vm1737_vm13, %v3737_v46, -1.0 }
 0x865   : > { %v1663_v56 = vpop.xlane.xlu1 %1662  ;;  %1720 = vmax.xlane.f32.xlu2 %v1697_v57  ;;  %1770 = vmax.xlane.f32.xlu0 %v1752_v31 }
 0x866   : > { %vm1683_vm14 = vcmp.lt.f32.partialorder %v3792_v61, %v1663_v56 }
 0x867   : > { %v1698_v32 = vsel %vm1683_vm14, %v3792_v61, -1.0 }
 0x868   : > { %1722 = vmax.xlane.f32.xlu1 %v1698_v32 }
 0x86a   : > { %v1713_v34 = vpop.xlane.xlu2 %1712 }
 0x86b   : > { %vm1738_vm15 = vcmp.lt.f32.partialorder %v3748_v6, %v1713_v34 }
 0x86c   : > { %v1753_v36 = vsel %vm1738_vm15, %v3748_v6, -1.0 }
 0x86d   : > { %v1665_v35 = vpop.xlane.xlu0 %1664  ;;  %1772 = vmax.xlane.f32.xlu2 %v1753_v36 }
 0x86e   : > { %vm1684_vm1 = vcmp.lt.f32.partialorder %v3799_v48, %v1665_v35 }
 0x86f   : > { %v1699_v14 = vsel %vm1684_vm1, %v3799_v48, -1.0 }
 0x870   : > { %1724 = vmax.xlane.f32.xlu0 %v1699_v14 }
 0x872   : > { %v1715_v37 = vpop.xlane.xlu1 %1714 }
 0x873   : > { %vm1739_vm2 = vcmp.lt.f32.partialorder %v3761_v28, %v1715_v37 }
 0x874   : > { %v1754_v39 = vsel %vm1739_vm2, %v3761_v28, -1.0 }
 0x875   : > { %1774 = vmax.xlane.f32.xlu1 %v1754_v39  ;;  %v1667_v41 = vpop.xlane.xlu0 %1666 }
 0x876   : > { %vm1685_vm3 = vcmp.lt.f32.partialorder %v3807_v54, %v1667_v41 }
 0x877   : > { %v1700_v42 = vsel %vm1685_vm3, %v3807_v54, -1.0 }
 0x878   : > { %1726 = vmax.xlane.f32.xlu0 %v1700_v42 }
 0x87a   : > { %v1717_v47 = vpop.xlane.xlu1 %1716 }
 0x87b   : > { %vm1740_vm4 = vcmp.lt.f32.partialorder %v3770_v40, %v1717_v47 }
 0x87c   : > { %v1755_v13 = vsel %vm1740_vm4, %v3770_v40, -1.0 }
 0x87d   : > { %v1669_v49 = vpop.xlane.xlu0 %1668  ;;  %1776 = vmax.xlane.f32.xlu1 %v1755_v13 }
 0x87e   : > { %vm1686_vm5 = vcmp.lt.f32.partialorder %v3813_v38, %v1669_v49 }
 0x87f   : > { %v1701_v50 = vsel %vm1686_vm5, %v3813_v38, -1.0 }
 0x880   : > { %1728 = vmax.xlane.f32.xlu0 %v1701_v50 }
 0x882   : > { %v1671_v51 = vpop.xlane.xlu1 %1670 }
 0x883   : > { %vm1687_vm6 = vcmp.lt.f32.partialorder %v3817_v43, %v1671_v51 }
 0x884   : > { %v1702_v17 = vsel %vm1687_vm6, %v3817_v43, -1.0 }
 0x885   : > { %1730 = vmax.xlane.f32.xlu1 %v1702_v17 }
 0x88a   : > { %v1673_v52 = vpop.xlane.xlu1 %1672 }
 0x88b   : > { %vm1688_vm7 = vcmp.lt.f32.partialorder %v3824_v45, %v1673_v52 }
 0x88c   : > { %v1703_v8 = vsel %vm1688_vm7, %v3824_v45, -1.0 }
 0x88d   : > { %1732 = vmax.xlane.f32.xlu1 %v1703_v8 }
 0x8c0   : > { %v1765_v53 = vpop.xlane.xlu2 %1764 }
 0x8c1   : > { %vm1794_vm8 = vcmp.lt.f32.partialorder %v3707_v44, %v1765_v53 }
 0x8c2   : > { %v1809_v3 = vsel %vm1794_vm8, %v3707_v44, -1.0 }
 0x8c3   : > { %1824 = vmax.xlane.f32.xlu2 %v1809_v3 }
 0x8c8   : > { %v1767_v2 = vpop.xlane.xlu2 %1766 }
 0x8c9   : > { %vm1795_vm9 = vcmp.lt.f32.partialorder %v3717_v4, %v1767_v2 }
 0x8ca   : > { %v1810_v58 = vsel %vm1795_vm9, %v3717_v4, -1.0 }
 0x8cb   : > { %1826 = vmax.xlane.f32.xlu2 %v1810_v58 }
 0x8d0   : > { %v1719_v59 = vpop.xlane.xlu2 %1718  ;;  %v1769_v11 = vpop.xlane.xlu0 %1768 }
 0x8d1   : > { %vm1741_vm10 = vcmp.lt.f32.partialorder %v3775_v20, %v1719_v59  ;;  %vm1796_vm11 = vcmp.lt.f32.partialorder %v3726_v25, %v1769_v11 }
 0x8d2   : > { %v1756_v60 = vsel %vm1741_vm10, %v3775_v20, -1.0  ;;  %v1811_v62 = vsel %vm1796_vm11, %v3726_v25, -1.0 }
 0x8d3   : > { %1778 = vmax.xlane.f32.xlu2 %v1756_v60  ;;  %1828 = vmax.xlane.f32.xlu0 %v1811_v62 }
 0x8d8   : > { %v1721_v22 = vpop.xlane.xlu2 %1720  ;;  %v1771_v63 = vpop.xlane.xlu0 %1770 }
 0x8d9   : > { %vm1742_vm12 = vcmp.lt.f32.partialorder %v3784_v18, %v1721_v22  ;;  %vm1797_vm13 = vcmp.lt.f32.partialorder %v3737_v46, %v1771_v63 }
 0x8da   : > { %v1757_v33 = vsel %vm1742_vm12, %v3784_v18, -1.0  ;;  %v1812_v1 = vsel %vm1797_vm13, %v3737_v46, -1.0 }
 0x8db   : > { %v1723_v0 = vpop.xlane.xlu1 %1722  ;;  %1780 = vmax.xlane.f32.xlu2 %v1757_v33  ;;  %1830 = vmax.xlane.f32.xlu0 %v1812_v1 }
 0x8dc   : > { %vm1743_vm14 = vcmp.lt.f32.partialorder %v3792_v61, %v1723_v0 }
 0x8dd   : > { %v1758_v5 = vsel %vm1743_vm14, %v3792_v61, -1.0 }
 0x8de   : > { %1782 = vmax.xlane.f32.xlu1 %v1758_v5 }
 0x8e0   : > { %v1773_v7 = vpop.xlane.xlu2 %1772 }
 0x8e1   : > { %vm1798_vm15 = vcmp.lt.f32.partialorder %v3748_v6, %v1773_v7 }
 0x8e2   : > { %v1813_v10 = vsel %vm1798_vm15, %v3748_v6, -1.0 }
 0x8e3   : > { %v1725_v9 = vpop.xlane.xlu0 %1724  ;;  %1832 = vmax.xlane.f32.xlu2 %v1813_v10 }
 0x8e4   : > { %vm1744_vm1 = vcmp.lt.f32.partialorder %v3799_v48, %v1725_v9 }
 0x8e5   : > { %v1759_v12 = vsel %vm1744_vm1, %v3799_v48, -1.0 }
 0x8e6   : > { %1784 = vmax.xlane.f32.xlu0 %v1759_v12 }
 0x8e8   : > { %v1775_v15 = vpop.xlane.xlu1 %1774 }
 0x8e9   : > { %vm1799_vm2 = vcmp.lt.f32.partialorder %v3761_v28, %v1775_v15 }
 0x8ea   : > { %v1814_v55 = vsel %vm1799_vm2, %v3761_v28, -1.0 }
 0x8eb   : > { %1834 = vmax.xlane.f32.xlu1 %v1814_v55  ;;  %v1727_v16 = vpop.xlane.xlu0 %1726 }
 0x8ec   : > { %vm1745_vm3 = vcmp.lt.f32.partialorder %v3807_v54, %v1727_v16 }
 0x8ed   : > { %v1760_v19 = vsel %vm1745_vm3, %v3807_v54, -1.0 }
 0x8ee   : > { %1786 = vmax.xlane.f32.xlu0 %v1760_v19 }
 0x8f0   : > { %v1777_v21 = vpop.xlane.xlu1 %1776 }
 0x8f1   : > { %vm1800_vm4 = vcmp.lt.f32.partialorder %v3770_v40, %v1777_v21 }
 0x8f2   : > { %v1815_v23 = vsel %vm1800_vm4, %v3770_v40, -1.0 }
 0x8f3   : > { %v1729_v24 = vpop.xlane.xlu0 %1728  ;;  %1836 = vmax.xlane.f32.xlu1 %v1815_v23 }
 0x8f4   : > { %vm1746_vm5 = vcmp.lt.f32.partialorder %v3813_v38, %v1729_v24 }
 0x8f5   : > { %v1761_v26 = vsel %vm1746_vm5, %v3813_v38, -1.0 }
 0x8f6   : > { %1788 = vmax.xlane.f32.xlu0 %v1761_v26 }
 0x8f8   : > { %v1731_v27 = vpop.xlane.xlu1 %1730 }
 0x8f9   : > { %vm1747_vm6 = vcmp.lt.f32.partialorder %v3817_v43, %v1731_v27 }
 0x8fa   : > { %v1762_v29 = vsel %vm1747_vm6, %v3817_v43, -1.0 }
 0x8fb   : > { %1790 = vmax.xlane.f32.xlu1 %v1762_v29 }
 0x900   : > { %v1733_v30 = vpop.xlane.xlu1 %1732 }
 0x901   : > { %vm1748_vm7 = vcmp.lt.f32.partialorder %v3824_v45, %v1733_v30 }
 0x902   : > { %v1763_v57 = vsel %vm1748_vm7, %v3824_v45, -1.0 }
 0x903   : > { %1792 = vmax.xlane.f32.xlu1 %v1763_v57 }
 0x936   : > { %v1825_v56 = vpop.xlane.xlu2 %1824 }
 0x937   : > { %vm1854_vm8 = vcmp.lt.f32.partialorder %v3707_v44, %v1825_v56 }
 0x938   : > { %v1869_v31 = vsel %vm1854_vm8, %v3707_v44, -1.0 }
 0x939   : > { %1884 = vmax.xlane.f32.xlu2 %v1869_v31 }
 0x93e   : > { %v1827_v32 = vpop.xlane.xlu2 %1826 }
 0x93f   : > { %vm1855_vm9 = vcmp.lt.f32.partialorder %v3717_v4, %v1827_v32 }
 0x940   : > { %v1870_v34 = vsel %vm1855_vm9, %v3717_v4, -1.0 }
 0x941   : > { %1886 = vmax.xlane.f32.xlu2 %v1870_v34 }
 0x946   : > { %v1779_v35 = vpop.xlane.xlu2 %1778  ;;  %v1829_v36 = vpop.xlane.xlu0 %1828 }
 0x947   : > { %vm1801_vm10 = vcmp.lt.f32.partialorder %v3775_v20, %v1779_v35  ;;  %vm1856_vm11 = vcmp.lt.f32.partialorder %v3726_v25, %v1829_v36 }
 0x948   : > { %v1816_v14 = vsel %vm1801_vm10, %v3775_v20, -1.0  ;;  %v1871_v37 = vsel %vm1856_vm11, %v3726_v25, -1.0 }
 0x949   : > { %1838 = vmax.xlane.f32.xlu2 %v1816_v14  ;;  %1888 = vmax.xlane.f32.xlu0 %v1871_v37 }
 0x94e   : > { %v1781_v39 = vpop.xlane.xlu2 %1780  ;;  %v1831_v41 = vpop.xlane.xlu0 %1830 }
 0x94f   : > { %vm1802_vm12 = vcmp.lt.f32.partialorder %v3784_v18, %v1781_v39  ;;  %vm1857_vm13 = vcmp.lt.f32.partialorder %v3737_v46, %v1831_v41 }
 0x950   : > { %v1817_v42 = vsel %vm1802_vm12, %v3784_v18, -1.0  ;;  %v1872_v13 = vsel %vm1857_vm13, %v3737_v46, -1.0 }
 0x951   : > { %v1783_v47 = vpop.xlane.xlu1 %1782  ;;  %1840 = vmax.xlane.f32.xlu2 %v1817_v42  ;;  %1890 = vmax.xlane.f32.xlu0 %v1872_v13 }
 0x952   : > { %vm1803_vm14 = vcmp.lt.f32.partialorder %v3792_v61, %v1783_v47 }
 0x953   : > { %v1818_v49 = vsel %vm1803_vm14, %v3792_v61, -1.0 }
 0x954   : > { %1842 = vmax.xlane.f32.xlu1 %v1818_v49 }
 0x956   : > { %v1833_v50 = vpop.xlane.xlu2 %1832 }
 0x957   : > { %vm1858_vm15 = vcmp.lt.f32.partialorder %v3748_v6, %v1833_v50 }
 0x958   : > { %v1873_v17 = vsel %vm1858_vm15, %v3748_v6, -1.0 }
 0x959   : > { %v1785_v51 = vpop.xlane.xlu0 %1784  ;;  %1892 = vmax.xlane.f32.xlu2 %v1873_v17 }
 0x95a   : > { %vm1804_vm1 = vcmp.lt.f32.partialorder %v3799_v48, %v1785_v51 }
 0x95b   : > { %v1819_v52 = vsel %vm1804_vm1, %v3799_v48, -1.0 }
 0x95c   : > { %1844 = vmax.xlane.f32.xlu0 %v1819_v52 }
 0x95e   : > { %v1835_v8 = vpop.xlane.xlu1 %1834 }
 0x95f   : > { %vm1859_vm2 = vcmp.lt.f32.partialorder %v3761_v28, %v1835_v8 }
 0x960   : > { %v1874_v53 = vsel %vm1859_vm2, %v3761_v28, -1.0 }
 0x961   : > { %1894 = vmax.xlane.f32.xlu1 %v1874_v53  ;;  %v1787_v3 = vpop.xlane.xlu0 %1786 }
 0x962   : > { %vm1805_vm3 = vcmp.lt.f32.partialorder %v3807_v54, %v1787_v3 }
 0x963   : > { %v1820_v2 = vsel %vm1805_vm3, %v3807_v54, -1.0 }
 0x964   : > { %1846 = vmax.xlane.f32.xlu0 %v1820_v2 }
 0x966   : > { %v1837_v58 = vpop.xlane.xlu1 %1836 }
 0x967   : > { %vm1860_vm4 = vcmp.lt.f32.partialorder %v3770_v40, %v1837_v58 }
 0x968   : > { %v1875_v59 = vsel %vm1860_vm4, %v3770_v40, -1.0 }
 0x969   : > { %v1789_v11 = vpop.xlane.xlu0 %1788  ;;  %1896 = vmax.xlane.f32.xlu1 %v1875_v59 }
 0x96a   : > { %vm1806_vm5 = vcmp.lt.f32.partialorder %v3813_v38, %v1789_v11 }
 0x96b   : > { %v1821_v60 = vsel %vm1806_vm5, %v3813_v38, -1.0 }
 0x96c   : > { %1848 = vmax.xlane.f32.xlu0 %v1821_v60 }
 0x96e   : > { %v1791_v62 = vpop.xlane.xlu1 %1790 }
 0x96f   : > { %vm1807_vm6 = vcmp.lt.f32.partialorder %v3817_v43, %v1791_v62 }
 0x970   : > { %v1822_v22 = vsel %vm1807_vm6, %v3817_v43, -1.0 }
 0x971   : > { %1850 = vmax.xlane.f32.xlu1 %v1822_v22 }
 0x976   : > { %v1793_v63 = vpop.xlane.xlu1 %1792 }
 0x977   : > { %vm1808_vm7 = vcmp.lt.f32.partialorder %v3824_v45, %v1793_v63 }
 0x978   : > { %v1823_v33 = vsel %vm1808_vm7, %v3824_v45, -1.0 }
 0x979   : > { %1852 = vmax.xlane.f32.xlu1 %v1823_v33 }
 0x9ac   : > { %v1885_v0 = vpop.xlane.xlu2 %1884 }
 0x9ad   : > { %vm1914_vm8 = vcmp.lt.f32.partialorder %v3707_v44, %v1885_v0 }
 0x9ae   : > { %v1929_v1 = vsel %vm1914_vm8, %v3707_v44, -1.0 }
 0x9af   : > { %1944 = vmax.xlane.f32.xlu2 %v1929_v1 }
 0x9b4   : > { %v1887_v5 = vpop.xlane.xlu2 %1886 }
 0x9b5   : > { %vm1915_vm9 = vcmp.lt.f32.partialorder %v3717_v4, %v1887_v5 }
 0x9b6   : > { %v1930_v7 = vsel %vm1915_vm9, %v3717_v4, -1.0 }
 0x9b7   : > { %1946 = vmax.xlane.f32.xlu2 %v1930_v7 }
 0x9bc   : > { %v1839_v9 = vpop.xlane.xlu2 %1838  ;;  %v1889_v10 = vpop.xlane.xlu0 %1888 }
 0x9bd   : > { %vm1861_vm10 = vcmp.lt.f32.partialorder %v3775_v20, %v1839_v9  ;;  %vm1916_vm11 = vcmp.lt.f32.partialorder %v3726_v25, %v1889_v10 }
 0x9be   : > { %v1876_v12 = vsel %vm1861_vm10, %v3775_v20, -1.0  ;;  %v1931_v15 = vsel %vm1916_vm11, %v3726_v25, -1.0 }
 0x9bf   : > { %1898 = vmax.xlane.f32.xlu2 %v1876_v12  ;;  %1948 = vmax.xlane.f32.xlu0 %v1931_v15 }
 0x9c4   : > { %v1841_v55 = vpop.xlane.xlu2 %1840  ;;  %v1891_v16 = vpop.xlane.xlu0 %1890 }
 0x9c5   : > { %vm1862_vm12 = vcmp.lt.f32.partialorder %v3784_v18, %v1841_v55  ;;  %vm1917_vm13 = vcmp.lt.f32.partialorder %v3737_v46, %v1891_v16 }
 0x9c6   : > { %v1877_v19 = vsel %vm1862_vm12, %v3784_v18, -1.0  ;;  %v1932_v23 = vsel %vm1917_vm13, %v3737_v46, -1.0 }
 0x9c7   : > { %v1843_v21 = vpop.xlane.xlu1 %1842  ;;  %1900 = vmax.xlane.f32.xlu2 %v1877_v19  ;;  %1950 = vmax.xlane.f32.xlu0 %v1932_v23 }
 0x9c8   : > { %vm1863_vm14 = vcmp.lt.f32.partialorder %v3792_v61, %v1843_v21 }
 0x9c9   : > { %v1878_v24 = vsel %vm1863_vm14, %v3792_v61, -1.0 }
 0x9ca   : > { %1902 = vmax.xlane.f32.xlu1 %v1878_v24 }
 0x9cc   : > { %v1893_v26 = vpop.xlane.xlu2 %1892 }
 0x9cd   : > { %vm1918_vm15 = vcmp.lt.f32.partialorder %v3748_v6, %v1893_v26 }
 0x9ce   : > { %v1933_v29 = vsel %vm1918_vm15, %v3748_v6, -1.0 }
 0x9cf   : > { %v1845_v27 = vpop.xlane.xlu0 %1844  ;;  %1952 = vmax.xlane.f32.xlu2 %v1933_v29 }
 0x9d0   : > { %vm1864_vm1 = vcmp.lt.f32.partialorder %v3799_v48, %v1845_v27 }
 0x9d1   : > { %v1879_v30 = vsel %vm1864_vm1, %v3799_v48, -1.0 }
 0x9d2   : > { %1904 = vmax.xlane.f32.xlu0 %v1879_v30 }
 0x9d4   : > { %v1895_v57 = vpop.xlane.xlu1 %1894 }
 0x9d5   : > { %vm1919_vm2 = vcmp.lt.f32.partialorder %v3761_v28, %v1895_v57 }
 0x9d6   : > { %v1934_v56 = vsel %vm1919_vm2, %v3761_v28, -1.0 }
 0x9d7   : > { %1954 = vmax.xlane.f32.xlu1 %v1934_v56  ;;  %v1847_v31 = vpop.xlane.xlu0 %1846 }
 0x9d8   : > { %vm1865_vm3 = vcmp.lt.f32.partialorder %v3807_v54, %v1847_v31 }
 0x9d9   : > { %v1880_v32 = vsel %vm1865_vm3, %v3807_v54, -1.0 }
 0x9da   : > { %1906 = vmax.xlane.f32.xlu0 %v1880_v32 }
 0x9dc   : > { %v1897_v34 = vpop.xlane.xlu1 %1896 }
 0x9dd   : > { %vm1920_vm4 = vcmp.lt.f32.partialorder %v3770_v40, %v1897_v34 }
 0x9de   : > { %v1935_v35 = vsel %vm1920_vm4, %v3770_v40, -1.0 }
 0x9df   : > { %v1849_v36 = vpop.xlane.xlu0 %1848  ;;  %1956 = vmax.xlane.f32.xlu1 %v1935_v35 }
 0x9e0   : > { %vm1866_vm5 = vcmp.lt.f32.partialorder %v3813_v38, %v1849_v36 }
 0x9e1   : > { %v1881_v14 = vsel %vm1866_vm5, %v3813_v38, -1.0 }
 0x9e2   : > { %1908 = vmax.xlane.f32.xlu0 %v1881_v14 }
 0x9e4   : > { %v1851_v37 = vpop.xlane.xlu1 %1850 }
 0x9e5   : > { %vm1867_vm6 = vcmp.lt.f32.partialorder %v3817_v43, %v1851_v37 }
 0x9e6   : > { %v1882_v39 = vsel %vm1867_vm6, %v3817_v43, -1.0 }
 0x9e7   : > { %1910 = vmax.xlane.f32.xlu1 %v1882_v39 }
 0x9ec   : > { %v1853_v41 = vpop.xlane.xlu1 %1852 }
 0x9ed   : > { %vm1868_vm7 = vcmp.lt.f32.partialorder %v3824_v45, %v1853_v41 }
 0x9ee   : > { %v1883_v42 = vsel %vm1868_vm7, %v3824_v45, -1.0 }
 0x9ef   : > { %1912 = vmax.xlane.f32.xlu1 %v1883_v42 }
 0xa22   : > { %v1945_v47 = vpop.xlane.xlu2 %1944 }
 0xa23   : > { %vm1974_vm8 = vcmp.lt.f32.partialorder %v3707_v44, %v1945_v47 }
 0xa24   : > { %v1989_v13 = vsel %vm1974_vm8, %v3707_v44, -1.0 }
 0xa25   : > { %2004 = vmax.xlane.f32.xlu2 %v1989_v13 }
 0xa2a   : > { %v1947_v49 = vpop.xlane.xlu2 %1946 }
 0xa2b   : > { %vm1975_vm9 = vcmp.lt.f32.partialorder %v3717_v4, %v1947_v49 }
 0xa2c   : > { %v1990_v50 = vsel %vm1975_vm9, %v3717_v4, -1.0 }
 0xa2d   : > { %2006 = vmax.xlane.f32.xlu2 %v1990_v50 }
 0xa32   : > { %v1899_v51 = vpop.xlane.xlu2 %1898  ;;  %v1949_v17 = vpop.xlane.xlu0 %1948 }
 0xa33   : > { %vm1921_vm10 = vcmp.lt.f32.partialorder %v3775_v20, %v1899_v51  ;;  %vm1976_vm11 = vcmp.lt.f32.partialorder %v3726_v25, %v1949_v17 }
 0xa34   : > { %v1936_v52 = vsel %vm1921_vm10, %v3775_v20, -1.0  ;;  %v1991_v8 = vsel %vm1976_vm11, %v3726_v25, -1.0 }
 0xa35   : > { %1958 = vmax.xlane.f32.xlu2 %v1936_v52  ;;  %2008 = vmax.xlane.f32.xlu0 %v1991_v8 }
 0xa3a   : > { %v1901_v53 = vpop.xlane.xlu2 %1900  ;;  %v1951_v3 = vpop.xlane.xlu0 %1950 }
 0xa3b   : > { %vm1922_vm12 = vcmp.lt.f32.partialorder %v3784_v18, %v1901_v53  ;;  %vm1977_vm13 = vcmp.lt.f32.partialorder %v3737_v46, %v1951_v3 }
 0xa3c   : > { %v1937_v2 = vsel %vm1922_vm12, %v3784_v18, -1.0  ;;  %v1992_v59 = vsel %vm1977_vm13, %v3737_v46, -1.0 }
 0xa3d   : > { %v1903_v58 = vpop.xlane.xlu1 %1902  ;;  %1960 = vmax.xlane.f32.xlu2 %v1937_v2  ;;  %2010 = vmax.xlane.f32.xlu0 %v1992_v59 }
 0xa3e   : > { %vm1923_vm14 = vcmp.lt.f32.partialorder %v3792_v61, %v1903_v58 }
 0xa3f   : > { %v1938_v11 = vsel %vm1923_vm14, %v3792_v61, -1.0 }
 0xa40   : > { %1962 = vmax.xlane.f32.xlu1 %v1938_v11 }
 0xa42   : > { %v1953_v60 = vpop.xlane.xlu2 %1952 }
 0xa43   : > { %vm1978_vm15 = vcmp.lt.f32.partialorder %v3748_v6, %v1953_v60 }
 0xa44   : > { %v1993_v22 = vsel %vm1978_vm15, %v3748_v6, -1.0 }
 0xa45   : > { %v1905_v62 = vpop.xlane.xlu0 %1904  ;;  %2012 = vmax.xlane.f32.xlu2 %v1993_v22 }
 0xa46   : > { %vm1924_vm1 = vcmp.lt.f32.partialorder %v3799_v48, %v1905_v62 }
 0xa47   : > { %v1939_v63 = vsel %vm1924_vm1, %v3799_v48, -1.0 }
 0xa48   : > { %1964 = vmax.xlane.f32.xlu0 %v1939_v63 }
 0xa4a   : > { %v1955_v33 = vpop.xlane.xlu1 %1954 }
 0xa4b   : > { %vm1979_vm2 = vcmp.lt.f32.partialorder %v3761_v28, %v1955_v33 }
 0xa4c   : > { %v1994_v0 = vsel %vm1979_vm2, %v3761_v28, -1.0 }
 0xa4d   : > { %2014 = vmax.xlane.f32.xlu1 %v1994_v0  ;;  %v1907_v1 = vpop.xlane.xlu0 %1906 }
 0xa4e   : > { %vm1925_vm3 = vcmp.lt.f32.partialorder %v3807_v54, %v1907_v1 }
 0xa4f   : > { %v1940_v5 = vsel %vm1925_vm3, %v3807_v54, -1.0 }
 0xa50   : > { %1966 = vmax.xlane.f32.xlu0 %v1940_v5 }
 0xa52   : > { %v1957_v7 = vpop.xlane.xlu1 %1956 }
 0xa53   : > { %vm1980_vm4 = vcmp.lt.f32.partialorder %v3770_v40, %v1957_v7 }
 0xa54   : > { %v1995_v9 = vsel %vm1980_vm4, %v3770_v40, -1.0 }
 0xa55   : > { %v1909_v10 = vpop.xlane.xlu0 %1908  ;;  %2016 = vmax.xlane.f32.xlu1 %v1995_v9 }
 0xa56   : > { %vm1926_vm5 = vcmp.lt.f32.partialorder %v3813_v38, %v1909_v10 }
 0xa57   : > { %v1941_v12 = vsel %vm1926_vm5, %v3813_v38, -1.0 }
 0xa58   : > { %1968 = vmax.xlane.f32.xlu0 %v1941_v12 }
 0xa5a   : > { %v1911_v15 = vpop.xlane.xlu1 %1910 }
 0xa5b   : > { %vm1927_vm6 = vcmp.lt.f32.partialorder %v3817_v43, %v1911_v15 }
 0xa5c   : > { %v1942_v55 = vsel %vm1927_vm6, %v3817_v43, -1.0 }
 0xa5d   : > { %1970 = vmax.xlane.f32.xlu1 %v1942_v55 }
 0xa62   : > { %v1913_v16 = vpop.xlane.xlu1 %1912 }
 0xa63   : > { %vm1928_vm7 = vcmp.lt.f32.partialorder %v3824_v45, %v1913_v16 }
 0xa64   : > { %v1943_v19 = vsel %vm1928_vm7, %v3824_v45, -1.0 }
 0xa65   : > { %1972 = vmax.xlane.f32.xlu1 %v1943_v19 }
 0xa98   : > { %v2005_v21 = vpop.xlane.xlu2 %2004 }
 0xa99   : > { %vm2034_vm8 = vcmp.lt.f32.partialorder %v3707_v44, %v2005_v21 }
 0xa9a   : > { %v2049_v23 = vsel %vm2034_vm8, %v3707_v44, -1.0 }
 0xa9b   : > { %2064 = vmax.xlane.f32.xlu2 %v2049_v23 }
 0xaa0   : > { %v2007_v24 = vpop.xlane.xlu2 %2006 }
 0xaa1   : > { %vm2035_vm9 = vcmp.lt.f32.partialorder %v3717_v4, %v2007_v24 }
 0xaa2   : > { %v2050_v26 = vsel %vm2035_vm9, %v3717_v4, -1.0 }
 0xaa3   : > { %2066 = vmax.xlane.f32.xlu2 %v2050_v26 }
 0xaa8   : > { %v1959_v27 = vpop.xlane.xlu2 %1958  ;;  %v2009_v29 = vpop.xlane.xlu0 %2008 }
 0xaa9   : > { %vm1981_vm10 = vcmp.lt.f32.partialorder %v3775_v20, %v1959_v27  ;;  %vm2036_vm11 = vcmp.lt.f32.partialorder %v3726_v25, %v2009_v29 }
 0xaaa   : > { %v1996_v30 = vsel %vm1981_vm10, %v3775_v20, -1.0  ;;  %v2051_v57 = vsel %vm2036_vm11, %v3726_v25, -1.0 }
 0xaab   : > { %2018 = vmax.xlane.f32.xlu2 %v1996_v30  ;;  %2068 = vmax.xlane.f32.xlu0 %v2051_v57 }
 0xab0   : > { %v1961_v56 = vpop.xlane.xlu2 %1960  ;;  %v2011_v31 = vpop.xlane.xlu0 %2010 }
 0xab1   : > { %vm1982_vm12 = vcmp.lt.f32.partialorder %v3784_v18, %v1961_v56  ;;  %vm2037_vm13 = vcmp.lt.f32.partialorder %v3737_v46, %v2011_v31 }
 0xab2   : > { %v1997_v32 = vsel %vm1982_vm12, %v3784_v18, -1.0  ;;  %v2052_v35 = vsel %vm2037_vm13, %v3737_v46, -1.0 }
 0xab3   : > { %v1963_v34 = vpop.xlane.xlu1 %1962  ;;  %2020 = vmax.xlane.f32.xlu2 %v1997_v32  ;;  %2070 = vmax.xlane.f32.xlu0 %v2052_v35 }
 0xab4   : > { %vm1983_vm14 = vcmp.lt.f32.partialorder %v3792_v61, %v1963_v34 }
 0xab5   : > { %v1998_v36 = vsel %vm1983_vm14, %v3792_v61, -1.0 }
 0xab6   : > { %2022 = vmax.xlane.f32.xlu1 %v1998_v36 }
 0xab8   : > { %v2013_v14 = vpop.xlane.xlu2 %2012 }
 0xab9   : > { %vm2038_vm15 = vcmp.lt.f32.partialorder %v3748_v6, %v2013_v14 }
 0xaba   : > { %v2053_v39 = vsel %vm2038_vm15, %v3748_v6, -1.0 }
 0xabb   : > { %v1965_v37 = vpop.xlane.xlu0 %1964  ;;  %2072 = vmax.xlane.f32.xlu2 %v2053_v39 }
 0xabc   : > { %vm1984_vm1 = vcmp.lt.f32.partialorder %v3799_v48, %v1965_v37 }
 0xabd   : > { %v1999_v41 = vsel %vm1984_vm1, %v3799_v48, -1.0 }
 0xabe   : > { %2024 = vmax.xlane.f32.xlu0 %v1999_v41 }
 0xac0   : > { %v2015_v42 = vpop.xlane.xlu1 %2014 }
 0xac1   : > { %vm2039_vm2 = vcmp.lt.f32.partialorder %v3761_v28, %v2015_v42 }
 0xac2   : > { %v2054_v47 = vsel %vm2039_vm2, %v3761_v28, -1.0 }
 0xac3   : > { %2074 = vmax.xlane.f32.xlu1 %v2054_v47  ;;  %v1967_v13 = vpop.xlane.xlu0 %1966 }
 0xac4   : > { %vm1985_vm3 = vcmp.lt.f32.partialorder %v3807_v54, %v1967_v13 }
 0xac5   : > { %v2000_v49 = vsel %vm1985_vm3, %v3807_v54, -1.0 }
 0xac6   : > { %2026 = vmax.xlane.f32.xlu0 %v2000_v49 }
 0xac8   : > { %v2017_v50 = vpop.xlane.xlu1 %2016 }
 0xac9   : > { %vm2040_vm4 = vcmp.lt.f32.partialorder %v3770_v40, %v2017_v50 }
 0xaca   : > { %v2055_v51 = vsel %vm2040_vm4, %v3770_v40, -1.0 }
 0xacb   : > { %v1969_v17 = vpop.xlane.xlu0 %1968  ;;  %2076 = vmax.xlane.f32.xlu1 %v2055_v51 }
 0xacc   : > { %vm1986_vm5 = vcmp.lt.f32.partialorder %v3813_v38, %v1969_v17 }
 0xacd   : > { %v2001_v52 = vsel %vm1986_vm5, %v3813_v38, -1.0 }
 0xace   : > { %2028 = vmax.xlane.f32.xlu0 %v2001_v52 }
 0xad0   : > { %v1971_v8 = vpop.xlane.xlu1 %1970 }
 0xad1   : > { %vm1987_vm6 = vcmp.lt.f32.partialorder %v3817_v43, %v1971_v8 }
 0xad2   : > { %v2002_v53 = vsel %vm1987_vm6, %v3817_v43, -1.0 }
 0xad3   : > { %2030 = vmax.xlane.f32.xlu1 %v2002_v53 }
 0xad8   : > { %v1973_v3 = vpop.xlane.xlu1 %1972 }
 0xad9   : > { %vm1988_vm7 = vcmp.lt.f32.partialorder %v3824_v45, %v1973_v3 }
 0xada   : > { %v2003_v2 = vsel %vm1988_vm7, %v3824_v45, -1.0 }
 0xadb   : > { %2032 = vmax.xlane.f32.xlu1 %v2003_v2 }
 0xb0e   : > { %v2065_v58 = vpop.xlane.xlu2 %2064 }
 0xb0f   : > { %vm2094_vm8 = vcmp.lt.f32.partialorder %v3707_v44, %v2065_v58 }
 0xb10   : > { %v2109_v59 = vsel %vm2094_vm8, %v3707_v44, -1.0 }
 0xb11   : > { %2124 = vmax.xlane.f32.xlu2 %v2109_v59 }
 0xb16   : > { %v2067_v11 = vpop.xlane.xlu2 %2066 }
 0xb17   : > { %vm2095_vm9 = vcmp.lt.f32.partialorder %v3717_v4, %v2067_v11 }
 0xb18   : > { %v2110_v60 = vsel %vm2095_vm9, %v3717_v4, -1.0 }
 0xb19   : > { %2126 = vmax.xlane.f32.xlu2 %v2110_v60 }
 0xb1e   : > { %v2019_v62 = vpop.xlane.xlu2 %2018  ;;  %v2069_v22 = vpop.xlane.xlu0 %2068 }
 0xb1f   : > { %vm2041_vm10 = vcmp.lt.f32.partialorder %v3775_v20, %v2019_v62  ;;  %vm2096_vm11 = vcmp.lt.f32.partialorder %v3726_v25, %v2069_v22 }
 0xb20   : > { %v2056_v63 = vsel %vm2041_vm10, %v3775_v20, -1.0  ;;  %v2111_v33 = vsel %vm2096_vm11, %v3726_v25, -1.0 }
 0xb21   : > { %2078 = vmax.xlane.f32.xlu2 %v2056_v63  ;;  %2128 = vmax.xlane.f32.xlu0 %v2111_v33 }
 0xb26   : > { %v2021_v0 = vpop.xlane.xlu2 %2020  ;;  %v2071_v1 = vpop.xlane.xlu0 %2070 }
 0xb27   : > { %vm2042_vm12 = vcmp.lt.f32.partialorder %v3784_v18, %v2021_v0  ;;  %vm2097_vm13 = vcmp.lt.f32.partialorder %v3737_v46, %v2071_v1 }
 0xb28   : > { %v2057_v5 = vsel %vm2042_vm12, %v3784_v18, -1.0  ;;  %v2112_v9 = vsel %vm2097_vm13, %v3737_v46, -1.0 }
 0xb29   : > { %v2023_v7 = vpop.xlane.xlu1 %2022  ;;  %2080 = vmax.xlane.f32.xlu2 %v2057_v5  ;;  %2130 = vmax.xlane.f32.xlu0 %v2112_v9 }
 0xb2a   : > { %vm2043_vm14 = vcmp.lt.f32.partialorder %v3792_v61, %v2023_v7 }
 0xb2b   : > { %v2058_v10 = vsel %vm2043_vm14, %v3792_v61, -1.0 }
 0xb2c   : > { %2082 = vmax.xlane.f32.xlu1 %v2058_v10 }
 0xb2e   : > { %v2073_v12 = vpop.xlane.xlu2 %2072 }
 0xb2f   : > { %vm2098_vm15 = vcmp.lt.f32.partialorder %v3748_v6, %v2073_v12 }
 0xb30   : > { %v2113_v55 = vsel %vm2098_vm15, %v3748_v6, -1.0 }
 0xb31   : > { %v2025_v15 = vpop.xlane.xlu0 %2024  ;;  %2132 = vmax.xlane.f32.xlu2 %v2113_v55 }
 0xb32   : > { %vm2044_vm1 = vcmp.lt.f32.partialorder %v3799_v48, %v2025_v15 }
 0xb33   : > { %v2059_v16 = vsel %vm2044_vm1, %v3799_v48, -1.0 }
 0xb34   : > { %2084 = vmax.xlane.f32.xlu0 %v2059_v16 }
 0xb36   : > { %v2075_v19 = vpop.xlane.xlu1 %2074 }
 0xb37   : > { %vm2099_vm2 = vcmp.lt.f32.partialorder %v3761_v28, %v2075_v19 }
 0xb38   : > { %v2114_v21 = vsel %vm2099_vm2, %v3761_v28, -1.0 }
 0xb39   : > { %2134 = vmax.xlane.f32.xlu1 %v2114_v21  ;;  %v2027_v23 = vpop.xlane.xlu0 %2026 }
 0xb3a   : > { %vm2045_vm3 = vcmp.lt.f32.partialorder %v3807_v54, %v2027_v23 }
 0xb3b   : > { %v2060_v24 = vsel %vm2045_vm3, %v3807_v54, -1.0 }
 0xb3c   : > { %2086 = vmax.xlane.f32.xlu0 %v2060_v24 }
 0xb3e   : > { %v2077_v26 = vpop.xlane.xlu1 %2076 }
 0xb3f   : > { %vm2100_vm4 = vcmp.lt.f32.partialorder %v3770_v40, %v2077_v26 }
 0xb40   : > { %v2115_v27 = vsel %vm2100_vm4, %v3770_v40, -1.0 }
 0xb41   : > { %v2029_v29 = vpop.xlane.xlu0 %2028  ;;  %2136 = vmax.xlane.f32.xlu1 %v2115_v27 }
 0xb42   : > { %vm2046_vm5 = vcmp.lt.f32.partialorder %v3813_v38, %v2029_v29 }
 0xb43   : > { %v2061_v30 = vsel %vm2046_vm5, %v3813_v38, -1.0 }
 0xb44   : > { %2088 = vmax.xlane.f32.xlu0 %v2061_v30 }
 0xb46   : > { %v2031_v57 = vpop.xlane.xlu1 %2030 }
 0xb47   : > { %vm2047_vm6 = vcmp.lt.f32.partialorder %v3817_v43, %v2031_v57 }
 0xb48   : > { %v2062_v56 = vsel %vm2047_vm6, %v3817_v43, -1.0 }
 0xb49   : > { %2090 = vmax.xlane.f32.xlu1 %v2062_v56 }
 0xb4e   : > { %v2033_v31 = vpop.xlane.xlu1 %2032 }
 0xb4f   : > { %vm2048_vm7 = vcmp.lt.f32.partialorder %v3824_v45, %v2033_v31 }
 0xb50   : > { %v2063_v32 = vsel %vm2048_vm7, %v3824_v45, -1.0 }
 0xb51   : > { %2092 = vmax.xlane.f32.xlu1 %v2063_v32 }
 0xb84   : > { %v2125_v34 = vpop.xlane.xlu2 %2124 }
 0xb85   : > { %vm2154_vm8 = vcmp.lt.f32.partialorder %v3707_v44, %v2125_v34 }
 0xb86   : > { %v2169_v35 = vsel %vm2154_vm8, %v3707_v44, -1.0 }
 0xb87   : > { %2184 = vmax.xlane.f32.xlu2 %v2169_v35 }
 0xb8c   : > { %v2127_v36 = vpop.xlane.xlu2 %2126 }
 0xb8d   : > { %vm2155_vm9 = vcmp.lt.f32.partialorder %v3717_v4, %v2127_v36 }
 0xb8e   : > { %v2170_v14 = vsel %vm2155_vm9, %v3717_v4, -1.0 }
 0xb8f   : > { %2186 = vmax.xlane.f32.xlu2 %v2170_v14 }
 0xb94   : > { %v2079_v37 = vpop.xlane.xlu2 %2078  ;;  %v2129_v39 = vpop.xlane.xlu0 %2128 }
 0xb95   : > { %vm2101_vm10 = vcmp.lt.f32.partialorder %v3775_v20, %v2079_v37  ;;  %vm2156_vm11 = vcmp.lt.f32.partialorder %v3726_v25, %v2129_v39 }
 0xb96   : > { %v2116_v41 = vsel %vm2101_vm10, %v3775_v20, -1.0  ;;  %v2171_v42 = vsel %vm2156_vm11, %v3726_v25, -1.0 }
 0xb97   : > { %2138 = vmax.xlane.f32.xlu2 %v2116_v41  ;;  %2188 = vmax.xlane.f32.xlu0 %v2171_v42 }
 0xb9c   : > { %v2081_v47 = vpop.xlane.xlu2 %2080  ;;  %v2131_v13 = vpop.xlane.xlu0 %2130 }
 0xb9d   : > { %vm2102_vm12 = vcmp.lt.f32.partialorder %v3784_v18, %v2081_v47  ;;  %vm2157_vm13 = vcmp.lt.f32.partialorder %v3737_v46, %v2131_v13 }
 0xb9e   : > { %v2117_v49 = vsel %vm2102_vm12, %v3784_v18, -1.0  ;;  %v2172_v51 = vsel %vm2157_vm13, %v3737_v46, -1.0 }
 0xb9f   : > { %v2083_v50 = vpop.xlane.xlu1 %2082  ;;  %2140 = vmax.xlane.f32.xlu2 %v2117_v49  ;;  %2190 = vmax.xlane.f32.xlu0 %v2172_v51 }
 0xba0   : > { %vm2103_vm14 = vcmp.lt.f32.partialorder %v3792_v61, %v2083_v50 }
 0xba1   : > { %v2118_v17 = vsel %vm2103_vm14, %v3792_v61, -1.0 }
 0xba2   : > { %2142 = vmax.xlane.f32.xlu1 %v2118_v17 }
 0xba4   : > { %v2133_v52 = vpop.xlane.xlu2 %2132 }
 0xba5   : > { %vm2158_vm15 = vcmp.lt.f32.partialorder %v3748_v6, %v2133_v52 }
 0xba6   : > { %v2173_v53 = vsel %vm2158_vm15, %v3748_v6, -1.0 }
 0xba7   : > { %v2085_v8 = vpop.xlane.xlu0 %2084  ;;  %2192 = vmax.xlane.f32.xlu2 %v2173_v53 }
 0xba8   : > { %vm2104_vm1 = vcmp.lt.f32.partialorder %v3799_v48, %v2085_v8 }
 0xba9   : > { %v2119_v3 = vsel %vm2104_vm1, %v3799_v48, -1.0 }
 0xbaa   : > { %2144 = vmax.xlane.f32.xlu0 %v2119_v3 }
 0xbac   : > { %v2135_v2 = vpop.xlane.xlu1 %2134 }
 0xbad   : > { %vm2159_vm2 = vcmp.lt.f32.partialorder %v3761_v28, %v2135_v2 }
 0xbae   : > { %v2174_v58 = vsel %vm2159_vm2, %v3761_v28, -1.0 }
 0xbaf   : > { %2194 = vmax.xlane.f32.xlu1 %v2174_v58  ;;  %v2087_v59 = vpop.xlane.xlu0 %2086 }
 0xbb0   : > { %vm2105_vm3 = vcmp.lt.f32.partialorder %v3807_v54, %v2087_v59 }
 0xbb1   : > { %v2120_v11 = vsel %vm2105_vm3, %v3807_v54, -1.0 }
 0xbb2   : > { %2146 = vmax.xlane.f32.xlu0 %v2120_v11 }
 0xbb4   : > { %v2137_v60 = vpop.xlane.xlu1 %2136 }
 0xbb5   : > { %vm2160_vm4 = vcmp.lt.f32.partialorder %v3770_v40, %v2137_v60 }
 0xbb6   : > { %v2175_v62 = vsel %vm2160_vm4, %v3770_v40, -1.0 }
 0xbb7   : > { %v2089_v22 = vpop.xlane.xlu0 %2088  ;;  %2196 = vmax.xlane.f32.xlu1 %v2175_v62 }
 0xbb8   : > { %vm2106_vm5 = vcmp.lt.f32.partialorder %v3813_v38, %v2089_v22 }
 0xbb9   : > { %v2121_v63 = vsel %vm2106_vm5, %v3813_v38, -1.0 }
 0xbba   : > { %2148 = vmax.xlane.f32.xlu0 %v2121_v63 }
 0xbbc   : > { %v2091_v33 = vpop.xlane.xlu1 %2090 }
 0xbbd   : > { %vm2107_vm6 = vcmp.lt.f32.partialorder %v3817_v43, %v2091_v33 }
 0xbbe   : > { %v2122_v0 = vsel %vm2107_vm6, %v3817_v43, -1.0 }
 0xbbf   : > { %2150 = vmax.xlane.f32.xlu1 %v2122_v0 }
 0xbc4   : > { %v2093_v1 = vpop.xlane.xlu1 %2092 }
 0xbc5   : > { %vm2108_vm7 = vcmp.lt.f32.partialorder %v3824_v45, %v2093_v1 }
 0xbc6   : > { %v2123_v5 = vsel %vm2108_vm7, %v3824_v45, -1.0 }
 0xbc7   : > { %2152 = vmax.xlane.f32.xlu1 %v2123_v5 }
 0xbfa   : > { %v2185_v7 = vpop.xlane.xlu2 %2184 }
 0xbfb   : > { %vm2214_vm8 = vcmp.lt.f32.partialorder %v3707_v44, %v2185_v7 }
 0xbfc   : > { %v2229_v9 = vsel %vm2214_vm8, %v3707_v44, -1.0 }
 0xbfd   : > { %2244 = vmax.xlane.f32.xlu2 %v2229_v9 }
 0xc02   : > { %v2187_v10 = vpop.xlane.xlu2 %2186 }
 0xc03   : > { %vm2215_vm9 = vcmp.lt.f32.partialorder %v3717_v4, %v2187_v10 }
 0xc04   : > { %v2230_v12 = vsel %vm2215_vm9, %v3717_v4, -1.0 }
 0xc05   : > { %2246 = vmax.xlane.f32.xlu2 %v2230_v12 }
 0xc0a   : > { %v2139_v15 = vpop.xlane.xlu2 %2138  ;;  %v2189_v55 = vpop.xlane.xlu0 %2188 }
 0xc0b   : > { %vm2161_vm10 = vcmp.lt.f32.partialorder %v3775_v20, %v2139_v15  ;;  %vm2216_vm11 = vcmp.lt.f32.partialorder %v3726_v25, %v2189_v55 }
 0xc0c   : > { %v2176_v16 = vsel %vm2161_vm10, %v3775_v20, -1.0  ;;  %v2231_v19 = vsel %vm2216_vm11, %v3726_v25, -1.0 }
 0xc0d   : > { %2198 = vmax.xlane.f32.xlu2 %v2176_v16  ;;  %2248 = vmax.xlane.f32.xlu0 %v2231_v19 }
 0xc12   : > { %v2141_v21 = vpop.xlane.xlu2 %2140  ;;  %v2191_v23 = vpop.xlane.xlu0 %2190 }
 0xc13   : > { %vm2162_vm12 = vcmp.lt.f32.partialorder %v3784_v18, %v2141_v21  ;;  %vm2217_vm13 = vcmp.lt.f32.partialorder %v3737_v46, %v2191_v23 }
 0xc14   : > { %v2177_v24 = vsel %vm2162_vm12, %v3784_v18, -1.0  ;;  %v2232_v27 = vsel %vm2217_vm13, %v3737_v46, -1.0 }
 0xc15   : > { %v2143_v26 = vpop.xlane.xlu1 %2142  ;;  %2200 = vmax.xlane.f32.xlu2 %v2177_v24  ;;  %2250 = vmax.xlane.f32.xlu0 %v2232_v27 }
 0xc16   : > { %vm2163_vm14 = vcmp.lt.f32.partialorder %v3792_v61, %v2143_v26 }
 0xc17   : > { %v2178_v29 = vsel %vm2163_vm14, %v3792_v61, -1.0 }
 0xc18   : > { %2202 = vmax.xlane.f32.xlu1 %v2178_v29 }
 0xc1a   : > { %v2193_v30 = vpop.xlane.xlu2 %2192 }
 0xc1b   : > { %vm2218_vm15 = vcmp.lt.f32.partialorder %v3748_v6, %v2193_v30 }
 0xc1c   : > { %v2233_v56 = vsel %vm2218_vm15, %v3748_v6, -1.0 }
 0xc1d   : > { %v2145_v57 = vpop.xlane.xlu0 %2144  ;;  %2252 = vmax.xlane.f32.xlu2 %v2233_v56 }
 0xc1e   : > { %vm2164_vm1 = vcmp.lt.f32.partialorder %v3799_v48, %v2145_v57 }
 0xc1f   : > { %v2179_v31 = vsel %vm2164_vm1, %v3799_v48, -1.0 }
 0xc20   : > { %2204 = vmax.xlane.f32.xlu0 %v2179_v31 }
 0xc22   : > { %v2195_v32 = vpop.xlane.xlu1 %2194 }
 0xc23   : > { %vm2219_vm2 = vcmp.lt.f32.partialorder %v3761_v28, %v2195_v32 }
 0xc24   : > { %v2234_v34 = vsel %vm2219_vm2, %v3761_v28, -1.0 }
 0xc25   : > { %2254 = vmax.xlane.f32.xlu1 %v2234_v34  ;;  %v2147_v35 = vpop.xlane.xlu0 %2146 }
 0xc26   : > { %vm2165_vm3 = vcmp.lt.f32.partialorder %v3807_v54, %v2147_v35 }
 0xc27   : > { %v2180_v36 = vsel %vm2165_vm3, %v3807_v54, -1.0 }
 0xc28   : > { %2206 = vmax.xlane.f32.xlu0 %v2180_v36 }
 0xc2a   : > { %v2197_v14 = vpop.xlane.xlu1 %2196 }
 0xc2b   : > { %vm2220_vm4 = vcmp.lt.f32.partialorder %v3770_v40, %v2197_v14 }
 0xc2c   : > { %v2235_v37 = vsel %vm2220_vm4, %v3770_v40, -1.0 }
 0xc2d   : > { %v2149_v39 = vpop.xlane.xlu0 %2148  ;;  %2256 = vmax.xlane.f32.xlu1 %v2235_v37 }
 0xc2e   : > { %vm2166_vm5 = vcmp.lt.f32.partialorder %v3813_v38, %v2149_v39 }
 0xc2f   : > { %v2181_v41 = vsel %vm2166_vm5, %v3813_v38, -1.0 }
 0xc30   : > { %2208 = vmax.xlane.f32.xlu0 %v2181_v41 }
 0xc32   : > { %v2151_v42 = vpop.xlane.xlu1 %2150 }
 0xc33   : > { %vm2167_vm6 = vcmp.lt.f32.partialorder %v3817_v43, %v2151_v42 }
 0xc34   : > { %v2182_v47 = vsel %vm2167_vm6, %v3817_v43, -1.0 }
 0xc35   : > { %2210 = vmax.xlane.f32.xlu1 %v2182_v47 }
 0xc3a   : > { %v2153_v13 = vpop.xlane.xlu1 %2152 }
 0xc3b   : > { %vm2168_vm7 = vcmp.lt.f32.partialorder %v3824_v45, %v2153_v13 }
 0xc3c   : > { %v2183_v49 = vsel %vm2168_vm7, %v3824_v45, -1.0 }
 0xc3d   : > { %2212 = vmax.xlane.f32.xlu1 %v2183_v49 }
 0xc70   : > { %v2245_v50 = vpop.xlane.xlu2 %2244 }
 0xc71   : > { %vm2274_vm8 = vcmp.lt.f32.partialorder %v3707_v44, %v2245_v50 }
 0xc72   : > { %v2289_v51 = vsel %vm2274_vm8, %v3707_v44, -1.0 }
 0xc73   : > { %2304 = vmax.xlane.f32.xlu2 %v2289_v51 }
 0xc78   : > { %v2247_v17 = vpop.xlane.xlu2 %2246 }
 0xc79   : > { %vm2275_vm9 = vcmp.lt.f32.partialorder %v3717_v4, %v2247_v17 }
 0xc7a   : > { %v2290_v52 = vsel %vm2275_vm9, %v3717_v4, -1.0 }
 0xc7b   : > { %2306 = vmax.xlane.f32.xlu2 %v2290_v52 }
 0xc80   : > { %v2199_v8 = vpop.xlane.xlu2 %2198  ;;  %v2249_v53 = vpop.xlane.xlu0 %2248 }
 0xc81   : > { %vm2221_vm10 = vcmp.lt.f32.partialorder %v3775_v20, %v2199_v8  ;;  %vm2276_vm11 = vcmp.lt.f32.partialorder %v3726_v25, %v2249_v53 }
 0xc82   : > { %v2236_v3 = vsel %vm2221_vm10, %v3775_v20, -1.0  ;;  %v2291_v2 = vsel %vm2276_vm11, %v3726_v25, -1.0 }
 0xc83   : > { %2258 = vmax.xlane.f32.xlu2 %v2236_v3  ;;  %2308 = vmax.xlane.f32.xlu0 %v2291_v2 }
 0xc88   : > { %v2201_v58 = vpop.xlane.xlu2 %2200  ;;  %v2251_v59 = vpop.xlane.xlu0 %2250 }
 0xc89   : > { %vm2222_vm12 = vcmp.lt.f32.partialorder %v3784_v18, %v2201_v58  ;;  %vm2277_vm13 = vcmp.lt.f32.partialorder %v3737_v46, %v2251_v59 }
 0xc8a   : > { %v2237_v11 = vsel %vm2222_vm12, %v3784_v18, -1.0  ;;  %v2292_v62 = vsel %vm2277_vm13, %v3737_v46, -1.0 }
 0xc8b   : > { %v2203_v60 = vpop.xlane.xlu1 %2202  ;;  %2260 = vmax.xlane.f32.xlu2 %v2237_v11  ;;  %2310 = vmax.xlane.f32.xlu0 %v2292_v62 }
 0xc8c   : > { %vm2223_vm14 = vcmp.lt.f32.partialorder %v3792_v61, %v2203_v60 }
 0xc8d   : > { %v2238_v22 = vsel %vm2223_vm14, %v3792_v61, -1.0 }
 0xc8e   : > { %2262 = vmax.xlane.f32.xlu1 %v2238_v22 }
 0xc90   : > { %v2253_v63 = vpop.xlane.xlu2 %2252 }
 0xc91   : > { %vm2278_vm15 = vcmp.lt.f32.partialorder %v3748_v6, %v2253_v63 }
 0xc92   : > { %v2293_v0 = vsel %vm2278_vm15, %v3748_v6, -1.0 }
 0xc93   : > { %v2205_v33 = vpop.xlane.xlu0 %2204  ;;  %2312 = vmax.xlane.f32.xlu2 %v2293_v0 }
 0xc94   : > { %vm2224_vm1 = vcmp.lt.f32.partialorder %v3799_v48, %v2205_v33 }
 0xc95   : > { %v2239_v1 = vsel %vm2224_vm1, %v3799_v48, -1.0 }
 0xc96   : > { %2264 = vmax.xlane.f32.xlu0 %v2239_v1 }
 0xc98   : > { %v2255_v5 = vpop.xlane.xlu1 %2254 }
 0xc99   : > { %vm2279_vm2 = vcmp.lt.f32.partialorder %v3761_v28, %v2255_v5 }
 0xc9a   : > { %v2294_v7 = vsel %vm2279_vm2, %v3761_v28, -1.0 }
 0xc9b   : > { %2314 = vmax.xlane.f32.xlu1 %v2294_v7  ;;  %v2207_v9 = vpop.xlane.xlu0 %2206 }
 0xc9c   : > { %vm2225_vm3 = vcmp.lt.f32.partialorder %v3807_v54, %v2207_v9 }
 0xc9d   : > { %v2240_v10 = vsel %vm2225_vm3, %v3807_v54, -1.0 }
 0xc9e   : > { %2266 = vmax.xlane.f32.xlu0 %v2240_v10 }
 0xca0   : > { %v2257_v12 = vpop.xlane.xlu1 %2256 }
 0xca1   : > { %vm2280_vm4 = vcmp.lt.f32.partialorder %v3770_v40, %v2257_v12 }
 0xca2   : > { %v2295_v15 = vsel %vm2280_vm4, %v3770_v40, -1.0 }
 0xca3   : > { %v2209_v55 = vpop.xlane.xlu0 %2208  ;;  %2316 = vmax.xlane.f32.xlu1 %v2295_v15 }
 0xca4   : > { %vm2226_vm5 = vcmp.lt.f32.partialorder %v3813_v38, %v2209_v55 }
 0xca5   : > { %v2241_v16 = vsel %vm2226_vm5, %v3813_v38, -1.0 }
 0xca6   : > { %2268 = vmax.xlane.f32.xlu0 %v2241_v16 }
 0xca8   : > { %v2211_v19 = vpop.xlane.xlu1 %2210 }
 0xca9   : > { %vm2227_vm6 = vcmp.lt.f32.partialorder %v3817_v43, %v2211_v19 }
 0xcaa   : > { %v2242_v21 = vsel %vm2227_vm6, %v3817_v43, -1.0 }
 0xcab   : > { %2270 = vmax.xlane.f32.xlu1 %v2242_v21 }
 0xcb0   : > { %v2213_v23 = vpop.xlane.xlu1 %2212 }
 0xcb1   : > { %vm2228_vm7 = vcmp.lt.f32.partialorder %v3824_v45, %v2213_v23 }
 0xcb2   : > { %v2243_v24 = vsel %vm2228_vm7, %v3824_v45, -1.0 }
 0xcb3   : > { %2272 = vmax.xlane.f32.xlu1 %v2243_v24 }
 0xce6   : > { %v2305_v26 = vpop.xlane.xlu2 %2304 }
 0xce7   : > { %vm2334_vm8 = vcmp.lt.f32.partialorder %v3707_v44, %v2305_v26 }
 0xce8   : > { %v2349_v27 = vsel %vm2334_vm8, %v3707_v44, -1.0 }
 0xce9   : > { %2364 = vmax.xlane.f32.xlu2 %v2349_v27 }
 0xcee   : > { %v2307_v29 = vpop.xlane.xlu2 %2306 }
 0xcef   : > { %vm2335_vm9 = vcmp.lt.f32.partialorder %v3717_v4, %v2307_v29 }
 0xcf0   : > { %v2350_v30 = vsel %vm2335_vm9, %v3717_v4, -1.0 }
 0xcf1   : > { %2366 = vmax.xlane.f32.xlu2 %v2350_v30 }
 0xcf6   : > { %v2259_v57 = vpop.xlane.xlu2 %2258  ;;  %v2309_v56 = vpop.xlane.xlu0 %2308 }
 0xcf7   : > { %vm2281_vm10 = vcmp.lt.f32.partialorder %v3775_v20, %v2259_v57  ;;  %vm2336_vm11 = vcmp.lt.f32.partialorder %v3726_v25, %v2309_v56 }
 0xcf8   : > { %v2296_v31 = vsel %vm2281_vm10, %v3775_v20, -1.0  ;;  %v2351_v32 = vsel %vm2336_vm11, %v3726_v25, -1.0 }
 0xcf9   : > { %2318 = vmax.xlane.f32.xlu2 %v2296_v31  ;;  %2368 = vmax.xlane.f32.xlu0 %v2351_v32 }
 0xcfe   : > { %v2261_v34 = vpop.xlane.xlu2 %2260  ;;  %v2311_v35 = vpop.xlane.xlu0 %2310 }
 0xcff   : > { %vm2282_vm12 = vcmp.lt.f32.partialorder %v3784_v18, %v2261_v34  ;;  %vm2337_vm13 = vcmp.lt.f32.partialorder %v3737_v46, %v2311_v35 }
 0xd00   : > { %v2297_v36 = vsel %vm2282_vm12, %v3784_v18, -1.0  ;;  %v2352_v37 = vsel %vm2337_vm13, %v3737_v46, -1.0 }
 0xd01   : > { %v2263_v14 = vpop.xlane.xlu1 %2262  ;;  %2320 = vmax.xlane.f32.xlu2 %v2297_v36  ;;  %2370 = vmax.xlane.f32.xlu0 %v2352_v37 }
 0xd02   : > { %vm2283_vm14 = vcmp.lt.f32.partialorder %v3792_v61, %v2263_v14 }
 0xd03   : > { %v2298_v39 = vsel %vm2283_vm14, %v3792_v61, -1.0 }
 0xd04   : > { %2322 = vmax.xlane.f32.xlu1 %v2298_v39 }
 0xd06   : > { %v2313_v41 = vpop.xlane.xlu2 %2312 }
 0xd07   : > { %vm2338_vm15 = vcmp.lt.f32.partialorder %v3748_v6, %v2313_v41 }
 0xd08   : > { %v2353_v47 = vsel %vm2338_vm15, %v3748_v6, -1.0 }
 0xd09   : > { %v2265_v42 = vpop.xlane.xlu0 %2264  ;;  %2372 = vmax.xlane.f32.xlu2 %v2353_v47 }
 0xd0a   : > { %vm2284_vm1 = vcmp.lt.f32.partialorder %v3799_v48, %v2265_v42 }
 0xd0b   : > { %v2299_v13 = vsel %vm2284_vm1, %v3799_v48, -1.0 }
 0xd0c   : > { %2324 = vmax.xlane.f32.xlu0 %v2299_v13 }
 0xd0e   : > { %v2315_v49 = vpop.xlane.xlu1 %2314 }
 0xd0f   : > { %vm2339_vm2 = vcmp.lt.f32.partialorder %v3761_v28, %v2315_v49 }
 0xd10   : > { %v2354_v50 = vsel %vm2339_vm2, %v3761_v28, -1.0 }
 0xd11   : > { %2374 = vmax.xlane.f32.xlu1 %v2354_v50  ;;  %v2267_v51 = vpop.xlane.xlu0 %2266 }
 0xd12   : > { %vm2285_vm3 = vcmp.lt.f32.partialorder %v3807_v54, %v2267_v51 }
 0xd13   : > { %v2300_v17 = vsel %vm2285_vm3, %v3807_v54, -1.0 }
 0xd14   : > { %2326 = vmax.xlane.f32.xlu0 %v2300_v17 }
 0xd16   : > { %v2317_v52 = vpop.xlane.xlu1 %2316 }
 0xd17   : > { %vm2340_vm4 = vcmp.lt.f32.partialorder %v3770_v40, %v2317_v52 }
 0xd18   : > { %v2355_v8 = vsel %vm2340_vm4, %v3770_v40, -1.0 }
 0xd19   : > { %v2269_v53 = vpop.xlane.xlu0 %2268  ;;  %2376 = vmax.xlane.f32.xlu1 %v2355_v8 }
 0xd1a   : > { %vm2286_vm5 = vcmp.lt.f32.partialorder %v3813_v38, %v2269_v53 }
 0xd1b   : > { %v2301_v3 = vsel %vm2286_vm5, %v3813_v38, -1.0 }
 0xd1c   : > { %2328 = vmax.xlane.f32.xlu0 %v2301_v3 }
 0xd1e   : > { %v2271_v2 = vpop.xlane.xlu1 %2270 }
 0xd1f   : > { %vm2287_vm6 = vcmp.lt.f32.partialorder %v3817_v43, %v2271_v2 }
 0xd20   : > { %v2302_v58 = vsel %vm2287_vm6, %v3817_v43, -1.0 }
 0xd21   : > { %2330 = vmax.xlane.f32.xlu1 %v2302_v58 }
 0xd26   : > { %v2273_v59 = vpop.xlane.xlu1 %2272 }
 0xd27   : > { %vm2288_vm7 = vcmp.lt.f32.partialorder %v3824_v45, %v2273_v59 }
 0xd28   : > { %v2303_v11 = vsel %vm2288_vm7, %v3824_v45, -1.0 }
 0xd29   : > { %2332 = vmax.xlane.f32.xlu1 %v2303_v11 }
 0xd5c   : > { %v2365_v60 = vpop.xlane.xlu2 %2364 }
 0xd5d   : > { %vm2394_vm8 = vcmp.lt.f32.partialorder %v3707_v44, %v2365_v60 }
 0xd5e   : > { %v2409_v62 = vsel %vm2394_vm8, %v3707_v44, -1.0 }
 0xd5f   : > { %2424 = vmax.xlane.f32.xlu2 %v2409_v62 }
 0xd64   : > { %v2367_v22 = vpop.xlane.xlu2 %2366 }
 0xd65   : > { %vm2395_vm9 = vcmp.lt.f32.partialorder %v3717_v4, %v2367_v22 }
 0xd66   : > { %v2410_v63 = vsel %vm2395_vm9, %v3717_v4, -1.0 }
 0xd67   : > { %2426 = vmax.xlane.f32.xlu2 %v2410_v63 }
 0xd6c   : > { %v2319_v33 = vpop.xlane.xlu2 %2318  ;;  %v2369_v0 = vpop.xlane.xlu0 %2368 }
 0xd6d   : > { %vm2341_vm10 = vcmp.lt.f32.partialorder %v3775_v20, %v2319_v33  ;;  %vm2396_vm11 = vcmp.lt.f32.partialorder %v3726_v25, %v2369_v0 }
 0xd6e   : > { %v2356_v1 = vsel %vm2341_vm10, %v3775_v20, -1.0  ;;  %v2411_v5 = vsel %vm2396_vm11, %v3726_v25, -1.0 }
 0xd6f   : > { %2378 = vmax.xlane.f32.xlu2 %v2356_v1  ;;  %2428 = vmax.xlane.f32.xlu0 %v2411_v5 }
 0xd74   : > { %v2321_v7 = vpop.xlane.xlu2 %2320  ;;  %v2371_v9 = vpop.xlane.xlu0 %2370 }
 0xd75   : > { %vm2342_vm12 = vcmp.lt.f32.partialorder %v3784_v18, %v2321_v7  ;;  %vm2397_vm13 = vcmp.lt.f32.partialorder %v3737_v46, %v2371_v9 }
 0xd76   : > { %v2357_v10 = vsel %vm2342_vm12, %v3784_v18, -1.0  ;;  %v2412_v15 = vsel %vm2397_vm13, %v3737_v46, -1.0 }
 0xd77   : > { %v2323_v12 = vpop.xlane.xlu1 %2322  ;;  %2380 = vmax.xlane.f32.xlu2 %v2357_v10  ;;  %2430 = vmax.xlane.f32.xlu0 %v2412_v15 }
 0xd78   : > { %vm2343_vm14 = vcmp.lt.f32.partialorder %v3792_v61, %v2323_v12 }
 0xd79   : > { %v2358_v55 = vsel %vm2343_vm14, %v3792_v61, -1.0 }
 0xd7a   : > { %2382 = vmax.xlane.f32.xlu1 %v2358_v55 }
 0xd7c   : > { %v2373_v16 = vpop.xlane.xlu2 %2372 }
 0xd7d   : > { %vm2398_vm15 = vcmp.lt.f32.partialorder %v3748_v6, %v2373_v16 }
 0xd7e   : > { %v2413_v21 = vsel %vm2398_vm15, %v3748_v6, -1.0 }
 0xd7f   : > { %v2325_v19 = vpop.xlane.xlu0 %2324  ;;  %2432 = vmax.xlane.f32.xlu2 %v2413_v21 }
 0xd80   : > { %vm2344_vm1 = vcmp.lt.f32.partialorder %v3799_v48, %v2325_v19 }
 0xd81   : > { %v2359_v23 = vsel %vm2344_vm1, %v3799_v48, -1.0 }
 0xd82   : > { %2384 = vmax.xlane.f32.xlu0 %v2359_v23 }
 0xd84   : > { %v2375_v24 = vpop.xlane.xlu1 %2374 }
 0xd85   : > { %vm2399_vm2 = vcmp.lt.f32.partialorder %v3761_v28, %v2375_v24 }
 0xd86   : > { %v2414_v26 = vsel %vm2399_vm2, %v3761_v28, -1.0 }
 0xd87   : > { %2434 = vmax.xlane.f32.xlu1 %v2414_v26  ;;  %v2327_v27 = vpop.xlane.xlu0 %2326 }
 0xd88   : > { %vm2345_vm3 = vcmp.lt.f32.partialorder %v3807_v54, %v2327_v27 }
 0xd89   : > { %v2360_v29 = vsel %vm2345_vm3, %v3807_v54, -1.0 }
 0xd8a   : > { %2386 = vmax.xlane.f32.xlu0 %v2360_v29 }
 0xd8c   : > { %v2377_v30 = vpop.xlane.xlu1 %2376 }
 0xd8d   : > { %vm2400_vm4 = vcmp.lt.f32.partialorder %v3770_v40, %v2377_v30 }
 0xd8e   : > { %v2415_v57 = vsel %vm2400_vm4, %v3770_v40, -1.0 }
 0xd8f   : > { %v2329_v56 = vpop.xlane.xlu0 %2328  ;;  %2436 = vmax.xlane.f32.xlu1 %v2415_v57 }
 0xd90   : > { %vm2346_vm5 = vcmp.lt.f32.partialorder %v3813_v38, %v2329_v56 }
 0xd91   : > { %v2361_v31 = vsel %vm2346_vm5, %v3813_v38, -1.0 }
 0xd92   : > { %2388 = vmax.xlane.f32.xlu0 %v2361_v31 }
 0xd94   : > { %v2331_v32 = vpop.xlane.xlu1 %2330 }
 0xd95   : > { %vm2347_vm6 = vcmp.lt.f32.partialorder %v3817_v43, %v2331_v32 }
 0xd96   : > { %v2362_v34 = vsel %vm2347_vm6, %v3817_v43, -1.0 }
 0xd97   : > { %2390 = vmax.xlane.f32.xlu1 %v2362_v34 }
 0xd9c   : > { %v2333_v35 = vpop.xlane.xlu1 %2332 }
 0xd9d   : > { %vm2348_vm7 = vcmp.lt.f32.partialorder %v3824_v45, %v2333_v35 }
 0xd9e   : > { %v2363_v36 = vsel %vm2348_vm7, %v3824_v45, -1.0 }
 0xd9f   : > { %2392 = vmax.xlane.f32.xlu1 %v2363_v36 }
 0xdd2   : > { %v2425_v14 = vpop.xlane.xlu2 %2424 }
 0xdd3   : > { %vm2454_vm8 = vcmp.lt.f32.partialorder %v3707_v44, %v2425_v14 }
 0xdd4   : > { %v2469_v37 = vsel %vm2454_vm8, %v3707_v44, -1.0 }
 0xdd5   : > { %2484 = vmax.xlane.f32.xlu2 %v2469_v37 }
 0xdda   : > { %v2427_v39 = vpop.xlane.xlu2 %2426 }
 0xddb   : > { %vm2455_vm9 = vcmp.lt.f32.partialorder %v3717_v4, %v2427_v39 }
 0xddc   : > { %v2470_v41 = vsel %vm2455_vm9, %v3717_v4, -1.0 }
 0xddd   : > { %2486 = vmax.xlane.f32.xlu2 %v2470_v41 }
 0xde2   : > { %v2379_v42 = vpop.xlane.xlu2 %2378  ;;  %v2429_v47 = vpop.xlane.xlu0 %2428 }
 0xde3   : > { %vm2401_vm10 = vcmp.lt.f32.partialorder %v3775_v20, %v2379_v42  ;;  %vm2456_vm11 = vcmp.lt.f32.partialorder %v3726_v25, %v2429_v47 }
 0xde4   : > { %v2416_v13 = vsel %vm2401_vm10, %v3775_v20, -1.0  ;;  %v2471_v49 = vsel %vm2456_vm11, %v3726_v25, -1.0 }
 0xde5   : > { %2438 = vmax.xlane.f32.xlu2 %v2416_v13  ;;  %2488 = vmax.xlane.f32.xlu0 %v2471_v49 }
 0xdea   : > { %v2381_v50 = vpop.xlane.xlu2 %2380  ;;  %v2431_v51 = vpop.xlane.xlu0 %2430 }
 0xdeb   : > { %vm2402_vm12 = vcmp.lt.f32.partialorder %v3784_v18, %v2381_v50  ;;  %vm2457_vm13 = vcmp.lt.f32.partialorder %v3737_v46, %v2431_v51 }
 0xdec   : > { %v2417_v17 = vsel %vm2402_vm12, %v3784_v18, -1.0  ;;  %v2472_v8 = vsel %vm2457_vm13, %v3737_v46, -1.0 }
 0xded   : > { %v2383_v52 = vpop.xlane.xlu1 %2382  ;;  %2440 = vmax.xlane.f32.xlu2 %v2417_v17  ;;  %2490 = vmax.xlane.f32.xlu0 %v2472_v8 }
 0xdee   : > { %vm2403_vm14 = vcmp.lt.f32.partialorder %v3792_v61, %v2383_v52 }
 0xdef   : > { %v2418_v53 = vsel %vm2403_vm14, %v3792_v61, -1.0 }
 0xdf0   : > { %2442 = vmax.xlane.f32.xlu1 %v2418_v53 }
 0xdf2   : > { %v2433_v3 = vpop.xlane.xlu2 %2432 }
 0xdf3   : > { %vm2458_vm15 = vcmp.lt.f32.partialorder %v3748_v6, %v2433_v3 }
 0xdf4   : > { %v2473_v58 = vsel %vm2458_vm15, %v3748_v6, -1.0 }
 0xdf5   : > { %v2385_v2 = vpop.xlane.xlu0 %2384  ;;  %2492 = vmax.xlane.f32.xlu2 %v2473_v58 }
 0xdf6   : > { %vm2404_vm1 = vcmp.lt.f32.partialorder %v3799_v48, %v2385_v2 }
 0xdf7   : > { %v2419_v59 = vsel %vm2404_vm1, %v3799_v48, -1.0 }
 0xdf8   : > { %2444 = vmax.xlane.f32.xlu0 %v2419_v59 }
 0xdfa   : > { %v2435_v11 = vpop.xlane.xlu1 %2434 }
 0xdfb   : > { %vm2459_vm2 = vcmp.lt.f32.partialorder %v3761_v28, %v2435_v11 }
 0xdfc   : > { %v2474_v60 = vsel %vm2459_vm2, %v3761_v28, -1.0 }
 0xdfd   : > { %2494 = vmax.xlane.f32.xlu1 %v2474_v60  ;;  %v2387_v62 = vpop.xlane.xlu0 %2386 }
 0xdfe   : > { %vm2405_vm3 = vcmp.lt.f32.partialorder %v3807_v54, %v2387_v62 }
 0xdff   : > { %v2420_v22 = vsel %vm2405_vm3, %v3807_v54, -1.0 }
 0xe00   : > { %2446 = vmax.xlane.f32.xlu0 %v2420_v22 }
 0xe02   : > { %v2437_v63 = vpop.xlane.xlu1 %2436 }
 0xe03   : > { %vm2460_vm4 = vcmp.lt.f32.partialorder %v3770_v40, %v2437_v63 }
 0xe04   : > { %v2475_v33 = vsel %vm2460_vm4, %v3770_v40, -1.0 }
 0xe05   : > { %v2389_v0 = vpop.xlane.xlu0 %2388  ;;  %2496 = vmax.xlane.f32.xlu1 %v2475_v33 }
 0xe06   : > { %vm2406_vm5 = vcmp.lt.f32.partialorder %v3813_v38, %v2389_v0 }
 0xe07   : > { %v2421_v1 = vsel %vm2406_vm5, %v3813_v38, -1.0 }
 0xe08   : > { %2448 = vmax.xlane.f32.xlu0 %v2421_v1 }
 0xe0a   : > { %v2391_v5 = vpop.xlane.xlu1 %2390 }
 0xe0b   : > { %vm2407_vm6 = vcmp.lt.f32.partialorder %v3817_v43, %v2391_v5 }
 0xe0c   : > { %v2422_v7 = vsel %vm2407_vm6, %v3817_v43, -1.0 }
 0xe0d   : > { %2450 = vmax.xlane.f32.xlu1 %v2422_v7 }
 0xe12   : > { %v2393_v9 = vpop.xlane.xlu1 %2392 }
 0xe13   : > { %vm2408_vm7 = vcmp.lt.f32.partialorder %v3824_v45, %v2393_v9 }
 0xe14   : > { %v2423_v10 = vsel %vm2408_vm7, %v3824_v45, -1.0 }
 0xe15   : > { %2452 = vmax.xlane.f32.xlu1 %v2423_v10 }
 0xe48   : > { %v2485_v12 = vpop.xlane.xlu2 %2484 }
 0xe49   : > { %vm2514_vm8 = vcmp.lt.f32.partialorder %v3707_v44, %v2485_v12 }
 0xe4a   : > { %v2529_v15 = vsel %vm2514_vm8, %v3707_v44, -1.0 }
 0xe4b   : > { %2544 = vmax.xlane.f32.xlu2 %v2529_v15 }
 0xe50   : > { %v2487_v55 = vpop.xlane.xlu2 %2486 }
 0xe51   : > { %vm2515_vm9 = vcmp.lt.f32.partialorder %v3717_v4, %v2487_v55 }
 0xe52   : > { %v2530_v16 = vsel %vm2515_vm9, %v3717_v4, -1.0 }
 0xe53   : > { %2546 = vmax.xlane.f32.xlu2 %v2530_v16 }
 0xe58   : > { %v2439_v19 = vpop.xlane.xlu2 %2438  ;;  %v2489_v21 = vpop.xlane.xlu0 %2488 }
 0xe59   : > { %vm2461_vm10 = vcmp.lt.f32.partialorder %v3775_v20, %v2439_v19  ;;  %vm2516_vm11 = vcmp.lt.f32.partialorder %v3726_v25, %v2489_v21 }
 0xe5a   : > { %v2476_v23 = vsel %vm2461_vm10, %v3775_v20, -1.0  ;;  %v2531_v24 = vsel %vm2516_vm11, %v3726_v25, -1.0 }
 0xe5b   : > { %2498 = vmax.xlane.f32.xlu2 %v2476_v23  ;;  %2548 = vmax.xlane.f32.xlu0 %v2531_v24 }
 0xe60   : > { %v2441_v26 = vpop.xlane.xlu2 %2440  ;;  %v2491_v27 = vpop.xlane.xlu0 %2490 }
 0xe61   : > { %vm2462_vm12 = vcmp.lt.f32.partialorder %v3784_v18, %v2441_v26  ;;  %vm2517_vm13 = vcmp.lt.f32.partialorder %v3737_v46, %v2491_v27 }
 0xe62   : > { %v2477_v29 = vsel %vm2462_vm12, %v3784_v18, -1.0  ;;  %v2532_v57 = vsel %vm2517_vm13, %v3737_v46, -1.0 }
 0xe63   : > { %v2443_v30 = vpop.xlane.xlu1 %2442  ;;  %2500 = vmax.xlane.f32.xlu2 %v2477_v29  ;;  %2550 = vmax.xlane.f32.xlu0 %v2532_v57 }
 0xe64   : > { %vm2463_vm14 = vcmp.lt.f32.partialorder %v3792_v61, %v2443_v30 }
 0xe65   : > { %v2478_v56 = vsel %vm2463_vm14, %v3792_v61, -1.0 }
 0xe66   : > { %2502 = vmax.xlane.f32.xlu1 %v2478_v56 }
 0xe68   : > { %v2493_v31 = vpop.xlane.xlu2 %2492 }
 0xe69   : > { %vm2518_vm15 = vcmp.lt.f32.partialorder %v3748_v6, %v2493_v31 }
 0xe6a   : > { %v2533_v34 = vsel %vm2518_vm15, %v3748_v6, -1.0 }
 0xe6b   : > { %v2445_v32 = vpop.xlane.xlu0 %2444  ;;  %2552 = vmax.xlane.f32.xlu2 %v2533_v34 }
 0xe6c   : > { %vm2464_vm1 = vcmp.lt.f32.partialorder %v3799_v48, %v2445_v32 }
 0xe6d   : > { %v2479_v35 = vsel %vm2464_vm1, %v3799_v48, -1.0 }
 0xe6e   : > { %2504 = vmax.xlane.f32.xlu0 %v2479_v35 }
 0xe70   : > { %v2495_v36 = vpop.xlane.xlu1 %2494 }
 0xe71   : > { %vm2519_vm2 = vcmp.lt.f32.partialorder %v3761_v28, %v2495_v36 }
 0xe72   : > { %v2534_v14 = vsel %vm2519_vm2, %v3761_v28, -1.0 }
 0xe73   : > { %2554 = vmax.xlane.f32.xlu1 %v2534_v14  ;;  %v2447_v37 = vpop.xlane.xlu0 %2446 }
 0xe74   : > { %vm2465_vm3 = vcmp.lt.f32.partialorder %v3807_v54, %v2447_v37 }
 0xe75   : > { %v2480_v39 = vsel %vm2465_vm3, %v3807_v54, -1.0 }
 0xe76   : > { %2506 = vmax.xlane.f32.xlu0 %v2480_v39 }
 0xe78   : > { %v2497_v41 = vpop.xlane.xlu1 %2496 }
 0xe79   : > { %vm2520_vm4 = vcmp.lt.f32.partialorder %v3770_v40, %v2497_v41 }
 0xe7a   : > { %v2535_v42 = vsel %vm2520_vm4, %v3770_v40, -1.0 }
 0xe7b   : > { %v2449_v47 = vpop.xlane.xlu0 %2448  ;;  %2556 = vmax.xlane.f32.xlu1 %v2535_v42 }
 0xe7c   : > { %vm2466_vm5 = vcmp.lt.f32.partialorder %v3813_v38, %v2449_v47 }
 0xe7d   : > { %v2481_v13 = vsel %vm2466_vm5, %v3813_v38, -1.0 }
 0xe7e   : > { %2508 = vmax.xlane.f32.xlu0 %v2481_v13 }
 0xe80   : > { %v2451_v49 = vpop.xlane.xlu1 %2450 }
 0xe81   : > { %vm2467_vm6 = vcmp.lt.f32.partialorder %v3817_v43, %v2451_v49 }
 0xe82   : > { %v2482_v50 = vsel %vm2467_vm6, %v3817_v43, -1.0 }
 0xe83   : > { %2510 = vmax.xlane.f32.xlu1 %v2482_v50 }
 0xe88   : > { %v2453_v51 = vpop.xlane.xlu1 %2452 }
 0xe89   : > { %vm2468_vm7 = vcmp.lt.f32.partialorder %v3824_v45, %v2453_v51 }
 0xe8a   : > { %v2483_v17 = vsel %vm2468_vm7, %v3824_v45, -1.0 }
 0xe8b   : > { %2512 = vmax.xlane.f32.xlu1 %v2483_v17 }
 0xebe   : > { %v2545_v52 = vpop.xlane.xlu2 %2544 }
 0xebf   : > { %vm2574_vm8 = vcmp.lt.f32.partialorder %v3707_v44, %v2545_v52 }
 0xec0   : > { %v2589_v8 = vsel %vm2574_vm8, %v3707_v44, -1.0 }
 0xec1   : > { %2604 = vmax.xlane.f32.xlu2 %v2589_v8 }
 0xec6   : > { %v2547_v53 = vpop.xlane.xlu2 %2546 }
 0xec7   : > { %vm2575_vm9 = vcmp.lt.f32.partialorder %v3717_v4, %v2547_v53 }
 0xec8   : > { %v2590_v3 = vsel %vm2575_vm9, %v3717_v4, -1.0 }
 0xec9   : > { %2606 = vmax.xlane.f32.xlu2 %v2590_v3 }
 0xece   : > { %v2499_v2 = vpop.xlane.xlu2 %2498  ;;  %v2549_v58 = vpop.xlane.xlu0 %2548 }
 0xecf   : > { %vm2521_vm10 = vcmp.lt.f32.partialorder %v3775_v20, %v2499_v2  ;;  %vm2576_vm11 = vcmp.lt.f32.partialorder %v3726_v25, %v2549_v58 }
 0xed0   : > { %v2536_v59 = vsel %vm2521_vm10, %v3775_v20, -1.0  ;;  %v2591_v11 = vsel %vm2576_vm11, %v3726_v25, -1.0 }
 0xed1   : > { %2558 = vmax.xlane.f32.xlu2 %v2536_v59  ;;  %2608 = vmax.xlane.f32.xlu0 %v2591_v11 }
 0xed6   : > { %v2501_v60 = vpop.xlane.xlu2 %2500  ;;  %v2551_v62 = vpop.xlane.xlu0 %2550 }
 0xed7   : > { %vm2522_vm12 = vcmp.lt.f32.partialorder %v3784_v18, %v2501_v60  ;;  %vm2577_vm13 = vcmp.lt.f32.partialorder %v3737_v46, %v2551_v62 }
 0xed8   : > { %v2537_v22 = vsel %vm2522_vm12, %v3784_v18, -1.0  ;;  %v2592_v33 = vsel %vm2577_vm13, %v3737_v46, -1.0 }
 0xed9   : > { %v2503_v63 = vpop.xlane.xlu1 %2502  ;;  %2560 = vmax.xlane.f32.xlu2 %v2537_v22  ;;  %2610 = vmax.xlane.f32.xlu0 %v2592_v33 }
 0xeda   : > { %vm2523_vm14 = vcmp.lt.f32.partialorder %v3792_v61, %v2503_v63 }
 0xedb   : > { %v2538_v0 = vsel %vm2523_vm14, %v3792_v61, -1.0 }
 0xedc   : > { %2562 = vmax.xlane.f32.xlu1 %v2538_v0 }
 0xede   : > { %v2553_v1 = vpop.xlane.xlu2 %2552 }
 0xedf   : > { %vm2578_vm15 = vcmp.lt.f32.partialorder %v3748_v6, %v2553_v1 }
 0xee0   : > { %v2593_v7 = vsel %vm2578_vm15, %v3748_v6, -1.0 }
 0xee1   : > { %v2505_v5 = vpop.xlane.xlu0 %2504  ;;  %2612 = vmax.xlane.f32.xlu2 %v2593_v7 }
 0xee2   : > { %vm2524_vm1 = vcmp.lt.f32.partialorder %v3799_v48, %v2505_v5 }
 0xee3   : > { %v2539_v9 = vsel %vm2524_vm1, %v3799_v48, -1.0 }
 0xee4   : > { %2564 = vmax.xlane.f32.xlu0 %v2539_v9 }
 0xee6   : > { %v2555_v10 = vpop.xlane.xlu1 %2554 }
 0xee7   : > { %vm2579_vm2 = vcmp.lt.f32.partialorder %v3761_v28, %v2555_v10 }
 0xee8   : > { %v2594_v12 = vsel %vm2579_vm2, %v3761_v28, -1.0 }
 0xee9   : > { %2614 = vmax.xlane.f32.xlu1 %v2594_v12  ;;  %v2507_v15 = vpop.xlane.xlu0 %2506 }
 0xeea   : > { %vm2525_vm3 = vcmp.lt.f32.partialorder %v3807_v54, %v2507_v15 }
 0xeeb   : > { %v2540_v55 = vsel %vm2525_vm3, %v3807_v54, -1.0 }
 0xeec   : > { %2566 = vmax.xlane.f32.xlu0 %v2540_v55 }
 0xeee   : > { %v2557_v16 = vpop.xlane.xlu1 %2556 }
 0xeef   : > { %vm2580_vm4 = vcmp.lt.f32.partialorder %v3770_v40, %v2557_v16 }
 0xef0   : > { %v2595_v19 = vsel %vm2580_vm4, %v3770_v40, -1.0 }
 0xef1   : > { %v2509_v21 = vpop.xlane.xlu0 %2508  ;;  %2616 = vmax.xlane.f32.xlu1 %v2595_v19 }
 0xef2   : > { %vm2526_vm5 = vcmp.lt.f32.partialorder %v3813_v38, %v2509_v21 }
 0xef3   : > { %v2541_v23 = vsel %vm2526_vm5, %v3813_v38, -1.0 }
 0xef4   : > { %2568 = vmax.xlane.f32.xlu0 %v2541_v23 }
 0xef6   : > { %v2511_v24 = vpop.xlane.xlu1 %2510 }
 0xef7   : > { %vm2527_vm6 = vcmp.lt.f32.partialorder %v3817_v43, %v2511_v24 }
 0xef8   : > { %v2542_v26 = vsel %vm2527_vm6, %v3817_v43, -1.0 }
 0xef9   : > { %2570 = vmax.xlane.f32.xlu1 %v2542_v26 }
 0xefe   : > { %v2513_v27 = vpop.xlane.xlu1 %2512 }
 0xeff   : > { %vm2528_vm7 = vcmp.lt.f32.partialorder %v3824_v45, %v2513_v27 }
 0xf00   : > { %v2543_v29 = vsel %vm2528_vm7, %v3824_v45, -1.0 }
 0xf01   : > { %2572 = vmax.xlane.f32.xlu1 %v2543_v29 }
 0xf34   : > { %v2605_v30 = vpop.xlane.xlu2 %2604 }
 0xf35   : > { %vm2634_vm8 = vcmp.lt.f32.partialorder %v3707_v44, %v2605_v30 }
 0xf36   : > { %v2649_v57 = vsel %vm2634_vm8, %v3707_v44, -1.0 }
 0xf37   : > { %2664 = vmax.xlane.f32.xlu2 %v2649_v57 }
 0xf3c   : > { %v2607_v56 = vpop.xlane.xlu2 %2606 }
 0xf3d   : > { %vm2635_vm9 = vcmp.lt.f32.partialorder %v3717_v4, %v2607_v56 }
 0xf3e   : > { %v2650_v31 = vsel %vm2635_vm9, %v3717_v4, -1.0 }
 0xf3f   : > { %2666 = vmax.xlane.f32.xlu2 %v2650_v31 }
 0xf44   : > { %v2559_v32 = vpop.xlane.xlu2 %2558  ;;  %v2609_v34 = vpop.xlane.xlu0 %2608 }
 0xf45   : > { %vm2581_vm10 = vcmp.lt.f32.partialorder %v3775_v20, %v2559_v32  ;;  %vm2636_vm11 = vcmp.lt.f32.partialorder %v3726_v25, %v2609_v34 }
 0xf46   : > { %v2596_v35 = vsel %vm2581_vm10, %v3775_v20, -1.0  ;;  %v2651_v36 = vsel %vm2636_vm11, %v3726_v25, -1.0 }
 0xf47   : > { %2618 = vmax.xlane.f32.xlu2 %v2596_v35  ;;  %2668 = vmax.xlane.f32.xlu0 %v2651_v36 }
 0xf4c   : > { %v2561_v14 = vpop.xlane.xlu2 %2560  ;;  %v2611_v37 = vpop.xlane.xlu0 %2610 }
 0xf4d   : > { %vm2582_vm12 = vcmp.lt.f32.partialorder %v3784_v18, %v2561_v14  ;;  %vm2637_vm13 = vcmp.lt.f32.partialorder %v3737_v46, %v2611_v37 }
 0xf4e   : > { %v2597_v39 = vsel %vm2582_vm12, %v3784_v18, -1.0  ;;  %v2652_v42 = vsel %vm2637_vm13, %v3737_v46, -1.0 }
 0xf4f   : > { %v2563_v41 = vpop.xlane.xlu1 %2562  ;;  %2620 = vmax.xlane.f32.xlu2 %v2597_v39  ;;  %2670 = vmax.xlane.f32.xlu0 %v2652_v42 }
 0xf50   : > { %vm2583_vm14 = vcmp.lt.f32.partialorder %v3792_v61, %v2563_v41 }
 0xf51   : > { %v2598_v47 = vsel %vm2583_vm14, %v3792_v61, -1.0 }
 0xf52   : > { %2622 = vmax.xlane.f32.xlu1 %v2598_v47 }
 0xf54   : > { %v2613_v13 = vpop.xlane.xlu2 %2612 }
 0xf55   : > { %vm2638_vm15 = vcmp.lt.f32.partialorder %v3748_v6, %v2613_v13 }
 0xf56   : > { %v2653_v50 = vsel %vm2638_vm15, %v3748_v6, -1.0 }
 0xf57   : > { %v2565_v49 = vpop.xlane.xlu0 %2564  ;;  %2672 = vmax.xlane.f32.xlu2 %v2653_v50 }
 0xf58   : > { %vm2584_vm1 = vcmp.lt.f32.partialorder %v3799_v48, %v2565_v49 }
 0xf59   : > { %v2599_v51 = vsel %vm2584_vm1, %v3799_v48, -1.0 }
 0xf5a   : > { %2624 = vmax.xlane.f32.xlu0 %v2599_v51 }
 0xf5c   : > { %v2615_v17 = vpop.xlane.xlu1 %2614 }
 0xf5d   : > { %vm2639_vm2 = vcmp.lt.f32.partialorder %v3761_v28, %v2615_v17 }
 0xf5e   : > { %v2654_v52 = vsel %vm2639_vm2, %v3761_v28, -1.0 }
 0xf5f   : > { %2674 = vmax.xlane.f32.xlu1 %v2654_v52  ;;  %v2567_v8 = vpop.xlane.xlu0 %2566 }
 0xf60   : > { %vm2585_vm3 = vcmp.lt.f32.partialorder %v3807_v54, %v2567_v8 }
 0xf61   : > { %v2600_v53 = vsel %vm2585_vm3, %v3807_v54, -1.0 }
 0xf62   : > { %2626 = vmax.xlane.f32.xlu0 %v2600_v53 }
 0xf64   : > { %v2617_v3 = vpop.xlane.xlu1 %2616 }
 0xf65   : > { %vm2640_vm4 = vcmp.lt.f32.partialorder %v3770_v40, %v2617_v3 }
 0xf66   : > { %v2655_v2 = vsel %vm2640_vm4, %v3770_v40, -1.0 }
 0xf67   : > { %v2569_v58 = vpop.xlane.xlu0 %2568  ;;  %2676 = vmax.xlane.f32.xlu1 %v2655_v2 }
 0xf68   : > { %vm2586_vm5 = vcmp.lt.f32.partialorder %v3813_v38, %v2569_v58 }
 0xf69   : > { %v2601_v59 = vsel %vm2586_vm5, %v3813_v38, -1.0 }
 0xf6a   : > { %2628 = vmax.xlane.f32.xlu0 %v2601_v59 }
 0xf6c   : > { %v2571_v11 = vpop.xlane.xlu1 %2570 }
 0xf6d   : > { %vm2587_vm6 = vcmp.lt.f32.partialorder %v3817_v43, %v2571_v11 }
 0xf6e   : > { %v2602_v60 = vsel %vm2587_vm6, %v3817_v43, -1.0 }
 0xf6f   : > { %2630 = vmax.xlane.f32.xlu1 %v2602_v60  ;;  %v2859_v60 = vld [vmem:[%s4717_s23 + $0x78] sm:$0xff] }
 0xf74   : > { %v2573_v62 = vpop.xlane.xlu1 %2572 }
 0xf75   : > { %vm2588_vm7 = vcmp.lt.f32.partialorder %v3824_v45, %v2573_v62  ;;  %v4724_v62 = vld [vmem:[%s4922_s4] ss:$0 sm:$0xff] }
 0xf76   : > { %v2603_v22 = vsel %vm2588_vm7, %v3824_v45, -1.0 }
 0xf77   : > { %2632 = vmax.xlane.f32.xlu1 %v2603_v22  ;;  %v4729_v22 = vld [vmem:[%s4923_s5] ss:$0 sm:$0xff] }
 0xfaa   : > { %v2665_v63 = vpop.xlane.xlu2 %2664 }
 0xfab   : > { %vm2694_vm8 = vcmp.lt.f32.partialorder %v3707_v44, %v2665_v63 }
 0xfac   : > { %v2709_v33 = vsel %vm2694_vm8, %v3707_v44, -1.0 }
 0xfad   : > { %2724 = vmax.xlane.f32.xlu2 %v2709_v33  ;;  %v2858_v33 = vld [vmem:[%s4717_s23 + $0x70] sm:$0xff] }
 0xfb2   : > { %v2667_v0 = vpop.xlane.xlu2 %2666 }
 0xfb3   : > { %vm2695_vm9 = vcmp.lt.f32.partialorder %v3717_v4, %v2667_v0  ;;  %v2857_v0 = vld [vmem:[%s4717_s23 + $0x68] sm:$0xff] }
 0xfb4   : > { %v2710_v1 = vsel %vm2695_vm9, %v3717_v4, -1.0 }
 0xfb5   : > { %2726 = vmax.xlane.f32.xlu2 %v2710_v1  ;;  %v2856_v1 = vld [vmem:[%s4717_s23 + $0x60] sm:$0xff] }
 0xfba   : > { %v2619_v5 = vpop.xlane.xlu2 %2618  ;;  %v2669_v7 = vpop.xlane.xlu0 %2668 }
 0xfbb   : > { %vm2641_vm10 = vcmp.lt.f32.partialorder %v3775_v20, %v2619_v5  ;;  %vm2696_vm11 = vcmp.lt.f32.partialorder %v3726_v25, %v2669_v7  ;;  %v2879_v7 = vmul.f32 %v4724_v62, %v2859_v60 }
 0xfbc   : > { %v2656_v9 = vsel %vm2641_vm10, %v3775_v20, -1.0  ;;  %v2711_v10 = vsel %vm2696_vm11, %v3726_v25, -1.0 }
 0xfbd   : > { %2678 = vmax.xlane.f32.xlu2 %v2656_v9  ;;  %2728 = vmax.xlane.f32.xlu0 %v2711_v10  ;;  %v2878_v9 = vmul.f32 %v4724_v62, %v2858_v33  ;;  %v2877_v10 = vmul.f32 %v4724_v62, %v2857_v0 }
 0xfc2   : > { %v2621_v12 = vpop.xlane.xlu2 %2620  ;;  %v2671_v15 = vpop.xlane.xlu0 %2670 }
 0xfc3   : > { %vm2642_vm12 = vcmp.lt.f32.partialorder %v3784_v18, %v2621_v12  ;;  %vm2697_vm13 = vcmp.lt.f32.partialorder %v3737_v46, %v2671_v15  ;;  %v2855_v12 = vld [vmem:[%s4717_s23 + $0x58] sm:$0xff]  ;;  %v2854_v15 = vld [vmem:[%s4717_s23 + $0x50] sm:$0xff] }
 0xfc4   : > { %v2657_v55 = vsel %vm2642_vm12, %v3784_v18, -1.0  ;;  %v2712_v19 = vsel %vm2697_vm13, %v3737_v46, -1.0 }
 0xfc5   : > { %v2623_v16 = vpop.xlane.xlu1 %2622  ;;  %2680 = vmax.xlane.f32.xlu2 %v2657_v55  ;;  %2730 = vmax.xlane.f32.xlu0 %v2712_v19  ;;  %v2876_v55 = vmul.f32 %v4724_v62, %v2856_v1  ;;  %v2899_v19 = vadd.f32 %v4729_v22, %v2879_v7  ;;  %v2846_v7 = vld [vmem:[%s4717_s23 + $0x10] sm:$0xff] }
 0xfc6   : > { %vm2643_vm14 = vcmp.lt.f32.partialorder %v3792_v61, %v2623_v16 }
 0xfc7   : > { %v2658_v21 = vsel %vm2643_vm14, %v3792_v61, -1.0 }
 0xfc8   : > { %2682 = vmax.xlane.f32.xlu1 %v2658_v21  ;;  %v2898_v21 = vadd.f32 %v4729_v22, %v2878_v9 }
 0xfca   : > { %v2673_v23 = vpop.xlane.xlu2 %2672 }
 0xfcb   : > { %vm2698_vm15 = vcmp.lt.f32.partialorder %v3748_v6, %v2673_v23  ;;  %v2897_v23 = vadd.f32 %v4729_v22, %v2877_v10 }
 0xfcc   : > { %v2713_v26 = vsel %vm2698_vm15, %v3748_v6, -1.0 }
 0xfcd   : > { %v2625_v24 = vpop.xlane.xlu0 %2624  ;;  %2732 = vmax.xlane.f32.xlu2 %v2713_v26  ;;  %v2874_v26 = vmul.f32 %v4724_v62, %v2854_v15 }
 0xfce   : > { %vm2644_vm1 = vcmp.lt.f32.partialorder %v3799_v48, %v2625_v24  ;;  %v2875_v24 = vmul.f32 %v4724_v62, %v2855_v12 }
 0xfcf   : > { %v2659_v27 = vsel %vm2644_vm1, %v3799_v48, -1.0 }
 0xfd0   : > { %2684 = vmax.xlane.f32.xlu0 %v2659_v27  ;;  %v2853_v27 = vld [vmem:[%s4717_s23 + $0x48] sm:$0xff] }
 0xfd2   : > { %v2675_v29 = vpop.xlane.xlu1 %2674 }
 0xfd3   : > { %vm2699_vm2 = vcmp.lt.f32.partialorder %v3761_v28, %v2675_v29 }
 0xfd4   : > { %v2714_v30 = vsel %vm2699_vm2, %v3761_v28, -1.0 }
 0xfd5   : > { %2734 = vmax.xlane.f32.xlu1 %v2714_v30  ;;  %v2627_v57 = vpop.xlane.xlu0 %2626  ;;  %v2915_v30 = vmax.f32 %v2899_v19, 0.0 }
 0xfd6   : > { %vm2645_vm3 = vcmp.lt.f32.partialorder %v3807_v54, %v2627_v57  ;;  %v2914_v57 = vmax.f32 %v2898_v21, 0.0  ;;  %v2866_v21 = vmul.f32 %v4724_v62, %v2846_v7 }
 0xfd7   : > { %v2660_v56 = vsel %vm2645_vm3, %v3807_v54, -1.0  ;;  %2916 = vmatpush.msra.mxu1 %v2915_v30  ;;  %3310 = vmatpush.msrb.mxu3 %v2915_v30 }
 0xfd8   : > { %2686 = vmax.xlane.f32.xlu0 %v2660_v56  ;;  %v2896_v56 = vadd.f32 %v4729_v22, %v2876_v55  ;;  %v2845_v55 = vld [vmem:[%s4717_s23 + $0x8] sm:$0xff]  ;;  %v2886_v30 = vadd.f32 %v4729_v22, %v2866_v21 }
 0xfd9   : > { %2917 = vmatpush.msra.mxu1 %v2914_v57  ;;  %3311 = vmatpush.msrb.mxu3 %v2914_v57 }
 0xfda   : > { %v2677_v31 = vpop.xlane.xlu1 %2676 }
 0xfdb   : > { %vm2700_vm4 = vcmp.lt.f32.partialorder %v3770_v40, %v2677_v31  ;;  %v2852_v31 = vld [vmem:[%s4717_s23 + $0x40] sm:$0xff] }
 0xfdc   : > { %v2715_v32 = vsel %vm2700_vm4, %v3770_v40, -1.0 }
 0xfdd   : > { %v2629_v34 = vpop.xlane.xlu0 %2628  ;;  %2736 = vmax.xlane.f32.xlu1 %v2715_v32 }
 0xfde   : > { %vm2646_vm5 = vcmp.lt.f32.partialorder %v3813_v38, %v2629_v34  ;;  %v2913_v34 = vmax.f32 %v2897_v23, 0.0 }
 0xfdf   : > { %v2661_v35 = vsel %vm2646_vm5, %v3813_v38, -1.0 }
 0xfe0   : > { %2688 = vmax.xlane.f32.xlu0 %v2661_v35  ;;  %v2895_v35 = vadd.f32 %v4729_v22, %v2875_v24  ;;  %2918 = vmatpush.msra.mxu1 %v2913_v34 }
 0xfe1   : > { %3312 = vmatpush.msrb.mxu3 %v2913_v34 }
 0xfe2   : > { %v2631_v36 = vpop.xlane.xlu1 %2630 }
 0xfe3   : > { %vm2647_vm6 = vcmp.lt.f32.partialorder %v3817_v43, %v2631_v36  ;;  %v2873_v36 = vmul.f32 %v4724_v62, %v2853_v27  ;;  %v2865_v27 = vmul.f32 %v4724_v62, %v2845_v55 }
 0xfe4   : > { %v2662_v14 = vsel %vm2647_vm6, %v3817_v43, -1.0 }
 0xfe5   : > { %2690 = vmax.xlane.f32.xlu1 %v2662_v14  ;;  %v2851_v14 = vld [vmem:[%s4717_s23 + $0x38] sm:$0xff] }
 0xfea   : > { %v2633_v37 = vpop.xlane.xlu1 %2632 }
 0xfeb   : > { %vm2648_vm7 = vcmp.lt.f32.partialorder %v3824_v45, %v2633_v37 }
 0xfec   : > { %v2663_v39 = vsel %vm2648_vm7, %v3824_v45, -1.0 }
 0xfed   : > { %2692 = vmax.xlane.f32.xlu1 %v2663_v39  ;;  %v2912_v39 = vmax.f32 %v2896_v56, 0.0  ;;  %v2885_v56 = vadd.f32 %v4729_v22, %v2865_v27 }
 0xfef   : > { %2919 = vmatpush.msra.mxu1 %v2912_v39  ;;  %3313 = vmatpush.msrb.mxu3 %v2912_v39 }
0x1020   : > { %v2725_v41 = vpop.xlane.xlu2 %2724 }
0x1021   : > { %vm2754_vm8 = vcmp.lt.f32.partialorder %v3707_v44, %v2725_v41  ;;  %v2894_v41 = vadd.f32 %v4729_v22, %v2874_v26 }
0x1022   : > { %v2769_v42 = vsel %vm2754_vm8, %v3707_v44, -1.0 }
0x1023   : > { %2784 = vmax.xlane.f32.xlu2 %v2769_v42  ;;  %v2872_v42 = vmul.f32 %v4724_v62, %v2852_v31 }
0x1028   : > { %v2727_v47 = vpop.xlane.xlu2 %2726 }
0x1029   : > { %vm2755_vm9 = vcmp.lt.f32.partialorder %v3717_v4, %v2727_v47  ;;  %v2850_v47 = vld [vmem:[%s4717_s23 + $0x30] sm:$0xff] }
0x102a   : > { %v2770_v13 = vsel %vm2755_vm9, %v3717_v4, -1.0 }
0x102b   : > { %2786 = vmax.xlane.f32.xlu2 %v2770_v13  ;;  %v2911_v13 = vmax.f32 %v2895_v35, 0.0  ;;  %v2901_v35 = vmax.f32 %v2885_v56, 0.0 }
0x102d   : > { %2920 = vmatpush.msra.mxu1 %v2911_v13  ;;  %3314 = vmatpush.msrb.mxu3 %v2911_v13 }
0x1030   : > { %v2679_v49 = vpop.xlane.xlu2 %2678  ;;  %v2729_v50 = vpop.xlane.xlu0 %2728 }
0x1031   : > { %vm2701_vm10 = vcmp.lt.f32.partialorder %v3775_v20, %v2679_v49  ;;  %vm2756_vm11 = vcmp.lt.f32.partialorder %v3726_v25, %v2729_v50  ;;  %v2893_v49 = vadd.f32 %v4729_v22, %v2873_v36  ;;  %v2871_v50 = vmul.f32 %v4724_v62, %v2851_v14  ;;  %v2844_v36 = vld [vmem:[%s4717_s23] sm:$0xff] }
0x1032   : > { %v2716_v51 = vsel %vm2701_vm10, %v3775_v20, -1.0  ;;  %v2771_v17 = vsel %vm2756_vm11, %v3726_v25, -1.0  ;;  %v2864_v14 = vmul.f32 %v4724_v62, %v2844_v36 }
0x1033   : > { %2738 = vmax.xlane.f32.xlu2 %v2716_v51  ;;  %2788 = vmax.xlane.f32.xlu0 %v2771_v17  ;;  %v2849_v17 = vld [vmem:[%s4717_s23 + $0x28] sm:$0xff] }
0x1034   : > { %v2869_v60 = vmul.f32 %v4724_v62, %v2849_v17  ;;  %v2981_v17 = vld [vmem:[%s4924_s6 + $0x18] sm:$0xff] }
0x1035   : > { %3039 = vmatpush.msra.mxu2 %v2981_v17 }
0x1036   : > { %v2889_v10 = vadd.f32 %v4729_v22, %v2869_v60 }
0x1038   : > { %v2681_v52 = vpop.xlane.xlu2 %2680  ;;  %v2731_v8 = vpop.xlane.xlu0 %2730  ;;  %v2905_v24 = vmax.f32 %v2889_v10, 0.0 }
0x1039   : > { %vm2702_vm12 = vcmp.lt.f32.partialorder %v3784_v18, %v2681_v52  ;;  %vm2757_vm13 = vcmp.lt.f32.partialorder %v3737_v46, %v2731_v8  ;;  %v2910_v52 = vmax.f32 %v2894_v41, 0.0  ;;  %v2892_v8 = vadd.f32 %v4729_v22, %v2872_v42 }
0x103a   : > { %v2717_v53 = vsel %vm2702_vm12, %v3784_v18, -1.0  ;;  %v2772_v2 = vsel %vm2757_vm13, %v3737_v46, -1.0 }
0x103b   : > { %v2683_v3 = vpop.xlane.xlu1 %2682  ;;  %2740 = vmax.xlane.f32.xlu2 %v2717_v53  ;;  %2790 = vmax.xlane.f32.xlu0 %v2772_v2  ;;  %v2870_v53 = vmul.f32 %v4724_v62, %v2850_v47  ;;  %v2848_v2 = vld [vmem:[%s4717_s23 + $0x20] sm:$0xff]  ;;  %v2908_v0 = vmax.f32 %v2892_v8, 0.0  ;;  %v2979_v8 = vld [vmem:[%s4924_s6 + $0x8] sm:$0xff] }
0x103c   : > { %vm2703_vm14 = vcmp.lt.f32.partialorder %v3792_v61, %v2683_v3  ;;  %2921 = vmatpush.msra.mxu1 %v2910_v52  ;;  %3315 = vmatpush.msrb.mxu3 %v2910_v52  ;;  %v2980_v52 = vld [vmem:[%s4924_s6 + $0x10] sm:$0xff] }
0x103d   : > { %v2718_v58 = vsel %vm2703_vm14, %v3792_v61, -1.0  ;;  %v2890_v1 = vadd.f32 %v4729_v22, %v2870_v53  ;;  %3040 = vmatpush.msra.mxu2 %v2980_v52 }
0x103e   : > { %2742 = vmax.xlane.f32.xlu1 %v2718_v58 }
0x103f   : > { %3041 = vmatpush.msra.mxu2 %v2979_v8 }
0x1040   : > { %v2733_v59 = vpop.xlane.xlu2 %2732 }
0x1041   : > { %vm2758_vm15 = vcmp.lt.f32.partialorder %v3748_v6, %v2733_v59  ;;  %v2909_v59 = vmax.f32 %v2893_v49, 0.0 }
0x1042   : > { %v2773_v63 = vsel %vm2758_vm15, %v3748_v6, -1.0 }
0x1043   : > { %v2685_v11 = vpop.xlane.xlu0 %2684  ;;  %2792 = vmax.xlane.f32.xlu2 %v2773_v63  ;;  %v2847_v63 = vld [vmem:[%s4717_s23 + $0x18] sm:$0xff]  ;;  %2922 = vmatpush.msra.mxu1 %v2909_v59 }
0x1044   : > { %vm2704_vm1 = vcmp.lt.f32.partialorder %v3799_v48, %v2685_v11  ;;  %v2891_v11 = vadd.f32 %v4729_v22, %v2871_v50  ;;  %v2867_v12 = vmul.f32 %v4724_v62, %v2847_v63  ;;  %3316 = vmatpush.msrb.mxu3 %v2909_v59 }
0x1045   : > { %v2719_v5 = vsel %vm2704_vm1, %v3799_v48, -1.0  ;;  %2923 = vmatpush.msra.mxu1 %v2908_v0 }
0x1046   : > { %2744 = vmax.xlane.f32.xlu0 %v2719_v5  ;;  %v2868_v5 = vmul.f32 %v4724_v62, %v2848_v2  ;;  %v2907_v9 = vmax.f32 %v2891_v11, 0.0  ;;  %v2887_v26 = vadd.f32 %v4729_v22, %v2867_v12  ;;  %3317 = vmatpush.msrb.mxu3 %v2908_v0 }
0x1048   : > { %v2735_v16 = vpop.xlane.xlu1 %2734  ;;  %v2888_v19 = vadd.f32 %v4729_v22, %v2868_v5  ;;  %2924 = vmatpush.msra.mxu1 %v2907_v9  ;;  %3318 = vmatpush.msrb.mxu3 %v2907_v9  ;;  %v2903_v57 = vmax.f32 %v2887_v26, 0.0 }
0x1049   : > { %vm2759_vm2 = vcmp.lt.f32.partialorder %v3761_v28, %v2735_v16  ;;  %v2906_v16 = vmax.f32 %v2890_v1, 0.0 }
0x104a   : > { %v2774_v29 = vsel %vm2759_vm2, %v3761_v28, -1.0 }
0x104b   : > { %2794 = vmax.xlane.f32.xlu1 %v2774_v29  ;;  %v2687_v32 = vpop.xlane.xlu0 %2686  ;;  %2925 = vmatpush.msra.mxu1 %v2906_v16  ;;  %v2904_v29 = vmax.f32 %v2888_v19, 0.0 }
0x104c   : > { %vm2705_vm3 = vcmp.lt.f32.partialorder %v3807_v54, %v2687_v32  ;;  %3319 = vmatpush.msrb.mxu3 %v2906_v16  ;;  %v2902_v32 = vmax.f32 %v2886_v30, 0.0 }
0x104d   : > { %v2720_v37 = vsel %vm2705_vm3, %v3807_v54, -1.0  ;;  %2926 = vmatpush.msra.mxu1 %v2905_v24 }
0x104e   : > { %2746 = vmax.xlane.f32.xlu2 %v2720_v37  ;;  %3320 = vmatpush.msrb.mxu3 %v2905_v24  ;;  %v2884_v37 = vadd.f32 %v4729_v22, %v2864_v14 }
0x104f   : > { %2927 = vmatpush.msra.mxu1 %v2904_v29 }
0x1050   : > { %v2737_v51 = vpop.xlane.xlu1 %2736  ;;  %3321 = vmatpush.msrb.mxu3 %v2904_v29  ;;  %v2900_v39 = vmax.f32 %v2884_v37, 0.0 }
0x1051   : > { %vm2760_vm4 = vcmp.lt.f32.partialorder %v3770_v40, %v2737_v51  ;;  %2928 = vmatpush.msra.mxu1 %v2903_v57 }
0x1052   : > { %v2775_v3 = vsel %vm2760_vm4, %v3770_v40, -1.0  ;;  %3322 = vmatpush.msrb.mxu3 %v2903_v57 }
0x1053   : > { %v2689_v58 = vpop.xlane.xlu0 %2688  ;;  %2796 = vmax.xlane.f32.xlu0 %v2775_v3  ;;  %2929 = vmatpush.msra.mxu1 %v2902_v32 }
0x1054   : > { %vm2706_vm5 = vcmp.lt.f32.partialorder %v3813_v38, %v2689_v58  ;;  %3323 = vmatpush.msrb.mxu3 %v2902_v32 }
0x1055   : > { %v2721_v33 = vsel %vm2706_vm5, %v3813_v38, -1.0  ;;  %2930 = vmatpush.msra.mxu1 %v2901_v35 }
0x1056   : > { %2748 = vmax.xlane.f32.xlu1 %v2721_v33  ;;  %3324 = vmatpush.msrb.mxu3 %v2901_v35 }
0x1057   : > { %2931 = vmatpush.msra.mxu1 %v2900_v39 }
0x1058   : > { %v2691_v15 = vpop.xlane.xlu1 %2690  ;;  %3325 = vmatpush.msrb.mxu3 %v2900_v39 }
0x1059   : > { %vm2707_vm6 = vcmp.lt.f32.partialorder %v3817_v43, %v2691_v15 }
0x105a   : > { %v2722_v23 = vsel %vm2707_vm6, %v3817_v43, -1.0 }
0x105b   : > { %2750 = vmax.xlane.f32.xlu2 %v2722_v23 }
0x1060   : > { %v2693_v31 = vpop.xlane.xlu1 %2692 }
0x1061   : > { %vm2708_vm7 = vcmp.lt.f32.partialorder %v3824_v45, %v2693_v31 }
0x1062   : > { %v2723_v34 = vsel %vm2708_vm7, %v3824_v45, -1.0 }
0x1063   : > { %2752 = vmax.xlane.f32.xlu1 %v2723_v34 }
0x1096   : > { %v2785_v41 = vpop.xlane.xlu2 %2784 }
0x1097   : > { %vm2814_vm8 = vcmp.ge.f32.partialorder %v3707_v44, %v2785_v41 }
0x1098   : > { %3260 = vmatmul.msk.f32.vlgmr.msra.gmra.mxu1 %vm2814_vm8, %v3707_v44 }
0x109e   : > { %v2787_v42 = vpop.xlane.xlu2 %2786 }
0x109f   : > { %vm2815_vm9 = vcmp.ge.f32.partialorder %v3717_v4, %v2787_v42 }
0x10a0   : > { %3261 = vmatmul.msk.f32.gmra.mxu1 %vm2815_vm9, %v3717_v4 }
0x10a6   : > { %v2739_v47 = vpop.xlane.xlu2 %2738  ;;  %v2789_v13 = vpop.xlane.xlu0 %2788 }
0x10a7   : > { %vm2761_vm10 = vcmp.lt.f32.partialorder %v3775_v20, %v2739_v47  ;;  %vm2816_vm11 = vcmp.ge.f32.partialorder %v3726_v25, %v2789_v13 }
0x10a8   : > { %v2776_v62 = vsel %vm2761_vm10, %v3775_v20, -1.0  ;;  %3262 = vmatmul.msk.f32.gmra.mxu1 %vm2816_vm11, %v3726_v25 }
0x10a9   : > { %2798 = vmax.xlane.f32.xlu0 %v2776_v62 }
0x10ae   : > { %v2741_v22 = vpop.xlane.xlu2 %2740  ;;  %v2791_v44 = vpop.xlane.xlu0 %2790 }
0x10af   : > { %vm2762_vm12 = vcmp.lt.f32.partialorder %v3784_v18, %v2741_v22  ;;  %vm2817_vm13 = vcmp.ge.f32.partialorder %v3737_v46, %v2791_v44 }
0x10b0   : > { %v2777_v49 = vsel %vm2762_vm12, %v3784_v18, -1.0  ;;  %3263 = vmatmul.msk.f32.gmra.mxu1 %vm2817_vm13, %v3737_v46 }
0x10b1   : > { %v2743_v4 = vpop.xlane.xlu1 %2742  ;;  %2800 = vmax.xlane.f32.xlu2 %v2777_v49 }
0x10b2   : > { %vm2763_vm14 = vcmp.lt.f32.partialorder %v3792_v61, %v2743_v4 }
0x10b3   : > { %v2778_v50 = vsel %vm2763_vm14, %v3792_v61, -1.0 }
0x10b4   : > { %2802 = vmax.xlane.f32.xlu0 %v2778_v50 }
0x10b6   : > { %v2793_v51 = vpop.xlane.xlu2 %2792 }
0x10b7   : > { %vm2818_vm15 = vcmp.ge.f32.partialorder %v3748_v6, %v2793_v51 }
0x10b8   : > { %3264 = vmatmul.msk.f32.gmra.mxu1 %vm2818_vm15, %v3748_v6 }
0x10b9   : > { %v2745_v25 = vpop.xlane.xlu0 %2744 }
0x10ba   : > { %vm2764_vm1 = vcmp.lt.f32.partialorder %v3799_v48, %v2745_v25 }
0x10bb   : > { %v2779_v46 = vsel %vm2764_vm1, %v3799_v48, -1.0 }
0x10bc   : > { %2804 = vmax.xlane.f32.xlu1 %v2779_v46 }
0x10be   : > { %v2795_v53 = vpop.xlane.xlu1 %2794 }
0x10bf   : > { %vm2819_vm2 = vcmp.ge.f32.partialorder %v3761_v28, %v2795_v53 }
0x10c0   : > { %3265 = vmatmul.msk.f32.gmra.mxu1 %vm2819_vm2, %v3761_v28 }
0x10c1   : > { %v2747_v3 = vpop.xlane.xlu2 %2746 }
0x10c2   : > { %vm2765_vm3 = vcmp.lt.f32.partialorder %v3807_v54, %v2747_v3 }
0x10c3   : > { %v2780_v6 = vsel %vm2765_vm3, %v3807_v54, -1.0 }
0x10c4   : > { %2806 = vmax.xlane.f32.xlu2 %v2780_v6 }
0x10c6   : > { %v2797_v2 = vpop.xlane.xlu0 %2796 }
0x10c7   : > { %vm2820_vm4 = vcmp.ge.f32.partialorder %v3770_v40, %v2797_v2 }
0x10c8   : > { %3266 = vmatmul.msk.f32.gmra.mxu1 %vm2820_vm4, %v3770_v40  ;;  %v2978_v40 = vld [vmem:[%s4924_s6] sm:$0xff] }
0x10c9   : > { %v2749_v58 = vpop.xlane.xlu1 %2748  ;;  %3042 = vmatpush.msra.mxu2 %v2978_v40 }
0x10ca   : > { %vm2766_vm5 = vcmp.lt.f32.partialorder %v3813_v38, %v2749_v58 }
0x10cb   : > { %v2781_v59 = vsel %vm2766_vm5, %v3813_v38, -1.0 }
0x10cc   : > { %2808 = vmax.xlane.f32.xlu0 %v2781_v59 }
0x10ce   : > { %v2751_v11 = vpop.xlane.xlu2 %2750 }
0x10cf   : > { %vm2767_vm6 = vcmp.lt.f32.partialorder %v3817_v43, %v2751_v11 }
0x10d0   : > { %v2782_v28 = vsel %vm2767_vm6, %v3817_v43, -1.0 }
0x10d1   : > { %2810 = vmax.xlane.f32.xlu1 %v2782_v28 }
0x10d6   : > { %v2753_v60 = vpop.xlane.xlu1 %2752 }
0x10d7   : > { %vm2768_vm7 = vcmp.lt.f32.partialorder %v3824_v45, %v2753_v60 }
0x10d8   : > { %v2783_v63 = vsel %vm2768_vm7, %v3824_v45, -1.0 }
0x10d9   : > { %2812 = vmax.xlane.f32.xlu2 %v2783_v63 }
0x1115   : > { %v2933_v33 = vpop.f32.mrf.mxu1 }
0x1116   : > { %3275 = vmatmul.msk.f32.vlgmr.msra.gmra.mxu2 %vm389_vm0, %v2933_v33 }
0x111c   : > { %v2799_v0 = vpop.xlane.xlu0 %2798 }
0x111d   : > { %vm2821_vm8 = vcmp.ge.f32.partialorder %v3775_v20, %v2799_v0  ;;  %v2936_v1 = vpop.f32.mrf.mxu1 }
0x111e   : > { %3267 = vmatmul.msk.f32.gmra.mxu1 %vm2821_vm8, %v3775_v20  ;;  %3276 = vmatmul.msk.f32.gmra.mxu2 %vm389_vm0, %v2936_v1 }
0x1124   : > { %v2801_v5 = vpop.xlane.xlu2 %2800 }
0x1125   : > { %vm2822_vm9 = vcmp.ge.f32.partialorder %v3784_v18, %v2801_v5  ;;  %v2939_v7 = vpop.f32.mrf.mxu1 }
0x1126   : > { %3268 = vmatmul.msk.f32.gmra.mxu1 %vm2822_vm9, %v3784_v18  ;;  %3277 = vmatmul.msk.f32.gmra.mxu2 %vm389_vm0, %v2939_v7 }
0x1127   : > { %v2803_v9 = vpop.xlane.xlu0 %2802 }
0x1128   : > { %vm2823_vm10 = vcmp.ge.f32.partialorder %v3792_v61, %v2803_v9 }
0x112d   : > { %v2942_v10 = vpop.f32.mrf.mxu1 }
0x112e   : > { %3269 = vmatmul.msk.f32.gmra.mxu1 %vm2823_vm10, %v3792_v61  ;;  %3278 = vmatmul.msk.f32.gmra.mxu2 %vm389_vm0, %v2942_v10 }
0x112f   : > { %v2805_v12 = vpop.xlane.xlu1 %2804 }
0x1130   : > { %vm2824_vm11 = vcmp.ge.f32.partialorder %v3799_v48, %v2805_v12 }
0x1135   : > { %v2945_v20 = vpop.f32.mrf.mxu1 }
0x1136   : > { %3270 = vmatmul.msk.f32.gmra.mxu1 %vm2824_vm11, %v3799_v48  ;;  %3279 = vmatmul.msk.f32.gmra.mxu2 %vm389_vm0, %v2945_v20 }
0x1137   : > { %v2807_v15 = vpop.xlane.xlu2 %2806 }
0x1138   : > { %vm2825_vm12 = vcmp.ge.f32.partialorder %v3807_v54, %v2807_v15 }
0x113d   : > { %v2948_v18 = vpop.f32.mrf.mxu1 }
0x113e   : > { %3271 = vmatmul.msk.f32.gmra.mxu1 %vm2825_vm12, %v3807_v54  ;;  %3280 = vmatmul.msk.f32.gmra.mxu2 %vm389_vm0, %v2948_v18 }
0x113f   : > { %v2809_v61 = vpop.xlane.xlu0 %2808 }
0x1140   : > { %vm2826_vm13 = vcmp.ge.f32.partialorder %v3813_v38, %v2809_v61 }
0x1144   : > { %v2811_v55 = vpop.xlane.xlu1 %2810 }
0x1145   : > { %vm2827_vm14 = vcmp.ge.f32.partialorder %v3817_v43, %v2811_v55  ;;  %v2951_v48 = vpop.f32.mrf.mxu1 }
0x1146   : > { %3272 = vmatmul.msk.f32.gmra.mxu1 %vm2826_vm13, %v3813_v38  ;;  %3273 = vmatmul.msk.f32.vlgmr.msrb.gmra.mxu3 %vm2827_vm14, %v3817_v43 }
0x1147   : > { %3281 = vmatmul.msk.f32.gmra.mxu2 %vm389_vm0, %v2951_v48 }
0x114c   : > { %v2813_v16 = vpop.xlane.xlu2 %2812 }
0x114d   : > { %vm2828_vm15 = vcmp.ge.f32.partialorder %v3824_v45, %v2813_v16 }
0x114e   : > { %3274 = vmatmul.msk.f32.gmra.mxu3 %vm2828_vm15, %v3824_v45 }
0x1199   : > { %v3044_v54 = vpop.f32.mrf.mxu2 }
0x119a   : > { %3089 = vst.msk [vmem:[%s4863_s22] sm:$0xff] %vm389_vm0, %v3044_v54 }
0x119b   : > { %v2954_v38 = vpop.f32.mrf.mxu1 }
0x119c   : > { %3282 = vmatmul.msk.f32.gmra.mxu2 %vm389_vm0, %v2954_v38 }
0x11a1   : > { %v3047_v43 = vpop.f32.mrf.mxu2 }
0x11a2   : > { %3090 = vst.msk [vmem:[%s4863_s22 + $0x8] sm:$0xff] %vm389_vm0, %v3047_v43 }
0x11a3   : > { %v2957_v45 = vpop.f32.mrf.mxu1 }
0x11a4   : > { %3283 = vmatmul.msk.f32.gmra.mxu2 %vm389_vm0, %v2957_v45 }
0x11a9   : > { %v3050_v19 = vpop.f32.mrf.mxu2 }
0x11aa   : > { %3091 = vst.msk [vmem:[%s4863_s22 + $0x10] sm:$0xff] %vm389_vm0, %v3050_v19 }
0x11ab   : > { %v2960_v21 = vpop.f32.mrf.mxu1 }
0x11ac   : > { %3284 = vmatmul.msk.f32.gmra.mxu2 %vm389_vm0, %v2960_v21 }
0x11b1   : > { %v3053_v23 = vpop.f32.mrf.mxu2 }
0x11b2   : > { %3092 = vst.msk [vmem:[%s4863_s22 + $0x18] sm:$0xff] %vm389_vm0, %v3053_v23 }
0x11b3   : > { %v2963_v24 = vpop.f32.mrf.mxu1 }
0x11b4   : > { %3285 = vmatmul.msk.f32.gmra.mxu2 %vm389_vm0, %v2963_v24 }
0x11b9   : > { %v3056_v26 = vpop.f32.mrf.mxu2 }
0x11ba   : > { %3093 = vst.msk [vmem:[%s4863_s22 + $0x20] sm:$0xff] %vm389_vm0, %v3056_v26 }
0x11bb   : > { %v2966_v27 = vpop.f32.mrf.mxu1 }
0x11bc   : > { %3286 = vmatmul.msk.f32.gmra.mxu2 %vm389_vm0, %v2966_v27 }
0x11c1   : > { %v3059_v29 = vpop.f32.mrf.mxu2 }
0x11c2   : > { %3094 = vst.msk [vmem:[%s4863_s22 + $0x28] sm:$0xff] %vm389_vm0, %v3059_v29 }
0x11c3   : > { %v2969_v30 = vpop.f32.mrf.mxu1 }
0x11c4   : > { %3287 = vmatmul.msk.f32.gmra.mxu2 %vm389_vm0, %v2969_v30 }
0x11c9   : > { %v2972_v57 = vpop.f32.mrf.mxu3 }
0x11ca   : > { %v3062_v56 = vpop.f32.mrf.mxu2 }
0x11cb   : > { %3095 = vst.msk [vmem:[%s4863_s22 + $0x30] sm:$0xff] %vm389_vm0, %v3062_v56 }
0x11cc   : > { %3288 = vmatmul.msk.f32.gmra.mxu2 %vm389_vm0, %v2972_v57 }
0x11d1   : > { %v2975_v31 = vpop.f32.mrf.mxu3 }
0x11d4   : > { %3289 = vmatmul.msk.f32.gmra.mxu2 %vm389_vm0, %v2975_v31 }
0x121f   : > { %v3065_v32 = vpop.f32.mrf.mxu2 }
0x1220   : > { %3096 = vst.msk [vmem:[%s4863_s22 + $0x38] sm:$0xff] %vm389_vm0, %v3065_v32 }
0x1227   : > { %v3068_v34 = vpop.f32.mrf.mxu2 }
0x1228   : > { %3097 = vst.msk [vmem:[%s4863_s22 + $0x40] sm:$0xff] %vm389_vm0, %v3068_v34 }
0x122f   : > { %v3071_v35 = vpop.f32.mrf.mxu2 }
0x1230   : > { %3098 = vst.msk [vmem:[%s4863_s22 + $0x48] sm:$0xff] %vm389_vm0, %v3071_v35 }
0x1237   : > { %v3074_v36 = vpop.f32.mrf.mxu2 }
0x1238   : > { %3099 = vst.msk [vmem:[%s4863_s22 + $0x50] sm:$0xff] %vm389_vm0, %v3074_v36 }
0x123f   : > { %v3077_v14 = vpop.f32.mrf.mxu2 }
0x1240   : > { %3100 = vst.msk [vmem:[%s4863_s22 + $0x58] sm:$0xff] %vm389_vm0, %v3077_v14 }
0x1247   : > { %v3080_v37 = vpop.f32.mrf.mxu2 }
0x1248   : > { %3101 = vst.msk [vmem:[%s4863_s22 + $0x60] sm:$0xff] %vm389_vm0, %v3080_v37 }
0x124f   : > { %v3083_v39 = vpop.f32.mrf.mxu2 }
0x1250   : > { %3102 = vst.msk [vmem:[%s4863_s22 + $0x68] sm:$0xff] %vm389_vm0, %v3083_v39 }
0x1257   : > { %v3086_v41 = vpop.f32.mrf.mxu2 }
0x1258   : > { %3103 = vst.msk [vmem:[%s4863_s22 + $0x70] sm:$0xff] %vm389_vm0, %v3086_v41 }
0x1259 PF: > { %s17_s28 = sadd.s32 1, %s3468_s28   ;;  %s4926_s24 = smov %s3460_s26 }
0x125a   : > { %p14_p7 = scmp.ge.s32.totalorder %s17_s28, 6   ;;  %s4927_s25 = smov %s3464_s27 }
0x125b   : > { %s4928_s26 = smov %s4931_s29  ;;  %s4929_s27 = smov %s4935_s30 }
0x125c   :  { %16 = sbr.rel (!%p14_p7) target bundleno = 3 (0x3), region = 84 }

</bundles_post_ra>
